<compile_context>
chip_gen: v5e
topology: v5e:2x2
jax: 0.10.0
libtpu: 0.0.40
codegen_flags: <defaults>
</compile_context>

<pallas_src>
import math

import numpy as np
import jax
import jax.numpy as jnp
from jax import lax
from jax.experimental import pallas as pl
from jax.experimental.pallas import tpu as pltpu  # TPU backend / memory spaces

EMOTION_COUNT = 6  # len(Emotion) in covergan; only used when has_emotions=True
_LN_EPS = 1e-5


# ---------------------------------------------------------------------------
# Init-time constant builders (numpy)
# ---------------------------------------------------------------------------
def _blur_matrix(n: int, ksize: int, sigma: float) -> np.ndarray:
    """Dense (n, n) matrix M with (M @ x) == 1-D gaussian blur of x, reflect pad."""
    half = (ksize - 1) * 0.5
    xs = np.linspace(-half, half, ksize)
    pdf = np.exp(-0.5 * (xs / sigma) ** 2)
    k1d = pdf / pdf.sum()
    pad = ksize // 2
    M = np.zeros((n, n), np.float64)
    for i in range(n):
        for t in range(ksize):
            j = i - pad + t
            if j < 0:
                j = -j
            elif j >= n:
                j = 2 * (n - 1) - j
            M[i, j] += k1d[t]
    return M.astype(np.float32)


def _gather_matrix(h_in: int, w_in: int, k: int, s: int, p: int,
                   oh: int, ow: int) -> np.ndarray:
    """0/1 matrix G (h_in*w_in, k*k*oh*ow): for an image laid out (C, h_in*w_in),
    `x @ G` is the zero-padded im2col gather, column order ((kh, kw), (oh, ow))."""
    P = oh * ow
    G = np.zeros((h_in * w_in, k * k * P), np.float32)
    for kh in range(k):
        for kw in range(k):
            off = kh * k + kw
            for i in range(oh):
                hh = s * i + kh - p
                if hh < 0 or hh >= h_in:
                    continue
                for j in range(ow):
                    ww = s * j + kw - p
                    if ww < 0 or ww >= w_in:
                        continue
                    G[hh * w_in + ww, off * P + i * ow + j] = 1.0
    return G


# ---------------------------------------------------------------------------
# Pallas call 1: gaussian blur for the whole batch (grid-free)
# ---------------------------------------------------------------------------
def _blur_kernel(x_ref, mwT_ref, mh_ref, o_ref):
    # x_ref: (B*C*H, W) bf16, mwT/mh: (W, W)/(H, H) bf16, o_ref: (B*C, H, W) bf16
    R, H, W = o_ref.shape
    xw = jnp.dot(x_ref[...], mwT_ref[...],
                 preferred_element_type=jnp.float32).astype(jnp.bfloat16)
    mh = mh_ref[...]
    for r in range(R):  # static unroll over B*C images
        row = jnp.dot(mh, xw[r * H:(r + 1) * H, :],
                      preferred_element_type=jnp.float32)
        o_ref[r] = row.astype(jnp.bfloat16)


# ---------------------------------------------------------------------------
# Pallas call 2: fused conv stack (+LayerNorm +LeakyReLU) + linear head
# ---------------------------------------------------------------------------
def _make_main_kernel(batch, conv_cfg, n_head, has_emotions):
    n_conv = len(conv_cfg)

    def _ln_lrelu(y, w, b, slope):
        # LayerNorm over the spatial axis (per channel), f32 epilogue.
        mean = jnp.mean(y, axis=1, keepdims=True)
        yc = y - mean
        var = jnp.mean(yc * yc, axis=1, keepdims=True)
        yn = yc * lax.rsqrt(var + _LN_EPS) * w + b
        return jnp.where(yn > 0, yn, slope * yn)

    def kernel(*refs):
        out_ref = refs[-1]
        it = iter(refs[:-1])

        # ---- load everything into VMEM-resident values once ----
        patches = next(it)[...]                    # (K1, B*P1) bf16
        audio = next(it)[...]                      # (A, B) f32
        emo = next(it)[...] if has_emotions else None
        conv_w = []
        for li in range(n_conv):
            if li == 0:
                conv_w.append((next(it)[...], next(it)[...], next(it)[...]))
            else:
                conv_w.append((next(it)[...], next(it)[...],
                               next(it)[...], next(it)[...]))
        hw_conv = next(it)[...]                    # (P_last, F0, C_last) f32
        hw_audio = next(it)[...]                   # (F0, A) f32
        hw_emo = next(it)[...] if has_emotions else None
        hb0 = next(it)[...]                        # (F0, 1) f32
        head_rest = []
        for _ in range(n_head - 1):
            head_rest.append((next(it)[...], next(it)[...]))

        P0 = conv_cfg[0]["p_out"]
        p_last = conv_cfg[-1]["p_out"]

        for b in range(batch):                     # static unroll over batch
            # -- conv layer 0: patch matrix comes from the wrapper (lane dense) --
            wmat, lnw, lnb = conv_w[0]
            y = jnp.dot(wmat, patches[:, b * P0:(b + 1) * P0],
                        preferred_element_type=jnp.float32)
            y = _ln_lrelu(y, lnw, lnb, 0.1)

            # -- conv layers >= 1: in-kernel gather (0/1 matmul) + per-offset dots --
            for li in range(1, n_conv):
                gT, w_off, lnw, lnb = conv_w[li]
                lc = conv_cfg[li]
                k2 = lc["k"] * lc["k"]
                P = lc["p_out"]
                m = jnp.dot(y.astype(jnp.bfloat16), gT,
                            preferred_element_type=jnp.float32)
                m = m.astype(jnp.bfloat16)         # (C_in, k2*P) im2col patches
                acc = jnp.dot(w_off[0], m[:, :P],
                              preferred_element_type=jnp.float32)
                for j in range(1, k2):
                    acc = acc + jnp.dot(w_off[j], m[:, j * P:(j + 1) * P],
                                        preferred_element_type=jnp.float32)
                y = _ln_lrelu(acc, lnw, lnb, 0.1)  # (C_out, P) f32

            # -- fused linear head (first Linear split conv/audio/emotion) --
            z = hb0
            for pi in range(p_last):
                z = z + jnp.dot(hw_conv[pi], y[:, pi:pi + 1],
                                preferred_element_type=jnp.float32)
            z = z + jnp.dot(hw_audio, audio[:, b:b + 1],
                            preferred_element_type=jnp.float32)
            if has_emotions:
                z = z + jnp.dot(hw_emo, emo[:, b:b + 1],
                                preferred_element_type=jnp.float32)
            if n_head > 1:
                z = jnp.where(z > 0, z, 0.2 * z)
                # TODO(synk): Dropout2d(0.2) is identity in eval mode; training-mode dropout not modeled.
                for hi, (wr, br) in enumerate(head_rest):
                    z = jnp.dot(wr, z, preferred_element_type=jnp.float32) + br
                    if hi < len(head_rest) - 1:
                        z = jnp.where(z > 0, z, 0.2 * z)
            out_ref[b:b + 1, :] = z                # (1, 1) logit for image b

    return kernel


# ---------------------------------------------------------------------------
# Discriminator
# ---------------------------------------------------------------------------
class DiscriminatorPallas:
    def __init__(self, canvas_size, audio_embedding_dim, has_emotions,
                 num_conv_layers, num_linear_layers, key):
        self.has_emotions = has_emotions
        self.audio_dim = audio_embedding_dim

        # --- blur matrices (torchvision gaussian_blur, kernel_size=29) ---
        ksize = 29
        sigma = 0.3 * ((ksize - 1) * 0.5 - 1) + 0.8
        M = _blur_matrix(canvas_size, ksize, sigma)
        params = {"mh": jnp.asarray(M, jnp.bfloat16),
                  "mwT": jnp.asarray(M.T, jnp.bfloat16)}

        # --- conv stack ---
        in_ch = 3
        out_ch = in_ch * 8
        double_ch = True
        k, s, p = 6, 4, 1
        ds = canvas_size
        conv_cfg, conv_params = [], []
        for i in range(num_conv_layers):
            h_in = ds
            ds = (ds + 2 * p - k) // s + 1
            key, wk = jax.random.split(key)
            # TODO(synk): init is normal*0.05, not PyTorch's default kaiming-uniform.
            w = jax.random.normal(wk, (out_ch, in_ch, k, k), jnp.float32) * 0.05
            lp = {"ln_w": jnp.ones((1, ds * ds), jnp.float32),     # torch LN init
                  "ln_b": jnp.zeros((1, ds * ds), jnp.float32)}
            if i == 0:
                lp["wmat"] = w.reshape(out_ch, in_ch * k * k).astype(jnp.bfloat16)
            else:
                lp["w_off"] = jnp.transpose(w, (2, 3, 0, 1)).reshape(
                    k * k, out_ch, in_ch).astype(jnp.bfloat16)
                # NOTE: gather matrix is (h_in^2, k^2*ds^2); fine for post-conv1
                # spatial sizes (<=16x16 here), revisit for very large canvases.
                lp["gT"] = jnp.asarray(
                    _gather_matrix(h_in, h_in, k, s, p, ds, ds), jnp.bfloat16)
            conv_params.append(lp)
            conv_cfg.append(dict(k=k, s=s, p=p, in_ch=in_ch, out_ch=out_ch,
                                 h_in=h_in, ds=ds, p_out=ds * ds))
            in_ch = out_ch
            if double_ch:
                out_ch *= 2
                double_ch = False
            else:
                double_ch = True
            k = max(k - 1, 3)
            s = max(s - 1, 2)
        params["conv"] = conv_params
        self.conv_cfg = conv_cfg

        # --- linear head ---
        c_last = conv_cfg[-1]["out_ch"]
        p_last = conv_cfg[-1]["p_out"]
        img_dim = c_last * p_last
        in_f = img_dim + audio_embedding_dim
        if has_emotions:
            in_f += EMOTION_COUNT

        head_params, head_cfg = [], []
        n_hidden = num_linear_layers - 1
        for li in range(num_linear_layers):
            out_f = (in_f // 64) if li < n_hidden else 1
            key, wk, bk = jax.random.split(key, 3)
            wfull = jax.random.normal(wk, (out_f, in_f), jnp.float32) / math.sqrt(in_f)
            bias = (jax.random.normal(bk, (out_f,), jnp.float32) * 0.01).reshape(out_f, 1)
            if li == 0:
                w_conv = wfull[:, :img_dim].reshape(out_f, c_last, p_last)
                hp = {"w_conv": jnp.transpose(w_conv, (2, 0, 1)),       # (P_last, F0, C_last)
                      "w_audio": wfull[:, img_dim:img_dim + audio_embedding_dim],
                      "b": bias}
                if has_emotions:
                    hp["w_emo"] = wfull[:, img_dim + audio_embedding_dim:]
            else:
                hp = {"w": wfull, "b": bias}
            head_params.append(hp)
            head_cfg.append((in_f, out_f))
            in_f = out_f
        params["head"] = head_params
        self.head_cfg = head_cfg

        self.params = params
        self._forward = jax.jit(self._forward_impl)

    # -------------------------------------------------------------------
    def _forward_impl(self, params, img, audio_embedding, emotions):
        B, C, H, W = img.shape
        cfg0 = self.conv_cfg[0]

        # --- Pallas call 1: gaussian blur, whole batch, grid-free, bf16 in/out ---
        x2d = img.astype(jnp.bfloat16).reshape(B * C * H, W)
        blurred = pl.pallas_call(
            _blur_kernel,
            out_shape=jax.ShapeDtypeStruct((B * C, H, W), jnp.bfloat16),
        )(x2d, params["mwT"], params["mh"])

        # --- XLA glue: im2col for conv layer 0 only (lane-dense (K1, B*P1)) ---
        k, s, p = cfg0["k"], cfg0["s"], cfg0["p"]
        oh = cfg0["ds"]
        xp = jnp.pad(blurred.reshape(B, C, H, W), ((0, 0), (0, 0), (p, p), (p, p)))
        cols = [xp[:, :, i:i + s * (oh - 1) + 1:s, j:j + s * (oh - 1) + 1:s]
                for i in range(k) for j in range(k)]
        pat = jnp.stack(cols, axis=2)                       # (B, C, k*k, oh, ow)
        pat = pat.transpose(1, 2, 0, 3, 4).reshape(C * k * k, B * oh * oh)

        # --- Pallas call 2: fused conv stack + layer norms + linear head ---
        args = [pat, jnp.transpose(audio_embedding).astype(jnp.float32)]
        if self.has_emotions:
            args.append(jnp.transpose(emotions).astype(jnp.float32))
        for li, lp in enumerate(params["conv"]):
            if li == 0:
                args += [lp["wmat"], lp["ln_w"], lp["ln_b"]]
            else:
                args += [lp["gT"], lp["w_off"], lp["ln_w"], lp["ln_b"]]
        hp0 = params["head"][0]
        args += [hp0["w_conv"], hp0["w_audio"]]
        if self.has_emotions:
            args.append(hp0["w_emo"])
        args.append(hp0["b"])
        for hp in params["head"][1:]:
            args += [hp["w"], hp["b"]]

        kernel = _make_main_kernel(B, self.conv_cfg, len(self.head_cfg),
                                   self.has_emotions)
        validity = pl.pallas_call(
            kernel,
            out_shape=jax.ShapeDtypeStruct((B, 1), jnp.float32),
        )(*args)
        return validity

    def __call__(self, img, audio_embedding, emotions=None):
        return self._forward(self.params, img, audio_embedding, emotions)


if __name__ == "__main__":
    canvas_size = 64
    audio_embedding_dim = 64
    has_emotions = False
    num_conv_layers = 3
    num_linear_layers = 2
    batch = 2

    key = jax.random.PRNGKey(0)
    key, pk, ik, ak = jax.random.split(key, 4)

    disc = DiscriminatorPallas(canvas_size, audio_embedding_dim, has_emotions,
                               num_conv_layers, num_linear_layers, pk)

    img = jax.random.uniform(ik, (batch, 3, canvas_size, canvas_size), jnp.float32)
    audio = jax.random.normal(ak, (batch, audio_embedding_dim), jnp.float32)

    validity = disc(img, audio, None)
    validity = jax.block_until_ready(validity)

    assert validity.shape == (batch, 1), validity.shape
    assert not bool(jnp.any(jnp.isnan(validity)))  # mirrors the torch assert
    print("KERNEL_OK")
</pallas_src>

<mosaic_0001>
module attributes {stable_mosaic.version = 11 : i64} {
  func.func @_blur_kernel(%arg0: memref<384x64xbf16, #tpu.memory_space<vmem>>, %arg1: memref<64x64xbf16, #tpu.memory_space<vmem>>, %arg2: memref<64x64xbf16, #tpu.memory_space<vmem>>, %arg3: memref<6x64x64xbf16, #tpu.memory_space<vmem>>) attributes {dimension_semantics = [], scalar_prefetch = 0 : i64, scratch_operands = 0 : i64, tpu.core_type = #tpu.core_type<tc>} {
    %c0 = arith.constant 0 : index
    %c0_0 = arith.constant 0 : index
    %0 = vector.load %arg0[%c0, %c0_0] : memref<384x64xbf16, #tpu.memory_space<vmem>>, vector<384x64xbf16>
    %c0_1 = arith.constant 0 : index
    %c0_2 = arith.constant 0 : index
    %1 = vector.load %arg1[%c0_1, %c0_2] : memref<64x64xbf16, #tpu.memory_space<vmem>>, vector<64x64xbf16>
    %cst = arith.constant dense<0.000000e+00> : vector<384x64xf32>
    %2 = tpu.matmul %0, %1, %cst {dimension_numbers = #tpu.dot_dimension_numbers<[1], [0], [0], [1], [0, 0, 1, 1], [], []>} : vector<384x64xbf16>, vector<64x64xbf16>, vector<384x64xf32> -> vector<384x64xf32>
    %3 = arith.truncf %2 : vector<384x64xf32> to vector<384x64xbf16>
    %c0_3 = arith.constant 0 : index
    %c0_4 = arith.constant 0 : index
    %4 = vector.load %arg2[%c0_3, %c0_4] : memref<64x64xbf16, #tpu.memory_space<vmem>>, vector<64x64xbf16>
    %5 = vector.extract_strided_slice %3 {offsets = [0, 0], sizes = [64, 64], strides = [1, 1]} : vector<384x64xbf16> to vector<64x64xbf16>
    %cst_5 = arith.constant dense<0.000000e+00> : vector<64x64xf32>
    %6 = tpu.matmul %4, %5, %cst_5 {dimension_numbers = #tpu.dot_dimension_numbers<[1], [0], [0], [1], [0, 0, 1, 1], [], []>} : vector<64x64xbf16>, vector<64x64xbf16>, vector<64x64xf32> -> vector<64x64xf32>
    %7 = arith.truncf %6 : vector<64x64xf32> to vector<64x64xbf16>
    %c0_6 = arith.constant 0 : index
    %c0_7 = arith.constant 0 : index
    %c0_8 = arith.constant 0 : index
    %8 = vector.load %arg3[%c0_6, %c0_7, %c0_8] : memref<6x64x64xbf16, #tpu.memory_space<vmem>>, vector<1x64x64xbf16>
    %9 = vector.shape_cast %8 : vector<1x64x64xbf16> to vector<64x64xbf16>
    %10 = vector.shape_cast %7 : vector<64x64xbf16> to vector<1x64x64xbf16>
    tpu.vector_store %arg3[%c0_6, %c0_7, %c0_8], %10 {strides = array<i32>} : memref<6x64x64xbf16, #tpu.memory_space<vmem>>, vector<1x64x64xbf16>,
    %11 = vector.extract_strided_slice %3 {offsets = [64, 0], sizes = [64, 64], strides = [1, 1]} : vector<384x64xbf16> to vector<64x64xbf16>
    %cst_9 = arith.constant dense<0.000000e+00> : vector<64x64xf32>
    %12 = tpu.matmul %4, %11, %cst_9 {dimension_numbers = #tpu.dot_dimension_numbers<[1], [0], [0], [1], [0, 0, 1, 1], [], []>} : vector<64x64xbf16>, vector<64x64xbf16>, vector<64x64xf32> -> vector<64x64xf32>
    %13 = arith.truncf %12 : vector<64x64xf32> to vector<64x64xbf16>
    %c1 = arith.constant 1 : index
    %c0_10 = arith.constant 0 : index
    %c0_11 = arith.constant 0 : index
    %14 = vector.load %arg3[%c1, %c0_10, %c0_11] : memref<6x64x64xbf16, #tpu.memory_space<vmem>>, vector<1x64x64xbf16>
    %15 = vector.shape_cast %14 : vector<1x64x64xbf16> to vector<64x64xbf16>
    %16 = vector.shape_cast %13 : vector<64x64xbf16> to vector<1x64x64xbf16>
    tpu.vector_store %arg3[%c1, %c0_10, %c0_11], %16 {strides = array<i32>} : memref<6x64x64xbf16, #tpu.memory_space<vmem>>, vector<1x64x64xbf16>,
    %17 = vector.extract_strided_slice %3 {offsets = [128, 0], sizes = [64, 64], strides = [1, 1]} : vector<384x64xbf16> to vector<64x64xbf16>
    %cst_12 = arith.constant dense<0.000000e+00> : vector<64x64xf32>
    %18 = tpu.matmul %4, %17, %cst_12 {dimension_numbers = #tpu.dot_dimension_numbers<[1], [0], [0], [1], [0, 0, 1, 1], [], []>} : vector<64x64xbf16>, vector<64x64xbf16>, vector<64x64xf32> -> vector<64x64xf32>
    %19 = arith.truncf %18 : vector<64x64xf32> to vector<64x64xbf16>
    %c2 = arith.constant 2 : index
    %c0_13 = arith.constant 0 : index
    %c0_14 = arith.constant 0 : index
    %20 = vector.load %arg3[%c2, %c0_13, %c0_14] : memref<6x64x64xbf16, #tpu.memory_space<vmem>>, vector<1x64x64xbf16>
    %21 = vector.shape_cast %20 : vector<1x64x64xbf16> to vector<64x64xbf16>
    %22 = vector.shape_cast %19 : vector<64x64xbf16> to vector<1x64x64xbf16>
    tpu.vector_store %arg3[%c2, %c0_13, %c0_14], %22 {strides = array<i32>} : memref<6x64x64xbf16, #tpu.memory_space<vmem>>, vector<1x64x64xbf16>,
    %23 = vector.extract_strided_slice %3 {offsets = [192, 0], sizes = [64, 64], strides = [1, 1]} : vector<384x64xbf16> to vector<64x64xbf16>
    %cst_15 = arith.constant dense<0.000000e+00> : vector<64x64xf32>
    %24 = tpu.matmul %4, %23, %cst_15 {dimension_numbers = #tpu.dot_dimension_numbers<[1], [0], [0], [1], [0, 0, 1, 1], [], []>} : vector<64x64xbf16>, vector<64x64xbf16>, vector<64x64xf32> -> vector<64x64xf32>
    %25 = arith.truncf %24 : vector<64x64xf32> to vector<64x64xbf16>
    %c3 = arith.constant 3 : index
    %c0_16 = arith.constant 0 : index
    %c0_17 = arith.constant 0 : index
    %26 = vector.load %arg3[%c3, %c0_16, %c0_17] : memref<6x64x64xbf16, #tpu.memory_space<vmem>>, vector<1x64x64xbf16>
    %27 = vector.shape_cast %26 : vector<1x64x64xbf16> to vector<64x64xbf16>
    %28 = vector.shape_cast %25 : vector<64x64xbf16> to vector<1x64x64xbf16>
    tpu.vector_store %arg3[%c3, %c0_16, %c0_17], %28 {strides = array<i32>} : memref<6x64x64xbf16, #tpu.memory_space<vmem>>, vector<1x64x64xbf16>,
    %29 = vector.extract_strided_slice %3 {offsets = [256, 0], sizes = [64, 64], strides = [1, 1]} : vector<384x64xbf16> to vector<64x64xbf16>
    %cst_18 = arith.constant dense<0.000000e+00> : vector<64x64xf32>
    %30 = tpu.matmul %4, %29, %cst_18 {dimension_numbers = #tpu.dot_dimension_numbers<[1], [0], [0], [1], [0, 0, 1, 1], [], []>} : vector<64x64xbf16>, vector<64x64xbf16>, vector<64x64xf32> -> vector<64x64xf32>
    %31 = arith.truncf %30 : vector<64x64xf32> to vector<64x64xbf16>
    %c4 = arith.constant 4 : index
    %c0_19 = arith.constant 0 : index
    %c0_20 = arith.constant 0 : index
    %32 = vector.load %arg3[%c4, %c0_19, %c0_20] : memref<6x64x64xbf16, #tpu.memory_space<vmem>>, vector<1x64x64xbf16>
    %33 = vector.shape_cast %32 : vector<1x64x64xbf16> to vector<64x64xbf16>
    %34 = vector.shape_cast %31 : vector<64x64xbf16> to vector<1x64x64xbf16>
    tpu.vector_store %arg3[%c4, %c0_19, %c0_20], %34 {strides = array<i32>} : memref<6x64x64xbf16, #tpu.memory_space<vmem>>, vector<1x64x64xbf16>,
    %35 = vector.extract_strided_slice %3 {offsets = [320, 0], sizes = [64, 64], strides = [1, 1]} : vector<384x64xbf16> to vector<64x64xbf16>
    %cst_21 = arith.constant dense<0.000000e+00> : vector<64x64xf32>
    %36 = tpu.matmul %4, %35, %cst_21 {dimension_numbers = #tpu.dot_dimension_numbers<[1], [0], [0], [1], [0, 0, 1, 1], [], []>} : vector<64x64xbf16>, vector<64x64xbf16>, vector<64x64xf32> -> vector<64x64xf32>
    %37 = arith.truncf %36 : vector<64x64xf32> to vector<64x64xbf16>
    %c5 = arith.constant 5 : index
    %c0_22 = arith.constant 0 : index
    %c0_23 = arith.constant 0 : index
    %38 = vector.load %arg3[%c5, %c0_22, %c0_23] : memref<6x64x64xbf16, #tpu.memory_space<vmem>>, vector<1x64x64xbf16>
    %39 = vector.shape_cast %38 : vector<1x64x64xbf16> to vector<64x64xbf16>
    %40 = vector.shape_cast %37 : vector<64x64xbf16> to vector<1x64x64xbf16>
    tpu.vector_store %arg3[%c5, %c0_22, %c0_23], %40 {strides = array<i32>} : memref<6x64x64xbf16, #tpu.memory_space<vmem>>, vector<1x64x64xbf16>,
    return
  }
}

module attributes {stable_mosaic.version = 11 : i64} {
  func.func @kernel(%arg0: memref<108x512xbf16, #tpu.memory_space<vmem>>, %arg1: memref<64x2xf32, #tpu.memory_space<vmem>>, %arg2: memref<24x108xbf16, #tpu.memory_space<vmem>>, %arg3: memref<1x256xf32, #tpu.memory_space<vmem>>, %arg4: memref<1x256xf32, #tpu.memory_space<vmem>>, %arg5: memref<256x625xbf16, #tpu.memory_space<vmem>>, %arg6: memref<25x48x24xbf16, #tpu.memory_space<vmem>>, %arg7: memref<1x25xf32, #tpu.memory_space<vmem>>, %arg8: memref<1x25xf32, #tpu.memory_space<vmem>>, %arg9: memref<25x64xbf16, #tpu.memory_space<vmem>>, %arg10: memref<16x48x48xbf16, #tpu.memory_space<vmem>>, %arg11: memref<1x4xf32, #tpu.memory_space<vmem>>, %arg12: memref<1x4xf32, #tpu.memory_space<vmem>>, %arg13: memref<4x4x48xf32, #tpu.memory_space<vmem>>, %arg14: memref<4x64xf32, #tpu.memory_space<vmem>>, %arg15: memref<4x1xf32, #tpu.memory_space<vmem>>, %arg16: memref<1x4xf32, #tpu.memory_space<vmem>>, %arg17: memref<1x1xf32, #tpu.memory_space<vmem>>, %arg18: memref<2x1xf32, #tpu.memory_space<vmem>>) attributes {dimension_semantics = [], scalar_prefetch = 0 : i64, scratch_operands = 0 : i64, tpu.core_type = #tpu.core_type<tc>} {
    %c0 = arith.constant 0 : index
    %c0_0 = arith.constant 0 : index
    %0 = vector.load %arg0[%c0, %c0_0] : memref<108x512xbf16, #tpu.memory_space<vmem>>, vector<108x512xbf16>
    %c0_1 = arith.constant 0 : index
    %c0_2 = arith.constant 0 : index
    %1 = vector.load %arg1[%c0_1, %c0_2] : memref<64x2xf32, #tpu.memory_space<vmem>>, vector<64x2xf32>
    %c0_3 = arith.constant 0 : index
    %c0_4 = arith.constant 0 : index
    %2 = vector.load %arg2[%c0_3, %c0_4] : memref<24x108xbf16, #tpu.memory_space<vmem>>, vector<24x108xbf16>
    %c0_5 = arith.constant 0 : index
    %c0_6 = arith.constant 0 : index
    %3 = vector.load %arg3[%c0_5, %c0_6] : memref<1x256xf32, #tpu.memory_space<vmem>>, vector<1x256xf32>
    %c0_7 = arith.constant 0 : index
    %c0_8 = arith.constant 0 : index
    %4 = vector.load %arg4[%c0_7, %c0_8] : memref<1x256xf32, #tpu.memory_space<vmem>>, vector<1x256xf32>
    %c0_9 = arith.constant 0 : index
    %c0_10 = arith.constant 0 : index
    %5 = vector.load %arg5[%c0_9, %c0_10] : memref<256x625xbf16, #tpu.memory_space<vmem>>, vector<256x625xbf16>
    %c0_11 = arith.constant 0 : index
    %c0_12 = arith.constant 0 : index
    %c0_13 = arith.constant 0 : index
    %6 = vector.load %arg6[%c0_11, %c0_12, %c0_13] : memref<25x48x24xbf16, #tpu.memory_space<vmem>>, vector<25x48x24xbf16>
    %c0_14 = arith.constant 0 : index
    %c0_15 = arith.constant 0 : index
    %7 = vector.load %arg7[%c0_14, %c0_15] : memref<1x25xf32, #tpu.memory_space<vmem>>, vector<1x25xf32>
    %c0_16 = arith.constant 0 : index
    %c0_17 = arith.constant 0 : index
    %8 = vector.load %arg8[%c0_16, %c0_17] : memref<1x25xf32, #tpu.memory_space<vmem>>, vector<1x25xf32>
    %c0_18 = arith.constant 0 : index
    %c0_19 = arith.constant 0 : index
    %9 = vector.load %arg9[%c0_18, %c0_19] : memref<25x64xbf16, #tpu.memory_space<vmem>>, vector<25x64xbf16>
    %c0_20 = arith.constant 0 : index
    %c0_21 = arith.constant 0 : index
    %c0_22 = arith.constant 0 : index
    %10 = vector.load %arg10[%c0_20, %c0_21, %c0_22] : memref<16x48x48xbf16, #tpu.memory_space<vmem>>, vector<16x48x48xbf16>
    %c0_23 = arith.constant 0 : index
    %c0_24 = arith.constant 0 : index
    %11 = vector.load %arg11[%c0_23, %c0_24] : memref<1x4xf32, #tpu.memory_space<vmem>>, vector<1x4xf32>
    %c0_25 = arith.constant 0 : index
    %c0_26 = arith.constant 0 : index
    %12 = vector.load %arg12[%c0_25, %c0_26] : memref<1x4xf32, #tpu.memory_space<vmem>>, vector<1x4xf32>
    %c0_27 = arith.constant 0 : index
    %c0_28 = arith.constant 0 : index
    %c0_29 = arith.constant 0 : index
    %13 = vector.load %arg13[%c0_27, %c0_28, %c0_29] : memref<4x4x48xf32, #tpu.memory_space<vmem>>, vector<4x4x48xf32>
    %c0_30 = arith.constant 0 : index
    %c0_31 = arith.constant 0 : index
    %14 = vector.load %arg14[%c0_30, %c0_31] : memref<4x64xf32, #tpu.memory_space<vmem>>, vector<4x64xf32>
    %c0_32 = arith.constant 0 : index
    %c0_33 = arith.constant 0 : index
    %15 = vector.load %arg15[%c0_32, %c0_33] : memref<4x1xf32, #tpu.memory_space<vmem>>, vector<4x1xf32>
    %c0_34 = arith.constant 0 : index
    %c0_35 = arith.constant 0 : index
    %16 = vector.load %arg16[%c0_34, %c0_35] : memref<1x4xf32, #tpu.memory_space<vmem>>, vector<1x4xf32>
    %c0_36 = arith.constant 0 : index
    %c0_37 = arith.constant 0 : index
    %17 = vector.load %arg17[%c0_36, %c0_37] : memref<1x1xf32, #tpu.memory_space<vmem>>, vector<1x1xf32>
    %18 = vector.extract_strided_slice %0 {offsets = [0, 0], sizes = [108, 256], strides = [1, 1]} : vector<108x512xbf16> to vector<108x256xbf16>
    %cst = arith.constant dense<0.000000e+00> : vector<24x256xf32>
    %19 = tpu.matmul %2, %18, %cst {dimension_numbers = #tpu.dot_dimension_numbers<[1], [0], [0], [1], [0, 0, 1, 1], [], []>} : vector<24x108xbf16>, vector<108x256xbf16>, vector<24x256xf32> -> vector<24x256xf32>
    %cst_38 = arith.constant dense<0.000000e+00> : vector<24xf32>
    %20 = vector.multi_reduction <add>, %19, %cst_38 [1] : vector<24x256xf32> to vector<24xf32>
    %21 = vector.shape_cast %20 : vector<24xf32> to vector<24x1xf32>
    %cst_39 = arith.constant 2.560000e+02 : f32
    %22 = vector.broadcast %cst_39 : f32 to vector<24x1xf32>
    %23 = arith.divf %21, %22 : vector<24x1xf32>
    %24 = vector.broadcast %23 : vector<24x1xf32> to vector<24x256xf32>
    %25 = arith.subf %19, %24 : vector<24x256xf32>
    %26 = arith.mulf %25, %25 : vector<24x256xf32>
    %cst_40 = arith.constant dense<0.000000e+00> : vector<24xf32>
    %27 = vector.multi_reduction <add>, %26, %cst_40 [1] : vector<24x256xf32> to vector<24xf32>
    %28 = vector.shape_cast %27 : vector<24xf32> to vector<24x1xf32>
    %cst_41 = arith.constant 2.560000e+02 : f32
    %29 = vector.broadcast %cst_41 : f32 to vector<24x1xf32>
    %30 = arith.divf %28, %29 : vector<24x1xf32>
    %cst_42 = arith.constant 9.99999974E-6 : f32
    %31 = vector.broadcast %cst_42 : f32 to vector<24x1xf32>
    %32 = arith.addf %30, %31 : vector<24x1xf32>
    %33 = math.rsqrt %32 : vector<24x1xf32>
    %34 = vector.broadcast %33 : vector<24x1xf32> to vector<24x256xf32>
    %35 = arith.mulf %25, %34 : vector<24x256xf32>
    %36 = vector.broadcast %3 : vector<1x256xf32> to vector<24x256xf32>
    %37 = arith.mulf %35, %36 : vector<24x256xf32>
    %38 = vector.broadcast %4 : vector<1x256xf32> to vector<24x256xf32>
    %39 = arith.addf %37, %38 : vector<24x256xf32>
    %cst_43 = arith.constant 0.000000e+00 : f32
    %40 = vector.broadcast %cst_43 : f32 to vector<24x256xf32>
    %41 = arith.cmpf ogt, %39, %40 : vector<24x256xf32>
    %cst_44 = arith.constant 1.000000e-01 : f32
    %42 = vector.broadcast %cst_44 : f32 to vector<24x256xf32>
    %43 = arith.mulf %42, %39 : vector<24x256xf32>
    %44 = arith.select %41, %39, %43 : vector<24x256xi1>, vector<24x256xf32>
    %45 = arith.truncf %44 : vector<24x256xf32> to vector<24x256xbf16>
    %cst_45 = arith.constant dense<0.000000e+00> : vector<24x625xf32>
    %46 = tpu.matmul %45, %5, %cst_45 {dimension_numbers = #tpu.dot_dimension_numbers<[1], [0], [0], [1], [0, 0, 1, 1], [], []>} : vector<24x256xbf16>, vector<256x625xbf16>, vector<24x625xf32> -> vector<24x625xf32>
    %47 = arith.truncf %46 : vector<24x625xf32> to vector<24x625xbf16>
    %48 = vector.extract_strided_slice %6 {offsets = [0, 0, 0], sizes = [1, 48, 24], strides = [1, 1, 1]} : vector<25x48x24xbf16> to vector<1x48x24xbf16>
    %49 = vector.shape_cast %48 : vector<1x48x24xbf16> to vector<48x24xbf16>
    %50 = vector.extract_strided_slice %47 {offsets = [0, 0], sizes = [24, 25], strides = [1, 1]} : vector<24x625xbf16> to vector<24x25xbf16>
    %cst_46 = arith.constant dense<0.000000e+00> : vector<48x25xf32>
    %51 = tpu.matmul %49, %50, %cst_46 {dimension_numbers = #tpu.dot_dimension_numbers<[1], [0], [0], [1], [0, 0, 1, 1], [], []>} : vector<48x24xbf16>, vector<24x25xbf16>, vector<48x25xf32> -> vector<48x25xf32>
    %52 = vector.extract_strided_slice %6 {offsets = [1, 0, 0], sizes = [1, 48, 24], strides = [1, 1, 1]} : vector<25x48x24xbf16> to vector<1x48x24xbf16>
    %53 = vector.shape_cast %52 : vector<1x48x24xbf16> to vector<48x24xbf16>
    %54 = vector.extract_strided_slice %47 {offsets = [0, 25], sizes = [24, 25], strides = [1, 1]} : vector<24x625xbf16> to vector<24x25xbf16>
    %cst_47 = arith.constant dense<0.000000e+00> : vector<48x25xf32>
    %55 = tpu.matmul %53, %54, %cst_47 {dimension_numbers = #tpu.dot_dimension_numbers<[1], [0], [0], [1], [0, 0, 1, 1], [], []>} : vector<48x24xbf16>, vector<24x25xbf16>, vector<48x25xf32> -> vector<48x25xf32>
    %56 = arith.addf %51, %55 : vector<48x25xf32>
    %57 = vector.extract_strided_slice %6 {offsets = [2, 0, 0], sizes = [1, 48, 24], strides = [1, 1, 1]} : vector<25x48x24xbf16> to vector<1x48x24xbf16>
    %58 = vector.shape_cast %57 : vector<1x48x24xbf16> to vector<48x24xbf16>
    %59 = vector.extract_strided_slice %47 {offsets = [0, 50], sizes = [24, 25], strides = [1, 1]} : vector<24x625xbf16> to vector<24x25xbf16>
    %cst_48 = arith.constant dense<0.000000e+00> : vector<48x25xf32>
    %60 = tpu.matmul %58, %59, %cst_48 {dimension_numbers = #tpu.dot_dimension_numbers<[1], [0], [0], [1], [0, 0, 1, 1], [], []>} : vector<48x24xbf16>, vector<24x25xbf16>, vector<48x25xf32> -> vector<48x25xf32>
    %61 = arith.addf %56, %60 : vector<48x25xf32>
    %62 = vector.extract_strided_slice %6 {offsets = [3, 0, 0], sizes = [1, 48, 24], strides = [1, 1, 1]} : vector<25x48x24xbf16> to vector<1x48x24xbf16>
    %63 = vector.shape_cast %62 : vector<1x48x24xbf16> to vector<48x24xbf16>
    %64 = vector.extract_strided_slice %47 {offsets = [0, 75], sizes = [24, 25], strides = [1, 1]} : vector<24x625xbf16> to vector<24x25xbf16>
    %cst_49 = arith.constant dense<0.000000e+00> : vector<48x25xf32>
    %65 = tpu.matmul %63, %64, %cst_49 {dimension_numbers = #tpu.dot_dimension_numbers<[1], [0], [0], [1], [0, 0, 1, 1], [], []>} : vector<48x24xbf16>, vector<24x25xbf16>, vector<48x25xf32> -> vector<48x25xf32>
    %66 = arith.addf %61, %65 : vector<48x25xf32>
    %67 = vector.extract_strided_slice %6 {offsets = [4, 0, 0], sizes = [1, 48, 24], strides = [1, 1, 1]} : vector<25x48x24xbf16> to vector<1x48x24xbf16>
    %68 = vector.shape_cast %67 : vector<1x48x24xbf16> to vector<48x24xbf16>
    %69 = vector.extract_strided_slice %47 {offsets = [0, 100], sizes = [24, 25], strides = [1, 1]} : vector<24x625xbf16> to vector<24x25xbf16>
    %cst_50 = arith.constant dense<0.000000e+00> : vector<48x25xf32>
    %70 = tpu.matmul %68, %69, %cst_50 {dimension_numbers = #tpu.dot_dimension_numbers<[1], [0], [0], [1], [0, 0, 1, 1], [], []>} : vector<48x24xbf16>, vector<24x25xbf16>, vector<48x25xf32> -> vector<48x25xf32>
    %71 = arith.addf %66, %70 : vector<48x25xf32>
    %72 = vector.extract_strided_slice %6 {offsets = [5, 0, 0], sizes = [1, 48, 24], strides = [1, 1, 1]} : vector<25x48x24xbf16> to vector<1x48x24xbf16>
    %73 = vector.shape_cast %72 : vector<1x48x24xbf16> to vector<48x24xbf16>
    %74 = vector.extract_strided_slice %47 {offsets = [0, 125], sizes = [24, 25], strides = [1, 1]} : vector<24x625xbf16> to vector<24x25xbf16>
    %cst_51 = arith.constant dense<0.000000e+00> : vector<48x25xf32>
    %75 = tpu.matmul %73, %74, %cst_51 {dimension_numbers = #tpu.dot_dimension_numbers<[1], [0], [0], [1], [0, 0, 1, 1], [], []>} : vector<48x24xbf16>, vector<24x25xbf16>, vector<48x25xf32> -> vector<48x25xf32>
    %76 = arith.addf %71, %75 : vector<48x25xf32>
    %77 = vector.extract_strided_slice %6 {offsets = [6, 0, 0], sizes = [1, 48, 24], strides = [1, 1, 1]} : vector<25x48x24xbf16> to vector<1x48x24xbf16>
    %78 = vector.shape_cast %77 : vector<1x48x24xbf16> to vector<48x24xbf16>
    %79 = vector.extract_strided_slice %47 {offsets = [0, 150], sizes = [24, 25], strides = [1, 1]} : vector<24x625xbf16> to vector<24x25xbf16>
    %cst_52 = arith.constant dense<0.000000e+00> : vector<48x25xf32>
    %80 = tpu.matmul %78, %79, %cst_52 {dimension_numbers = #tpu.dot_dimension_numbers<[1], [0], [0], [1], [0, 0, 1, 1], [], []>} : vector<48x24xbf16>, vector<24x25xbf16>, vector<48x25xf32> -> vector<48x25xf32>
    %81 = arith.addf %76, %80 : vector<48x25xf32>
    %82 = vector.extract_strided_slice %6 {offsets = [7, 0, 0], sizes = [1, 48, 24], strides = [1, 1, 1]} : vector<25x48x24xbf16> to vector<1x48x24xbf16>
    %83 = vector.shape_cast %82 : vector<1x48x24xbf16> to vector<48x24xbf16>
    %84 = vector.extract_strided_slice %47 {offsets = [0, 175], sizes = [24, 25], strides = [1, 1]} : vector<24x625xbf16> to vector<24x25xbf16>
    %cst_53 = arith.constant dense<0.000000e+00> : vector<48x25xf32>
    %85 = tpu.matmul %83, %84, %cst_53 {dimension_numbers = #tpu.dot_dimension_numbers<[1], [0], [0], [1], [0, 0, 1, 1], [], []>} : vector<48x24xbf16>, vector<24x25xbf16>, vector<48x25xf32> -> vector<48x25xf32>
    %86 = arith.addf %81, %85 : vector<48x25xf32>
    %87 = vector.extract_strided_slice %6 {offsets = [8, 0, 0], sizes = [1, 48, 24], strides = [1, 1, 1]} : vector<25x48x24xbf16> to vector<1x48x24xbf16>
    %88 = vector.shape_cast %87 : vector<1x48x24xbf16> to vector<48x24xbf16>
    %89 = vector.extract_strided_slice %47 {offsets = [0, 200], sizes = [24, 25], strides = [1, 1]} : vector<24x625xbf16> to vector<24x25xbf16>
    %cst_54 = arith.constant dense<0.000000e+00> : vector<48x25xf32>
    %90 = tpu.matmul %88, %89, %cst_54 {dimension_numbers = #tpu.dot_dimension_numbers<[1], [0], [0], [1], [0, 0, 1, 1], [], []>} : vector<48x24xbf16>, vector<24x25xbf16>, vector<48x25xf32> -> vector<48x25xf32>
    %91 = arith.addf %86, %90 : vector<48x25xf32>
    %92 = vector.extract_strided_slice %6 {offsets = [9, 0, 0], sizes = [1, 48, 24], strides = [1, 1, 1]} : vector<25x48x24xbf16> to vector<1x48x24xbf16>
    %93 = vector.shape_cast %92 : vector<1x48x24xbf16> to vector<48x24xbf16>
    %94 = vector.extract_strided_slice %47 {offsets = [0, 225], sizes = [24, 25], strides = [1, 1]} : vector<24x625xbf16> to vector<24x25xbf16>
    %cst_55 = arith.constant dense<0.000000e+00> : vector<48x25xf32>
    %95 = tpu.matmul %93, %94, %cst_55 {dimension_numbers = #tpu.dot_dimension_numbers<[1], [0], [0], [1], [0, 0, 1, 1], [], []>} : vector<48x24xbf16>, vector<24x25xbf16>, vector<48x25xf32> -> vector<48x25xf32>
    %96 = arith.addf %91, %95 : vector<48x25xf32>
    %97 = vector.extract_strided_slice %6 {offsets = [10, 0, 0], sizes = [1, 48, 24], strides = [1, 1, 1]} : vector<25x48x24xbf16> to vector<1x48x24xbf16>
    %98 = vector.shape_cast %97 : vector<1x48x24xbf16> to vector<48x24xbf16>
    %99 = vector.extract_strided_slice %47 {offsets = [0, 250], sizes = [24, 25], strides = [1, 1]} : vector<24x625xbf16> to vector<24x25xbf16>
    %cst_56 = arith.constant dense<0.000000e+00> : vector<48x25xf32>
    %100 = tpu.matmul %98, %99, %cst_56 {dimension_numbers = #tpu.dot_dimension_numbers<[1], [0], [0], [1], [0, 0, 1, 1], [], []>} : vector<48x24xbf16>, vector<24x25xbf16>, vector<48x25xf32> -> vector<48x25xf32>
    %101 = arith.addf %96, %100 : vector<48x25xf32>
    %102 = vector.extract_strided_slice %6 {offsets = [11, 0, 0], sizes = [1, 48, 24], strides = [1, 1, 1]} : vector<25x48x24xbf16> to vector<1x48x24xbf16>
    %103 = vector.shape_cast %102 : vector<1x48x24xbf16> to vector<48x24xbf16>
    %104 = vector.extract_strided_slice %47 {offsets = [0, 275], sizes = [24, 25], strides = [1, 1]} : vector<24x625xbf16> to vector<24x25xbf16>
    %cst_57 = arith.constant dense<0.000000e+00> : vector<48x25xf32>
    %105 = tpu.matmul %103, %104, %cst_57 {dimension_numbers = #tpu.dot_dimension_numbers<[1], [0], [0], [1], [0, 0, 1, 1], [], []>} : vector<48x24xbf16>, vector<24x25xbf16>, vector<48x25xf32> -> vector<48x25xf32>
    %106 = arith.addf %101, %105 : vector<48x25xf32>
    %107 = vector.extract_strided_slice %6 {offsets = [12, 0, 0], sizes = [1, 48, 24], strides = [1, 1, 1]} : vector<25x48x24xbf16> to vector<1x48x24xbf16>
    %108 = vector.shape_cast %107 : vector<1x48x24xbf16> to vector<48x24xbf16>
    %109 = vector.extract_strided_slice %47 {offsets = [0, 300], sizes = [24, 25], strides = [1, 1]} : vector<24x625xbf16> to vector<24x25xbf16>
    %cst_58 = arith.constant dense<0.000000e+00> : vector<48x25xf32>
    %110 = tpu.matmul %108, %109, %cst_58 {dimension_numbers = #tpu.dot_dimension_numbers<[1], [0], [0], [1], [0, 0, 1, 1], [], []>} : vector<48x24xbf16>, vector<24x25xbf16>, vector<48x25xf32> -> vector<48x25xf32>
    %111 = arith.addf %106, %110 : vector<48x25xf32>
    %112 = vector.extract_strided_slice %6 {offsets = [13, 0, 0], sizes = [1, 48, 24], strides = [1, 1, 1]} : vector<25x48x24xbf16> to vector<1x48x24xbf16>
    %113 = vector.shape_cast %112 : vector<1x48x24xbf16> to vector<48x24xbf16>
    %114 = vector.extract_strided_slice %47 {offsets = [0, 325], sizes = [24, 25], strides = [1, 1]} : vector<24x625xbf16> to vector<24x25xbf16>
    %cst_59 = arith.constant dense<0.000000e+00> : vector<48x25xf32>
    %115 = tpu.matmul %113, %114, %cst_59 {dimension_numbers = #tpu.dot_dimension_numbers<[1], [0], [0], [1], [0, 0, 1, 1], [], []>} : vector<48x24xbf16>, vector<24x25xbf16>, vector<48x25xf32> -> vector<48x25xf32>
    %116 = arith.addf %111, %115 : vector<48x25xf32>
    %117 = vector.extract_strided_slice %6 {offsets = [14, 0, 0], sizes = [1, 48, 24], strides = [1, 1, 1]} : vector<25x48x24xbf16> to vector<1x48x24xbf16>
    %118 = vector.shape_cast %117 : vector<1x48x24xbf16> to vector<48x24xbf16>
    %119 = vector.extract_strided_slice %47 {offsets = [0, 350], sizes = [24, 25], strides = [1, 1]} : vector<24x625xbf16> to vector<24x25xbf16>
    %cst_60 = arith.constant dense<0.000000e+00> : vector<48x25xf32>
    %120 = tpu.matmul %118, %119, %cst_60 {dimension_numbers = #tpu.dot_dimension_numbers<[1], [0], [0], [1], [0, 0, 1, 1], [], []>} : vector<48x24xbf16>, vector<24x25xbf16>, vector<48x25xf32> -> vector<48x25xf32>
    %121 = arith.addf %116, %120 : vector<48x25xf32>
    %122 = vector.extract_strided_slice %6 {offsets = [15, 0, 0], sizes = [1, 48, 24], strides = [1, 1, 1]} : vector<25x48x24xbf16> to vector<1x48x24xbf16>
    %123 = vector.shape_cast %122 : vector<1x48x24xbf16> to vector<48x24xbf16>
    %124 = vector.extract_strided_slice %47 {offsets = [0, 375], sizes = [24, 25], strides = [1, 1]} : vector<24x625xbf16> to vector<24x25xbf16>
    %cst_61 = arith.constant dense<0.000000e+00> : vector<48x25xf32>
    %125 = tpu.matmul %123, %124, %cst_61 {dimension_numbers = #tpu.dot_dimension_numbers<[1], [0], [0], [1], [0, 0, 1, 1], [], []>} : vector<48x24xbf16>, vector<24x25xbf16>, vector<48x25xf32> -> vector<48x25xf32>
    %126 = arith.addf %121, %125 : vector<48x25xf32>
    %127 = vector.extract_strided_slice %6 {offsets = [16, 0, 0], sizes = [1, 48, 24], strides = [1, 1, 1]} : vector<25x48x24xbf16> to vector<1x48x24xbf16>
    %128 = vector.shape_cast %127 : vector<1x48x24xbf16> to vector<48x24xbf16>
    %129 = vector.extract_strided_slice %47 {offsets = [0, 400], sizes = [24, 25], strides = [1, 1]} : vector<24x625xbf16> to vector<24x25xbf16>
    %cst_62 = arith.constant dense<0.000000e+00> : vector<48x25xf32>
    %130 = tpu.matmul %128, %129, %cst_62 {dimension_numbers = #tpu.dot_dimension_numbers<[1], [0], [0], [1], [0, 0, 1, 1], [], []>} : vector<48x24xbf16>, vector<24x25xbf16>, vector<48x25xf32> -> vector<48x25xf32>
    %131 = arith.addf %126, %130 : vector<48x25xf32>
    %132 = vector.extract_strided_slice %6 {offsets = [17, 0, 0], sizes = [1, 48, 24], strides = [1, 1, 1]} : vector<25x48x24xbf16> to vector<1x48x24xbf16>
    %133 = vector.shape_cast %132 : vector<1x48x24xbf16> to vector<48x24xbf16>
    %134 = vector.extract_strided_slice %47 {offsets = [0, 425], sizes = [24, 25], strides = [1, 1]} : vector<24x625xbf16> to vector<24x25xbf16>
    %cst_63 = arith.constant dense<0.000000e+00> : vector<48x25xf32>
    %135 = tpu.matmul %133, %134, %cst_63 {dimension_numbers = #tpu.dot_dimension_numbers<[1], [0], [0], [1], [0, 0, 1, 1], [], []>} : vector<48x24xbf16>, vector<24x25xbf16>, vector<48x25xf32> -> vector<48x25xf32>
    %136 = arith.addf %131, %135 : vector<48x25xf32>
    %137 = vector.extract_strided_slice %6 {offsets = [18, 0, 0], sizes = [1, 48, 24], strides = [1, 1, 1]} : vector<25x48x24xbf16> to vector<1x48x24xbf16>
    %138 = vector.shape_cast %137 : vector<1x48x24xbf16> to vector<48x24xbf16>
    %139 = vector.extract_strided_slice %47 {offsets = [0, 450], sizes = [24, 25], strides = [1, 1]} : vector<24x625xbf16> to vector<24x25xbf16>
    %cst_64 = arith.constant dense<0.000000e+00> : vector<48x25xf32>
    %140 = tpu.matmul %138, %139, %cst_64 {dimension_numbers = #tpu.dot_dimension_numbers<[1], [0], [0], [1], [0, 0, 1, 1], [], []>} : vector<48x24xbf16>, vector<24x25xbf16>, vector<48x25xf32> -> vector<48x25xf32>
    %141 = arith.addf %136, %140 : vector<48x25xf32>
    %142 = vector.extract_strided_slice %6 {offsets = [19, 0, 0], sizes = [1, 48, 24], strides = [1, 1, 1]} : vector<25x48x24xbf16> to vector<1x48x24xbf16>
    %143 = vector.shape_cast %142 : vector<1x48x24xbf16> to vector<48x24xbf16>
    %144 = vector.extract_strided_slice %47 {offsets = [0, 475], sizes = [24, 25], strides = [1, 1]} : vector<24x625xbf16> to vector<24x25xbf16>
    %cst_65 = arith.constant dense<0.000000e+00> : vector<48x25xf32>
    %145 = tpu.matmul %143, %144, %cst_65 {dimension_numbers = #tpu.dot_dimension_numbers<[1], [0], [0], [1], [0, 0, 1, 1], [], []>} : vector<48x24xbf16>, vector<24x25xbf16>, vector<48x25xf32> -> vector<48x25xf32>
    %146 = arith.addf %141, %145 : vector<48x25xf32>
    %147 = vector.extract_strided_slice %6 {offsets = [20, 0, 0], sizes = [1, 48, 24], strides = [1, 1, 1]} : vector<25x48x24xbf16> to vector<1x48x24xbf16>
    %148 = vector.shape_cast %147 : vector<1x48x24xbf16> to vector<48x24xbf16>
    %149 = vector.extract_strided_slice %47 {offsets = [0, 500], sizes = [24, 25], strides = [1, 1]} : vector<24x625xbf16> to vector<24x25xbf16>
    %cst_66 = arith.constant dense<0.000000e+00> : vector<48x25xf32>
    %150 = tpu.matmul %148, %149, %cst_66 {dimension_numbers = #tpu.dot_dimension_numbers<[1], [0], [0], [1], [0, 0, 1, 1], [], []>} : vector<48x24xbf16>, vector<24x25xbf16>, vector<48x25xf32> -> vector<48x25xf32>
    %151 = arith.addf %146, %150 : vector<48x25xf32>
    %152 = vector.extract_strided_slice %6 {offsets = [21, 0, 0], sizes = [1, 48, 24], strides = [1, 1, 1]} : vector<25x48x24xbf16> to vector<1x48x24xbf16>
    %153 = vector.shape_cast %152 : vector<1x48x24xbf16> to vector<48x24xbf16>
    %154 = vector.extract_strided_slice %47 {offsets = [0, 525], sizes = [24, 25], strides = [1, 1]} : vector<24x625xbf16> to vector<24x25xbf16>
    %cst_67 = arith.constant dense<0.000000e+00> : vector<48x25xf32>
    %155 = tpu.matmul %153, %154, %cst_67 {dimension_numbers = #tpu.dot_dimension_numbers<[1], [0], [0], [1], [0, 0, 1, 1], [], []>} : vector<48x24xbf16>, vector<24x25xbf16>, vector<48x25xf32> -> vector<48x25xf32>
    %156 = arith.addf %151, %155 : vector<48x25xf32>
    %157 = vector.extract_strided_slice %6 {offsets = [22, 0, 0], sizes = [1, 48, 24], strides = [1, 1, 1]} : vector<25x48x24xbf16> to vector<1x48x24xbf16>
    %158 = vector.shape_cast %157 : vector<1x48x24xbf16> to vector<48x24xbf16>
    %159 = vector.extract_strided_slice %47 {offsets = [0, 550], sizes = [24, 25], strides = [1, 1]} : vector<24x625xbf16> to vector<24x25xbf16>
    %cst_68 = arith.constant dense<0.000000e+00> : vector<48x25xf32>
    %160 = tpu.matmul %158, %159, %cst_68 {dimension_numbers = #tpu.dot_dimension_numbers<[1], [0], [0], [1], [0, 0, 1, 1], [], []>} : vector<48x24xbf16>, vector<24x25xbf16>, vector<48x25xf32> -> vector<48x25xf32>
    %161 = arith.addf %156, %160 : vector<48x25xf32>
    %162 = vector.extract_strided_slice %6 {offsets = [23, 0, 0], sizes = [1, 48, 24], strides = [1, 1, 1]} : vector<25x48x24xbf16> to vector<1x48x24xbf16>
    %163 = vector.shape_cast %162 : vector<1x48x24xbf16> to vector<48x24xbf16>
    %164 = vector.extract_strided_slice %47 {offsets = [0, 575], sizes = [24, 25], strides = [1, 1]} : vector<24x625xbf16> to vector<24x25xbf16>
    %cst_69 = arith.constant dense<0.000000e+00> : vector<48x25xf32>
    %165 = tpu.matmul %163, %164, %cst_69 {dimension_numbers = #tpu.dot_dimension_numbers<[1], [0], [0], [1], [0, 0, 1, 1], [], []>} : vector<48x24xbf16>, vector<24x25xbf16>, vector<48x25xf32> -> vector<48x25xf32>
    %166 = arith.addf %161, %165 : vector<48x25xf32>
    %167 = vector.extract_strided_slice %6 {offsets = [24, 0, 0], sizes = [1, 48, 24], strides = [1, 1, 1]} : vector<25x48x24xbf16> to vector<1x48x24xbf16>
    %168 = vector.shape_cast %167 : vector<1x48x24xbf16> to vector<48x24xbf16>
    %169 = vector.extract_strided_slice %47 {offsets = [0, 600], sizes = [24, 25], strides = [1, 1]} : vector<24x625xbf16> to vector<24x25xbf16>
    %cst_70 = arith.constant dense<0.000000e+00> : vector<48x25xf32>
    %170 = tpu.matmul %168, %169, %cst_70 {dimension_numbers = #tpu.dot_dimension_numbers<[1], [0], [0], [1], [0, 0, 1, 1], [], []>} : vector<48x24xbf16>, vector<24x25xbf16>, vector<48x25xf32> -> vector<48x25xf32>
    %171 = arith.addf %166, %170 : vector<48x25xf32>
    %cst_71 = arith.constant dense<0.000000e+00> : vector<48xf32>
    %172 = vector.multi_reduction <add>, %171, %cst_71 [1] : vector<48x25xf32> to vector<48xf32>
    %173 = vector.shape_cast %172 : vector<48xf32> to vector<48x1xf32>
    %cst_72 = arith.constant 2.500000e+01 : f32
    %174 = vector.broadcast %cst_72 : f32 to vector<48x1xf32>
    %175 = arith.divf %173, %174 : vector<48x1xf32>
    %176 = vector.broadcast %175 : vector<48x1xf32> to vector<48x25xf32>
    %177 = arith.subf %171, %176 : vector<48x25xf32>
    %178 = arith.mulf %177, %177 : vector<48x25xf32>
    %cst_73 = arith.constant dense<0.000000e+00> : vector<48xf32>
    %179 = vector.multi_reduction <add>, %178, %cst_73 [1] : vector<48x25xf32> to vector<48xf32>
    %180 = vector.shape_cast %179 : vector<48xf32> to vector<48x1xf32>
    %cst_74 = arith.constant 2.500000e+01 : f32
    %181 = vector.broadcast %cst_74 : f32 to vector<48x1xf32>
    %182 = arith.divf %180, %181 : vector<48x1xf32>
    %cst_75 = arith.constant 9.99999974E-6 : f32
    %183 = vector.broadcast %cst_75 : f32 to vector<48x1xf32>
    %184 = arith.addf %182, %183 : vector<48x1xf32>
    %185 = math.rsqrt %184 : vector<48x1xf32>
    %186 = vector.broadcast %185 : vector<48x1xf32> to vector<48x25xf32>
    %187 = arith.mulf %177, %186 : vector<48x25xf32>
    %188 = vector.broadcast %7 : vector<1x25xf32> to vector<48x25xf32>
    %189 = arith.mulf %187, %188 : vector<48x25xf32>
    %190 = vector.broadcast %8 : vector<1x25xf32> to vector<48x25xf32>
    %191 = arith.addf %189, %190 : vector<48x25xf32>
    %cst_76 = arith.constant 0.000000e+00 : f32
    %192 = vector.broadcast %cst_76 : f32 to vector<48x25xf32>
    %193 = arith.cmpf ogt, %191, %192 : vector<48x25xf32>
    %cst_77 = arith.constant 1.000000e-01 : f32
    %194 = vector.broadcast %cst_77 : f32 to vector<48x25xf32>
    %195 = arith.mulf %194, %191 : vector<48x25xf32>
    %196 = arith.select %193, %191, %195 : vector<48x25xi1>, vector<48x25xf32>
    %197 = arith.truncf %196 : vector<48x25xf32> to vector<48x25xbf16>
    %cst_78 = arith.constant dense<0.000000e+00> : vector<48x64xf32>
    %198 = tpu.matmul %197, %9, %cst_78 {dimension_numbers = #tpu.dot_dimension_numbers<[1], [0], [0], [1], [0, 0, 1, 1], [], []>} : vector<48x25xbf16>, vector<25x64xbf16>, vector<48x64xf32> -> vector<48x64xf32>
    %199 = arith.truncf %198 : vector<48x64xf32> to vector<48x64xbf16>
    %200 = vector.extract_strided_slice %10 {offsets = [0, 0, 0], sizes = [1, 48, 48], strides = [1, 1, 1]} : vector<16x48x48xbf16> to vector<1x48x48xbf16>
    %201 = vector.shape_cast %200 : vector<1x48x48xbf16> to vector<48x48xbf16>
    %202 = vector.extract_strided_slice %199 {offsets = [0, 0], sizes = [48, 4], strides = [1, 1]} : vector<48x64xbf16> to vector<48x4xbf16>
    %cst_79 = arith.constant dense<0.000000e+00> : vector<48x4xf32>
    %203 = tpu.matmul %201, %202, %cst_79 {dimension_numbers = #tpu.dot_dimension_numbers<[1], [0], [0], [1], [0, 0, 1, 1], [], []>} : vector<48x48xbf16>, vector<48x4xbf16>, vector<48x4xf32> -> vector<48x4xf32>
    %204 = vector.extract_strided_slice %10 {offsets = [1, 0, 0], sizes = [1, 48, 48], strides = [1, 1, 1]} : vector<16x48x48xbf16> to vector<1x48x48xbf16>
    %205 = vector.shape_cast %204 : vector<1x48x48xbf16> to vector<48x48xbf16>
    %206 = vector.extract_strided_slice %199 {offsets = [0, 4], sizes = [48, 4], strides = [1, 1]} : vector<48x64xbf16> to vector<48x4xbf16>
    %cst_80 = arith.constant dense<0.000000e+00> : vector<48x4xf32>
    %207 = tpu.matmul %205, %206, %cst_80 {dimension_numbers = #tpu.dot_dimension_numbers<[1], [0], [0], [1], [0, 0, 1, 1], [], []>} : vector<48x48xbf16>, vector<48x4xbf16>, vector<48x4xf32> -> vector<48x4xf32>
    %208 = arith.addf %203, %207 : vector<48x4xf32>
    %209 = vector.extract_strided_slice %10 {offsets = [2, 0, 0], sizes = [1, 48, 48], strides = [1, 1, 1]} : vector<16x48x48xbf16> to vector<1x48x48xbf16>
    %210 = vector.shape_cast %209 : vector<1x48x48xbf16> to vector<48x48xbf16>
    %211 = vector.extract_strided_slice %199 {offsets = [0, 8], sizes = [48, 4], strides = [1, 1]} : vector<48x64xbf16> to vector<48x4xbf16>
    %cst_81 = arith.constant dense<0.000000e+00> : vector<48x4xf32>
    %212 = tpu.matmul %210, %211, %cst_81 {dimension_numbers = #tpu.dot_dimension_numbers<[1], [0], [0], [1], [0, 0, 1, 1], [], []>} : vector<48x48xbf16>, vector<48x4xbf16>, vector<48x4xf32> -> vector<48x4xf32>
    %213 = arith.addf %208, %212 : vector<48x4xf32>
    %214 = vector.extract_strided_slice %10 {offsets = [3, 0, 0], sizes = [1, 48, 48], strides = [1, 1, 1]} : vector<16x48x48xbf16> to vector<1x48x48xbf16>
    %215 = vector.shape_cast %214 : vector<1x48x48xbf16> to vector<48x48xbf16>
    %216 = vector.extract_strided_slice %199 {offsets = [0, 12], sizes = [48, 4], strides = [1, 1]} : vector<48x64xbf16> to vector<48x4xbf16>
    %cst_82 = arith.constant dense<0.000000e+00> : vector<48x4xf32>
    %217 = tpu.matmul %215, %216, %cst_82 {dimension_numbers = #tpu.dot_dimension_numbers<[1], [0], [0], [1], [0, 0, 1, 1], [], []>} : vector<48x48xbf16>, vector<48x4xbf16>, vector<48x4xf32> -> vector<48x4xf32>
    %218 = arith.addf %213, %217 : vector<48x4xf32>
    %219 = vector.extract_strided_slice %10 {offsets = [4, 0, 0], sizes = [1, 48, 48], strides = [1, 1, 1]} : vector<16x48x48xbf16> to vector<1x48x48xbf16>
    %220 = vector.shape_cast %219 : vector<1x48x48xbf16> to vector<48x48xbf16>
    %221 = vector.extract_strided_slice %199 {offsets = [0, 16], sizes = [48, 4], strides = [1, 1]} : vector<48x64xbf16> to vector<48x4xbf16>
    %cst_83 = arith.constant dense<0.000000e+00> : vector<48x4xf32>
    %222 = tpu.matmul %220, %221, %cst_83 {dimension_numbers = #tpu.dot_dimension_numbers<[1], [0], [0], [1], [0, 0, 1, 1], [], []>} : vector<48x48xbf16>, vector<48x4xbf16>, vector<48x4xf32> -> vector<48x4xf32>
    %223 = arith.addf %218, %222 : vector<48x4xf32>
    %224 = vector.extract_strided_slice %10 {offsets = [5, 0, 0], sizes = [1, 48, 48], strides = [1, 1, 1]} : vector<16x48x48xbf16> to vector<1x48x48xbf16>
    %225 = vector.shape_cast %224 : vector<1x48x48xbf16> to vector<48x48xbf16>
    %226 = vector.extract_strided_slice %199 {offsets = [0, 20], sizes = [48, 4], strides = [1, 1]} : vector<48x64xbf16> to vector<48x4xbf16>
    %cst_84 = arith.constant dense<0.000000e+00> : vector<48x4xf32>
    %227 = tpu.matmul %225, %226, %cst_84 {dimension_numbers = #tpu.dot_dimension_numbers<[1], [0], [0], [1], [0, 0, 1, 1], [], []>} : vector<48x48xbf16>, vector<48x4xbf16>, vector<48x4xf32> -> vector<48x4xf32>
    %228 = arith.addf %223, %227 : vector<48x4xf32>
    %229 = vector.extract_strided_slice %10 {offsets = [6, 0, 0], sizes = [1, 48, 48], strides = [1, 1, 1]} : vector<16x48x48xbf16> to vector<1x48x48xbf16>
    %230 = vector.shape_cast %229 : vector<1x48x48xbf16> to vector<48x48xbf16>
    %231 = vector.extract_strided_slice %199 {offsets = [0, 24], sizes = [48, 4], strides = [1, 1]} : vector<48x64xbf16> to vector<48x4xbf16>
    %cst_85 = arith.constant dense<0.000000e+00> : vector<48x4xf32>
    %232 = tpu.matmul %230, %231, %cst_85 {dimension_numbers = #tpu.dot_dimension_numbers<[1], [0], [0], [1], [0, 0, 1, 1], [], []>} : vector<48x48xbf16>, vector<48x4xbf16>, vector<48x4xf32> -> vector<48x4xf32>
    %233 = arith.addf %228, %232 : vector<48x4xf32>
    %234 = vector.extract_strided_slice %10 {offsets = [7, 0, 0], sizes = [1, 48, 48], strides = [1, 1, 1]} : vector<16x48x48xbf16> to vector<1x48x48xbf16>
    %235 = vector.shape_cast %234 : vector<1x48x48xbf16> to vector<48x48xbf16>
    %236 = vector.extract_strided_slice %199 {offsets = [0, 28], sizes = [48, 4], strides = [1, 1]} : vector<48x64xbf16> to vector<48x4xbf16>
    %cst_86 = arith.constant dense<0.000000e+00> : vector<48x4xf32>
    %237 = tpu.matmul %235, %236, %cst_86 {dimension_numbers = #tpu.dot_dimension_numbers<[1], [0], [0], [1], [0, 0, 1, 1], [], []>} : vector<48x48xbf16>, vector<48x4xbf16>, vector<48x4xf32> -> vector<48x4xf32>
    %238 = arith.addf %233, %237 : vector<48x4xf32>
    %239 = vector.extract_strided_slice %10 {offsets = [8, 0, 0], sizes = [1, 48, 48], strides = [1, 1, 1]} : vector<16x48x48xbf16> to vector<1x48x48xbf16>
    %240 = vector.shape_cast %239 : vector<1x48x48xbf16> to vector<48x48xbf16>
    %241 = vector.extract_strided_slice %199 {offsets = [0, 32], sizes = [48, 4], strides = [1, 1]} : vector<48x64xbf16> to vector<48x4xbf16>
    %cst_87 = arith.constant dense<0.000000e+00> : vector<48x4xf32>
    %242 = tpu.matmul %240, %241, %cst_87 {dimension_numbers = #tpu.dot_dimension_numbers<[1], [0], [0], [1], [0, 0, 1, 1], [], []>} : vector<48x48xbf16>, vector<48x4xbf16>, vector<48x4xf32> -> vector<48x4xf32>
    %243 = arith.addf %238, %242 : vector<48x4xf32>
    %244 = vector.extract_strided_slice %10 {offsets = [9, 0, 0], sizes = [1, 48, 48], strides = [1, 1, 1]} : vector<16x48x48xbf16> to vector<1x48x48xbf16>
    %245 = vector.shape_cast %244 : vector<1x48x48xbf16> to vector<48x48xbf16>
    %246 = vector.extract_strided_slice %199 {offsets = [0, 36], sizes = [48, 4], strides = [1, 1]} : vector<48x64xbf16> to vector<48x4xbf16>
    %cst_88 = arith.constant dense<0.000000e+00> : vector<48x4xf32>
    %247 = tpu.matmul %245, %246, %cst_88 {dimension_numbers = #tpu.dot_dimension_numbers<[1], [0], [0], [1], [0, 0, 1, 1], [], []>} : vector<48x48xbf16>, vector<48x4xbf16>, vector<48x4xf32> -> vector<48x4xf32>
    %248 = arith.addf %243, %247 : vector<48x4xf32>
    %249 = vector.extract_strided_slice %10 {offsets = [10, 0, 0], sizes = [1, 48, 48], strides = [1, 1, 1]} : vector<16x48x48xbf16> to vector<1x48x48xbf16>
    %250 = vector.shape_cast %249 : vector<1x48x48xbf16> to vector<48x48xbf16>
    %251 = vector.extract_strided_slice %199 {offsets = [0, 40], sizes = [48, 4], strides = [1, 1]} : vector<48x64xbf16> to vector<48x4xbf16>
    %cst_89 = arith.constant dense<0.000000e+00> : vector<48x4xf32>
    %252 = tpu.matmul %250, %251, %cst_89 {dimension_numbers = #tpu.dot_dimension_numbers<[1], [0], [0], [1], [0, 0, 1, 1], [], []>} : vector<48x48xbf16>, vector<48x4xbf16>, vector<48x4xf32> -> vector<48x4xf32>
    %253 = arith.addf %248, %252 : vector<48x4xf32>
    %254 = vector.extract_strided_slice %10 {offsets = [11, 0, 0], sizes = [1, 48, 48], strides = [1, 1, 1]} : vector<16x48x48xbf16> to vector<1x48x48xbf16>
    %255 = vector.shape_cast %254 : vector<1x48x48xbf16> to vector<48x48xbf16>
    %256 = vector.extract_strided_slice %199 {offsets = [0, 44], sizes = [48, 4], strides = [1, 1]} : vector<48x64xbf16> to vector<48x4xbf16>
    %cst_90 = arith.constant dense<0.000000e+00> : vector<48x4xf32>
    %257 = tpu.matmul %255, %256, %cst_90 {dimension_numbers = #tpu.dot_dimension_numbers<[1], [0], [0], [1], [0, 0, 1, 1], [], []>} : vector<48x48xbf16>, vector<48x4xbf16>, vector<48x4xf32> -> vector<48x4xf32>
    %258 = arith.addf %253, %257 : vector<48x4xf32>
    %259 = vector.extract_strided_slice %10 {offsets = [12, 0, 0], sizes = [1, 48, 48], strides = [1, 1, 1]} : vector<16x48x48xbf16> to vector<1x48x48xbf16>
    %260 = vector.shape_cast %259 : vector<1x48x48xbf16> to vector<48x48xbf16>
    %261 = vector.extract_strided_slice %199 {offsets = [0, 48], sizes = [48, 4], strides = [1, 1]} : vector<48x64xbf16> to vector<48x4xbf16>
    %cst_91 = arith.constant dense<0.000000e+00> : vector<48x4xf32>
    %262 = tpu.matmul %260, %261, %cst_91 {dimension_numbers = #tpu.dot_dimension_numbers<[1], [0], [0], [1], [0, 0, 1, 1], [], []>} : vector<48x48xbf16>, vector<48x4xbf16>, vector<48x4xf32> -> vector<48x4xf32>
    %263 = arith.addf %258, %262 : vector<48x4xf32>
    %264 = vector.extract_strided_slice %10 {offsets = [13, 0, 0], sizes = [1, 48, 48], strides = [1, 1, 1]} : vector<16x48x48xbf16> to vector<1x48x48xbf16>
    %265 = vector.shape_cast %264 : vector<1x48x48xbf16> to vector<48x48xbf16>
    %266 = vector.extract_strided_slice %199 {offsets = [0, 52], sizes = [48, 4], strides = [1, 1]} : vector<48x64xbf16> to vector<48x4xbf16>
    %cst_92 = arith.constant dense<0.000000e+00> : vector<48x4xf32>
    %267 = tpu.matmul %265, %266, %cst_92 {dimension_numbers = #tpu.dot_dimension_numbers<[1], [0], [0], [1], [0, 0, 1, 1], [], []>} : vector<48x48xbf16>, vector<48x4xbf16>, vector<48x4xf32> -> vector<48x4xf32>
    %268 = arith.addf %263, %267 : vector<48x4xf32>
    %269 = vector.extract_strided_slice %10 {offsets = [14, 0, 0], sizes = [1, 48, 48], strides = [1, 1, 1]} : vector<16x48x48xbf16> to vector<1x48x48xbf16>
    %270 = vector.shape_cast %269 : vector<1x48x48xbf16> to vector<48x48xbf16>
    %271 = vector.extract_strided_slice %199 {offsets = [0, 56], sizes = [48, 4], strides = [1, 1]} : vector<48x64xbf16> to vector<48x4xbf16>
    %cst_93 = arith.constant dense<0.000000e+00> : vector<48x4xf32>
    %272 = tpu.matmul %270, %271, %cst_93 {dimension_numbers = #tpu.dot_dimension_numbers<[1], [0], [0], [1], [0, 0, 1, 1], [], []>} : vector<48x48xbf16>, vector<48x4xbf16>, vector<48x4xf32> -> vector<48x4xf32>
    %273 = arith.addf %268, %272 : vector<48x4xf32>
    %274 = vector.extract_strided_slice %10 {offsets = [15, 0, 0], sizes = [1, 48, 48], strides = [1, 1, 1]} : vector<16x48x48xbf16> to vector<1x48x48xbf16>
    %275 = vector.shape_cast %274 : vector<1x48x48xbf16> to vector<48x48xbf16>
    %276 = vector.extract_strided_slice %199 {offsets = [0, 60], sizes = [48, 4], strides = [1, 1]} : vector<48x64xbf16> to vector<48x4xbf16>
    %cst_94 = arith.constant dense<0.000000e+00> : vector<48x4xf32>
    %277 = tpu.matmul %275, %276, %cst_94 {dimension_numbers = #tpu.dot_dimension_numbers<[1], [0], [0], [1], [0, 0, 1, 1], [], []>} : vector<48x48xbf16>, vector<48x4xbf16>, vector<48x4xf32> -> vector<48x4xf32>
    %278 = arith.addf %273, %277 : vector<48x4xf32>
    %cst_95 = arith.constant dense<0.000000e+00> : vector<48xf32>
    %279 = vector.multi_reduction <add>, %278, %cst_95 [1] : vector<48x4xf32> to vector<48xf32>
    %280 = vector.shape_cast %279 : vector<48xf32> to vector<48x1xf32>
    %cst_96 = arith.constant 4.000000e+00 : f32
    %281 = vector.broadcast %cst_96 : f32 to vector<48x1xf32>
    %282 = arith.divf %280, %281 : vector<48x1xf32>
    %283 = vector.broadcast %282 : vector<48x1xf32> to vector<48x4xf32>
    %284 = arith.subf %278, %283 : vector<48x4xf32>
    %285 = arith.mulf %284, %284 : vector<48x4xf32>
    %cst_97 = arith.constant dense<0.000000e+00> : vector<48xf32>
    %286 = vector.multi_reduction <add>, %285, %cst_97 [1] : vector<48x4xf32> to vector<48xf32>
    %287 = vector.shape_cast %286 : vector<48xf32> to vector<48x1xf32>
    %cst_98 = arith.constant 4.000000e+00 : f32
    %288 = vector.broadcast %cst_98 : f32 to vector<48x1xf32>
    %289 = arith.divf %287, %288 : vector<48x1xf32>
    %cst_99 = arith.constant 9.99999974E-6 : f32
    %290 = vector.broadcast %cst_99 : f32 to vector<48x1xf32>
    %291 = arith.addf %289, %290 : vector<48x1xf32>
    %292 = math.rsqrt %291 : vector<48x1xf32>
    %293 = vector.broadcast %292 : vector<48x1xf32> to vector<48x4xf32>
    %294 = arith.mulf %284, %293 : vector<48x4xf32>
    %295 = vector.broadcast %11 : vector<1x4xf32> to vector<48x4xf32>
    %296 = arith.mulf %294, %295 : vector<48x4xf32>
    %297 = vector.broadcast %12 : vector<1x4xf32> to vector<48x4xf32>
    %298 = arith.addf %296, %297 : vector<48x4xf32>
    %cst_100 = arith.constant 0.000000e+00 : f32
    %299 = vector.broadcast %cst_100 : f32 to vector<48x4xf32>
    %300 = arith.cmpf ogt, %298, %299 : vector<48x4xf32>
    %cst_101 = arith.constant 1.000000e-01 : f32
    %301 = vector.broadcast %cst_101 : f32 to vector<48x4xf32>
    %302 = arith.mulf %301, %298 : vector<48x4xf32>
    %303 = arith.select %300, %298, %302 : vector<48x4xi1>, vector<48x4xf32>
    %304 = vector.extract_strided_slice %13 {offsets = [0, 0, 0], sizes = [1, 4, 48], strides = [1, 1, 1]} : vector<4x4x48xf32> to vector<1x4x48xf32>
    %305 = vector.shape_cast %304 : vector<1x4x48xf32> to vector<4x48xf32>
    %306 = vector.extract_strided_slice %303 {offsets = [0, 0], sizes = [48, 1], strides = [1, 1]} : vector<48x4xf32> to vector<48x1xf32>
    %cst_102 = arith.constant dense<0.000000e+00> : vector<4x1xf32>
    %307 = tpu.matmul %305, %306, %cst_102 {dimension_numbers = #tpu.dot_dimension_numbers<[1], [0], [0], [1], [0, 0, 1, 1], [], []>} : vector<4x48xf32>, vector<48x1xf32>, vector<4x1xf32> -> vector<4x1xf32>
    %308 = arith.addf %15, %307 : vector<4x1xf32>
    %309 = vector.extract_strided_slice %13 {offsets = [1, 0, 0], sizes = [1, 4, 48], strides = [1, 1, 1]} : vector<4x4x48xf32> to vector<1x4x48xf32>
    %310 = vector.shape_cast %309 : vector<1x4x48xf32> to vector<4x48xf32>
    %311 = vector.extract_strided_slice %303 {offsets = [0, 1], sizes = [48, 1], strides = [1, 1]} : vector<48x4xf32> to vector<48x1xf32>
    %cst_103 = arith.constant dense<0.000000e+00> : vector<4x1xf32>
    %312 = tpu.matmul %310, %311, %cst_103 {dimension_numbers = #tpu.dot_dimension_numbers<[1], [0], [0], [1], [0, 0, 1, 1], [], []>} : vector<4x48xf32>, vector<48x1xf32>, vector<4x1xf32> -> vector<4x1xf32>
    %313 = arith.addf %308, %312 : vector<4x1xf32>
    %314 = vector.extract_strided_slice %13 {offsets = [2, 0, 0], sizes = [1, 4, 48], strides = [1, 1, 1]} : vector<4x4x48xf32> to vector<1x4x48xf32>
    %315 = vector.shape_cast %314 : vector<1x4x48xf32> to vector<4x48xf32>
    %316 = vector.extract_strided_slice %303 {offsets = [0, 2], sizes = [48, 1], strides = [1, 1]} : vector<48x4xf32> to vector<48x1xf32>
    %cst_104 = arith.constant dense<0.000000e+00> : vector<4x1xf32>
    %317 = tpu.matmul %315, %316, %cst_104 {dimension_numbers = #tpu.dot_dimension_numbers<[1], [0], [0], [1], [0, 0, 1, 1], [], []>} : vector<4x48xf32>, vector<48x1xf32>, vector<4x1xf32> -> vector<4x1xf32>
    %318 = arith.addf %313, %317 : vector<4x1xf32>
    %319 = vector.extract_strided_slice %13 {offsets = [3, 0, 0], sizes = [1, 4, 48], strides = [1, 1, 1]} : vector<4x4x48xf32> to vector<1x4x48xf32>
    %320 = vector.shape_cast %319 : vector<1x4x48xf32> to vector<4x48xf32>
    %321 = vector.extract_strided_slice %303 {offsets = [0, 3], sizes = [48, 1], strides = [1, 1]} : vector<48x4xf32> to vector<48x1xf32>
    %cst_105 = arith.constant dense<0.000000e+00> : vector<4x1xf32>
    %322 = tpu.matmul %320, %321, %cst_105 {dimension_numbers = #tpu.dot_dimension_numbers<[1], [0], [0], [1], [0, 0, 1, 1], [], []>} : vector<4x48xf32>, vector<48x1xf32>, vector<4x1xf32> -> vector<4x1xf32>
    %323 = arith.addf %318, %322 : vector<4x1xf32>
    %324 = vector.extract_strided_slice %1 {offsets = [0, 0], sizes = [64, 1], strides = [1, 1]} : vector<64x2xf32> to vector<64x1xf32>
    %cst_106 = arith.constant dense<0.000000e+00> : vector<4x1xf32>
    %325 = tpu.matmul %14, %324, %cst_106 {dimension_numbers = #tpu.dot_dimension_numbers<[1], [0], [0], [1], [0, 0, 1, 1], [], []>} : vector<4x64xf32>, vector<64x1xf32>, vector<4x1xf32> -> vector<4x1xf32>
    %326 = arith.addf %323, %325 : vector<4x1xf32>
    %cst_107 = arith.constant 0.000000e+00 : f32
    %327 = vector.broadcast %cst_107 : f32 to vector<4x1xf32>
    %328 = arith.cmpf ogt, %326, %327 : vector<4x1xf32>
    %cst_108 = arith.constant 2.000000e-01 : f32
    %329 = vector.broadcast %cst_108 : f32 to vector<4x1xf32>
    %330 = arith.mulf %329, %326 : vector<4x1xf32>
    %331 = arith.select %328, %326, %330 : vector<4x1xi1>, vector<4x1xf32>
    %cst_109 = arith.constant dense<0.000000e+00> : vector<1x1xf32>
    %332 = tpu.matmul %16, %331, %cst_109 {dimension_numbers = #tpu.dot_dimension_numbers<[1], [0], [0], [1], [0, 0, 1, 1], [], []>} : vector<1x4xf32>, vector<4x1xf32>, vector<1x1xf32> -> vector<1x1xf32>
    %333 = arith.addf %332, %17 : vector<1x1xf32>
    %c0_110 = arith.constant 0 : index
    %c0_111 = arith.constant 0 : index
    %334 = vector.load %arg18[%c0_110, %c0_111] : memref<2x1xf32, #tpu.memory_space<vmem>>, vector<1x1xf32>
    tpu.vector_store %arg18[%c0_110, %c0_111], %333 {strides = array<i32>} : memref<2x1xf32, #tpu.memory_space<vmem>>, vector<1x1xf32>,
    %335 = vector.extract_strided_slice %0 {offsets = [0, 256], sizes = [108, 256], strides = [1, 1]} : vector<108x512xbf16> to vector<108x256xbf16>
    %cst_112 = arith.constant dense<0.000000e+00> : vector<24x256xf32>
    %336 = tpu.matmul %2, %335, %cst_112 {dimension_numbers = #tpu.dot_dimension_numbers<[1], [0], [0], [1], [0, 0, 1, 1], [], []>} : vector<24x108xbf16>, vector<108x256xbf16>, vector<24x256xf32> -> vector<24x256xf32>
    %cst_113 = arith.constant dense<0.000000e+00> : vector<24xf32>
    %337 = vector.multi_reduction <add>, %336, %cst_113 [1] : vector<24x256xf32> to vector<24xf32>
    %338 = vector.shape_cast %337 : vector<24xf32> to vector<24x1xf32>
    %cst_114 = arith.constant 2.560000e+02 : f32
    %339 = vector.broadcast %cst_114 : f32 to vector<24x1xf32>
    %340 = arith.divf %338, %339 : vector<24x1xf32>
    %341 = vector.broadcast %340 : vector<24x1xf32> to vector<24x256xf32>
    %342 = arith.subf %336, %341 : vector<24x256xf32>
    %343 = arith.mulf %342, %342 : vector<24x256xf32>
    %cst_115 = arith.constant dense<0.000000e+00> : vector<24xf32>
    %344 = vector.multi_reduction <add>, %343, %cst_115 [1] : vector<24x256xf32> to vector<24xf32>
    %345 = vector.shape_cast %344 : vector<24xf32> to vector<24x1xf32>
    %cst_116 = arith.constant 2.560000e+02 : f32
    %346 = vector.broadcast %cst_116 : f32 to vector<24x1xf32>
    %347 = arith.divf %345, %346 : vector<24x1xf32>
    %cst_117 = arith.constant 9.99999974E-6 : f32
    %348 = vector.broadcast %cst_117 : f32 to vector<24x1xf32>
    %349 = arith.addf %347, %348 : vector<24x1xf32>
    %350 = math.rsqrt %349 : vector<24x1xf32>
    %351 = vector.broadcast %350 : vector<24x1xf32> to vector<24x256xf32>
    %352 = arith.mulf %342, %351 : vector<24x256xf32>
    %353 = vector.broadcast %3 : vector<1x256xf32> to vector<24x256xf32>
    %354 = arith.mulf %352, %353 : vector<24x256xf32>
    %355 = vector.broadcast %4 : vector<1x256xf32> to vector<24x256xf32>
    %356 = arith.addf %354, %355 : vector<24x256xf32>
    %cst_118 = arith.constant 0.000000e+00 : f32
    %357 = vector.broadcast %cst_118 : f32 to vector<24x256xf32>
    %358 = arith.cmpf ogt, %356, %357 : vector<24x256xf32>
    %cst_119 = arith.constant 1.000000e-01 : f32
    %359 = vector.broadcast %cst_119 : f32 to vector<24x256xf32>
    %360 = arith.mulf %359, %356 : vector<24x256xf32>
    %361 = arith.select %358, %356, %360 : vector<24x256xi1>, vector<24x256xf32>
    %362 = arith.truncf %361 : vector<24x256xf32> to vector<24x256xbf16>
    %cst_120 = arith.constant dense<0.000000e+00> : vector<24x625xf32>
    %363 = tpu.matmul %362, %5, %cst_120 {dimension_numbers = #tpu.dot_dimension_numbers<[1], [0], [0], [1], [0, 0, 1, 1], [], []>} : vector<24x256xbf16>, vector<256x625xbf16>, vector<24x625xf32> -> vector<24x625xf32>
    %364 = arith.truncf %363 : vector<24x625xf32> to vector<24x625xbf16>
    %365 = vector.extract_strided_slice %6 {offsets = [0, 0, 0], sizes = [1, 48, 24], strides = [1, 1, 1]} : vector<25x48x24xbf16> to vector<1x48x24xbf16>
    %366 = vector.shape_cast %365 : vector<1x48x24xbf16> to vector<48x24xbf16>
    %367 = vector.extract_strided_slice %364 {offsets = [0, 0], sizes = [24, 25], strides = [1, 1]} : vector<24x625xbf16> to vector<24x25xbf16>
    %cst_121 = arith.constant dense<0.000000e+00> : vector<48x25xf32>
    %368 = tpu.matmul %366, %367, %cst_121 {dimension_numbers = #tpu.dot_dimension_numbers<[1], [0], [0], [1], [0, 0, 1, 1], [], []>} : vector<48x24xbf16>, vector<24x25xbf16>, vector<48x25xf32> -> vector<48x25xf32>
    %369 = vector.extract_strided_slice %6 {offsets = [1, 0, 0], sizes = [1, 48, 24], strides = [1, 1, 1]} : vector<25x48x24xbf16> to vector<1x48x24xbf16>
    %370 = vector.shape_cast %369 : vector<1x48x24xbf16> to vector<48x24xbf16>
    %371 = vector.extract_strided_slice %364 {offsets = [0, 25], sizes = [24, 25], strides = [1, 1]} : vector<24x625xbf16> to vector<24x25xbf16>
    %cst_122 = arith.constant dense<0.000000e+00> : vector<48x25xf32>
    %372 = tpu.matmul %370, %371, %cst_122 {dimension_numbers = #tpu.dot_dimension_numbers<[1], [0], [0], [1], [0, 0, 1, 1], [], []>} : vector<48x24xbf16>, vector<24x25xbf16>, vector<48x25xf32> -> vector<48x25xf32>
    %373 = arith.addf %368, %372 : vector<48x25xf32>
    %374 = vector.extract_strided_slice %6 {offsets = [2, 0, 0], sizes = [1, 48, 24], strides = [1, 1, 1]} : vector<25x48x24xbf16> to vector<1x48x24xbf16>
    %375 = vector.shape_cast %374 : vector<1x48x24xbf16> to vector<48x24xbf16>
    %376 = vector.extract_strided_slice %364 {offsets = [0, 50], sizes = [24, 25], strides = [1, 1]} : vector<24x625xbf16> to vector<24x25xbf16>
    %cst_123 = arith.constant dense<0.000000e+00> : vector<48x25xf32>
    %377 = tpu.matmul %375, %376, %cst_123 {dimension_numbers = #tpu.dot_dimension_numbers<[1], [0], [0], [1], [0, 0, 1, 1], [], []>} : vector<48x24xbf16>, vector<24x25xbf16>, vector<48x25xf32> -> vector<48x25xf32>
    %378 = arith.addf %373, %377 : vector<48x25xf32>
    %379 = vector.extract_strided_slice %6 {offsets = [3, 0, 0], sizes = [1, 48, 24], strides = [1, 1, 1]} : vector<25x48x24xbf16> to vector<1x48x24xbf16>
    %380 = vector.shape_cast %379 : vector<1x48x24xbf16> to vector<48x24xbf16>
    %381 = vector.extract_strided_slice %364 {offsets = [0, 75], sizes = [24, 25], strides = [1, 1]} : vector<24x625xbf16> to vector<24x25xbf16>
    %cst_124 = arith.constant dense<0.000000e+00> : vector<48x25xf32>
    %382 = tpu.matmul %380, %381, %cst_124 {dimension_numbers = #tpu.dot_dimension_numbers<[1], [0], [0], [1], [0, 0, 1, 1], [], []>} : vector<48x24xbf16>, vector<24x25xbf16>, vector<48x25xf32> -> vector<48x25xf32>
    %383 = arith.addf %378, %382 : vector<48x25xf32>
    %384 = vector.extract_strided_slice %6 {offsets = [4, 0, 0], sizes = [1, 48, 24], strides = [1, 1, 1]} : vector<25x48x24xbf16> to vector<1x48x24xbf16>
    %385 = vector.shape_cast %384 : vector<1x48x24xbf16> to vector<48x24xbf16>
    %386 = vector.extract_strided_slice %364 {offsets = [0, 100], sizes = [24, 25], strides = [1, 1]} : vector<24x625xbf16> to vector<24x25xbf16>
    %cst_125 = arith.constant dense<0.000000e+00> : vector<48x25xf32>
    %387 = tpu.matmul %385, %386, %cst_125 {dimension_numbers = #tpu.dot_dimension_numbers<[1], [0], [0], [1], [0, 0, 1, 1], [], []>} : vector<48x24xbf16>, vector<24x25xbf16>, vector<48x25xf32> -> vector<48x25xf32>
    %388 = arith.addf %383, %387 : vector<48x25xf32>
    %389 = vector.extract_strided_slice %6 {offsets = [5, 0, 0], sizes = [1, 48, 24], strides = [1, 1, 1]} : vector<25x48x24xbf16> to vector<1x48x24xbf16>
    %390 = vector.shape_cast %389 : vector<1x48x24xbf16> to vector<48x24xbf16>
    %391 = vector.extract_strided_slice %364 {offsets = [0, 125], sizes = [24, 25], strides = [1, 1]} : vector<24x625xbf16> to vector<24x25xbf16>
    %cst_126 = arith.constant dense<0.000000e+00> : vector<48x25xf32>
    %392 = tpu.matmul %390, %391, %cst_126 {dimension_numbers = #tpu.dot_dimension_numbers<[1], [0], [0], [1], [0, 0, 1, 1], [], []>} : vector<48x24xbf16>, vector<24x25xbf16>, vector<48x25xf32> -> vector<48x25xf32>
    %393 = arith.addf %388, %392 : vector<48x25xf32>
    %394 = vector.extract_strided_slice %6 {offsets = [6, 0, 0], sizes = [1, 48, 24], strides = [1, 1, 1]} : vector<25x48x24xbf16> to vector<1x48x24xbf16>
    %395 = vector.shape_cast %394 : vector<1x48x24xbf16> to vector<48x24xbf16>
    %396 = vector.extract_strided_slice %364 {offsets = [0, 150], sizes = [24, 25], strides = [1, 1]} : vector<24x625xbf16> to vector<24x25xbf16>
    %cst_127 = arith.constant dense<0.000000e+00> : vector<48x25xf32>
    %397 = tpu.matmul %395, %396, %cst_127 {dimension_numbers = #tpu.dot_dimension_numbers<[1], [0], [0], [1], [0, 0, 1, 1], [], []>} : vector<48x24xbf16>, vector<24x25xbf16>, vector<48x25xf32> -> vector<48x25xf32>
    %398 = arith.addf %393, %397 : vector<48x25xf32>
    %399 = vector.extract_strided_slice %6 {offsets = [7, 0, 0], sizes = [1, 48, 24], strides = [1, 1, 1]} : vector<25x48x24xbf16> to vector<1x48x24xbf16>
    %400 = vector.shape_cast %399 : vector<1x48x24xbf16> to vector<48x24xbf16>
    %401 = vector.extract_strided_slice %364 {offsets = [0, 175], sizes = [24, 25], strides = [1, 1]} : vector<24x625xbf16> to vector<24x25xbf16>
    %cst_128 = arith.constant dense<0.000000e+00> : vector<48x25xf32>
    %402 = tpu.matmul %400, %401, %cst_128 {dimension_numbers = #tpu.dot_dimension_numbers<[1], [0], [0], [1], [0, 0, 1, 1], [], []>} : vector<48x24xbf16>, vector<24x25xbf16>, vector<48x25xf32> -> vector<48x25xf32>
    %403 = arith.addf %398, %402 : vector<48x25xf32>
    %404 = vector.extract_strided_slice %6 {offsets = [8, 0, 0], sizes = [1, 48, 24], strides = [1, 1, 1]} : vector<25x48x24xbf16> to vector<1x48x24xbf16>
    %405 = vector.shape_cast %404 : vector<1x48x24xbf16> to vector<48x24xbf16>
    %406 = vector.extract_strided_slice %364 {offsets = [0, 200], sizes = [24, 25], strides = [1, 1]} : vector<24x625xbf16> to vector<24x25xbf16>
    %cst_129 = arith.constant dense<0.000000e+00> : vector<48x25xf32>
    %407 = tpu.matmul %405, %406, %cst_129 {dimension_numbers = #tpu.dot_dimension_numbers<[1], [0], [0], [1], [0, 0, 1, 1], [], []>} : vector<48x24xbf16>, vector<24x25xbf16>, vector<48x25xf32> -> vector<48x25xf32>
    %408 = arith.addf %403, %407 : vector<48x25xf32>
    %409 = vector.extract_strided_slice %6 {offsets = [9, 0, 0], sizes = [1, 48, 24], strides = [1, 1, 1]} : vector<25x48x24xbf16> to vector<1x48x24xbf16>
    %410 = vector.shape_cast %409 : vector<1x48x24xbf16> to vector<48x24xbf16>
    %411 = vector.extract_strided_slice %364 {offsets = [0, 225], sizes = [24, 25], strides = [1, 1]} : vector<24x625xbf16> to vector<24x25xbf16>
    %cst_130 = arith.constant dense<0.000000e+00> : vector<48x25xf32>
    %412 = tpu.matmul %410, %411, %cst_130 {dimension_numbers = #tpu.dot_dimension_numbers<[1], [0], [0], [1], [0, 0, 1, 1], [], []>} : vector<48x24xbf16>, vector<24x25xbf16>, vector<48x25xf32> -> vector<48x25xf32>
    %413 = arith.addf %408, %412 : vector<48x25xf32>
    %414 = vector.extract_strided_slice %6 {offsets = [10, 0, 0], sizes = [1, 48, 24], strides = [1, 1, 1]} : vector<25x48x24xbf16> to vector<1x48x24xbf16>
    %415 = vector.shape_cast %414 : vector<1x48x24xbf16> to vector<48x24xbf16>
    %416 = vector.extract_strided_slice %364 {offsets = [0, 250], sizes = [24, 25], strides = [1, 1]} : vector<24x625xbf16> to vector<24x25xbf16>
    %cst_131 = arith.constant dense<0.000000e+00> : vector<48x25xf32>
    %417 = tpu.matmul %415, %416, %cst_131 {dimension_numbers = #tpu.dot_dimension_numbers<[1], [0], [0], [1], [0, 0, 1, 1], [], []>} : vector<48x24xbf16>, vector<24x25xbf16>, vector<48x25xf32> -> vector<48x25xf32>
    %418 = arith.addf %413, %417 : vector<48x25xf32>
    %419 = vector.extract_strided_slice %6 {offsets = [11, 0, 0], sizes = [1, 48, 24], strides = [1, 1, 1]} : vector<25x48x24xbf16> to vector<1x48x24xbf16>
    %420 = vector.shape_cast %419 : vector<1x48x24xbf16> to vector<48x24xbf16>
    %421 = vector.extract_strided_slice %364 {offsets = [0, 275], sizes = [24, 25], strides = [1, 1]} : vector<24x625xbf16> to vector<24x25xbf16>
    %cst_132 = arith.constant dense<0.000000e+00> : vector<48x25xf32>
    %422 = tpu.matmul %420, %421, %cst_132 {dimension_numbers = #tpu.dot_dimension_numbers<[1], [0], [0], [1], [0, 0, 1, 1], [], []>} : vector<48x24xbf16>, vector<24x25xbf16>, vector<48x25xf32> -> vector<48x25xf32>
    %423 = arith.addf %418, %422 : vector<48x25xf32>
    %424 = vector.extract_strided_slice %6 {offsets = [12, 0, 0], sizes = [1, 48, 24], strides = [1, 1, 1]} : vector<25x48x24xbf16> to vector<1x48x24xbf16>
    %425 = vector.shape_cast %424 : vector<1x48x24xbf16> to vector<48x24xbf16>
    %426 = vector.extract_strided_slice %364 {offsets = [0, 300], sizes = [24, 25], strides = [1, 1]} : vector<24x625xbf16> to vector<24x25xbf16>
    %cst_133 = arith.constant dense<0.000000e+00> : vector<48x25xf32>
    %427 = tpu.matmul %425, %426, %cst_133 {dimension_numbers = #tpu.dot_dimension_numbers<[1], [0], [0], [1], [0, 0, 1, 1], [], []>} : vector<48x24xbf16>, vector<24x25xbf16>, vector<48x25xf32> -> vector<48x25xf32>
    %428 = arith.addf %423, %427 : vector<48x25xf32>
    %429 = vector.extract_strided_slice %6 {offsets = [13, 0, 0], sizes = [1, 48, 24], strides = [1, 1, 1]} : vector<25x48x24xbf16> to vector<1x48x24xbf16>
    %430 = vector.shape_cast %429 : vector<1x48x24xbf16> to vector<48x24xbf16>
    %431 = vector.extract_strided_slice %364 {offsets = [0, 325], sizes = [24, 25], strides = [1, 1]} : vector<24x625xbf16> to vector<24x25xbf16>
    %cst_134 = arith.constant dense<0.000000e+00> : vector<48x25xf32>
    %432 = tpu.matmul %430, %431, %cst_134 {dimension_numbers = #tpu.dot_dimension_numbers<[1], [0], [0], [1], [0, 0, 1, 1], [], []>} : vector<48x24xbf16>, vector<24x25xbf16>, vector<48x25xf32> -> vector<48x25xf32>
    %433 = arith.addf %428, %432 : vector<48x25xf32>
    %434 = vector.extract_strided_slice %6 {offsets = [14, 0, 0], sizes = [1, 48, 24], strides = [1, 1, 1]} : vector<25x48x24xbf16> to vector<1x48x24xbf16>
    %435 = vector.shape_cast %434 : vector<1x48x24xbf16> to vector<48x24xbf16>
    %436 = vector.extract_strided_slice %364 {offsets = [0, 350], sizes = [24, 25], strides = [1, 1]} : vector<24x625xbf16> to vector<24x25xbf16>
    %cst_135 = arith.constant dense<0.000000e+00> : vector<48x25xf32>
    %437 = tpu.matmul %435, %436, %cst_135 {dimension_numbers = #tpu.dot_dimension_numbers<[1], [0], [0], [1], [0, 0, 1, 1], [], []>} : vector<48x24xbf16>, vector<24x25xbf16>, vector<48x25xf32> -> vector<48x25xf32>
    %438 = arith.addf %433, %437 : vector<48x25xf32>
    %439 = vector.extract_strided_slice %6 {offsets = [15, 0, 0], sizes = [1, 48, 24], strides = [1, 1, 1]} : vector<25x48x24xbf16> to vector<1x48x24xbf16>
    %440 = vector.shape_cast %439 : vector<1x48x24xbf16> to vector<48x24xbf16>
    %441 = vector.extract_strided_slice %364 {offsets = [0, 375], sizes = [24, 25], strides = [1, 1]} : vector<24x625xbf16> to vector<24x25xbf16>
    %cst_136 = arith.constant dense<0.000000e+00> : vector<48x25xf32>
    %442 = tpu.matmul %440, %441, %cst_136 {dimension_numbers = #tpu.dot_dimension_numbers<[1], [0], [0], [1], [0, 0, 1, 1], [], []>} : vector<48x24xbf16>, vector<24x25xbf16>, vector<48x25xf32> -> vector<48x25xf32>
    %443 = arith.addf %438, %442 : vector<48x25xf32>
    %444 = vector.extract_strided_slice %6 {offsets = [16, 0, 0], sizes = [1, 48, 24], strides = [1, 1, 1]} : vector<25x48x24xbf16> to vector<1x48x24xbf16>
    %445 = vector.shape_cast %444 : vector<1x48x24xbf16> to vector<48x24xbf16>
    %446 = vector.extract_strided_slice %364 {offsets = [0, 400], sizes = [24, 25], strides = [1, 1]} : vector<24x625xbf16> to vector<24x25xbf16>
    %cst_137 = arith.constant dense<0.000000e+00> : vector<48x25xf32>
    %447 = tpu.matmul %445, %446, %cst_137 {dimension_numbers = #tpu.dot_dimension_numbers<[1], [0], [0], [1], [0, 0, 1, 1], [], []>} : vector<48x24xbf16>, vector<24x25xbf16>, vector<48x25xf32> -> vector<48x25xf32>
    %448 = arith.addf %443, %447 : vector<48x25xf32>
    %449 = vector.extract_strided_slice %6 {offsets = [17, 0, 0], sizes = [1, 48, 24], strides = [1, 1, 1]} : vector<25x48x24xbf16> to vector<1x48x24xbf16>
    %450 = vector.shape_cast %449 : vector<1x48x24xbf16> to vector<48x24xbf16>
    %451 = vector.extract_strided_slice %364 {offsets = [0, 425], sizes = [24, 25], strides = [1, 1]} : vector<24x625xbf16> to vector<24x25xbf16>
    %cst_138 = arith.constant dense<0.000000e+00> : vector<48x25xf32>
    %452 = tpu.matmul %450, %451, %cst_138 {dimension_numbers = #tpu.dot_dimension_numbers<[1], [0], [0], [1], [0, 0, 1, 1], [], []>} : vector<48x24xbf16>, vector<24x25xbf16>, vector<48x25xf32> -> vector<48x25xf32>
    %453 = arith.addf %448, %452 : vector<48x25xf32>
    %454 = vector.extract_strided_slice %6 {offsets = [18, 0, 0], sizes = [1, 48, 24], strides = [1, 1, 1]} : vector<25x48x24xbf16> to vector<1x48x24xbf16>
    %455 = vector.shape_cast %454 : vector<1x48x24xbf16> to vector<48x24xbf16>
    %456 = vector.extract_strided_slice %364 {offsets = [0, 450], sizes = [24, 25], strides = [1, 1]} : vector<24x625xbf16> to vector<24x25xbf16>
    %cst_139 = arith.constant dense<0.000000e+00> : vector<48x25xf32>
    %457 = tpu.matmul %455, %456, %cst_139 {dimension_numbers = #tpu.dot_dimension_numbers<[1], [0], [0], [1], [0, 0, 1, 1], [], []>} : vector<48x24xbf16>, vector<24x25xbf16>, vector<48x25xf32> -> vector<48x25xf32>
    %458 = arith.addf %453, %457 : vector<48x25xf32>
    %459 = vector.extract_strided_slice %6 {offsets = [19, 0, 0], sizes = [1, 48, 24], strides = [1, 1, 1]} : vector<25x48x24xbf16> to vector<1x48x24xbf16>
    %460 = vector.shape_cast %459 : vector<1x48x24xbf16> to vector<48x24xbf16>
    %461 = vector.extract_strided_slice %364 {offsets = [0, 475], sizes = [24, 25], strides = [1, 1]} : vector<24x625xbf16> to vector<24x25xbf16>
    %cst_140 = arith.constant dense<0.000000e+00> : vector<48x25xf32>
    %462 = tpu.matmul %460, %461, %cst_140 {dimension_numbers = #tpu.dot_dimension_numbers<[1], [0], [0], [1], [0, 0, 1, 1], [], []>} : vector<48x24xbf16>, vector<24x25xbf16>, vector<48x25xf32> -> vector<48x25xf32>
    %463 = arith.addf %458, %462 : vector<48x25xf32>
    %464 = vector.extract_strided_slice %6 {offsets = [20, 0, 0], sizes = [1, 48, 24], strides = [1, 1, 1]} : vector<25x48x24xbf16> to vector<1x48x24xbf16>
    %465 = vector.shape_cast %464 : vector<1x48x24xbf16> to vector<48x24xbf16>
    %466 = vector.extract_strided_slice %364 {offsets = [0, 500], sizes = [24, 25], strides = [1, 1]} : vector<24x625xbf16> to vector<24x25xbf16>
    %cst_141 = arith.constant dense<0.000000e+00> : vector<48x25xf32>
    %467 = tpu.matmul %465, %466, %cst_141 {dimension_numbers = #tpu.dot_dimension_numbers<[1], [0], [0], [1], [0, 0, 1, 1], [], []>} : vector<48x24xbf16>, vector<24x25xbf16>, vector<48x25xf32> -> vector<48x25xf32>
    %468 = arith.addf %463, %467 : vector<48x25xf32>
    %469 = vector.extract_strided_slice %6 {offsets = [21, 0, 0], sizes = [1, 48, 24], strides = [1, 1, 1]} : vector<25x48x24xbf16> to vector<1x48x24xbf16>
    %470 = vector.shape_cast %469 : vector<1x48x24xbf16> to vector<48x24xbf16>
    %471 = vector.extract_strided_slice %364 {offsets = [0, 525], sizes = [24, 25], strides = [1, 1]} : vector<24x625xbf16> to vector<24x25xbf16>
    %cst_142 = arith.constant dense<0.000000e+00> : vector<48x25xf32>
    %472 = tpu.matmul %470, %471, %cst_142 {dimension_numbers = #tpu.dot_dimension_numbers<[1], [0], [0], [1], [0, 0, 1, 1], [], []>} : vector<48x24xbf16>, vector<24x25xbf16>, vector<48x25xf32> -> vector<48x25xf32>
    %473 = arith.addf %468, %472 : vector<48x25xf32>
    %474 = vector.extract_strided_slice %6 {offsets = [22, 0, 0], sizes = [1, 48, 24], strides = [1, 1, 1]} : vector<25x48x24xbf16> to vector<1x48x24xbf16>
    %475 = vector.shape_cast %474 : vector<1x48x24xbf16> to vector<48x24xbf16>
    %476 = vector.extract_strided_slice %364 {offsets = [0, 550], sizes = [24, 25], strides = [1, 1]} : vector<24x625xbf16> to vector<24x25xbf16>
    %cst_143 = arith.constant dense<0.000000e+00> : vector<48x25xf32>
    %477 = tpu.matmul %475, %476, %cst_143 {dimension_numbers = #tpu.dot_dimension_numbers<[1], [0], [0], [1], [0, 0, 1, 1], [], []>} : vector<48x24xbf16>, vector<24x25xbf16>, vector<48x25xf32> -> vector<48x25xf32>
    %478 = arith.addf %473, %477 : vector<48x25xf32>
    %479 = vector.extract_strided_slice %6 {offsets = [23, 0, 0], sizes = [1, 48, 24], strides = [1, 1, 1]} : vector<25x48x24xbf16> to vector<1x48x24xbf16>
    %480 = vector.shape_cast %479 : vector<1x48x24xbf16> to vector<48x24xbf16>
    %481 = vector.extract_strided_slice %364 {offsets = [0, 575], sizes = [24, 25], strides = [1, 1]} : vector<24x625xbf16> to vector<24x25xbf16>
    %cst_144 = arith.constant dense<0.000000e+00> : vector<48x25xf32>
    %482 = tpu.matmul %480, %481, %cst_144 {dimension_numbers = #tpu.dot_dimension_numbers<[1], [0], [0], [1], [0, 0, 1, 1], [], []>} : vector<48x24xbf16>, vector<24x25xbf16>, vector<48x25xf32> -> vector<48x25xf32>
    %483 = arith.addf %478, %482 : vector<48x25xf32>
    %484 = vector.extract_strided_slice %6 {offsets = [24, 0, 0], sizes = [1, 48, 24], strides = [1, 1, 1]} : vector<25x48x24xbf16> to vector<1x48x24xbf16>
    %485 = vector.shape_cast %484 : vector<1x48x24xbf16> to vector<48x24xbf16>
    %486 = vector.extract_strided_slice %364 {offsets = [0, 600], sizes = [24, 25], strides = [1, 1]} : vector<24x625xbf16> to vector<24x25xbf16>
    %cst_145 = arith.constant dense<0.000000e+00> : vector<48x25xf32>
    %487 = tpu.matmul %485, %486, %cst_145 {dimension_numbers = #tpu.dot_dimension_numbers<[1], [0], [0], [1], [0, 0, 1, 1], [], []>} : vector<48x24xbf16>, vector<24x25xbf16>, vector<48x25xf32> -> vector<48x25xf32>
    %488 = arith.addf %483, %487 : vector<48x25xf32>
    %cst_146 = arith.constant dense<0.000000e+00> : vector<48xf32>
    %489 = vector.multi_reduction <add>, %488, %cst_146 [1] : vector<48x25xf32> to vector<48xf32>
    %490 = vector.shape_cast %489 : vector<48xf32> to vector<48x1xf32>
    %cst_147 = arith.constant 2.500000e+01 : f32
    %491 = vector.broadcast %cst_147 : f32 to vector<48x1xf32>
    %492 = arith.divf %490, %491 : vector<48x1xf32>
    %493 = vector.broadcast %492 : vector<48x1xf32> to vector<48x25xf32>
    %494 = arith.subf %488, %493 : vector<48x25xf32>
    %495 = arith.mulf %494, %494 : vector<48x25xf32>
    %cst_148 = arith.constant dense<0.000000e+00> : vector<48xf32>
    %496 = vector.multi_reduction <add>, %495, %cst_148 [1] : vector<48x25xf32> to vector<48xf32>
    %497 = vector.shape_cast %496 : vector<48xf32> to vector<48x1xf32>
    %cst_149 = arith.constant 2.500000e+01 : f32
    %498 = vector.broadcast %cst_149 : f32 to vector<48x1xf32>
    %499 = arith.divf %497, %498 : vector<48x1xf32>
    %cst_150 = arith.constant 9.99999974E-6 : f32
    %500 = vector.broadcast %cst_150 : f32 to vector<48x1xf32>
    %501 = arith.addf %499, %500 : vector<48x1xf32>
    %502 = math.rsqrt %501 : vector<48x1xf32>
    %503 = vector.broadcast %502 : vector<48x1xf32> to vector<48x25xf32>
    %504 = arith.mulf %494, %503 : vector<48x25xf32>
    %505 = vector.broadcast %7 : vector<1x25xf32> to vector<48x25xf32>
    %506 = arith.mulf %504, %505 : vector<48x25xf32>
    %507 = vector.broadcast %8 : vector<1x25xf32> to vector<48x25xf32>
    %508 = arith.addf %506, %507 : vector<48x25xf32>
    %cst_151 = arith.constant 0.000000e+00 : f32
    %509 = vector.broadcast %cst_151 : f32 to vector<48x25xf32>
    %510 = arith.cmpf ogt, %508, %509 : vector<48x25xf32>
    %cst_152 = arith.constant 1.000000e-01 : f32
    %511 = vector.broadcast %cst_152 : f32 to vector<48x25xf32>
    %512 = arith.mulf %511, %508 : vector<48x25xf32>
    %513 = arith.select %510, %508, %512 : vector<48x25xi1>, vector<48x25xf32>
    %514 = arith.truncf %513 : vector<48x25xf32> to vector<48x25xbf16>
    %cst_153 = arith.constant dense<0.000000e+00> : vector<48x64xf32>
    %515 = tpu.matmul %514, %9, %cst_153 {dimension_numbers = #tpu.dot_dimension_numbers<[1], [0], [0], [1], [0, 0, 1, 1], [], []>} : vector<48x25xbf16>, vector<25x64xbf16>, vector<48x64xf32> -> vector<48x64xf32>
    %516 = arith.truncf %515 : vector<48x64xf32> to vector<48x64xbf16>
    %517 = vector.extract_strided_slice %10 {offsets = [0, 0, 0], sizes = [1, 48, 48], strides = [1, 1, 1]} : vector<16x48x48xbf16> to vector<1x48x48xbf16>
    %518 = vector.shape_cast %517 : vector<1x48x48xbf16> to vector<48x48xbf16>
    %519 = vector.extract_strided_slice %516 {offsets = [0, 0], sizes = [48, 4], strides = [1, 1]} : vector<48x64xbf16> to vector<48x4xbf16>
    %cst_154 = arith.constant dense<0.000000e+00> : vector<48x4xf32>
    %520 = tpu.matmul %518, %519, %cst_154 {dimension_numbers = #tpu.dot_dimension_numbers<[1], [0], [0], [1], [0, 0, 1, 1], [], []>} : vector<48x48xbf16>, vector<48x4xbf16>, vector<48x4xf32> -> vector<48x4xf32>
    %521 = vector.extract_strided_slice %10 {offsets = [1, 0, 0], sizes = [1, 48, 48], strides = [1, 1, 1]} : vector<16x48x48xbf16> to vector<1x48x48xbf16>
    %522 = vector.shape_cast %521 : vector<1x48x48xbf16> to vector<48x48xbf16>
    %523 = vector.extract_strided_slice %516 {offsets = [0, 4], sizes = [48, 4], strides = [1, 1]} : vector<48x64xbf16> to vector<48x4xbf16>
    %cst_155 = arith.constant dense<0.000000e+00> : vector<48x4xf32>
    %524 = tpu.matmul %522, %523, %cst_155 {dimension_numbers = #tpu.dot_dimension_numbers<[1], [0], [0], [1], [0, 0, 1, 1], [], []>} : vector<48x48xbf16>, vector<48x4xbf16>, vector<48x4xf32> -> vector<48x4xf32>
    %525 = arith.addf %520, %524 : vector<48x4xf32>
    %526 = vector.extract_strided_slice %10 {offsets = [2, 0, 0], sizes = [1, 48, 48], strides = [1, 1, 1]} : vector<16x48x48xbf16> to vector<1x48x48xbf16>
    %527 = vector.shape_cast %526 : vector<1x48x48xbf16> to vector<48x48xbf16>
    %528 = vector.extract_strided_slice %516 {offsets = [0, 8], sizes = [48, 4], strides = [1, 1]} : vector<48x64xbf16> to vector<48x4xbf16>
    %cst_156 = arith.constant dense<0.000000e+00> : vector<48x4xf32>
    %529 = tpu.matmul %527, %528, %cst_156 {dimension_numbers = #tpu.dot_dimension_numbers<[1], [0], [0], [1], [0, 0, 1, 1], [], []>} : vector<48x48xbf16>, vector<48x4xbf16>, vector<48x4xf32> -> vector<48x4xf32>
    %530 = arith.addf %525, %529 : vector<48x4xf32>
    %531 = vector.extract_strided_slice %10 {offsets = [3, 0, 0], sizes = [1, 48, 48], strides = [1, 1, 1]} : vector<16x48x48xbf16> to vector<1x48x48xbf16>
    %532 = vector.shape_cast %531 : vector<1x48x48xbf16> to vector<48x48xbf16>
    %533 = vector.extract_strided_slice %516 {offsets = [0, 12], sizes = [48, 4], strides = [1, 1]} : vector<48x64xbf16> to vector<48x4xbf16>
    %cst_157 = arith.constant dense<0.000000e+00> : vector<48x4xf32>
    %534 = tpu.matmul %532, %533, %cst_157 {dimension_numbers = #tpu.dot_dimension_numbers<[1], [0], [0], [1], [0, 0, 1, 1], [], []>} : vector<48x48xbf16>, vector<48x4xbf16>, vector<48x4xf32> -> vector<48x4xf32>
    %535 = arith.addf %530, %534 : vector<48x4xf32>
    %536 = vector.extract_strided_slice %10 {offsets = [4, 0, 0], sizes = [1, 48, 48], strides = [1, 1, 1]} : vector<16x48x48xbf16> to vector<1x48x48xbf16>
    %537 = vector.shape_cast %536 : vector<1x48x48xbf16> to vector<48x48xbf16>
    %538 = vector.extract_strided_slice %516 {offsets = [0, 16], sizes = [48, 4], strides = [1, 1]} : vector<48x64xbf16> to vector<48x4xbf16>
    %cst_158 = arith.constant dense<0.000000e+00> : vector<48x4xf32>
    %539 = tpu.matmul %537, %538, %cst_158 {dimension_numbers = #tpu.dot_dimension_numbers<[1], [0], [0], [1], [0, 0, 1, 1], [], []>} : vector<48x48xbf16>, vector<48x4xbf16>, vector<48x4xf32> -> vector<48x4xf32>
    %540 = arith.addf %535, %539 : vector<48x4xf32>
    %541 = vector.extract_strided_slice %10 {offsets = [5, 0, 0], sizes = [1, 48, 48], strides = [1, 1, 1]} : vector<16x48x48xbf16> to vector<1x48x48xbf16>
    %542 = vector.shape_cast %541 : vector<1x48x48xbf16> to vector<48x48xbf16>
    %543 = vector.extract_strided_slice %516 {offsets = [0, 20], sizes = [48, 4], strides = [1, 1]} : vector<48x64xbf16> to vector<48x4xbf16>
    %cst_159 = arith.constant dense<0.000000e+00> : vector<48x4xf32>
    %544 = tpu.matmul %542, %543, %cst_159 {dimension_numbers = #tpu.dot_dimension_numbers<[1], [0], [0], [1], [0, 0, 1, 1], [], []>} : vector<48x48xbf16>, vector<48x4xbf16>, vector<48x4xf32> -> vector<48x4xf32>
    %545 = arith.addf %540, %544 : vector<48x4xf32>
    %546 = vector.extract_strided_slice %10 {offsets = [6, 0, 0], sizes = [1, 48, 48], strides = [1, 1, 1]} : vector<16x48x48xbf16> to vector<1x48x48xbf16>
    %547 = vector.shape_cast %546 : vector<1x48x48xbf16> to vector<48x48xbf16>
    %548 = vector.extract_strided_slice %516 {offsets = [0, 24], sizes = [48, 4], strides = [1, 1]} : vector<48x64xbf16> to vector<48x4xbf16>
    %cst_160 = arith.constant dense<0.000000e+00> : vector<48x4xf32>
    %549 = tpu.matmul %547, %548, %cst_160 {dimension_numbers = #tpu.dot_dimension_numbers<[1], [0], [0], [1], [0, 0, 1, 1], [], []>} : vector<48x48xbf16>, vector<48x4xbf16>, vector<48x4xf32> -> vector<48x4xf32>
    %550 = arith.addf %545, %549 : vector<48x4xf32>
    %551 = vector.extract_strided_slice %10 {offsets = [7, 0, 0], sizes = [1, 48, 48], strides = [1, 1, 1]} : vector<16x48x48xbf16> to vector<1x48x48xbf16>
    %552 = vector.shape_cast %551 : vector<1x48x48xbf16> to vector<48x48xbf16>
    %553 = vector.extract_strided_slice %516 {offsets = [0, 28], sizes = [48, 4], strides = [1, 1]} : vector<48x64xbf16> to vector<48x4xbf16>
    %cst_161 = arith.constant dense<0.000000e+00> : vector<48x4xf32>
    %554 = tpu.matmul %552, %553, %cst_161 {dimension_numbers = #tpu.dot_dimension_numbers<[1], [0], [0], [1], [0, 0, 1, 1], [], []>} : vector<48x48xbf16>, vector<48x4xbf16>, vector<48x4xf32> -> vector<48x4xf32>
    %555 = arith.addf %550, %554 : vector<48x4xf32>
    %556 = vector.extract_strided_slice %10 {offsets = [8, 0, 0], sizes = [1, 48, 48], strides = [1, 1, 1]} : vector<16x48x48xbf16> to vector<1x48x48xbf16>
    %557 = vector.shape_cast %556 : vector<1x48x48xbf16> to vector<48x48xbf16>
    %558 = vector.extract_strided_slice %516 {offsets = [0, 32], sizes = [48, 4], strides = [1, 1]} : vector<48x64xbf16> to vector<48x4xbf16>
    %cst_162 = arith.constant dense<0.000000e+00> : vector<48x4xf32>
    %559 = tpu.matmul %557, %558, %cst_162 {dimension_numbers = #tpu.dot_dimension_numbers<[1], [0], [0], [1], [0, 0, 1, 1], [], []>} : vector<48x48xbf16>, vector<48x4xbf16>, vector<48x4xf32> -> vector<48x4xf32>
    %560 = arith.addf %555, %559 : vector<48x4xf32>
    %561 = vector.extract_strided_slice %10 {offsets = [9, 0, 0], sizes = [1, 48, 48], strides = [1, 1, 1]} : vector<16x48x48xbf16> to vector<1x48x48xbf16>
    %562 = vector.shape_cast %561 : vector<1x48x48xbf16> to vector<48x48xbf16>
    %563 = vector.extract_strided_slice %516 {offsets = [0, 36], sizes = [48, 4], strides = [1, 1]} : vector<48x64xbf16> to vector<48x4xbf16>
    %cst_163 = arith.constant dense<0.000000e+00> : vector<48x4xf32>
    %564 = tpu.matmul %562, %563, %cst_163 {dimension_numbers = #tpu.dot_dimension_numbers<[1], [0], [0], [1], [0, 0, 1, 1], [], []>} : vector<48x48xbf16>, vector<48x4xbf16>, vector<48x4xf32> -> vector<48x4xf32>
    %565 = arith.addf %560, %564 : vector<48x4xf32>
    %566 = vector.extract_strided_slice %10 {offsets = [10, 0, 0], sizes = [1, 48, 48], strides = [1, 1, 1]} : vector<16x48x48xbf16> to vector<1x48x48xbf16>
    %567 = vector.shape_cast %566 : vector<1x48x48xbf16> to vector<48x48xbf16>
    %568 = vector.extract_strided_slice %516 {offsets = [0, 40], sizes = [48, 4], strides = [1, 1]} : vector<48x64xbf16> to vector<48x4xbf16>
    %cst_164 = arith.constant dense<0.000000e+00> : vector<48x4xf32>
    %569 = tpu.matmul %567, %568, %cst_164 {dimension_numbers = #tpu.dot_dimension_numbers<[1], [0], [0], [1], [0, 0, 1, 1], [], []>} : vector<48x48xbf16>, vector<48x4xbf16>, vector<48x4xf32> -> vector<48x4xf32>
    %570 = arith.addf %565, %569 : vector<48x4xf32>
    %571 = vector.extract_strided_slice %10 {offsets = [11, 0, 0], sizes = [1, 48, 48], strides = [1, 1, 1]} : vector<16x48x48xbf16> to vector<1x48x48xbf16>
    %572 = vector.shape_cast %571 : vector<1x48x48xbf16> to vector<48x48xbf16>
    %573 = vector.extract_strided_slice %516 {offsets = [0, 44], sizes = [48, 4], strides = [1, 1]} : vector<48x64xbf16> to vector<48x4xbf16>
    %cst_165 = arith.constant dense<0.000000e+00> : vector<48x4xf32>
    %574 = tpu.matmul %572, %573, %cst_165 {dimension_numbers = #tpu.dot_dimension_numbers<[1], [0], [0], [1], [0, 0, 1, 1], [], []>} : vector<48x48xbf16>, vector<48x4xbf16>, vector<48x4xf32> -> vector<48x4xf32>
    %575 = arith.addf %570, %574 : vector<48x4xf32>
    %576 = vector.extract_strided_slice %10 {offsets = [12, 0, 0], sizes = [1, 48, 48], strides = [1, 1, 1]} : vector<16x48x48xbf16> to vector<1x48x48xbf16>
    %577 = vector.shape_cast %576 : vector<1x48x48xbf16> to vector<48x48xbf16>
    %578 = vector.extract_strided_slice %516 {offsets = [0, 48], sizes = [48, 4], strides = [1, 1]} : vector<48x64xbf16> to vector<48x4xbf16>
    %cst_166 = arith.constant dense<0.000000e+00> : vector<48x4xf32>
    %579 = tpu.matmul %577, %578, %cst_166 {dimension_numbers = #tpu.dot_dimension_numbers<[1], [0], [0], [1], [0, 0, 1, 1], [], []>} : vector<48x48xbf16>, vector<48x4xbf16>, vector<48x4xf32> -> vector<48x4xf32>
    %580 = arith.addf %575, %579 : vector<48x4xf32>
    %581 = vector.extract_strided_slice %10 {offsets = [13, 0, 0], sizes = [1, 48, 48], strides = [1, 1, 1]} : vector<16x48x48xbf16> to vector<1x48x48xbf16>
    %582 = vector.shape_cast %581 : vector<1x48x48xbf16> to vector<48x48xbf16>
    %583 = vector.extract_strided_slice %516 {offsets = [0, 52], sizes = [48, 4], strides = [1, 1]} : vector<48x64xbf16> to vector<48x4xbf16>
    %cst_167 = arith.constant dense<0.000000e+00> : vector<48x4xf32>
    %584 = tpu.matmul %582, %583, %cst_167 {dimension_numbers = #tpu.dot_dimension_numbers<[1], [0], [0], [1], [0, 0, 1, 1], [], []>} : vector<48x48xbf16>, vector<48x4xbf16>, vector<48x4xf32> -> vector<48x4xf32>
    %585 = arith.addf %580, %584 : vector<48x4xf32>
    %586 = vector.extract_strided_slice %10 {offsets = [14, 0, 0], sizes = [1, 48, 48], strides = [1, 1, 1]} : vector<16x48x48xbf16> to vector<1x48x48xbf16>
    %587 = vector.shape_cast %586 : vector<1x48x48xbf16> to vector<48x48xbf16>
    %588 = vector.extract_strided_slice %516 {offsets = [0, 56], sizes = [48, 4], strides = [1, 1]} : vector<48x64xbf16> to vector<48x4xbf16>
    %cst_168 = arith.constant dense<0.000000e+00> : vector<48x4xf32>
    %589 = tpu.matmul %587, %588, %cst_168 {dimension_numbers = #tpu.dot_dimension_numbers<[1], [0], [0], [1], [0, 0, 1, 1], [], []>} : vector<48x48xbf16>, vector<48x4xbf16>, vector<48x4xf32> -> vector<48x4xf32>
    %590 = arith.addf %585, %589 : vector<48x4xf32>
    %591 = vector.extract_strided_slice %10 {offsets = [15, 0, 0], sizes = [1, 48, 48], strides = [1, 1, 1]} : vector<16x48x48xbf16> to vector<1x48x48xbf16>
    %592 = vector.shape_cast %591 : vector<1x48x48xbf16> to vector<48x48xbf16>
    %593 = vector.extract_strided_slice %516 {offsets = [0, 60], sizes = [48, 4], strides = [1, 1]} : vector<48x64xbf16> to vector<48x4xbf16>
    %cst_169 = arith.constant dense<0.000000e+00> : vector<48x4xf32>
    %594 = tpu.matmul %592, %593, %cst_169 {dimension_numbers = #tpu.dot_dimension_numbers<[1], [0], [0], [1], [0, 0, 1, 1], [], []>} : vector<48x48xbf16>, vector<48x4xbf16>, vector<48x4xf32> -> vector<48x4xf32>
    %595 = arith.addf %590, %594 : vector<48x4xf32>
    %cst_170 = arith.constant dense<0.000000e+00> : vector<48xf32>
    %596 = vector.multi_reduction <add>, %595, %cst_170 [1] : vector<48x4xf32> to vector<48xf32>
    %597 = vector.shape_cast %596 : vector<48xf32> to vector<48x1xf32>
    %cst_171 = arith.constant 4.000000e+00 : f32
    %598 = vector.broadcast %cst_171 : f32 to vector<48x1xf32>
    %599 = arith.divf %597, %598 : vector<48x1xf32>
    %600 = vector.broadcast %599 : vector<48x1xf32> to vector<48x4xf32>
    %601 = arith.subf %595, %600 : vector<48x4xf32>
    %602 = arith.mulf %601, %601 : vector<48x4xf32>
    %cst_172 = arith.constant dense<0.000000e+00> : vector<48xf32>
    %603 = vector.multi_reduction <add>, %602, %cst_172 [1] : vector<48x4xf32> to vector<48xf32>
    %604 = vector.shape_cast %603 : vector<48xf32> to vector<48x1xf32>
    %cst_173 = arith.constant 4.000000e+00 : f32
    %605 = vector.broadcast %cst_173 : f32 to vector<48x1xf32>
    %606 = arith.divf %604, %605 : vector<48x1xf32>
    %cst_174 = arith.constant 9.99999974E-6 : f32
    %607 = vector.broadcast %cst_174 : f32 to vector<48x1xf32>
    %608 = arith.addf %606, %607 : vector<48x1xf32>
    %609 = math.rsqrt %608 : vector<48x1xf32>
    %610 = vector.broadcast %609 : vector<48x1xf32> to vector<48x4xf32>
    %611 = arith.mulf %601, %610 : vector<48x4xf32>
    %612 = vector.broadcast %11 : vector<1x4xf32> to vector<48x4xf32>
    %613 = arith.mulf %611, %612 : vector<48x4xf32>
    %614 = vector.broadcast %12 : vector<1x4xf32> to vector<48x4xf32>
    %615 = arith.addf %613, %614 : vector<48x4xf32>
    %cst_175 = arith.constant 0.000000e+00 : f32
    %616 = vector.broadcast %cst_175 : f32 to vector<48x4xf32>
    %617 = arith.cmpf ogt, %615, %616 : vector<48x4xf32>
    %cst_176 = arith.constant 1.000000e-01 : f32
    %618 = vector.broadcast %cst_176 : f32 to vector<48x4xf32>
    %619 = arith.mulf %618, %615 : vector<48x4xf32>
    %620 = arith.select %617, %615, %619 : vector<48x4xi1>, vector<48x4xf32>
    %621 = vector.extract_strided_slice %13 {offsets = [0, 0, 0], sizes = [1, 4, 48], strides = [1, 1, 1]} : vector<4x4x48xf32> to vector<1x4x48xf32>
    %622 = vector.shape_cast %621 : vector<1x4x48xf32> to vector<4x48xf32>
    %623 = vector.extract_strided_slice %620 {offsets = [0, 0], sizes = [48, 1], strides = [1, 1]} : vector<48x4xf32> to vector<48x1xf32>
    %cst_177 = arith.constant dense<0.000000e+00> : vector<4x1xf32>
    %624 = tpu.matmul %622, %623, %cst_177 {dimension_numbers = #tpu.dot_dimension_numbers<[1], [0], [0], [1], [0, 0, 1, 1], [], []>} : vector<4x48xf32>, vector<48x1xf32>, vector<4x1xf32> -> vector<4x1xf32>
    %625 = arith.addf %15, %624 : vector<4x1xf32>
    %626 = vector.extract_strided_slice %13 {offsets = [1, 0, 0], sizes = [1, 4, 48], strides = [1, 1, 1]} : vector<4x4x48xf32> to vector<1x4x48xf32>
    %627 = vector.shape_cast %626 : vector<1x4x48xf32> to vector<4x48xf32>
    %628 = vector.extract_strided_slice %620 {offsets = [0, 1], sizes = [48, 1], strides = [1, 1]} : vector<48x4xf32> to vector<48x1xf32>
    %cst_178 = arith.constant dense<0.000000e+00> : vector<4x1xf32>
    %629 = tpu.matmul %627, %628, %cst_178 {dimension_numbers = #tpu.dot_dimension_numbers<[1], [0], [0], [1], [0, 0, 1, 1], [], []>} : vector<4x48xf32>, vector<48x1xf32>, vector<4x1xf32> -> vector<4x1xf32>
    %630 = arith.addf %625, %629 : vector<4x1xf32>
    %631 = vector.extract_strided_slice %13 {offsets = [2, 0, 0], sizes = [1, 4, 48], strides = [1, 1, 1]} : vector<4x4x48xf32> to vector<1x4x48xf32>
    %632 = vector.shape_cast %631 : vector<1x4x48xf32> to vector<4x48xf32>
    %633 = vector.extract_strided_slice %620 {offsets = [0, 2], sizes = [48, 1], strides = [1, 1]} : vector<48x4xf32> to vector<48x1xf32>
    %cst_179 = arith.constant dense<0.000000e+00> : vector<4x1xf32>
    %634 = tpu.matmul %632, %633, %cst_179 {dimension_numbers = #tpu.dot_dimension_numbers<[1], [0], [0], [1], [0, 0, 1, 1], [], []>} : vector<4x48xf32>, vector<48x1xf32>, vector<4x1xf32> -> vector<4x1xf32>
    %635 = arith.addf %630, %634 : vector<4x1xf32>
    %636 = vector.extract_strided_slice %13 {offsets = [3, 0, 0], sizes = [1, 4, 48], strides = [1, 1, 1]} : vector<4x4x48xf32> to vector<1x4x48xf32>
    %637 = vector.shape_cast %636 : vector<1x4x48xf32> to vector<4x48xf32>
    %638 = vector.extract_strided_slice %620 {offsets = [0, 3], sizes = [48, 1], strides = [1, 1]} : vector<48x4xf32> to vector<48x1xf32>
    %cst_180 = arith.constant dense<0.000000e+00> : vector<4x1xf32>
    %639 = tpu.matmul %637, %638, %cst_180 {dimension_numbers = #tpu.dot_dimension_numbers<[1], [0], [0], [1], [0, 0, 1, 1], [], []>} : vector<4x48xf32>, vector<48x1xf32>, vector<4x1xf32> -> vector<4x1xf32>
    %640 = arith.addf %635, %639 : vector<4x1xf32>
    %641 = vector.extract_strided_slice %1 {offsets = [0, 1], sizes = [64, 1], strides = [1, 1]} : vector<64x2xf32> to vector<64x1xf32>
    %cst_181 = arith.constant dense<0.000000e+00> : vector<4x1xf32>
    %642 = tpu.matmul %14, %641, %cst_181 {dimension_numbers = #tpu.dot_dimension_numbers<[1], [0], [0], [1], [0, 0, 1, 1], [], []>} : vector<4x64xf32>, vector<64x1xf32>, vector<4x1xf32> -> vector<4x1xf32>
    %643 = arith.addf %640, %642 : vector<4x1xf32>
    %cst_182 = arith.constant 0.000000e+00 : f32
    %644 = vector.broadcast %cst_182 : f32 to vector<4x1xf32>
    %645 = arith.cmpf ogt, %643, %644 : vector<4x1xf32>
    %cst_183 = arith.constant 2.000000e-01 : f32
    %646 = vector.broadcast %cst_183 : f32 to vector<4x1xf32>
    %647 = arith.mulf %646, %643 : vector<4x1xf32>
    %648 = arith.select %645, %643, %647 : vector<4x1xi1>, vector<4x1xf32>
    %cst_184 = arith.constant dense<0.000000e+00> : vector<1x1xf32>
    %649 = tpu.matmul %16, %648, %cst_184 {dimension_numbers = #tpu.dot_dimension_numbers<[1], [0], [0], [1], [0, 0, 1, 1], [], []>} : vector<1x4xf32>, vector<4x1xf32>, vector<1x1xf32> -> vector<1x1xf32>
    %650 = arith.addf %649, %17 : vector<1x1xf32>
    %c1 = arith.constant 1 : index
    %c0_185 = arith.constant 0 : index
    %651 = vector.load %arg18[%c1, %c0_185] : memref<2x1xf32, #tpu.memory_space<vmem>>, vector<1x1xf32>
    tpu.vector_store %arg18[%c1, %c0_185], %650 {strides = array<i32>} : memref<2x1xf32, #tpu.memory_space<vmem>>, vector<1x1xf32>,
    return
  }
}

</mosaic_0001>

<bundles_post_ra>
// kernel: _forward_impl.2
= control target key start
LH: loop header
LB: loop body
LE: loop exit
PB: predicated region body
PF: predicated region fallthrough
CT: control target
= control target key end

     0   :  { %vm215_vm0 = vcmask 523264   ;;  %vm566_vm1 = vcmask 519168   ;;  %s1621_s1 = inlined_call_operand.vmem [shape: bf16[64,64], index: 1, kind: input, shape index: {}]   ;;  %s1622_s0 = inlined_call_operand.vmem [shape: bf16[384,64], index: 0, kind: input, shape index: {}]   ;;  %s1623_s2 = inlined_call_operand.vmem [shape: bf16[64,64], index: 2, kind: input, shape index: {}]   ;;  %s1624_s3 = inlined_call_operand.vmem [shape: bf16[6,64,64], index: 3, kind: output, shape index: {}]  }
   0x1   :  { %v1172_v0 = vld [vmem:[%s1621_s1 + $0x18] sm:$0xff]  ;;  %v1171_v1 = vld [vmem:[%s1621_s1 + $0x10] sm:$0xff]  ;;  %v1170_v2 = vld [vmem:[%s1621_s1 + $0x8] sm:$0xff] }
   0x2   :  { %292 = vmatpush.bf16.msra.mxu0 %v1172_v0  ;;  %1178 = vmatpush.bf16.msra.mxu2 %v1172_v0  ;;  %v1169_v3 = vld [vmem:[%s1621_s1] sm:$0xff]  ;;  %v1146_v5 = vld [vmem:[%s1622_s0 + $0x8] sm:$0xff]  ;;  %v1147_v6 = vld [vmem:[%s1622_s0 + $0x10] sm:$0xff] }
   0x3   :  { %1177 = vmatpush.bf16.msra.mxu1 %v1172_v0  ;;  %1179 = vmatpush.bf16.msra.mxu3 %v1172_v0  ;;  %v1145_v4 = vld [vmem:[%s1622_s0] sm:$0xff]  ;;  %v1148_v7 = vld [vmem:[%s1622_s0 + $0x18] sm:$0xff]  ;;  %v1150_v9 = vld [vmem:[%s1622_s0 + $0x28] sm:$0xff] }
   0x4   :  { %v1149_v8 = vld [vmem:[%s1622_s0 + $0x20] sm:$0xff]  ;;  %v1151_v11 = vld [vmem:[%s1622_s0 + $0x30] sm:$0xff]  ;;  %v1162_v13 = vld [vmem:[%s1622_s0 + $0x88] sm:$0xff] }
   0x5   :  { %v1161_v10 = vld [vmem:[%s1622_s0 + $0x80] sm:$0xff]  ;;  %v1152_v15 = vld [vmem:[%s1622_s0 + $0x38] sm:$0xff]  ;;  %v1158_v16 = vld [vmem:[%s1622_s0 + $0x68] sm:$0xff] }
   0x6   :  { %293 = vmatpush.bf16.msra.mxu0 %v1171_v1  ;;  %1181 = vmatpush.bf16.msra.mxu2 %v1171_v1  ;;  %v1157_v12 = vld [vmem:[%s1622_s0 + $0x60] sm:$0xff]  ;;  %v1163_v17 = vld [vmem:[%s1622_s0 + $0x90] sm:$0xff]  ;;  %v1166_v18 = vld [vmem:[%s1622_s0 + $0xa8] sm:$0xff] }
   0x7   :  { %1180 = vmatpush.bf16.msra.mxu1 %v1171_v1  ;;  %1182 = vmatpush.bf16.msra.mxu3 %v1171_v1  ;;  %v1165_v14 = vld [vmem:[%s1622_s0 + $0xa0] sm:$0xff]  ;;  %v1159_v21 = vld [vmem:[%s1622_s0 + $0x70] sm:$0xff]  ;;  %v1164_v22 = vld [vmem:[%s1622_s0 + $0x98] sm:$0xff] }
   0x8   :  { %v1153_v19 = vld [vmem:[%s1622_s0 + $0x40] sm:$0xff]  ;;  %v1167_v24 = vld [vmem:[%s1622_s0 + $0xb0] sm:$0xff]  ;;  %v1154_v25 = vld [vmem:[%s1622_s0 + $0x48] sm:$0xff] }
   0x9   :  { %v1160_v27 = vld [vmem:[%s1622_s0 + $0x78] sm:$0xff]  ;;  %v1155_v30 = vld [vmem:[%s1622_s0 + $0x50] sm:$0xff] }
   0xa   :  { %294 = vmatpush.bf16.msra.mxu0 %v1170_v2  ;;  %1184 = vmatpush.bf16.msra.mxu2 %v1170_v2  ;;  %v1168_v29 = vld [vmem:[%s1622_s0 + $0xb8] sm:$0xff] }
   0xb   :  { %1183 = vmatpush.bf16.msra.mxu1 %v1170_v2  ;;  %1185 = vmatpush.bf16.msra.mxu3 %v1170_v2  ;;  %v1156_v33 = vld [vmem:[%s1622_s0 + $0x58] sm:$0xff] }
   0xe   :  { %295 = vmatpush.bf16.msra.mxu0 %v1169_v3  ;;  %1187 = vmatpush.bf16.msra.mxu2 %v1169_v3 }
   0xf   :  { %1186 = vmatpush.bf16.msra.mxu1 %v1169_v3  ;;  %1188 = vmatpush.bf16.msra.mxu3 %v1169_v3 }
  0x11   :  { %1041 = vmatmul.msk.bf16.vlgmr.msra.gmra.mxu0 %vm215_vm0, %v1145_v4  ;;  %1057 = vmatmul.msk.bf16.vlgmr.msra.gmra.mxu2 %vm215_vm0, %v1161_v10 }
  0x12   :  { %1053 = vmatmul.msk.bf16.vlgmr.msra.gmra.mxu1 %vm215_vm0, %v1157_v12  ;;  %1061 = vmatmul.msk.bf16.vlgmr.msra.gmra.mxu3 %vm215_vm0, %v1165_v14 }
  0x21   :  { %1042 = vmatmul.msk.bf16.gmra.mxu0 %vm215_vm0, %v1146_v5  ;;  %1058 = vmatmul.msk.bf16.gmra.mxu2 %vm215_vm0, %v1162_v13 }
  0x22   :  { %1054 = vmatmul.msk.bf16.gmra.mxu1 %vm215_vm0, %v1158_v16  ;;  %1062 = vmatmul.msk.bf16.gmra.mxu3 %vm215_vm0, %v1166_v18 }
  0x31   :  { %1043 = vmatmul.msk.bf16.gmra.mxu0 %vm215_vm0, %v1147_v6  ;;  %1059 = vmatmul.msk.bf16.gmra.mxu2 %vm215_vm0, %v1163_v17 }
  0x32   :  { %1055 = vmatmul.msk.bf16.gmra.mxu1 %vm215_vm0, %v1159_v21  ;;  %1063 = vmatmul.msk.bf16.gmra.mxu3 %vm215_vm0, %v1167_v24 }
  0x41   :  { %1044 = vmatmul.msk.bf16.gmra.mxu0 %vm215_vm0, %v1148_v7  ;;  %1060 = vmatmul.msk.bf16.gmra.mxu2 %vm215_vm0, %v1164_v22 }
  0x42   :  { %1056 = vmatmul.msk.bf16.gmra.mxu1 %vm215_vm0, %v1160_v27  ;;  %1064 = vmatmul.msk.bf16.gmra.mxu3 %vm215_vm0, %v1168_v29 }
  0x51   :  { %1045 = vmatmul.msk.bf16.gmra.mxu0 %vm215_vm0, %v1149_v8 }
  0x61   :  { %1046 = vmatmul.msk.bf16.gmra.mxu0 %vm215_vm0, %v1150_v9 }
  0x71   :  { %1047 = vmatmul.msk.bf16.gmra.mxu0 %vm215_vm0, %v1151_v11 }
  0x81   :  { %1048 = vmatmul.msk.bf16.gmra.mxu0 %vm215_vm0, %v1152_v15 }
  0x8e   :  { %v297_v20 = vpop.f32.mrf.mxu0 }
  0x8f   :  { %v417_v51 = vpack.c.bf16 %v297_v20, %v297_v20  ;;  %v1319_v62 = vpop.f32.mrf.mxu1 }
  0x91   :  { %1049 = vmatmul.msk.bf16.gmra.mxu0 %vm215_vm0, %v1153_v19  ;;  %v501_v55 = vunpack.c.l.b16 %v417_v51 }
  0x94   :  { %v1317_v60 = vpop.f32.mrf.mxu2 }
  0x95   :  { %v1327_v7 = vpop.f32.mrf.mxu3 }
  0x96   :  { %v299_v23 = vpop.f32.mrf.mxu0 }
  0x97   :  { %v418_v48 = vpack.c.bf16 %v299_v23, %v299_v23  ;;  %v1323_v1 = vpop.f32.mrf.mxu1 }
  0x99   :  { %v502_v53 = vunpack.c.l.b16 %v418_v48 }
  0x9b   :  { %v509_v57 = vpack.c.b16 %v502_v53, %v501_v55 }
  0x9c   :  { %v1321_v63 = vpop.f32.mrf.mxu2 }
  0x9e   :  { %v302_v26 = vpop.f32.mrf.mxu0 }
  0x9f   :  { %v419_v45 = vpack.c.bf16 %v302_v26, %v302_v26  ;;  %v1325_v4 = vpop.f32.mrf.mxu1 }
  0xa1   :  { %1050 = vmatmul.msk.bf16.gmra.mxu0 %vm215_vm0, %v1154_v25  ;;  %v503_v52 = vunpack.c.l.b16 %v419_v45  ;;  %v1333_v25 = vpop.f32.mrf.mxu3 }
  0xa4   :  { %v382_v2 = vpop.f32.mrf.mxu2 }
  0xa6   :  { %v304_v28 = vpop.f32.mrf.mxu0 }
  0xa7   :  { %v420_v42 = vpack.c.bf16 %v304_v28, %v304_v28  ;;  %v1329_v11 = vpop.f32.mrf.mxu1 }
  0xa9   :  { %v504_v49 = vunpack.c.l.b16 %v420_v42 }
  0xab   :  { %v510_v54 = vpack.c.b16 %v504_v49, %v503_v52 }
  0xac   :  { %v384_v5 = vpop.f32.mrf.mxu2 }
  0xad   :  { %v452_v48 = vpack.c.bf16 %v384_v5, %v384_v5 }
  0xae   :  { %v307_v31 = vpop.f32.mrf.mxu0 }
  0xaf   :  { %v421_v39 = vpack.c.bf16 %v307_v31, %v307_v31  ;;  %v367_v26 = vpop.f32.mrf.mxu1 }
  0xb1   :  { %1051 = vmatmul.msk.bf16.gmra.mxu0 %vm215_vm0, %v1155_v30  ;;  %v505_v46 = vunpack.c.l.b16 %v421_v39 }
  0xb4   :  { %v387_v15 = vpop.f32.mrf.mxu2 }
  0xb6   :  { %v309_v32 = vpop.f32.mrf.mxu0 }
  0xb7   :  { %v422_v37 = vpack.c.bf16 %v309_v32, %v309_v32 }
  0xb9   :  { %v506_v43 = vunpack.c.l.b16 %v422_v37 }
  0xbb   :  { %v511_v50 = vpack.c.b16 %v506_v43, %v505_v46 }
  0xbc   :  { %v389_v29 = vpop.f32.mrf.mxu2 }
  0xbd   :  { %v454_v42 = vpack.c.bf16 %v389_v29, %v389_v29 }
  0xbe   :  { %v312_v34 = vpop.f32.mrf.mxu0 }
  0xbf   :  { %v423_v35 = vpack.c.bf16 %v312_v34, %v312_v34 }
  0xc1   :  { %1052 = vmatmul.msk.bf16.gmra.mxu0 %vm215_vm0, %v1156_v33  ;;  %v507_v40 = vunpack.c.l.b16 %v423_v35  ;;  %v369_v35 = vpop.f32.mrf.mxu1 }
  0xc2   :  { %v446_v55 = vpack.c.bf16 %v369_v35, %v369_v35 }
  0xc4   :  { %v392_v37 = vpop.f32.mrf.mxu2 }
  0xc5   :  { %v455_v39 = vpack.c.bf16 %v392_v37, %v392_v37 }
  0xc6   :  { %v314_v36 = vpop.f32.mrf.mxu0 }
  0xc7   :  { %v424_v38 = vpack.c.bf16 %v314_v36, %v314_v36  ;;  %v1337_v36 = vpop.f32.mrf.mxu3  ;;  %v799_v45 = vunpack.c.l.b16 %v455_v39 }
  0xc9   :  { %v508_v41 = vunpack.c.l.b16 %v424_v38 }
  0xcb   :  { %v512_v44 = vpack.c.b16 %v508_v41, %v507_v40  ;;  %v372_v40 = vpop.f32.mrf.mxu1  ;;  %v453_v41 = vpack.c.bf16 %v387_v15, %v387_v15 }
  0xcc   :  { %v394_v43 = vpop.f32.mrf.mxu2  ;;  %v447_v51 = vpack.c.bf16 %v372_v40, %v372_v40 }
  0xcd   :  { %533 = vmatpush.bf16.msrb.mxu1 %v512_v44  ;;  %v456_v46 = vpack.c.bf16 %v394_v43, %v394_v43  ;;  %v797_v49 = vunpack.c.l.b16 %v453_v41 }
  0xce   :  { %v317_v47 = vpop.f32.mrf.mxu0 }
  0xcf   :  { %v425_v27 = vpack.c.bf16 %v317_v47, %v317_v47  ;;  %v1341_v44 = vpop.f32.mrf.mxu3  ;;  %v451_v47 = vpack.c.bf16 %v382_v2, %v382_v2  ;;  %v800_v52 = vunpack.c.l.b16 %v456_v46 }
  0xd1   :  { %534 = vmatpush.bf16.msrb.mxu1 %v511_v50  ;;  %v583_v32 = vunpack.c.l.b16 %v425_v27  ;;  %v798_v50 = vunpack.c.l.b16 %v454_v42 }
  0xd3   :  { %v803_v2 = vpack.c.b16 %v798_v50, %v797_v49 }
  0xd5   :  { %535 = vmatpush.bf16.msrb.mxu1 %v510_v54  ;;  %v445_v54 = vpack.c.bf16 %v367_v26, %v367_v26 }
  0xd6   :  { %v319_v56 = vpop.f32.mrf.mxu0 }
  0xd7   :  { %v426_v22 = vpack.c.bf16 %v319_v56, %v319_v56  ;;  %v804_v56 = vpack.c.b16 %v800_v52, %v799_v45 }
  0xd9   :  { %536 = vmatpush.bf16.msrb.mxu1 %v509_v57  ;;  %v584_v30 = vunpack.c.l.b16 %v426_v22  ;;  %v449_v57 = vpack.c.bf16 %v1317_v60, %v1317_v60  ;;  %v1362_v22 = vld [vmem:[%s1623_s2] sm:$0xff] }
  0xdb   :  { %v591_v34 = vpack.c.b16 %v584_v30, %v583_v32  ;;  %v793_v60 = vunpack.c.l.b16 %v449_v57  ;;  %v1371_v30 = vld [vmem:[%s1623_s2 + $0x8] sm:$0xff] }
  0xdc   :  { %1081 = vmatmul.msk.bf16.vlgmr.msrb.gmra.mxu1 %vm215_vm0, %v1362_v22 }
  0xde   :  { %v322_v58 = vpop.f32.mrf.mxu0 }
  0xdf   :  { %v427_v19 = vpack.c.bf16 %v322_v58, %v322_v58  ;;  %v450_v58 = vpack.c.bf16 %v1321_v63, %v1321_v63  ;;  %v1353_v63 = vpop.f32.mrf.mxu3 }
  0xe1   :  { %v585_v28 = vunpack.c.l.b16 %v427_v19 }
  0xe6   :  { %v324_v59 = vpop.f32.mrf.mxu0 }
  0xe7   :  { %v428_v16 = vpack.c.bf16 %v324_v59, %v324_v59  ;;  %v795_v59 = vunpack.c.l.b16 %v451_v47  ;;  %v409_v27 = vpop.f32.mrf.mxu3 }
  0xe9   :  { %v586_v23 = vunpack.c.l.b16 %v428_v16  ;;  %v441_v16 = vpack.c.bf16 %v1319_v62, %v1319_v62 }
  0xeb   :  { %v592_v31 = vpack.c.b16 %v586_v23, %v585_v28  ;;  %v723_v23 = vunpack.c.l.b16 %v441_v16 }
  0xec   :  { %1082 = vmatmul.msk.bf16.gmra.mxu1 %vm215_vm0, %v1371_v30 }
  0xee   :  { %v327_v61 = vpop.f32.mrf.mxu0 }
  0xef   :  { %v429_v12 = vpack.c.bf16 %v327_v61, %v327_v61  ;;  %v374_v61 = vpop.f32.mrf.mxu1  ;;  %v412_v29 = vpop.f32.mrf.mxu3 }
  0xf0   :  { %v448_v5 = vpack.c.bf16 %v374_v61, %v374_v61 }
  0xf1   :  { %v587_v20 = vunpack.c.l.b16 %v429_v12 }
  0xf2   :  { %v730_v12 = vunpack.c.l.b16 %v448_v5 }
  0xf6   :  { %v329_v0 = vpop.f32.mrf.mxu0 }
  0xf7   :  { %v430_v9 = vpack.c.bf16 %v329_v0, %v329_v0  ;;  %v796_v0 = vunpack.c.l.b16 %v452_v48  ;;  %v414_v45 = vpop.f32.mrf.mxu3  ;;  %v463_v48 = vpack.c.bf16 %v412_v29, %v412_v29 }
  0xf8   :  { %v464_v49 = vpack.c.bf16 %v414_v45, %v414_v45 }
  0xf9   :  { %v588_v17 = vunpack.c.l.b16 %v430_v9  ;;  %v727_v9 = vunpack.c.l.b16 %v445_v54  ;;  %v1175_v54 = vld [vmem:[%s1623_s2 + $0x10] sm:$0xff]  ;;  %v869_v57 = vunpack.c.l.b16 %v463_v48 }
  0xfb   :  { %v593_v24 = vpack.c.b16 %v588_v17, %v587_v20 }
  0xfc   :  { %1083 = vmatmul.msk.bf16.gmra.mxu1 %vm215_vm0, %v1175_v54 }
  0xfe   :  { %v332_v3 = vpop.f32.mrf.mxu0 }
  0xff   :  { %v431_v6 = vpack.c.bf16 %v332_v3, %v332_v3  ;;  %v729_v3 = vunpack.c.l.b16 %v447_v51 }
 0x101   :  { %v589_v13 = vunpack.c.l.b16 %v431_v6  ;;  %v443_v6 = vpack.c.bf16 %v1325_v4, %v1325_v4  ;;  %v734_v15 = vpack.c.b16 %v730_v12, %v729_v3  ;;  %v442_v4 = vpack.c.bf16 %v1323_v1, %v1323_v1 }
 0x102   :  { %v457_v12 = vpack.c.bf16 %v1327_v7, %v1327_v7 }
 0x103   :  { %743 = vmatpush.bf16.msra.mxu1 %v734_v15 }
 0x106   :  { %v334_v8 = vpop.f32.mrf.mxu0 }
 0x107   :  { %v432_v10 = vpack.c.bf16 %v334_v8, %v334_v8  ;;  %v444_v8 = vpack.c.bf16 %v1329_v11, %v1329_v11 }
 0x109   :  { %v590_v14 = vunpack.c.l.b16 %v432_v10  ;;  %v728_v10 = vunpack.c.l.b16 %v446_v55  ;;  %v726_v19 = vunpack.c.l.b16 %v444_v8 }
 0x10b   :  { %v594_v18 = vpack.c.b16 %v590_v14, %v589_v13  ;;  %v794_v13 = vunpack.c.l.b16 %v450_v58  ;;  %v802_v14 = vpack.c.b16 %v796_v0, %v795_v59  ;;  %v733_v11 = vpack.c.b16 %v728_v10, %v727_v9 }
 0x10c   :  { %v870_v58 = vunpack.c.l.b16 %v464_v49  ;;  %v459_v0 = vpack.c.bf16 %v1337_v36, %v1337_v36 }
 0x10d   :  { %603 = vmatpush.bf16.msrb.mxu2 %v594_v18  ;;  %v725_v18 = vunpack.c.l.b16 %v443_v6  ;;  %v801_v20 = vpack.c.b16 %v794_v13, %v793_v60  ;;  %744 = vmatpush.bf16.msra.mxu1 %v733_v11  ;;  %v458_v60 = vpack.c.bf16 %v1333_v25, %v1333_v25 }
 0x10e   :  { %v1331_v21 = vpop.f32.mrf.mxu0  ;;  %v874_v5 = vpack.c.b16 %v870_v58, %v869_v57  ;;  %v865_v8 = vunpack.c.l.b16 %v459_v0 }
 0x10f   :  { %v732_v26 = vpack.c.b16 %v726_v19, %v725_v18  ;;  %v864_v13 = vunpack.c.l.b16 %v458_v60 }
 0x111   :  { %604 = vmatpush.bf16.msrb.mxu2 %v593_v24  ;;  %v724_v24 = vunpack.c.l.b16 %v442_v4  ;;  %745 = vmatpush.bf16.msra.mxu1 %v732_v26 }
 0x113   :  { %v731_v1 = vpack.c.b16 %v724_v24, %v723_v23 }
 0x115   :  { %605 = vmatpush.bf16.msrb.mxu2 %v592_v31  ;;  %746 = vmatpush.bf16.msra.mxu1 %v731_v1 }
 0x116   :  { %v1335_v33 = vpop.f32.mrf.mxu0 }
 0x117   :  { %v434_v50 = vpack.c.bf16 %v1335_v33, %v1335_v33 }
 0x119   :  { %606 = vmatpush.bf16.msrb.mxu2 %v591_v34  ;;  %v654_v59 = vunpack.c.l.b16 %v434_v50 }
 0x11c   :  { %1085 = vmatmul.msk.bf16.vlgmr.msrb.gmra.mxu2 %vm215_vm0, %v1362_v22 }
 0x11d   :  { %813 = vmatpush.bf16.msra.mxu2 %v804_v56  ;;  %v462_v56 = vpack.c.bf16 %v409_v27, %v409_v27 }
 0x11e   :  { %v1339_v38 = vpop.f32.mrf.mxu0 }
 0x11f   :  { %v435_v46 = vpack.c.bf16 %v1339_v38, %v1339_v38  ;;  %v461_v38 = vpack.c.bf16 %v1353_v63, %v1353_v63  ;;  %v868_v3 = vunpack.c.l.b16 %v462_v56 }
 0x121   :  { %814 = vmatpush.bf16.msra.mxu2 %v803_v2  ;;  %v655_v55 = vunpack.c.l.b16 %v435_v46  ;;  %v867_v2 = vunpack.c.l.b16 %v461_v38 }
 0x123   :  { %v873_v10 = vpack.c.b16 %v868_v3, %v867_v2 }
 0x125   :  { %815 = vmatpush.bf16.msra.mxu2 %v802_v14  ;;  %v1176_v14 = vld [vmem:[%s1623_s2 + $0x18] sm:$0xff] }
 0x126   :  { %v1343_v53 = vpop.f32.mrf.mxu0  ;;  %1084 = vmatmul.msk.bf16.gmra.mxu1 %vm215_vm0, %v1176_v14 }
 0x127   :  { %v436_v41 = vpack.c.bf16 %v1343_v53, %v1343_v53  ;;  %v433_v53 = vpack.c.bf16 %v1331_v21, %v1331_v21  ;;  %v460_v21 = vpack.c.bf16 %v1341_v44, %v1341_v44  ;;  %v863_v44 = vunpack.c.l.b16 %v457_v12 }
 0x129   :  { %816 = vmatpush.bf16.msra.mxu2 %v801_v20  ;;  %v656_v51 = vunpack.c.l.b16 %v436_v41  ;;  %v653_v33 = vunpack.c.l.b16 %v433_v53  ;;  %v866_v9 = vunpack.c.l.b16 %v460_v21  ;;  %v871_v63 = vpack.c.b16 %v864_v13, %v863_v44 }
 0x12b   :  { %v662_v61 = vpack.c.b16 %v656_v51, %v655_v55  ;;  %v661_v6 = vpack.c.b16 %v654_v59, %v653_v33  ;;  %v872_v36 = vpack.c.b16 %v866_v9, %v865_v8 }
 0x12c   :  { %1086 = vmatmul.msk.bf16.gmra.mxu2 %vm215_vm0, %v1371_v30 }
 0x12e   :  { %v347_v17 = vpop.f32.mrf.mxu0 }
 0x12f   :  { %v437_v37 = vpack.c.bf16 %v347_v17, %v347_v17 }
 0x131   :  { %v657_v47 = vunpack.c.l.b16 %v437_v37 }
 0x136   :  { %v349_v62 = vpop.f32.mrf.mxu0  ;;  %1109 = vmatmul.msk.bf16.vlgmr.msra.gmra.mxu1 %vm215_vm0, %v1362_v22 }
 0x137   :  { %v438_v34 = vpack.c.bf16 %v349_v62, %v349_v62 }
 0x139   :  { %v658_v42 = vunpack.c.l.b16 %v438_v34 }
 0x13b   :  { %v663_v52 = vpack.c.b16 %v658_v42, %v657_v47 }
 0x13c   :  { %1087 = vmatmul.msk.bf16.gmra.mxu2 %vm215_vm0, %v1175_v54 }
 0x13e   :  { %v352_v28 = vpop.f32.mrf.mxu0 }
 0x13f   :  { %v439_v31 = vpack.c.bf16 %v352_v28, %v352_v28 }
 0x141   :  { %v659_v39 = vunpack.c.l.b16 %v439_v31 }
 0x146   :  { %v354_v32 = vpop.f32.mrf.mxu0  ;;  %1110 = vmatmul.msk.bf16.gmra.mxu1 %vm215_vm0, %v1371_v30 }
 0x147   :  { %v440_v35 = vpack.c.bf16 %v354_v32, %v354_v32 }
 0x149   :  { %v660_v40 = vunpack.c.l.b16 %v440_v35 }
 0x14b   :  { %v664_v43 = vpack.c.b16 %v660_v40, %v659_v39 }
 0x14c   :  { %1088 = vmatmul.msk.bf16.gmra.mxu2 %vm215_vm0, %v1176_v14 }
 0x14d   :  { %673 = vmatpush.bf16.msrb.mxu3 %v664_v43 }
 0x151   :  { %674 = vmatpush.bf16.msrb.mxu3 %v663_v52 }
 0x155   :  { %675 = vmatpush.bf16.msrb.mxu3 %v662_v61 }
 0x156   :  { %1111 = vmatmul.msk.bf16.gmra.mxu1 %vm215_vm0, %v1175_v54 }
 0x159   :  { %676 = vmatpush.bf16.msrb.mxu3 %v661_v6  ;;  %v538_v7 = vpop.f32.mrf.mxu1 }
 0x15a   :  { %v558_v25 = vpack.c.bf16 %v538_v7, %v538_v7 }
 0x15c   :  { %1097 = vmatmul.msk.bf16.vlgmr.msrb.gmra.mxu3 %vm215_vm0, %v1362_v22  ;;  %1121 = vmatmul.msk.bf16.vlgmr.msra.gmra.mxu2 %vm215_vm0, %v1362_v22  ;;  %567 = vst.msk [vmem:[%s1624_s3] sm:$0xf] %vm566_vm1, %v558_v25 }
 0x15d   :  { %883 = vmatpush.bf16.msra.mxu3 %v874_v5 }
 0x161   :  { %884 = vmatpush.bf16.msra.mxu3 %v873_v10  ;;  %v540_v17 = vpop.f32.mrf.mxu1 }
 0x162   :  { %v559_v18 = vpack.c.bf16 %v540_v17, %v540_v17 }
 0x164   :  { %568 = vst.msk [vmem:[%s1624_s3 + $0x4] sm:$0xf] %vm566_vm1, %v559_v18 }
 0x165   :  { %885 = vmatpush.bf16.msra.mxu3 %v872_v36 }
 0x166   :  { %1112 = vmatmul.msk.bf16.gmra.mxu1 %vm215_vm0, %v1176_v14 }
 0x169   :  { %886 = vmatpush.bf16.msra.mxu3 %v871_v63  ;;  %v543_v11 = vpop.f32.mrf.mxu1 }
 0x16c   :  { %1098 = vmatmul.msk.bf16.gmra.mxu3 %vm215_vm0, %v1371_v30  ;;  %1122 = vmatmul.msk.bf16.gmra.mxu2 %vm215_vm0, %v1371_v30 }
 0x171   :  { %v545_v24 = vpop.f32.mrf.mxu1 }
 0x172   :  { %v561_v62 = vpack.c.bf16 %v545_v24, %v545_v24 }
 0x174   :  { %570 = vst.msk [vmem:[%s1624_s3 + $0xc] sm:$0xf] %vm566_vm1, %v561_v62 }
 0x179   :  { %v548_v27 = vpop.f32.mrf.mxu1 }
 0x17a   :  { %v562_v29 = vpack.c.bf16 %v548_v27, %v548_v27 }
 0x17c   :  { %1099 = vmatmul.msk.bf16.gmra.mxu3 %vm215_vm0, %v1175_v54  ;;  %1123 = vmatmul.msk.bf16.gmra.mxu2 %vm215_vm0, %v1175_v54  ;;  %571 = vst.msk [vmem:[%s1624_s3 + $0x10] sm:$0xf] %vm566_vm1, %v562_v29 }
 0x181   :  { %v550_v32 = vpop.f32.mrf.mxu1 }
 0x182   :  { %v563_v35 = vpack.c.bf16 %v550_v32, %v550_v32 }
 0x184   :  { %572 = vst.msk [vmem:[%s1624_s3 + $0x14] sm:$0xf] %vm566_vm1, %v563_v35 }
 0x18c   :  { %1100 = vmatmul.msk.bf16.gmra.mxu3 %vm215_vm0, %v1176_v14  ;;  %1124 = vmatmul.msk.bf16.gmra.mxu2 %vm215_vm0, %v1176_v14 }
 0x19c   :  { %1133 = vmatmul.msk.bf16.vlgmr.msra.gmra.mxu3 %vm215_vm0, %v1362_v22  ;;  %v560_v22 = vpack.c.bf16 %v543_v11, %v543_v11 }
 0x19e   :  { %569 = vst.msk [vmem:[%s1624_s3 + $0x8] sm:$0xf] %vm566_vm1, %v560_v22 }
 0x19f   :  { %v608_v15 = vpop.f32.mrf.mxu2 }
 0x1a0   :  { %v628_v16 = vpack.c.bf16 %v608_v15, %v608_v15 }
 0x1a2   :  { %1089 = vst.msk [vmem:[%s1624_s3 + $0x20] sm:$0xf] %vm566_vm1, %v628_v16 }
 0x1a3   :  { %v553_v41 = vpop.f32.mrf.mxu1 }
 0x1a4   :  { %v564_v45 = vpack.c.bf16 %v553_v41, %v553_v41 }
 0x1a6   :  { %573 = vst.msk [vmem:[%s1624_s3 + $0x18] sm:$0xf] %vm566_vm1, %v564_v45 }
 0x1a7   :  { %v610_v4 = vpop.f32.mrf.mxu2 }
 0x1a8   :  { %v629_v19 = vpack.c.bf16 %v610_v4, %v610_v4 }
 0x1aa   :  { %1090 = vst.msk [vmem:[%s1624_s3 + $0x24] sm:$0xf] %vm566_vm1, %v629_v19 }
 0x1ab   :  { %v555_v48 = vpop.f32.mrf.mxu1 }
 0x1ac   :  { %1134 = vmatmul.msk.bf16.gmra.mxu3 %vm215_vm0, %v1371_v30  ;;  %v565_v50 = vpack.c.bf16 %v555_v48, %v555_v48 }
 0x1ae   :  { %574 = vst.msk [vmem:[%s1624_s3 + $0x1c] sm:$0xf] %vm566_vm1, %v565_v50 }
 0x1af   :  { %v613_v20 = vpop.f32.mrf.mxu2 }
 0x1b0   :  { %v630_v23 = vpack.c.bf16 %v613_v20, %v613_v20 }
 0x1b2   :  { %1091 = vst.msk [vmem:[%s1624_s3 + $0x28] sm:$0xf] %vm566_vm1, %v630_v23 }
 0x1b3   :  { %v748_v53 = vpop.f32.mrf.mxu1 }
 0x1b4   :  { %v768_v56 = vpack.c.bf16 %v748_v53, %v748_v53 }
 0x1b6   :  { %1113 = vst.msk [vmem:[%s1624_s3 + $0x60] sm:$0xf] %vm566_vm1, %v768_v56 }
 0x1b7   :  { %v615_v26 = vpop.f32.mrf.mxu2 }
 0x1b8   :  { %v631_v1 = vpack.c.bf16 %v615_v26, %v615_v26 }
 0x1ba   :  { %1092 = vst.msk [vmem:[%s1624_s3 + $0x2c] sm:$0xf] %vm566_vm1, %v631_v1 }
 0x1bb   :  { %v750_v59 = vpop.f32.mrf.mxu1 }
 0x1bc   :  { %1135 = vmatmul.msk.bf16.gmra.mxu3 %vm215_vm0, %v1175_v54  ;;  %v769_v33 = vpack.c.bf16 %v750_v59, %v750_v59 }
 0x1be   :  { %1114 = vst.msk [vmem:[%s1624_s3 + $0x64] sm:$0xf] %vm566_vm1, %v769_v33 }
 0x1bf   :  { %v618_v28 = vpop.f32.mrf.mxu2 }
 0x1c0   :  { %v632_v30 = vpack.c.bf16 %v618_v28, %v618_v28 }
 0x1c2   :  { %1093 = vst.msk [vmem:[%s1624_s3 + $0x30] sm:$0xf] %vm566_vm1, %v632_v30 }
 0x1c3   :  { %v753_v3 = vpop.f32.mrf.mxu1 }
 0x1c4   :  { %v770_v8 = vpack.c.bf16 %v753_v3, %v753_v3 }
 0x1c6   :  { %1115 = vst.msk [vmem:[%s1624_s3 + $0x68] sm:$0xf] %vm566_vm1, %v770_v8 }
 0x1c7   :  { %v620_v37 = vpop.f32.mrf.mxu2 }
 0x1c8   :  { %v633_v39 = vpack.c.bf16 %v620_v37, %v620_v37 }
 0x1ca   :  { %1094 = vst.msk [vmem:[%s1624_s3 + $0x34] sm:$0xf] %vm566_vm1, %v633_v39 }
 0x1cb   :  { %v755_v12 = vpop.f32.mrf.mxu1 }
 0x1cc   :  { %1136 = vmatmul.msk.bf16.gmra.mxu3 %vm215_vm0, %v1176_v14  ;;  %v771_v36 = vpack.c.bf16 %v755_v12, %v755_v12 }
 0x1ce   :  { %1116 = vst.msk [vmem:[%s1624_s3 + $0x6c] sm:$0xf] %vm566_vm1, %v771_v36 }
 0x1cf   :  { %v623_v43 = vpop.f32.mrf.mxu2 }
 0x1d0   :  { %v634_v46 = vpack.c.bf16 %v623_v43, %v623_v43 }
 0x1d2   :  { %1095 = vst.msk [vmem:[%s1624_s3 + $0x38] sm:$0xf] %vm566_vm1, %v634_v46 }
 0x1d3   :  { %v758_v63 = vpop.f32.mrf.mxu1 }
 0x1d4   :  { %v772_v15 = vpack.c.bf16 %v758_v63, %v758_v63 }
 0x1d6   :  { %1117 = vst.msk [vmem:[%s1624_s3 + $0x70] sm:$0xf] %vm566_vm1, %v772_v15 }
 0x1d7   :  { %v625_v51 = vpop.f32.mrf.mxu2 }
 0x1d8   :  { %v635_v52 = vpack.c.bf16 %v625_v51, %v625_v51 }
 0x1da   :  { %1096 = vst.msk [vmem:[%s1624_s3 + $0x3c] sm:$0xf] %vm566_vm1, %v635_v52 }
 0x1db   :  { %v760_v4 = vpop.f32.mrf.mxu1 }
 0x1dc   :  { %v773_v19 = vpack.c.bf16 %v760_v4, %v760_v4 }
 0x1de   :  { %1118 = vst.msk [vmem:[%s1624_s3 + $0x74] sm:$0xf] %vm566_vm1, %v773_v19 }
 0x1df   :  { %v678_v31 = vpop.f32.mrf.mxu3  ;;  %v818_v38 = vpop.f32.mrf.mxu2 }
 0x1e0   :  { %v698_v34 = vpack.c.bf16 %v678_v31, %v678_v31  ;;  %v838_v57 = vpack.c.bf16 %v818_v38, %v818_v38 }
 0x1e2   :  { %1101 = vst.msk [vmem:[%s1624_s3 + $0x40] sm:$0xf] %vm566_vm1, %v698_v34 }
 0x1e3   :  { %1125 = vst.msk [vmem:[%s1624_s3 + $0x80] sm:$0xf] %vm566_vm1, %v838_v57  ;;  %v763_v23 = vpop.f32.mrf.mxu1 }
 0x1e4   :  { %v774_v62 = vpack.c.bf16 %v763_v23, %v763_v23 }
 0x1e6   :  { %1119 = vst.msk [vmem:[%s1624_s3 + $0x78] sm:$0xf] %vm566_vm1, %v774_v62 }
 0x1e7   :  { %v680_v40 = vpop.f32.mrf.mxu3  ;;  %v820_v0 = vpop.f32.mrf.mxu2 }
 0x1e8   :  { %v699_v42 = vpack.c.bf16 %v680_v40, %v680_v40  ;;  %v839_v21 = vpack.c.bf16 %v820_v0, %v820_v0 }
 0x1ea   :  { %1102 = vst.msk [vmem:[%s1624_s3 + $0x44] sm:$0xf] %vm566_vm1, %v699_v42 }
 0x1eb   :  { %1126 = vst.msk [vmem:[%s1624_s3 + $0x84] sm:$0xf] %vm566_vm1, %v839_v21  ;;  %v765_v28 = vpop.f32.mrf.mxu1 }
 0x1ec   :  { %v775_v30 = vpack.c.bf16 %v765_v28, %v765_v28 }
 0x1ee   :  { %1120 = vst.msk [vmem:[%s1624_s3 + $0x7c] sm:$0xf] %vm566_vm1, %v775_v30 }
 0x1ef   :  { %v683_v47 = vpop.f32.mrf.mxu3  ;;  %v823_v6 = vpop.f32.mrf.mxu2 }
 0x1f0   :  { %v700_v49 = vpack.c.bf16 %v683_v47, %v683_v47  ;;  %v840_v9 = vpack.c.bf16 %v823_v6, %v823_v6 }
 0x1f2   :  { %1103 = vst.msk [vmem:[%s1624_s3 + $0x48] sm:$0xf] %vm566_vm1, %v700_v49 }
 0x1f3   :  { %1127 = vst.msk [vmem:[%s1624_s3 + $0x88] sm:$0xf] %vm566_vm1, %v840_v9 }
 0x1f7   :  { %v685_v54 = vpop.f32.mrf.mxu3  ;;  %v825_v44 = vpop.f32.mrf.mxu2 }
 0x1f8   :  { %v701_v55 = vpack.c.bf16 %v685_v54, %v685_v54  ;;  %v841_v13 = vpack.c.bf16 %v825_v44, %v825_v44 }
 0x1fa   :  { %1104 = vst.msk [vmem:[%s1624_s3 + $0x4c] sm:$0xf] %vm566_vm1, %v701_v55 }
 0x1fb   :  { %1128 = vst.msk [vmem:[%s1624_s3 + $0x8c] sm:$0xf] %vm566_vm1, %v841_v13 }
 0x1ff   :  { %v688_v58 = vpop.f32.mrf.mxu3  ;;  %v828_v25 = vpop.f32.mrf.mxu2 }
 0x200   :  { %v702_v61 = vpack.c.bf16 %v688_v58, %v688_v58  ;;  %v842_v16 = vpack.c.bf16 %v828_v25, %v828_v25 }
 0x202   :  { %1105 = vst.msk [vmem:[%s1624_s3 + $0x50] sm:$0xf] %vm566_vm1, %v702_v61 }
 0x203   :  { %1129 = vst.msk [vmem:[%s1624_s3 + $0x90] sm:$0xf] %vm566_vm1, %v842_v16 }
 0x207   :  { %v690_v2 = vpop.f32.mrf.mxu3  ;;  %v830_v11 = vpop.f32.mrf.mxu2 }
 0x208   :  { %v703_v5 = vpack.c.bf16 %v690_v2, %v690_v2  ;;  %v843_v20 = vpack.c.bf16 %v830_v11, %v830_v11 }
 0x20a   :  { %1106 = vst.msk [vmem:[%s1624_s3 + $0x54] sm:$0xf] %vm566_vm1, %v703_v5 }
 0x20b   :  { %1130 = vst.msk [vmem:[%s1624_s3 + $0x94] sm:$0xf] %vm566_vm1, %v843_v20 }
 0x20f   :  { %v693_v10 = vpop.f32.mrf.mxu3  ;;  %v833_v26 = vpop.f32.mrf.mxu2 }
 0x210   :  { %v704_v60 = vpack.c.bf16 %v693_v10, %v693_v10  ;;  %v844_v1 = vpack.c.bf16 %v833_v26, %v833_v26 }
 0x212   :  { %1107 = vst.msk [vmem:[%s1624_s3 + $0x58] sm:$0xf] %vm566_vm1, %v704_v60 }
 0x213   :  { %1131 = vst.msk [vmem:[%s1624_s3 + $0x98] sm:$0xf] %vm566_vm1, %v844_v1 }
 0x217   :  { %v695_v14 = vpop.f32.mrf.mxu3  ;;  %v835_v31 = vpop.f32.mrf.mxu2 }
 0x218   :  { %v705_v7 = vpack.c.bf16 %v695_v14, %v695_v14  ;;  %v845_v32 = vpack.c.bf16 %v835_v31, %v835_v31 }
 0x21a   :  { %1108 = vst.msk [vmem:[%s1624_s3 + $0x5c] sm:$0xf] %vm566_vm1, %v705_v7 }
 0x21b   :  { %1132 = vst.msk [vmem:[%s1624_s3 + $0x9c] sm:$0xf] %vm566_vm1, %v845_v32 }
 0x21f   :  { %v888_v17 = vpop.f32.mrf.mxu3 }
 0x220   :  { %v908_v18 = vpack.c.bf16 %v888_v17, %v888_v17 }
 0x222   :  { %1137 = vst.msk [vmem:[%s1624_s3 + $0xa0] sm:$0xf] %vm566_vm1, %v908_v18 }
 0x227   :  { %v890_v22 = vpop.f32.mrf.mxu3 }
 0x228   :  { %v909_v24 = vpack.c.bf16 %v890_v22, %v890_v22 }
 0x22a   :  { %1138 = vst.msk [vmem:[%s1624_s3 + $0xa4] sm:$0xf] %vm566_vm1, %v909_v24 }
 0x22f   :  { %v893_v27 = vpop.f32.mrf.mxu3 }
 0x230   :  { %v910_v29 = vpack.c.bf16 %v893_v27, %v893_v27 }
 0x232   :  { %1139 = vst.msk [vmem:[%s1624_s3 + $0xa8] sm:$0xf] %vm566_vm1, %v910_v29 }
 0x237   :  { %v895_v34 = vpop.f32.mrf.mxu3 }
 0x238   :  { %v911_v35 = vpack.c.bf16 %v895_v34, %v895_v34 }
 0x23a   :  { %1140 = vst.msk [vmem:[%s1624_s3 + $0xac] sm:$0xf] %vm566_vm1, %v911_v35 }
 0x23f   :  { %v898_v37 = vpop.f32.mrf.mxu3 }
 0x240   :  { %v912_v39 = vpack.c.bf16 %v898_v37, %v898_v37 }
 0x242   :  { %1141 = vst.msk [vmem:[%s1624_s3 + $0xb0] sm:$0xf] %vm566_vm1, %v912_v39 }
 0x247   :  { %v900_v40 = vpop.f32.mrf.mxu3 }
 0x248   :  { %v913_v41 = vpack.c.bf16 %v900_v40, %v900_v40 }
 0x24a   :  { %1142 = vst.msk [vmem:[%s1624_s3 + $0xb4] sm:$0xf] %vm566_vm1, %v913_v41 }
 0x24f   :  { %v903_v42 = vpop.f32.mrf.mxu3 }
 0x250   :  { %v914_v43 = vpack.c.bf16 %v903_v42, %v903_v42 }
 0x252   :  { %1143 = vst.msk [vmem:[%s1624_s3 + $0xb8] sm:$0xf] %vm566_vm1, %v914_v43 }
 0x257   :  { %v905_v45 = vpop.f32.mrf.mxu3 }
 0x258   :  { %v915_v46 = vpack.c.bf16 %v905_v45, %v905_v45 }
 0x25a   :  { %1144 = vst.msk [vmem:[%s1624_s3 + $0xbc] sm:$0xf] %vm566_vm1, %v915_v46 }

// kernel: _forward_impl.3
= control target key start
LH: loop header
LB: loop body
LE: loop exit
PB: predicated region body
PF: predicated region fallthrough
CT: control target
= control target key end

     0   :  { %vm544_vm0 = vcmask 1045504   ;;  %vm537_vm1 = vcmask 883712   ;;  %v8967_v59 = vmov 256.0   ;;  %s8970_s20 = smov 53   ;;  %s8971_s22 = smov 106   ;;  %s12371_s0 = inlined_call_operand.vmem [shape: bf16[108,512], index: 0, kind: input, shape index: {}]   ;;  %s12372_s2 = inlined_call_operand.vmem [shape: bf16[24,108], index: 2, kind: input, shape index: {}]   ;;  %s12373_s5 = inlined_call_operand.vmem [shape: bf16[256,625], index: 5, kind: input, shape index: {}]   ;;  %s12374_s3 = inlined_call_operand.vmem [shape: f32[1,256], index: 3, kind: input, shape index: {}]   ;;  %s12375_s4 = inlined_call_operand.vmem [shape: f32[1,256], index: 4, kind: input, shape index: {}]   ;;  %s12376_s6 = inlined_call_operand.vmem [shape: bf16[25,48,24], index: 6, kind: input, shape index: {}]   ;;  %s12377_s7 = inlined_call_operand.vmem [shape: f32[1,25], index: 7, kind: input, shape index: {}]   ;;  %s12378_s8 = inlined_call_operand.vmem [shape: f32[1,25], index: 8, kind: input, shape index: {}]   ;;  %s12379_s9 = inlined_call_operand.vmem [shape: bf16[25,64], index: 9, kind: input, shape index: {}]   ;;  %s12380_s10 = inlined_call_operand.vmem [shape: bf16[16,48,48], index: 10, kind: input, shape index: {}]   ;;  %s12381_s11 = inlined_call_operand.vmem [shape: f32[1,4], index: 11, kind: input, shape index: {}]   ;;  %s12382_s12 = inlined_call_operand.vmem [shape: f32[1,4], index: 12, kind: input, shape index: {}]   ;;  %s12383_s13 = inlined_call_operand.vmem [shape: f32[4,4,48], index: 13, kind: input, shape index: {}]   ;;  %s12384_s1 = inlined_call_operand.vmem [shape: f32[64,2], index: 1, kind: input, shape index: {}]   ;;  %s12385_s14 = inlined_call_operand.vmem [shape: f32[4,64], index: 14, kind: input, shape index: {}]   ;;  %s12386_s15 = inlined_call_operand.vmem [shape: f32[4,1], index: 15, kind: input, shape index: {}]   ;;  %s12387_s16 = inlined_call_operand.vmem [shape: f32[1,4], index: 16, kind: input, shape index: {}]   ;;  %s12388_s17 = inlined_call_operand.<no memory space> [shape: f32[1,1], index: 17, kind: input, shape index: {}]   ;;  %s12389_s18 = inlined_call_operand.vmem [shape: f32[2,1], index: 18, kind: output, shape index: {}]  }
   0x1   :  { %12555 = sst [smem:[#allocation87_spill]] %s12371_s0  ;;  %8762 = vrcp.f32 %v8967_v59  ;;  %s8973_s23 = smov 3  }
   0x2   :  { %12556 = sst [smem:[#allocation88_spill]] %s12372_s2  ;;  %s12464_s24 = smov 81  }
   0x3   :  { %12557 = sst [smem:[#allocation89_spill]] %s12373_s5  ;;  %s12546_s5 = smov 28  }
   0x4   :  { %s12558_s29 = sld [smem:[#allocation87_spill]]  ;;  %s12462_s25 = smov 56  }
   0x5   :  { %s12559_s30 = sld [smem:[#allocation88_spill]]  ;;  %s12448_s26 = smov 6  }
   0x6   :  { %s12562_s21 = sld [smem:[#allocation89_spill]]  ;;  %s12458_s27 = smov 109  }
   0x7   :  { %v8763_v60 = vpop.eup %8762  ;;  %s12450_s28 = smov 31   ;;  %s12544_s0 = smov 84  }
   0x8   :  { %v597_v61 = vmul.f32 256.0, %v8763_v60  ;;  %vm601_vm2 = vweird.f32 %v8763_v60  ;;  %s12452_s19 = smov 34   ;;  %s12468_s2 = smov 87  }
   0xa   :  { %v7214_v0 = vld [vmem:[%s12558_s29 + $0xc0] sm:$0xf]  ;;  %v8396_v1 = vld [vmem:[%s12558_s29 + $0xcc] sm:$0x30]  ;;  %v8394_v2 = vld [vmem:[%s12558_s29 + $0xc4] sm:$0xf] }
   0xb   :  { %v7215_v3 = vor.u32 %v8396_v1, %v7214_v0  ;;  %v7216_v4 = vld [vmem:[%s12558_s29 + $0xd0] sm:$0x30]  ;;  %v7206_v5 = vld [vmem:[%s12558_s29 + $0xa0] sm:$0xf]  ;;  %v8392_v6 = vld [vmem:[%s12558_s29 + $0xac] sm:$0xf0] }
   0xc   :  { %v7219_v7 = vor.u32 %v8394_v2, %v7216_v4  ;;  %v8390_v8 = vld [vmem:[%s12558_s29 + $0xa4] sm:$0xf]  ;;  %v7208_v9 = vld [vmem:[%s12558_s29 + $0xb0] sm:$0xf0]  ;;  %v7207_v12 = vor.u32 %v8392_v6, %v7206_v5  ;;  %v7198_v14 = vld [vmem:[%s12558_s29 + $0x80] sm:$0xf] }
   0xd   :  { %v546_v10 = vsel %vm544_vm0, %v7215_v3, 0  ;;  %v7211_v13 = vor.u32 %v8390_v8, %v7208_v9  ;;  %v8388_v15 = vld [vmem:[%s12558_s29 + $0x8c] sm:$0xf0]  ;;  %v8386_v16 = vld [vmem:[%s12558_s29 + $0x84] sm:$0xf]  ;;  %v598_v62 = vsub.f32 1.0, %v597_v61 }
   0xe   :  { %552 = vmatpush.bf16.msra.mxu0 %v546_v10  ;;  %v549_v11 = vsel %vm544_vm0, %v7219_v7, 0  ;;  %v7200_v17 = vld [vmem:[%s12558_s29 + $0x90] sm:$0xf0]  ;;  %v7199_v18 = vor.u32 %v8388_v15, %v7198_v14  ;;  %v7190_v20 = vld [vmem:[%s12558_s29 + $0x60] sm:$0xf] }
   0xf   :  { %570 = vmatpush.bf16.msra.mxu1 %v549_v11  ;;  %v7203_v19 = vor.u32 %v8386_v16, %v7200_v17  ;;  %v8384_v21 = vld [vmem:[%s12558_s29 + $0x6c] sm:$0xf0]  ;;  %v8382_v22 = vld [vmem:[%s12558_s29 + $0x64] sm:$0xf]  ;;  %v7192_v23 = vld [vmem:[%s12558_s29 + $0x70] sm:$0xf0]  ;;  %v599_v63 = vmul.f32 %v8763_v60, %v598_v62 }
  0x10   :  { %v7191_v24 = vor.u32 %v8384_v21, %v7190_v20  ;;  %v7195_v25 = vor.u32 %v8382_v22, %v7192_v23  ;;  %v7182_v26 = vld [vmem:[%s12558_s29 + $0x40] sm:$0xf]  ;;  %v8380_v27 = vld [vmem:[%s12558_s29 + $0x4c] sm:$0xf0]  ;;  %v8378_v28 = vld [vmem:[%s12558_s29 + $0x44] sm:$0xf] }
  0x11   :  { %v7184_v29 = vld [vmem:[%s12558_s29 + $0x50] sm:$0xf0]  ;;  %v7183_v30 = vor.u32 %v8380_v27, %v7182_v26  ;;  %v7174_v32 = vld [vmem:[%s12558_s29 + $0x20] sm:$0xf]  ;;  %v8376_v33 = vld [vmem:[%s12558_s29 + $0x2c] sm:$0xf0]  ;;  %v600_v0 = vadd.f32 %v8763_v60, %v599_v63 }
  0x12   :  { %553 = vmatpush.bf16.msra.mxu0 %v7207_v12  ;;  %v7187_v31 = vor.u32 %v8378_v28, %v7184_v29  ;;  %v8374_v34 = vld [vmem:[%s12558_s29 + $0x24] sm:$0xf]  ;;  %v7176_v35 = vld [vmem:[%s12558_s29 + $0x30] sm:$0xf0]  ;;  %v7175_v36 = vor.u32 %v8376_v33, %v7174_v32  ;;  %v7166_v38 = vld [vmem:[%s12558_s29] sm:$0xf] }
  0x13   :  { %571 = vmatpush.bf16.msra.mxu1 %v7211_v13  ;;  %v7179_v37 = vor.u32 %v8374_v34, %v7176_v35  ;;  %v8372_v39 = vld [vmem:[%s12558_s29 + $0xc] sm:$0xf0]  ;;  %v8370_v40 = vld [vmem:[%s12558_s29 + $0x4] sm:$0xf]  ;;  %v7168_v41 = vld [vmem:[%s12558_s29 + $0x10] sm:$0xf0]  ;;  %v9206_v1 = vsel %vm601_vm2, %v8763_v60, %v600_v0 }
  0x14   :  { %v7167_v42 = vor.u32 %v8372_v39, %v7166_v38  ;;  %v7171_v43 = vor.u32 %v8370_v40, %v7168_v41  ;;  %v8398_v44 = vld [vmem:[%s12559_s30] sm:$0xff]  ;;  %v100_v45 = vld [vmem:[%s12559_s30 + $0x8] sm:$0xf]  ;;  %12561 = vst [vmem:[#allocation4_spill] sm:$0xff] %v9206_v1  ;;  %v7366_v23 = vld [vmem:[%s12562_s21 + $0x118] sm:$0xf] }
  0x15   :  { %v466_v46 = vunpack.c.l.b16 %v100_v45  ;;  %v8476_v27 = vld [vmem:[%s12562_s21 + $0x268] sm:$0xf0]  ;;  %v8434_v28 = vld [vmem:[%s12562_s21 + $0x11c] sm:$0xf]  ;;  %v7368_v29 = vld [vmem:[%s12562_s21 + $0x12c] sm:$0xf0] }
  0x16   :  { %554 = vmatpush.bf16.msra.mxu0 %v7199_v18  ;;  %v8474_v32 = vld [vmem:[%s12562_s21 + $0x25c] sm:$0xf]  ;;  %v7528_v33 = vld [vmem:[%s12562_s21 + $0x26c] sm:$0xf0]  ;;  %v8471_v39 = vld [vmem:[%s12562_s21 + $0x240] sm:$0xf0] }
  0x17   :  { %572 = vmatpush.bf16.msra.mxu1 %v7203_v19  ;;  %v9200_v47 = vpack.c.b16 %v466_v46, %v466_v46  ;;  %v9266_v34 = vor.u32 %v8474_v32, %v7528_v33  ;;  %v7346_v35 = vld [vmem:[%s12562_s21 + $0xf0] sm:$0xf]  ;;  %v8429_v40 = vld [vmem:[%s12562_s21 + $0xf4] sm:$0xf]  ;;  %v7348_v41 = vld [vmem:[%s12562_s21 + $0x104] sm:$0xf0] }
  0x18   :  { %v7508_v45 = vld [vmem:[%s12562_s21 + $0x244] sm:$0xf0]  ;;  %v7306_v60 = vld [vmem:[%s12562_s21 + $0xa0] sm:$0xf]  ;;  %v8421_v61 = vld [vmem:[%s12562_s21 + $0xb0] sm:$0xf0] }
  0x19   :  { %12560 = vst [vmem:[#allocation3_spill] sm:$0xff] %v9200_v47  ;;  %v7466_v62 = vld [vmem:[%s12562_s21 + $0x1e0] sm:$0xf]  ;;  %v9352_v63 = vor.u32 %v8421_v61, %v7306_v60  ;;  %v8461_v0 = vld [vmem:[%s12562_s21 + $0x1f0] sm:$0xf0] }
  0x1a   :  { %555 = vmatpush.bf16.msra.mxu0 %v7191_v24  ;;  %v8436_v24 = vld [vmem:[%s12562_s21 + $0x128] sm:$0xf0]  ;;  %v7426_v32 = vld [vmem:[%s12562_s21 + $0x190] sm:$0xf]  ;;  %v7248_v60 = vld [vmem:[%s12562_s21 + $0x3c] sm:$0xf0] }
  0x1b   :  { %573 = vmatpush.bf16.msra.mxu1 %v7195_v25  ;;  %v7526_v25 = vld [vmem:[%s12562_s21 + $0x258] sm:$0xf]  ;;  %v9244_v26 = vor.u32 %v8436_v24, %v7366_v23  ;;  %12573 = vst [vmem:[#allocation15_spill] sm:$0xff] %v9352_v63  ;;  %v8454_v24 = vld [vmem:[%s12562_s21 + $0x1bc] sm:$0xf] }
  0x1d   :  { %12563 = vst [vmem:[#allocation5_spill] sm:$0xff] %v9244_v26  ;;  %1129 = vmatpush.bf16.msra.mxu2 %v9244_v26 }
  0x1e   :  { %556 = vmatpush.bf16.msra.mxu0 %v7183_v30  ;;  %v9255_v30 = vor.u32 %v8476_v27, %v7526_v25  ;;  %v7448_v25 = vld [vmem:[%s12562_s21 + $0x1cc] sm:$0xf0] }
  0x1f   :  { %574 = vmatpush.bf16.msra.mxu1 %v7187_v31  ;;  %v9257_v31 = vor.u32 %v8434_v28, %v7368_v29  ;;  %v9410_v27 = vor.u32 %v8454_v24, %v7448_v25  ;;  %v7266_v28 = vld [vmem:[%s12562_s21 + $0x50] sm:$0xf]  ;;  %v8411_v29 = vld [vmem:[%s12562_s21 + $0x60] sm:$0xf0] }
  0x20   :  { %12564 = vst [vmem:[#allocation6_spill] sm:$0xff] %v9255_v30  ;;  %1147 = vmatpush.bf16.msra.mxu3 %v9255_v30  ;;  %v9424_v33 = vor.u32 %v8411_v29, %v7266_v28  ;;  %v8439_v28 = vld [vmem:[%s12562_s21 + $0x144] sm:$0xf]  ;;  %v7388_v29 = vld [vmem:[%s12562_s21 + $0x154] sm:$0xf0] }
  0x21   :  { %12580 = vst [vmem:[#allocation22_spill] sm:$0xff] %v9410_v27 }
  0x22   :  { %557 = vmatpush.bf16.msra.mxu0 %v7175_v36  ;;  %v8431_v36 = vld [vmem:[%s12562_s21 + $0x100] sm:$0xf0]  ;;  %12581 = vst [vmem:[#allocation23_spill] sm:$0xff] %v9424_v33 }
  0x23   :  { %575 = vmatpush.bf16.msra.mxu1 %v7179_v37  ;;  %v7506_v37 = vld [vmem:[%s12562_s21 + $0x230] sm:$0xf]  ;;  %v9280_v38 = vor.u32 %v8431_v36, %v7346_v35  ;;  %v8451_v35 = vld [vmem:[%s12562_s21 + $0x1a0] sm:$0xf0]  ;;  %v8409_v36 = vld [vmem:[%s12562_s21 + $0x54] sm:$0xf] }
  0x25   :  { %12565 = vst [vmem:[#allocation7_spill] sm:$0xff] %v9280_v38  ;;  %1130 = vmatpush.bf16.msra.mxu2 %v9280_v38 }
  0x26   :  { %558 = vmatpush.bf16.msra.mxu0 %v7167_v42  ;;  %v9291_v42 = vor.u32 %v8471_v39, %v7506_v37  ;;  %v7268_v37 = vld [vmem:[%s12562_s21 + $0x64] sm:$0xf0]  ;;  %v9435_v39 = vor.u32 %v8451_v35, %v7426_v32  ;;  %v9522_v32 = vor.u32 %v8439_v28, %v7388_v29  ;;  %v8472_v29 = vld [vmem:[%s12562_s21 + $0x248] sm:$0xf0] }
  0x27   :  { %576 = vmatpush.bf16.msra.mxu1 %v7171_v43  ;;  %v9293_v43 = vor.u32 %v8429_v40, %v7348_v41  ;;  %v9437_v40 = vor.u32 %v8409_v36, %v7268_v37  ;;  %v8449_v41 = vld [vmem:[%s12562_s21 + $0x194] sm:$0xf]  ;;  %v7374_v37 = vld [vmem:[%s12562_s21 + $0x120] sm:$0xf] }
  0x28   :  { %12566 = vst [vmem:[#allocation8_spill] sm:$0xff] %v9291_v42  ;;  %1148 = vmatpush.bf16.msra.mxu3 %v9291_v42 }
  0x29   :  { %7220 = vmatmul.msk.bf16.vlgmr.msra.gmra.mxu0 %vm537_vm1, %v8398_v44  ;;  %12567 = vst [vmem:[#allocation9_spill] sm:$0xff] %v9293_v43 }
  0x2a   :  { %7222 = vmatmul.msk.bf16.vlgmr.msra.gmra.mxu1 %vm537_vm1, %v8398_v44  ;;  %1165 = vmatpush.bf16.msrb.mxu0 %v9257_v31  ;;  %v8469_v44 = vld [vmem:[%s12562_s21 + $0x234] sm:$0xf]  ;;  %12582 = vst [vmem:[#allocation24_spill] sm:$0xff] %v9435_v39 }
  0x2b   :  { %1183 = vmatpush.bf16.msrb.mxu1 %v9266_v34  ;;  %v9302_v46 = vor.u32 %v8469_v44, %v7508_v45  ;;  %12583 = vst [vmem:[#allocation25_spill] sm:$0xff] %v9437_v40  ;;  %v7428_v44 = vld [vmem:[%s12562_s21 + $0x1a4] sm:$0xf0] }
  0x2c   :  { %v9446_v45 = vor.u32 %v8449_v41, %v7428_v44  ;;  %12592 = vst [vmem:[#allocation34_spill] sm:$0xff] %v9522_v32  ;;  %v8437_v41 = vld [vmem:[%s12562_s21 + $0x130] sm:$0xf0]  ;;  %v7534_v44 = vld [vmem:[%s12562_s21 + $0x260] sm:$0xf] }
  0x2d   :  { %12568 = vst [vmem:[#allocation10_spill] sm:$0xff] %v9302_v46 }
  0x2e   :  { %1166 = vmatpush.bf16.msrb.mxu0 %v9293_v43  ;;  %12584 = vst [vmem:[#allocation26_spill] sm:$0xff] %v9446_v45 }
  0x2f   :  { %1184 = vmatpush.bf16.msrb.mxu1 %v9302_v46 }
  0x39   :  { %7221 = vmatmul.msk.bf16.gmra.mxu0 %vm537_vm1, %v9200_v47 }
  0x3a   :  { %7223 = vmatmul.msk.bf16.gmra.mxu1 %vm537_vm1, %v9200_v47 }
  0xa6   :  { %v560_v48 = vpop.f32.mrf.mxu0 }
  0xa7   :  { %v578_v49 = vpop.f32.mrf.mxu1 }
  0xa8   :  { %v587_v50 = vadd.f32 %v578_v49, %v560_v48 }
  0xaa   :  { %588 = vadd.xlane.f32.xlu0 %v587_v50  ;;  %v7486_v50 = vld [vmem:[%s12562_s21 + $0x208] sm:$0xf] }
  0xae   :  { %v562_v51 = vpop.f32.mrf.mxu0 }
  0xaf   :  { %v580_v52 = vpop.f32.mrf.mxu1 }
  0xb0   :  { %v590_v53 = vadd.f32 %v580_v52, %v562_v51 }
  0xb2   :  { %591 = vadd.xlane.f32.xlu0 %v590_v53  ;;  %v8424_v53 = vld [vmem:[%s12562_s21 + $0xcc] sm:$0xf] }
  0xb6   :  { %v565_v54 = vpop.f32.mrf.mxu0 }
  0xb7   :  { %v583_v55 = vpop.f32.mrf.mxu1 }
  0xb8   :  { %v593_v56 = vadd.f32 %v583_v55, %v565_v54 }
  0xba   :  { %594 = vadd.xlane.f32.xlu1 %v593_v56 }
  0xbe   :  { %v567_v57 = vpop.f32.mrf.mxu0 }
  0xbf   :  { %v585_v58 = vpop.f32.mrf.mxu1  ;;  %v8464_v57 = vld [vmem:[%s12562_s21 + $0x20c] sm:$0xf] }
  0xc0   :  { %v7488_v58 = vld [vmem:[%s12562_s21 + $0x21c] sm:$0xf0] }
  0xc1   :  { %v9338_v59 = vor.u32 %v8464_v57, %v7488_v58  ;;  %v8446_v57 = vld [vmem:[%s12562_s21 + $0x178] sm:$0xf0]  ;;  %v8404_v58 = vld [vmem:[%s12562_s21 + $0x2c] sm:$0xf] }
  0xc3   :  { %12572 = vst [vmem:[#allocation14_spill] sm:$0xff] %v9338_v59  ;;  %1185 = vmatpush.bf16.msrb.mxu1 %v9338_v59 }
 0x11d   :  { %v589_v2 = vpop.xlane.xlu0 %588 }
 0x11e   :  { %v603_v3 = vmul.f32 %v9206_v1, %v589_v2  ;;  %v8419_v2 = vld [vmem:[%s12562_s21 + $0xa4] sm:$0xf] }
 0x120   :  { %v9209_v4 = vsub.f32 %v560_v48, %v603_v3  ;;  %v9211_v5 = vsub.f32 %v578_v49, %v603_v3  ;;  %v7326_v48 = vld [vmem:[%s12562_s21 + $0xc8] sm:$0xf]  ;;  %v8426_v49 = vld [vmem:[%s12562_s21 + $0xd8] sm:$0xf0]  ;;  %v7308_v3 = vld [vmem:[%s12562_s21 + $0xb4] sm:$0xf0] }
 0x122   :  { %v612_v6 = vmul.f32 %v9209_v4, %v9209_v4  ;;  %v613_v7 = vmul.f32 %v9211_v5, %v9211_v5 }
 0x124   :  { %v618_v8 = vadd.f32 %v613_v7, %v612_v6  ;;  %v9363_v6 = vor.u32 %v8461_v0, %v7466_v62  ;;  %v9365_v7 = vor.u32 %v8419_v2, %v7308_v3  ;;  %v9474_v62 = vor.u32 %v8404_v58, %v7248_v60  ;;  %v8444_v0 = vld [vmem:[%s12562_s21 + $0x16c] sm:$0xf]  ;;  %v7408_v2 = vld [vmem:[%s12562_s21 + $0x17c] sm:$0xf0] }
 0x125   :  { %v592_v9 = vpop.xlane.xlu0 %591 }
 0x126   :  { %v604_v10 = vmul.f32 %v9206_v1, %v592_v9  ;;  %619 = vadd.xlane.f32.xlu1 %v618_v8  ;;  %12574 = vst [vmem:[#allocation16_spill] sm:$0xff] %v9363_v6  ;;  %v8459_v8 = vld [vmem:[%s12562_s21 + $0x1e4] sm:$0xf]  ;;  %v7468_v9 = vld [vmem:[%s12562_s21 + $0x1f4] sm:$0xf0] }
 0x127   :  { %12575 = vst [vmem:[#allocation17_spill] sm:$0xff] %v9365_v7 }
 0x128   :  { %v9218_v11 = vsub.f32 %v562_v51, %v604_v10  ;;  %v9220_v12 = vsub.f32 %v580_v52, %v604_v10  ;;  %v9316_v51 = vor.u32 %v8426_v49, %v7326_v48  ;;  %v8466_v52 = vld [vmem:[%s12562_s21 + $0x218] sm:$0xf0]  ;;  %v9374_v10 = vor.u32 %v8459_v8, %v7468_v9  ;;  %v7246_v49 = vld [vmem:[%s12562_s21 + $0x28] sm:$0xf]  ;;  %12587 = vst [vmem:[#allocation29_spill] sm:$0xff] %v9474_v62 }
 0x129   :  { %v9485_v8 = vor.u32 %v8444_v0, %v7408_v2  ;;  %v7226_v9 = vld [vmem:[%s12562_s21] sm:$0xf]  ;;  %v8475_v0 = vld [vmem:[%s12562_s21 + $0x264] sm:$0xf]  ;;  %v7536_v2 = vld [vmem:[%s12562_s21 + $0x274] sm:$0xf0] }
 0x12a   :  { %v614_v13 = vmul.f32 %v9218_v11, %v9218_v11  ;;  %v615_v14 = vmul.f32 %v9220_v12, %v9220_v12  ;;  %12569 = vst [vmem:[#allocation11_spill] sm:$0xff] %v9316_v51  ;;  %1131 = vmatpush.bf16.msra.mxu2 %v9316_v51  ;;  %1186 = vmatpush.bf16.msrb.mxu1 %v9374_v10 }
 0x12b   :  { %12576 = vst [vmem:[#allocation18_spill] sm:$0xff] %v9374_v10 }
 0x12c   :  { %v621_v15 = vadd.f32 %v615_v14, %v614_v13  ;;  %v7286_v13 = vld [vmem:[%s12562_s21 + $0x78] sm:$0xf]  ;;  %v8416_v14 = vld [vmem:[%s12562_s21 + $0x88] sm:$0xf0]  ;;  %12588 = vst [vmem:[#allocation30_spill] sm:$0xff] %v9485_v8 }
 0x12d   :  { %v595_v16 = vpop.xlane.xlu1 %594 }
 0x12e   :  { %v605_v17 = vmul.f32 %v9206_v1, %v595_v16  ;;  %622 = vadd.xlane.f32.xlu2 %v621_v15  ;;  %1132 = vmatpush.bf16.msra.mxu2 %v9352_v63  ;;  %v7446_v15 = vld [vmem:[%s12562_s21 + $0x1b8] sm:$0xf]  ;;  %v9388_v16 = vor.u32 %v8416_v14, %v7286_v13  ;;  %v8401_v13 = vld [vmem:[%s12562_s21 + $0x10] sm:$0xf0]  ;;  %v7386_v14 = vld [vmem:[%s12562_s21 + $0x140] sm:$0xf] }
 0x12f   :  { %1187 = vmatpush.bf16.msrb.mxu1 %v9410_v27 }
 0x130   :  { %v9227_v18 = vsub.f32 %v565_v54, %v605_v17  ;;  %v9229_v19 = vsub.f32 %v583_v55, %v605_v17  ;;  %v7328_v54 = vld [vmem:[%s12562_s21 + $0xdc] sm:$0xf0]  ;;  %v9327_v55 = vor.u32 %v8466_v52, %v7486_v50  ;;  %12577 = vst [vmem:[#allocation19_spill] sm:$0xff] %v9388_v16  ;;  %v8456_v17 = vld [vmem:[%s12562_s21 + $0x1c8] sm:$0xf0] }
 0x131   :  { %v9329_v56 = vor.u32 %v8424_v53, %v7328_v54  ;;  %v8406_v50 = vld [vmem:[%s12562_s21 + $0x38] sm:$0xf0]  ;;  %v7406_v52 = vld [vmem:[%s12562_s21 + $0x168] sm:$0xf] }
 0x132   :  { %v616_v20 = vmul.f32 %v9227_v18, %v9227_v18  ;;  %v617_v21 = vmul.f32 %v9229_v19, %v9229_v19  ;;  %12570 = vst [vmem:[#allocation12_spill] sm:$0xff] %v9327_v55  ;;  %1149 = vmatpush.bf16.msra.mxu3 %v9327_v55  ;;  %1133 = vmatpush.bf16.msra.mxu2 %v9388_v16  ;;  %v7316_v16 = vld [vmem:[%s12562_s21 + $0xbc] sm:$0xf0] }
 0x133   :  { %12571 = vst [vmem:[#allocation13_spill] sm:$0xff] %v9329_v56  ;;  %1167 = vmatpush.bf16.msrb.mxu0 %v9329_v56  ;;  %1188 = vmatpush.bf16.msrb.mxu1 %v9446_v45  ;;  %v9461_v54 = vor.u32 %v8406_v50, %v7246_v49  ;;  %v9472_v61 = vor.u32 %v8446_v57, %v7406_v52  ;;  %v8477_v49 = vld [vmem:[%s12562_s21 + $0x270] sm:$0xf0]  ;;  %v8435_v50 = vld [vmem:[%s12562_s21 + $0x124] sm:$0xf] }
 0x134   :  { %v624_v22 = vadd.f32 %v617_v21, %v616_v20  ;;  %v8414_v20 = vld [vmem:[%s12562_s21 + $0x7c] sm:$0xf]  ;;  %v7288_v21 = vld [vmem:[%s12562_s21 + $0x8c] sm:$0xf0]  ;;  %v7376_v52 = vld [vmem:[%s12562_s21 + $0x134] sm:$0xf0]  ;;  %v9552_v58 = vor.u32 %v8477_v49, %v7534_v44 }
 0x135   :  { %v9401_v23 = vor.u32 %v8414_v20, %v7288_v21  ;;  %12585 = vst [vmem:[#allocation27_spill] sm:$0xff] %v9461_v54  ;;  %v8399_v20 = vld [vmem:[%s12562_s21 + $0x4] sm:$0xf]  ;;  %v7228_v21 = vld [vmem:[%s12562_s21 + $0x14] sm:$0xf0]  ;;  %v9554_v60 = vor.u32 %v8435_v50, %v7376_v52 }
 0x136   :  { %625 = vadd.xlane.f32.xlu2 %v624_v22  ;;  %1150 = vmatpush.bf16.msra.mxu3 %v9363_v6  ;;  %v9399_v22 = vor.u32 %v8456_v17, %v7446_v15  ;;  %12586 = vst [vmem:[#allocation28_spill] sm:$0xff] %v9472_v61  ;;  %v9500_v15 = vor.u32 %v8401_v13, %v7226_v9  ;;  %v8441_v17 = vld [vmem:[%s12562_s21 + $0x150] sm:$0xf0]  ;;  %v8470_v44 = vld [vmem:[%s12562_s21 + $0x23c] sm:$0xf] }
 0x137   :  { %1168 = vmatpush.bf16.msrb.mxu0 %v9365_v7  ;;  %12579 = vst [vmem:[#allocation21_spill] sm:$0xff] %v9401_v23  ;;  %1134 = vmatpush.bf16.msra.mxu2 %v9424_v33  ;;  %v9511_v24 = vor.u32 %v8441_v17, %v7386_v14  ;;  %v9513_v25 = vor.u32 %v8399_v20, %v7228_v21  ;;  %v7354_v14 = vld [vmem:[%s12562_s21 + $0xf8] sm:$0xf]  ;;  %v8432_v17 = vld [vmem:[%s12562_s21 + $0x108] sm:$0xf0] }
 0x138   :  { %12578 = vst [vmem:[#allocation20_spill] sm:$0xff] %v9399_v22  ;;  %1189 = vmatpush.bf16.msrb.mxu1 %v9485_v8  ;;  %v9565_v13 = vor.u32 %v8475_v0, %v7536_v2  ;;  %v7514_v20 = vld [vmem:[%s12562_s21 + $0x238] sm:$0xf]  ;;  %v101_v21 = vld [vmem:[%s12374_s3] sm:$0x3]  ;;  %v9582_v28 = vor.u32 %v8432_v17, %v7354_v14  ;;  %s12456_s3 = smov 9  }
 0x139   :  { %12589 = vst [vmem:[#allocation31_spill] sm:$0xff] %v9500_v15  ;;  %v7516_v49 = vld [vmem:[%s12562_s21 + $0x24c] sm:$0xf0]  ;;  %v8427_v2 = vld [vmem:[%s12562_s21 + $0xe0] sm:$0xf0]  ;;  %v9616_v14 = vperm.slane %v101_v21, 0 }
 0x13a   :  { %1151 = vmatpush.bf16.msra.mxu3 %v9399_v22  ;;  %12590 = vst [vmem:[#allocation32_spill] sm:$0xff] %v9511_v24  ;;  %v9605_v52 = vor.u32 %v8470_v44, %v7516_v49  ;;  %v7334_v0 = vld [vmem:[%s12562_s21 + $0xd0] sm:$0xf]  ;;  %v7336_v49 = vld [vmem:[%s12562_s21 + $0xe4] sm:$0xf0] }
 0x13b   :  { %1169 = vmatpush.bf16.msrb.mxu0 %v9401_v23  ;;  %1135 = vmatpush.bf16.msra.mxu2 %v9461_v54  ;;  %12591 = vst [vmem:[#allocation33_spill] sm:$0xff] %v9513_v25 }
 0x13c   :  { %1190 = vmatpush.bf16.msrb.mxu1 %v9522_v32  ;;  %12594 = vst [vmem:[#allocation36_spill] sm:$0xff] %v9552_v58 }
 0x13d   :  { %12595 = vst [vmem:[#allocation37_spill] sm:$0xff] %v9554_v60 }
 0x13e   :  { %1152 = vmatpush.bf16.msra.mxu3 %v9435_v39  ;;  %12596 = vst [vmem:[#allocation38_spill] sm:$0xff] %v9565_v13 }
 0x13f   :  { %1170 = vmatpush.bf16.msrb.mxu0 %v9437_v40  ;;  %1136 = vmatpush.bf16.msra.mxu2 %v9500_v15  ;;  %12597 = vst [vmem:[#allocation39_spill] sm:$0xff] %v9582_v28  ;;  %v8422_v15 = vld [vmem:[%s12562_s21 + $0xb8] sm:$0xf0] }
 0x140   :  { %1255 = vmatpush.bf16.msra.mxu1 %v9565_v13  ;;  %12600 = vst [vmem:[#allocation42_spill] sm:$0xff] %v9605_v52 }
 0x141   :  { %12601 = vst [vmem:[#allocation43_spill] sm:$0xff] %v9616_v14 }
 0x142   :  { %1153 = vmatpush.bf16.msra.mxu3 %v9472_v61 }
 0x143   :  { %1171 = vmatpush.bf16.msrb.mxu0 %v9474_v62 }
 0x144   :  { %1256 = vmatpush.bf16.msra.mxu1 %v9605_v52 }
 0x146   :  { %1154 = vmatpush.bf16.msra.mxu3 %v9511_v24  ;;  %v7414_v24 = vld [vmem:[%s12562_s21 + $0x170] sm:$0xf] }
 0x147   :  { %1172 = vmatpush.bf16.msrb.mxu0 %v9513_v25 }
 0x14a   :  { %1219 = vmatpush.bf16.msrb.mxu3 %v9552_v58  ;;  %v8410_v58 = vld [vmem:[%s12562_s21 + $0x5c] sm:$0xf] }
 0x14b   :  { %1237 = vmatpush.bf16.msra.mxu0 %v9554_v60 }
 0x199   :  { %v620_v48 = vpop.xlane.xlu1 %619 }
 0x19a   :  { %v627_v53 = vmul.f32 %v620_v48, %v9206_v1  ;;  %v9537_v48 = vor.u32 %v8437_v41, %v7374_v37  ;;  %v9592_v37 = vor.u32 %v8472_v29, %v7514_v20  ;;  %v7356_v41 = vld [vmem:[%s12562_s21 + $0x10c] sm:$0xf0]  ;;  %v9619_v29 = vor.u32 %v8427_v2, %v7334_v0  ;;  %v8465_v0 = vld [vmem:[%s12562_s21 + $0x214] sm:$0xf]  ;;  %v7496_v2 = vld [vmem:[%s12562_s21 + $0x224] sm:$0xf0] }
 0x19c   :  { %v9482_v3 = vadd.f32 1e-05, %v627_v53  ;;  %12593 = vst [vmem:[#allocation35_spill] sm:$0xff] %v9537_v48  ;;  %1201 = vmatpush.bf16.msrb.mxu2 %v9537_v48  ;;  %1220 = vmatpush.bf16.msrb.mxu3 %v9592_v37  ;;  %v7314_v48 = vld [vmem:[%s12562_s21 + $0xa8] sm:$0xf] }
 0x19d   :  { %12598 = vst [vmem:[#allocation40_spill] sm:$0xff] %v9592_v37  ;;  %v8452_v37 = vld [vmem:[%s12562_s21 + $0x1a8] sm:$0xf0] }
 0x19e   :  { %8764 = vrsqrt.f32 %v9482_v3  ;;  %12602 = vst [vmem:[#allocation44_spill] sm:$0xff] %v9619_v29  ;;  %vm639_vm4 = vweird.f32 %v9482_v3 }
 0x1a0   :  { %1202 = vmatpush.bf16.msrb.mxu2 %v9582_v28 }
 0x1a1   :  { %v623_v35 = vpop.xlane.xlu2 %622 }
 0x1a2   :  { %v628_v36 = vmul.f32 %v623_v35, %v9206_v1  ;;  %v8430_v35 = vld [vmem:[%s12562_s21 + $0xfc] sm:$0xf] }
 0x1a3   :  { %v9603_v50 = vor.u32 %v8430_v35, %v7356_v41  ;;  %v8467_v35 = vld [vmem:[%s12562_s21 + $0x220] sm:$0xf0]  ;;  %v8425_v41 = vld [vmem:[%s12562_s21 + $0xd4] sm:$0xf] }
 0x1a4   :  { %v9548_v53 = vpop.eup %8764  ;;  %v9550_v57 = vadd.f32 1e-05, %v628_v36  ;;  %1203 = vmatpush.bf16.msrb.mxu2 %v9619_v29  ;;  %v7476_v29 = vld [vmem:[%s12562_s21 + $0x1fc] sm:$0xf0] }
 0x1a5   :  { %v634_v9 = vmul.f32 %v9548_v53, %v9482_v3  ;;  %12599 = vst [vmem:[#allocation41_spill] sm:$0xff] %v9603_v50  ;;  %1238 = vmatpush.bf16.msra.mxu0 %v9603_v50  ;;  %vm640_vm3 = vweird.f32 %v9548_v53  ;;  %v9682_v3 = vperm.slane %v101_v21, 1 }
 0x1a6   :  { %8766 = vrsqrt.f32 %v9550_v57  ;;  %vm641_vm5 = vmor %vm639_vm4, %vm640_vm3  ;;  %vm649_vm7 = vweird.f32 %v9550_v57  ;;  %vm1356_vm4 = vcmask 1043456  }
 0x1a7   :  { %v635_v36 = vmul.f32 %v9548_v53, %v634_v9  ;;  %v7494_v9 = vld [vmem:[%s12562_s21 + $0x210] sm:$0xf]  ;;  %12607 = vst [vmem:[#allocation49_spill] sm:$0xff] %v9682_v3 }
 0x1a9   :  { %v636_v17 = vmul.f32 0.5, %v635_v36  ;;  %v626_v20 = vpop.xlane.xlu2 %625  ;;  %v9630_v36 = vor.u32 %v8467_v35, %v7494_v9  ;;  %v9646_v9 = vor.u32 %v8425_v41, %v7336_v49  ;;  %v9648_v35 = vor.u32 %v8465_v0, %v7496_v2  ;;  %v8462_v41 = vld [vmem:[%s12562_s21 + $0x1f8] sm:$0xf0] }
 0x1aa   :  { %v629_v44 = vmul.f32 %v626_v20, %v9206_v1  ;;  %v102_v20 = vld [vmem:[%s12375_s4] sm:$0x3]  ;;  %v9671_v2 = vor.u32 %v8422_v15, %v7314_v48  ;;  %s8969_s4 = smov 78  }
 0x1ab   :  { %12603 = vst [vmem:[#allocation45_spill] sm:$0xff] %v9630_v36  ;;  %v637_v28 = vsub.f32 1.5, %v636_v17  ;;  %v7474_v17 = vld [vmem:[%s12562_s21 + $0x1e8] sm:$0xf]  ;;  %1221 = vmatpush.bf16.msrb.mxu3 %v9630_v36  ;;  %1239 = vmatpush.bf16.msra.mxu0 %v9646_v9  ;;  %v9701_v38 = vperm.slane %v102_v20, 0  ;;  %v9703_v26 = vperm.slane %v102_v20, 1 }
 0x1ac   :  { %12604 = vst [vmem:[#allocation46_spill] sm:$0xff] %v9646_v9  ;;  %v9656_v54 = vpop.eup %8766  ;;  %v9658_v33 = vadd.f32 1e-05, %v629_v44  ;;  %v8420_v44 = vld [vmem:[%s12562_s21 + $0xac] sm:$0xf]  ;;  %v9689_v15 = vor.u32 %v8462_v41, %v7474_v17  ;;  %1257 = vmatpush.bf16.msra.mxu1 %v9648_v35  ;;  %1204 = vmatpush.bf16.msrb.mxu2 %v9671_v2 }
 0x1ad   :  { %12605 = vst [vmem:[#allocation47_spill] sm:$0xff] %v9648_v35  ;;  %v638_v49 = vmul.f32 %v9548_v53, %v637_v28  ;;  %v644_v0 = vmul.f32 %v9656_v54, %v9550_v57  ;;  %v8460_v28 = vld [vmem:[%s12562_s21 + $0x1ec] sm:$0xf]  ;;  %v9691_v48 = vor.u32 %v8420_v44, %v7316_v16  ;;  %vm650_vm6 = vweird.f32 %v9656_v54 }
 0x1ae   :  { %12606 = vst [vmem:[#allocation48_spill] sm:$0xff] %v9671_v2  ;;  %8768 = vrsqrt.f32 %v9658_v33  ;;  %v9699_v51 = vor.u32 %v8460_v28, %v7476_v29  ;;  %v7294_v29 = vld [vmem:[%s12562_s21 + $0x80] sm:$0xf]  ;;  %vm651_vm8 = vmor %vm649_vm7, %vm650_vm6  ;;  %vm659_vm12 = vweird.f32 %v9658_v33  ;;  %vm1650_vm6 = vcmask 23552  }
 0x1af   :  { %12608 = vst [vmem:[#allocation50_spill] sm:$0xff] %v9689_v15  ;;  %v642_v21 = vsel %vm641_vm5, %v9548_v53, %v638_v49  ;;  %v645_v63 = vmul.f32 %v9656_v54, %v644_v0  ;;  %1222 = vmatpush.bf16.msrb.mxu3 %v9689_v15  ;;  %1240 = vmatpush.bf16.msra.mxu0 %v9691_v48  ;;  %v8457_v49 = vld [vmem:[%s12562_s21 + $0x1d0] sm:$0xf0]  ;;  %v8415_v0 = vld [vmem:[%s12562_s21 + $0x84] sm:$0xf]  ;;  %vm1346_vm5 = vcmask 195584  }
 0x1b0   :  { %12609 = vst [vmem:[#allocation51_spill] sm:$0xff] %v9691_v48  ;;  %v663_v17 = vmul.f32 %v642_v21, %v9209_v4  ;;  %v664_v16 = vmul.f32 %v642_v21, %v9211_v5  ;;  %v8417_v4 = vld [vmem:[%s12562_s21 + $0x90] sm:$0xf0]  ;;  %v7454_v5 = vld [vmem:[%s12562_s21 + $0x1c0] sm:$0xf]  ;;  %1258 = vmatpush.bf16.msra.mxu1 %v9699_v51  ;;  %vm1975_vm7 = vcmask 48128  }
 0x1b1   :  { %12610 = vst [vmem:[#allocation52_spill] sm:$0xff] %v9699_v51  ;;  %v646_v41 = vmul.f32 0.5, %v645_v63  ;;  %v9723_v20 = vor.u32 %v8417_v4, %v7294_v29  ;;  %v8455_v29 = vld [vmem:[%s12562_s21 + $0x1c4] sm:$0xf]  ;;  %v7456_v4 = vld [vmem:[%s12562_s21 + $0x1d4] sm:$0xf0] }
 0x1b2   :  { %12611 = vst [vmem:[#allocation53_spill] sm:$0xff] %v9701_v38  ;;  %v674_v44 = vmul.f32 %v9616_v14, %v663_v17  ;;  %v675_v53 = vmul.f32 %v9682_v3, %v664_v16  ;;  %v9737_v16 = vor.u32 %v8457_v49, %v7454_v5  ;;  %v7274_v5 = vld [vmem:[%s12562_s21 + $0x58] sm:$0xf]  ;;  %v8412_v49 = vld [vmem:[%s12562_s21 + $0x68] sm:$0xf0]  ;;  %v9771_v15 = vor.u32 %v8455_v29, %v7456_v4 }
 0x1b3   :  { %12612 = vst [vmem:[#allocation54_spill] sm:$0xff] %v9703_v26  ;;  %v647_v63 = vsub.f32 1.5, %v646_v41  ;;  %v7296_v41 = vld [vmem:[%s12562_s21 + $0x94] sm:$0xf0]  ;;  %1205 = vmatpush.bf16.msrb.mxu2 %v9723_v20  ;;  %v9773_v36 = vor.u32 %v8412_v49, %v7274_v5  ;;  %v8450_v29 = vld [vmem:[%s12562_s21 + $0x19c] sm:$0xf] }
 0x1b4   :  { %12613 = vst [vmem:[#allocation55_spill] sm:$0xff] %v9723_v20  ;;  %v9731_v28 = vpop.eup %8768  ;;  %v685_v21 = vadd.f32 %v9701_v38, %v674_v44  ;;  %v9735_v17 = vadd.f32 %v9703_v26, %v675_v53  ;;  %v9753_v53 = vor.u32 %v8415_v0, %v7296_v41  ;;  %1223 = vmatpush.bf16.msrb.mxu3 %v9737_v16  ;;  %v7436_v4 = vld [vmem:[%s12562_s21 + $0x1ac] sm:$0xf0] }
 0x1b5   :  { %12614 = vst [vmem:[#allocation56_spill] sm:$0xff] %v9737_v16  ;;  %v648_v2 = vmul.f32 %v9656_v54, %v647_v63  ;;  %v654_v44 = vmul.f32 %v9731_v28, %v9658_v33  ;;  %v7434_v63 = vld [vmem:[%s12562_s21 + $0x198] sm:$0xf]  ;;  %v7254_v5 = vld [vmem:[%s12562_s21 + $0x30] sm:$0xf]  ;;  %1259 = vmatpush.bf16.msra.mxu1 %v9771_v15  ;;  %vm660_vm10 = vweird.f32 %v9731_v28 }
 0x1b6   :  { %12615 = vst [vmem:[#allocation57_spill] sm:$0xff] %v9753_v53  ;;  %vm691_vm9 = vcmp.gt.f32.partialorder %v685_v21, 0.0  ;;  %v697_v57 = vmul.f32 0.1, %v685_v21  ;;  %v698_v0 = vmul.f32 0.1, %v9735_v17  ;;  %1241 = vmatpush.bf16.msra.mxu0 %v9753_v53  ;;  %vm661_vm13 = vmor %vm659_vm12, %vm660_vm10 }
 0x1b7   :  { %v652_v41 = vsel %vm651_vm8, %v9656_v54, %v648_v2  ;;  %v655_v20 = vmul.f32 %v9731_v28, %v654_v44  ;;  %12616 = vst [vmem:[#allocation58_spill] sm:$0xff] %v9771_v15  ;;  %v7276_v54 = vld [vmem:[%s12562_s21 + $0x6c] sm:$0xf0]  ;;  %1206 = vmatpush.bf16.msrb.mxu2 %v9773_v36  ;;  %v8407_v16 = vld [vmem:[%s12562_s21 + $0x40] sm:$0xf0]  ;;  %vm692_vm11 = vcmp.gt.f32.partialorder %v9735_v17, 0.0 }
 0x1b8   :  { %12617 = vst [vmem:[#allocation59_spill] sm:$0xff] %v9773_v36  ;;  %v665_v2 = vmul.f32 %v652_v41, %v9218_v11  ;;  %v666_v44 = vmul.f32 %v652_v41, %v9220_v12  ;;  %v9797_v11 = vor.u32 %v8452_v37, %v7434_v63  ;;  %v9799_v12 = vor.u32 %v8410_v58, %v7276_v54  ;;  %v8447_v58 = vld [vmem:[%s12562_s21 + $0x180] sm:$0xf0]  ;;  %v8405_v63 = vld [vmem:[%s12562_s21 + $0x34] sm:$0xf] }
 0x1b9   :  { %v656_v49 = vmul.f32 0.5, %v655_v20  ;;  %v9801_v41 = vor.u32 %v8450_v29, %v7436_v4  ;;  %v9812_v37 = vor.u32 %v8407_v16, %v7254_v5  ;;  %v7256_v54 = vld [vmem:[%s12562_s21 + $0x44] sm:$0xf0]  ;;  %v9826_v16 = vor.u32 %v8447_v58, %v7414_v24  ;;  %v8402_v58 = vld [vmem:[%s12562_s21 + $0x18] sm:$0xf0] }
 0x1ba   :  { %12618 = vst [vmem:[#allocation60_spill] sm:$0xff] %v9797_v11  ;;  %v676_v20 = vmul.f32 %v9616_v14, %v665_v2  ;;  %v677_v1 = vmul.f32 %v9682_v3, %v666_v44  ;;  %1224 = vmatpush.bf16.msrb.mxu3 %v9797_v11  ;;  %1242 = vmatpush.bf16.msra.mxu0 %v9799_v12  ;;  %v8445_v44 = vld [vmem:[%s12562_s21 + $0x174] sm:$0xf]  ;;  %v7416_v4 = vld [vmem:[%s12562_s21 + $0x184] sm:$0xf0]  ;;  %vm2297_vm8 = vcmask 72704  }
 0x1bb   :  { %12619 = vst [vmem:[#allocation61_spill] sm:$0xff] %v9799_v12  ;;  %v657_v29 = vsub.f32 1.5, %v656_v49  ;;  %v9828_v2 = vor.u32 %v8405_v63, %v7256_v54  ;;  %v703_v36 = vsel %vm691_vm9, %v685_v21, %v697_v57  ;;  %v7234_v24 = vld [vmem:[%s12562_s21 + $0x8] sm:$0xf]  ;;  %1260 = vmatpush.bf16.msra.mxu1 %v9801_v41  ;;  %1207 = vmatpush.bf16.msrb.mxu2 %v9812_v37  ;;  %v8442_v57 = vld [vmem:[%s12562_s21 + $0x158] sm:$0xf0] }
 0x1bc   :  { %12620 = vst [vmem:[#allocation62_spill] sm:$0xff] %v9801_v41  ;;  %v687_v5 = vadd.f32 %v9701_v38, %v676_v20  ;;  %v688_v49 = vadd.f32 %v9703_v26, %v677_v1  ;;  %v7394_v63 = vld [vmem:[%s12562_s21 + $0x148] sm:$0xf]  ;;  %v9852_v1 = vor.u32 %v8445_v44, %v7416_v4  ;;  %v9854_v21 = vor.u32 %v8402_v58, %v7234_v24  ;;  %v8400_v20 = vld [vmem:[%s12562_s21 + $0xc] sm:$0xf] }
 0x1bd   :  { %12621 = vst [vmem:[#allocation63_spill] sm:$0xff] %v9812_v37  ;;  %v658_v54 = vmul.f32 %v9731_v28, %v657_v29  ;;  %v7236_v33 = vld [vmem:[%s12562_s21 + $0x1c] sm:$0xf0]  ;;  %v704_v24 = vsel %vm692_vm11, %v9735_v17, %v698_v0  ;;  %v9873_v58 = vor.u32 %v8442_v57, %v7394_v63  ;;  %v8440_v37 = vld [vmem:[%s12562_s21 + $0x14c] sm:$0xf]  ;;  %vm12513_vm9 = vcmask 97280  }
 0x1be   :  { %12622 = vst [vmem:[#allocation64_spill] sm:$0xff] %v9826_v16  ;;  %vm693_vm14 = vcmp.gt.f32.partialorder %v687_v5, 0.0  ;;  %v699_v29 = vmul.f32 0.1, %v687_v5  ;;  %vm694_vm15 = vcmp.gt.f32.partialorder %v688_v49, 0.0  ;;  %1225 = vmatpush.bf16.msrb.mxu3 %v9826_v16  ;;  %1243 = vmatpush.bf16.msra.mxu0 %v9828_v2  ;;  %v9889_v63 = vor.u32 %v8400_v20, %v7236_v33 }
 0x1bf   :  { %12623 = vst [vmem:[#allocation65_spill] sm:$0xff] %v9828_v2  ;;  %v700_v44 = vmul.f32 0.1, %v688_v49  ;;  %v662_v4 = vsel %vm661_vm13, %v9731_v28, %v658_v54  ;;  %v7396_v11 = vld [vmem:[%s12562_s21 + $0x15c] sm:$0xf0]  ;;  %1261 = vmatpush.bf16.msra.mxu1 %v9852_v1  ;;  %1208 = vmatpush.bf16.msrb.mxu2 %v9854_v21  ;;  %vm12548_vm10 = vcmask 203776  }
 0x1c0   :  { %12624 = vst [vmem:[#allocation66_spill] sm:$0xff] %v9852_v1  ;;  %v667_v28 = vmul.f32 %v662_v4, %v9227_v18  ;;  %v668_v54 = vmul.f32 %v662_v4, %v9229_v19  ;;  %v705_v61 = vsel %vm693_vm14, %v687_v5, %v699_v29  ;;  %v9893_v22 = vor.u32 %v8440_v37, %v7396_v11  ;;  %v7382_v18 = vld [vmem:[%s12562_s21 + $0x128] sm:$0xf]  ;;  %v8438_v19 = vld [vmem:[%s12562_s21 + $0x138] sm:$0xf0] }
 0x1c1   :  { %12625 = vst [vmem:[#allocation67_spill] sm:$0xff] %v9854_v21  ;;  %v706_v17 = vsel %vm694_vm15, %v688_v49, %v700_v44  ;;  %v9883_v0 = vpack.c.bf16 %v705_v61, %v703_v36  ;;  %v7542_v61 = vld [vmem:[%s12562_s21 + $0x268] sm:$0xf]  ;;  %v9906_v36 = vor.u32 %v8438_v19, %v7382_v18  ;;  %v8478_v11 = vld [vmem:[%s12562_s21 + $0x278] sm:$0xf0]  ;;  %vm3115_vm12 = vcmask 1044480  }
 0x1c2   :  { %12626 = vst [vmem:[#allocation68_spill] sm:$0xff] %v9873_v58  ;;  %v9885_v16 = vpack.c.bf16 %v706_v17, %v704_v24  ;;  %v678_v57 = vmul.f32 %v9616_v14, %v667_v28  ;;  %v679_v39 = vmul.f32 %v9682_v3, %v668_v54  ;;  %v9913_v37 = vor.u32 %v8478_v11, %v7542_v61  ;;  %v7362_v5 = vld [vmem:[%s12562_s21 + $0x100] sm:$0xf]  ;;  %v8433_v49 = vld [vmem:[%s12562_s21 + $0x110] sm:$0xf0] }
 0x1c3   :  { %12627 = vst [vmem:[#allocation69_spill] sm:$0xff] %v9889_v63  ;;  %1137 = vmatmul.bf16.vlgmr.msra.gmra.mxu2 %v9883_v0  ;;  %1173 = vmatmul.bf16.vlgmr.msrb.gmra.mxu0 %v9883_v0  ;;  %v7522_v20 = vld [vmem:[%s12562_s21 + $0x240] sm:$0xf]  ;;  %v8473_v33 = vld [vmem:[%s12562_s21 + $0x250] sm:$0xf0]  ;;  %v9933_v4 = vor.u32 %v8433_v49, %v7362_v5 }
 0x1c4   :  { %12628 = vst [vmem:[#allocation70_spill] sm:$0xff] %v9893_v22  ;;  %1155 = vmatmul.bf16.vlgmr.msra.gmra.mxu3 %v9885_v16  ;;  %1191 = vmatmul.bf16.vlgmr.msrb.gmra.mxu1 %v9885_v16  ;;  %v689_v29 = vadd.f32 %v9701_v38, %v678_v57  ;;  %v690_v44 = vadd.f32 %v9703_v26, %v679_v39  ;;  %v7342_v28 = vld [vmem:[%s12562_s21 + $0xd8] sm:$0xf]  ;;  %v8428_v54 = vld [vmem:[%s12562_s21 + $0xe8] sm:$0xf0] }
 0x1c5   :  { %12629 = vst [vmem:[#allocation71_spill] sm:$0xff] %v9906_v36  ;;  %1226 = vmatpush.bf16.msrb.mxu3 %v9873_v58  ;;  %1244 = vmatpush.bf16.msra.mxu0 %v9889_v63  ;;  %v9936_v24 = vor.u32 %v8473_v33, %v7522_v20  ;;  %v7502_v39 = vld [vmem:[%s12562_s21 + $0x218] sm:$0xf]  ;;  %v8468_v17 = vld [vmem:[%s12562_s21 + $0x228] sm:$0xf0]  ;;  %v9951_v19 = vor.u32 %v8428_v54, %v7342_v28 }
 0x1c6   :  { %12630 = vst [vmem:[#allocation72_spill] sm:$0xff] %v9913_v37  ;;  %1262 = vmatpush.bf16.msra.mxu1 %v9893_v22  ;;  %1273 = vmatpush.bf16.msra.mxu2 %v9906_v36  ;;  %v701_v57 = vmul.f32 0.1, %v689_v29  ;;  %v702_v18 = vmul.f32 0.1, %v690_v44  ;;  %vm695_vm2 = vcmp.gt.f32.partialorder %v689_v29, 0.0  ;;  %v9954_v61 = vor.u32 %v8468_v17, %v7502_v39 }
 0x1c7   :  { %12631 = vst [vmem:[#allocation73_spill] sm:$0xff] %v9933_v4  ;;  %vm696_vm3 = vcmp.gt.f32.partialorder %v690_v44, 0.0  ;;  %v7322_v11 = vld [vmem:[%s12562_s21 + $0xb0] sm:$0xf]  ;;  %v8423_v5 = vld [vmem:[%s12562_s21 + $0xc0] sm:$0xf0] }
 0x1c8   :  { %12632 = vst [vmem:[#allocation74_spill] sm:$0xff] %v9936_v24  ;;  %v707_v49 = vsel %vm695_vm2, %v689_v29, %v701_v57  ;;  %v708_v20 = vsel %vm696_vm3, %v690_v44, %v702_v18  ;;  %v9963_v33 = vor.u32 %v8423_v5, %v7322_v11  ;;  %v7482_v28 = vld [vmem:[%s12562_s21 + $0x1f0] sm:$0xf]  ;;  %v8463_v54 = vld [vmem:[%s12562_s21 + $0x200] sm:$0xf0] }
 0x1c9   :  { %1291 = vmatpush.bf16.msra.mxu3 %v9913_v37  ;;  %12633 = vst [vmem:[#allocation75_spill] sm:$0xff] %v9951_v19  ;;  %v711_v39 = vpack.c.bf16 %v707_v49, %v707_v49  ;;  %v712_v17 = vpack.c.bf16 %v708_v20, %v708_v20  ;;  %v7302_v29 = vld [vmem:[%s12562_s21 + $0x88] sm:$0xf]  ;;  %v8418_v44 = vld [vmem:[%s12562_s21 + $0x98] sm:$0xf0] }
 0x1ca   :  { %1274 = vmatpush.bf16.msra.mxu2 %v9933_v4  ;;  %12634 = vst [vmem:[#allocation76_spill] sm:$0xff] %v9954_v61  ;;  %v9972_v4 = vor.u32 %v8463_v54, %v7482_v28  ;;  %v7462_v57 = vld [vmem:[%s12562_s21 + $0x1c8] sm:$0xf]  ;;  %v9984_v18 = vor.u32 %v8418_v44, %v7302_v29  ;;  %v8458_v11 = vld [vmem:[%s12562_s21 + $0x1d8] sm:$0xf0] }
 0x1cb   :  { %12635 = vst [vmem:[#allocation77_spill] sm:$0xff] %v9963_v33  ;;  %v7282_v5 = vld [vmem:[%s12562_s21 + $0x60] sm:$0xf]  ;;  %v8413_v49 = vld [vmem:[%s12562_s21 + $0x70] sm:$0xf0]  ;;  %v9996_v20 = vor.u32 %v8458_v11, %v7462_v57 }
 0x1cc   :  { %12636 = vst [vmem:[#allocation78_spill] sm:$0xff] %v9972_v4  ;;  %v9999_v28 = vor.u32 %v8413_v49, %v7282_v5  ;;  %v7442_v54 = vld [vmem:[%s12562_s21 + $0x1a0] sm:$0xf]  ;;  %v8453_v29 = vld [vmem:[%s12562_s21 + $0x1b0] sm:$0xf0] }
 0x1cd   :  { %1292 = vmatpush.bf16.msra.mxu3 %v9936_v24  ;;  %12637 = vst [vmem:[#allocation79_spill] sm:$0xff] %v9984_v18  ;;  %v7262_v44 = vld [vmem:[%s12562_s21 + $0x38] sm:$0xf]  ;;  %v8408_v57 = vld [vmem:[%s12562_s21 + $0x48] sm:$0xf0]  ;;  %v10014_v11 = vor.u32 %v8453_v29, %v7442_v54 }
 0x1ce   :  { %1275 = vmatpush.bf16.msra.mxu2 %v9951_v19  ;;  %12638 = vst [vmem:[#allocation80_spill] sm:$0xff] %v9996_v20  ;;  %v10017_v5 = vor.u32 %v8408_v57, %v7262_v44  ;;  %v7422_v49 = vld [vmem:[%s12562_s21 + $0x178] sm:$0xf]  ;;  %v8403_v54 = vld [vmem:[%s12562_s21 + $0x20] sm:$0xf0] }
 0x1cf   :  { %12639 = vst [vmem:[#allocation81_spill] sm:$0xff] %v9999_v28  ;;  %v7402_v57 = vld [vmem:[%s12562_s21 + $0x150] sm:$0xf] }
 0x1d0   :  { %12640 = vst [vmem:[#allocation82_spill] sm:$0xff] %v10014_v11 }
 0x1d1   :  { %1293 = vmatpush.bf16.msra.mxu3 %v9954_v61  ;;  %12641 = vst [vmem:[#allocation83_spill] sm:$0xff] %v10017_v5 }
 0x1d2   :  { %1276 = vmatpush.bf16.msra.mxu2 %v9963_v33  ;;  %v7242_v33 = vld [vmem:[%s12562_s21 + $0x10] sm:$0xf] }
 0x1d3   :  { %1142 = vmatmul.bf16.gmra.mxu2 %v711_v39  ;;  %1178 = vmatmul.bf16.gmra.mxu0 %v711_v39  ;;  %v10035_v44 = vor.u32 %v8403_v54, %v7242_v33 }
 0x1d4   :  { %1160 = vmatmul.bf16.gmra.mxu3 %v712_v17  ;;  %1196 = vmatmul.bf16.gmra.mxu1 %v712_v17 }
 0x1d5   :  { %1294 = vmatpush.bf16.msra.mxu3 %v9972_v4  ;;  %12643 = vst [vmem:[#allocation85_spill] sm:$0xff] %v10035_v44 }
 0x1d6   :  { %1277 = vmatpush.bf16.msra.mxu2 %v9984_v18  ;;  %v8448_v18 = vld [vmem:[%s12562_s21 + $0x188] sm:$0xf0] }
 0x1d7   :  { %v10032_v29 = vor.u32 %v8448_v18, %v7422_v49 }
 0x1d9   :  { %1295 = vmatpush.bf16.msra.mxu3 %v9996_v20  ;;  %12642 = vst [vmem:[#allocation84_spill] sm:$0xff] %v10032_v29 }
 0x1da   :  { %1278 = vmatpush.bf16.msra.mxu2 %v9999_v28  ;;  %v8443_v28 = vld [vmem:[%s12562_s21 + $0x160] sm:$0xf0]  ;;  %s8968_s21 = smov 103  }
 0x1db   :  { %v10044_v19 = vor.u32 %v8443_v28, %v7402_v57 }
 0x1dd   :  { %1296 = vmatpush.bf16.msra.mxu3 %v10014_v11  ;;  %12644 = vst [vmem:[#allocation86_spill] sm:$0xff] %v10044_v19 }
 0x1de   :  { %1279 = vmatpush.bf16.msra.mxu2 %v10017_v5 }
 0x1e1   :  { %1297 = vmatpush.bf16.msra.mxu3 %v10032_v29 }
 0x1e2   :  { %1280 = vmatpush.bf16.msra.mxu2 %v10035_v44 }
 0x1e3   :  { %1209 = vmatmul.bf16.vlgmr.msrb.gmra.mxu2 %v9883_v0  ;;  %1245 = vmatmul.bf16.vlgmr.msra.gmra.mxu0 %v9883_v0 }
 0x1e4   :  { %1227 = vmatmul.bf16.vlgmr.msrb.gmra.mxu3 %v9885_v16  ;;  %1263 = vmatmul.bf16.vlgmr.msra.gmra.mxu1 %v9885_v16 }
 0x1e5   :  { %1298 = vmatpush.bf16.msra.mxu3 %v10044_v19 }
 0x1f3   :  { %1214 = vmatmul.bf16.gmra.mxu2 %v711_v39  ;;  %1250 = vmatmul.bf16.gmra.mxu0 %v711_v39 }
 0x1f4   :  { %1232 = vmatmul.bf16.gmra.mxu3 %v712_v17  ;;  %1268 = vmatmul.bf16.gmra.mxu1 %v712_v17 }
 0x203   :  { %1281 = vmatmul.bf16.vlgmr.msra.gmra.mxu2 %v9883_v0 }
 0x204   :  { %1299 = vmatmul.bf16.vlgmr.msra.gmra.mxu3 %v9885_v16 }
 0x213   :  { %1286 = vmatmul.bf16.gmra.mxu2 %v711_v39 }
 0x214   :  { %1304 = vmatmul.bf16.gmra.mxu3 %v712_v17 }
 0x240   :  { %v1174_v33 = vpop.f32.mrf.mxu0 }
 0x241   :  { %v1192_v18 = vpop.f32.mrf.mxu1 }
 0x242   :  { %v1193_v5 = vadd.f32 %v1192_v18, %v1174_v33 }
 0x246   :  { %v1138_v28 = vpop.f32.mrf.mxu2 }
 0x247   :  { %v1156_v49 = vpop.f32.mrf.mxu3 }
 0x248   :  { %v1176_v54 = vpop.f32.mrf.mxu0  ;;  %v1157_v44 = vadd.f32 %v1156_v49, %v1138_v28 }
 0x249   :  { %v1194_v57 = vpop.f32.mrf.mxu1 }
 0x24a   :  { %v1309_v36 = vpack.c.bf16 %v1193_v5, %v1157_v44  ;;  %v1195_v11 = vadd.f32 %v1194_v57, %v1176_v54 }
 0x24c   :  { %v1336_v61 = vunpack.c.l.b16 %v1309_v36 }
 0x24e   :  { %v1140_v29 = vpop.f32.mrf.mxu2 }
 0x24f   :  { %v1158_v19 = vpop.f32.mrf.mxu3 }
 0x250   :  { %v1159_v21 = vadd.f32 %v1158_v19, %v1140_v29  ;;  %v1179_v4 = vpop.f32.mrf.mxu0 }
 0x251   :  { %v1197_v0 = vpop.f32.mrf.mxu1 }
 0x252   :  { %v1312_v20 = vpack.c.bf16 %v1195_v11, %v1159_v21  ;;  %v1198_v37 = vadd.f32 %v1197_v0, %v1179_v4 }
 0x254   :  { %v1337_v16 = vunpack.c.l.b16 %v1312_v20 }
 0x256   :  { %v1339_v39 = vpack.c.b16 %v1337_v16, %v1336_v61  ;;  %v1143_v17 = vpop.f32.mrf.mxu2  ;;  %v1638_v16 = vunpack.c.h.b16 %v1312_v20 }
 0x257   :  { %v1161_v24 = vpop.f32.mrf.mxu3 }
 0x258   :  { %v1162_v26 = vadd.f32 %v1161_v24, %v1143_v17  ;;  %1341 = vrot.lane.b32.xlu1 %v1339_v39, %s8968_s21  ;;  %v1181_v33 = vpop.f32.mrf.mxu0 }
 0x259   :  { %v1199_v18 = vpop.f32.mrf.mxu1  ;;  %v1637_v33 = vunpack.c.h.b16 %v1309_v36 }
 0x25a   :  { %v1315_v28 = vpack.c.bf16 %v1198_v37, %v1162_v26 }
 0x25b   :  { %v1640_v18 = vpack.c.b16 %v1638_v16, %v1637_v33 }
 0x25c   :  { %v1338_v49 = vunpack.c.l.b16 %v1315_v28  ;;  %v1639_v37 = vunpack.c.h.b16 %v1315_v28 }
 0x25e   :  { %v1340_v5 = vpack.c.b16 %v1338_v49, %v1338_v49  ;;  %v1145_v19 = vpop.f32.mrf.mxu2  ;;  %v10059_v24 = vpack.c.b16 %v1639_v37, %v1639_v37 }
 0x25f   :  { %v1163_v21 = vpop.f32.mrf.mxu3 }
 0x260   :  { %1453 = vrot.lane.b32.xlu2 %v1340_v5, %s8969_s4  ;;  %1343 = vrot.lane.b32.xlu0 %v1340_v5, %s8968_s21  ;;  %v1410_v61 = vsel %vm1356_vm4, %v1340_v5, 0  ;;  %v1246_v4 = vpop.f32.mrf.mxu0 }
 0x261   :  { %1513 = vrot.lane.b32.xlu1 %v1339_v39, %s8970_s20  ;;  %1418 = vmatpush.bf16.msrb.mxu1 %v1410_v61  ;;  %v1264_v26 = vpop.f32.mrf.mxu1 }
 0x262   :  { %v1265_v14 = vadd.f32 %v1264_v26, %v1246_v4 }
 0x265   :  { %1419 = vmatpush.bf16.msrb.mxu1 %v1339_v39 }
 0x266   :  { %v1210_v11 = vpop.f32.mrf.mxu2 }
 0x267   :  { %v1228_v29 = vpop.f32.mrf.mxu3 }
 0x268   :  { %1515 = vrot.lane.b32.xlu0 %v1340_v5, %s8970_s20  ;;  %1451 = vrot.lane.b32.xlu2 %v1339_v39, %s8969_s4  ;;  %v1248_v44 = vpop.f32.mrf.mxu0  ;;  %v1229_v38 = vadd.f32 %v1228_v29, %v1210_v11 }
 0x269   :  { %1713 = vrot.lane.b32.xlu1 %v10059_v24, %s8971_s22  ;;  %v1266_v54 = vpop.f32.mrf.mxu1 }
 0x26a   :  { %v1267_v3 = vadd.f32 %v1266_v54, %v1248_v44  ;;  %v1310_v36 = vpack.c.bf16 %v1265_v14, %v1229_v38 }
 0x26e   :  { %v1212_v57 = vpop.f32.mrf.mxu2 }
 0x26f   :  { %v1230_v0 = vpop.f32.mrf.mxu3 }
 0x270   :  { %1577 = vrot.lane.b32.xlu0 %v1340_v5, %s12546_s5  ;;  %1575 = vrot.lane.b32.xlu2 %v1339_v39, %s12546_s5  ;;  %v1251_v17 = vpop.f32.mrf.mxu0  ;;  %v1231_v37 = vadd.f32 %v1230_v0, %v1212_v57  ;;  %v8479_v0 = vld [vmem:[%s12376_s6] sm:$0xff]  ;;  %s12743_s5 = smov 31  }
 0x271   :  { %1648 = vrot.lane.b32.xlu1 %v10059_v24, %s8973_s23  ;;  %v1269_v28 = vpop.f32.mrf.mxu1  ;;  %7571 = vmatmul.msk.bf16.vlgmr.msrb.gmra.mxu1 %vm1346_vm5, %v8479_v0  ;;  %v8482_v0 = vld [vmem:[%s12376_s6 + $0x18] sm:$0xff] }
 0x272   :  { %v1313_v20 = vpack.c.bf16 %v1267_v3, %v1231_v37  ;;  %v1270_v33 = vadd.f32 %v1269_v28, %v1251_v17  ;;  %v8480_v37 = vld [vmem:[%s12376_s6 + $0x8] sm:$0xff] }
 0x274   :  { %v2285_v28 = vunpack.c.h.b16 %v1313_v20 }
 0x276   :  { %v1215_v49 = vpop.f32.mrf.mxu2 }
 0x277   :  { %v1233_v19 = vpop.f32.mrf.mxu3 }
 0x278   :  { %1711 = vrot.lane.b32.xlu0 %v1640_v18, %s8971_s22  ;;  %1773 = vrot.lane.b32.xlu2 %v1640_v18, %s12464_s24  ;;  %v1253_v21 = vpop.f32.mrf.mxu0  ;;  %v1234_v16 = vadd.f32 %v1233_v19, %v1215_v49 }
 0x279   :  { %1642 = vrot.lane.b32.xlu1 %v1339_v39, %s8973_s23  ;;  %v1271_v61 = vpop.f32.mrf.mxu1  ;;  %v1963_v39 = vunpack.c.l.b16 %v1313_v20  ;;  %v1962_v21 = vunpack.c.l.b16 %v1310_v36 }
 0x27a   :  { %v1316_v57 = vpack.c.bf16 %v1270_v33, %v1234_v16 }
 0x27b   :  { %v1965_v11 = vpack.c.b16 %v1963_v39, %v1962_v21 }
 0x27c   :  { %v1964_v38 = vunpack.c.l.b16 %v1316_v57 }
 0x27e   :  { %v1217_v58 = vpop.f32.mrf.mxu2 }
 0x27f   :  { %v1235_v6 = vpop.f32.mrf.mxu3 }
 0x280   :  { %1775 = vrot.lane.b32.xlu0 %v10059_v24, %s12464_s24  ;;  %1646 = vrot.lane.b32.xlu2 %v1340_v5, %s8973_s23  ;;  %v1966_v6 = vpack.c.b16 %v1964_v38, %v1964_v38  ;;  %s12472_s24 = smov 90  }
 0x281   :  { %1835 = vrot.lane.b32.xlu1 %v1640_v18, %s12462_s25  ;;  %7572 = vmatmul.msk.bf16.gmra.mxu1 %vm1346_vm5, %v8480_v37 }
 0x286   :  { %v1282_v29 = vpop.f32.mrf.mxu2 }
 0x287   :  { %v1300_v4 = vpop.f32.mrf.mxu3 }
 0x288   :  { %v10076_v3 = vadd.f32 %v1300_v4, %v1282_v29  ;;  %1644 = vrot.lane.b32.xlu0 %v1640_v18, %s8973_s23  ;;  %1837 = vrot.lane.b32.xlu2 %v10059_v24, %s12462_s25  ;;  %v8481_v4 = vld [vmem:[%s12376_s6 + $0x10] sm:$0xff]  ;;  %s12476_s25 = smov 65  }
 0x289   :  { %1969 = vrot.lane.b32.xlu1 %v1965_v11, %s12448_s26 }
 0x28a   :  { %v1311_v33 = vpack.c.bf16 %v10076_v3, %v10076_v3 }
 0x28c   :  { %v2609_v38 = vunpack.c.l.b16 %v1311_v33 }
 0x28e   :  { %v1284_v14 = vpop.f32.mrf.mxu2 }
 0x28f   :  { %v1302_v58 = vpop.f32.mrf.mxu3 }
 0x290   :  { %1971 = vrot.lane.b32.xlu0 %v10059_v24, %s12448_s26  ;;  %1973 = vrot.lane.b32.xlu2 %v1966_v6, %s12448_s26  ;;  %v1303_v16 = vadd.f32 %v1302_v58, %v1284_v14 }
 0x291   :  { %2038 = vrot.lane.b32.xlu1 %v1966_v6, %s12458_s27  ;;  %7573 = vmatmul.msk.bf16.gmra.mxu1 %vm1346_vm5, %v8481_v4 }
 0x292   :  { %v1314_v39 = vpack.c.bf16 %v1303_v16, %v1303_v16 }
 0x294   :  { %v2610_v29 = vunpack.c.l.b16 %v1314_v39 }
 0x296   :  { %v1287_v5 = vpop.f32.mrf.mxu2  ;;  %v2612_v14 = vpack.c.b16 %v2610_v29, %v2609_v38 }
 0x297   :  { %v1305_v26 = vpop.f32.mrf.mxu3 }
 0x298   :  { %1899 = vrot.lane.b32.xlu0 %v10059_v24, %s12450_s28  ;;  %1967 = vrot.lane.b32.xlu2 %v1640_v18, %s12448_s26  ;;  %v2286_v24 = vunpack.c.h.b16 %v1316_v57  ;;  %s12460_s26 = smov 62   ;;  %v1306_v21 = vadd.f32 %v1305_v26, %v1287_v5  ;;  %v8486_v26 = vld [vmem:[%s12376_s6 + $0x38] sm:$0xff] }
 0x299   :  { %2100 = vrot.lane.b32.xlu1 %v1966_v6, %s12544_s0 }
 0x29a   :  { %v2288_v17 = vpack.c.b16 %v2286_v24, %v2286_v24 }
 0x29e   :  { %v1289_v44 = vpop.f32.mrf.mxu2 }
 0x29f   :  { %v1307_v54 = vpop.f32.mrf.mxu3 }
 0x2a0   :  { %2036 = vrot.lane.b32.xlu0 %v1965_v11, %s12458_s27  ;;  %1897 = vrot.lane.b32.xlu2 %v1640_v18, %s12450_s28  ;;  %s12454_s28 = smov 59   ;;  %v2284_v18 = vunpack.c.h.b16 %v1310_v36  ;;  %v8485_v36 = vld [vmem:[%s12376_s6 + $0x30] sm:$0xff]  ;;  %s12524_s27 = smov 104  }
 0x2a1   :  { %2222 = vrot.lane.b32.xlu1 %v1965_v11, %s12452_s19 }
 0x2a2   :  { %v2287_v49 = vpack.c.b16 %v2285_v28, %v2284_v18 }
 0x2a8   :  { %2098 = vrot.lane.b32.xlu0 %v1965_v11, %s12544_s0  ;;  %2224 = vrot.lane.b32.xlu2 %v1966_v6, %s12452_s19  ;;  %s12466_s19 = smov 37  }
 0x2a9   :  { %2293 = vrot.lane.b32.xlu1 %v1966_v6, %s12456_s3 }
 0x2b0   :  { %2295 = vrot.lane.b32.xlu0 %v2288_v17, %s12456_s3  ;;  %2162 = vrot.lane.b32.xlu2 %v1966_v6, %s12454_s28  ;;  %v1317_v6 = vpack.c.bf16 %v1306_v21, %v1306_v21 }
 0x2b1   :  { %2160 = vrot.lane.b32.xlu1 %v1965_v11, %s12454_s28  ;;  %s12542_s28 = smov 112  }
 0x2b2   :  { %v2611_v3 = vunpack.c.l.b16 %v1317_v6 }
 0x2b4   :  { %v2613_v24 = vpack.c.b16 %v2611_v3, %v2611_v3  ;;  %v8489_v3 = vld [vmem:[%s12376_s6 + $0x50] sm:$0xff] }
 0x2b8   :  { %2289 = vrot.lane.b32.xlu0 %v1965_v11, %s12456_s3  ;;  %2291 = vrot.lane.b32.xlu2 %v2287_v49, %s12456_s3  ;;  %s12520_s3 = smov 108  }
 0x2b9   :  { %2482 = vrot.lane.b32.xlu1 %v2287_v49, %s12460_s26 }
 0x2ba   :  { %v1454_v19 = vpop.permute.xlu2 %1453 }
 0x2bb   :  { %v1466_v61 = vsel %vm1356_vm4, %v1454_v19, 0 }
 0x2bc   :  { %1474 = vmatpush.bf16.msrb.mxu2 %v1466_v61 }
 0x2c0   :  { %2360 = vrot.lane.b32.xlu0 %v2288_v17, %s12542_s28  ;;  %2358 = vrot.lane.b32.xlu2 %v2287_v49, %s12542_s28 }
 0x2c1   :  { %2484 = vrot.lane.b32.xlu1 %v2288_v17, %s12460_s26  ;;  %s12470_s26 = smov 12  }
 0x2c2   :  { %v1452_v20 = vpop.permute.xlu2 %1451 }
 0x2c3   :  { %1475 = vmatpush.bf16.msrb.mxu2 %v1452_v20 }
 0x2c6   :  { %7586 = vmatmul.msk.bf16.vlgmr.msrb.gmra.mxu2 %vm1346_vm5, %v8485_v36  ;;  %v8487_v36 = vld [vmem:[%s12376_s6 + $0x40] sm:$0xff] }
 0x2c8   :  { %2544 = vrot.lane.b32.xlu0 %v2287_v49, %s12466_s19  ;;  %2422 = vrot.lane.b32.xlu2 %v2288_v17, %s12468_s2 }
 0x2c9   :  { %2618 = vrot.lane.b32.xlu1 %v2288_v17, %s12470_s26 }
 0x2ca   :  { %v1576_v57 = vpop.permute.xlu2 %1575  ;;  %v1342_v11 = vpop.permute.xlu1 %1341 }
 0x2d0   :  { %2546 = vrot.lane.b32.xlu0 %v2288_v17, %s12466_s19  ;;  %2420 = vrot.lane.b32.xlu2 %v2287_v49, %s12468_s2  ;;  %s12530_s19 = smov 115   ;;  %s12474_s2 = smov 40  }
 0x2d1   :  { %2616 = vrot.lane.b32.xlu1 %v2612_v14, %s12470_s26 }
 0x2d2   :  { %v1344_v58 = vpop.permute.xlu0 %1343  ;;  %v10130_v5 = vpop.permute.xlu2 %1773 }
 0x2d3   :  { %v1358_v44 = vsel %vm1356_vm4, %v1344_v58, 0  ;;  %v1514_v54 = vpop.permute.xlu1 %1513 }
 0x2d4   :  { %1366 = vmatpush.bf16.msrb.mxu0 %v1358_v44 }
 0x2d6   :  { %7587 = vmatmul.msk.bf16.gmra.mxu2 %vm1346_vm5, %v8486_v26 }
 0x2d8   :  { %2620 = vrot.lane.b32.xlu0 %v2613_v24, %s12470_s26  ;;  %2614 = vrot.lane.b32.xlu2 %v2287_v49, %s12470_s26  ;;  %v8488_v49 = vld [vmem:[%s12376_s6 + $0x48] sm:$0xff]  ;;  %s12522_s26 = smov 100  }
 0x2d9   :  { %2685 = vrot.lane.b32.xlu1 %v2613_v24, %s12530_s19  ;;  %1367 = vmatpush.bf16.msrb.mxu0 %v1342_v11  ;;  %v8483_v11 = vld [vmem:[%s12376_s6 + $0x20] sm:$0xff] }
 0x2da   :  { %v1516_v17 = vpop.permute.xlu0 %1515  ;;  %v1647_v28 = vpop.permute.xlu2 %1646 }
 0x2db   :  { %v1528_v18 = vsel %vm1356_vm4, %v1516_v17, 0  ;;  %v1714_v19 = vpop.permute.xlu1 %1713 }
 0x2dc   :  { %v1726_v61 = vsel %vm1356_vm4, %v1714_v19, 0  ;;  %7556 = vmatmul.msk.bf16.vlgmr.msrb.gmra.mxu0 %vm1346_vm5, %v8482_v0  ;;  %1536 = vmatpush.bf16.msrb.mxu3 %v1528_v18  ;;  %v8494_v18 = vld [vmem:[%s12376_s6 + $0x78] sm:$0xff] }
 0x2dd   :  { %1734 = vmatpush.bf16.msra.mxu2 %v1726_v61  ;;  %v8490_v19 = vld [vmem:[%s12376_s6 + $0x58] sm:$0xff] }
 0x2e0   :  { %2747 = vrot.lane.b32.xlu0 %v2613_v24, %s12472_s24  ;;  %2809 = vrot.lane.b32.xlu2 %v2613_v24, %s12476_s25 }
 0x2e1   :  { %2683 = vrot.lane.b32.xlu1 %v2612_v14, %s12530_s19  ;;  %1537 = vmatpush.bf16.msrb.mxu3 %v1514_v54  ;;  %s12534_s19 = smov 68  }
 0x2e2   :  { %v1578_v37 = vpop.permute.xlu0 %1577  ;;  %v1838_v20 = vpop.permute.xlu2 %1837 }
 0x2e3   :  { %v1590_v16 = vsel %vm1356_vm4, %v1578_v37, 0  ;;  %v1649_v39 = vpop.permute.xlu1 %1648  ;;  %v1850_v29 = vsel %vm1356_vm4, %v1838_v20, 0 }
 0x2e4   :  { %v1652_v33 = vsel %vm1650_vm6, %v1647_v28, %v1649_v39  ;;  %7601 = vmatmul.msk.bf16.vlgmr.msrb.gmra.mxu3 %vm1346_vm5, %v8488_v49  ;;  %1598 = vmatpush.bf16.msra.mxu0 %v1590_v16  ;;  %v8498_v49 = vld [vmem:[%s12376_s6 + $0x98] sm:$0xff] }
 0x2e5   :  { %v1664_v21 = vsel %vm1356_vm4, %v1652_v33, 0  ;;  %v8491_v33 = vld [vmem:[%s12376_s6 + $0x60] sm:$0xff] }
 0x2e6   :  { %1672 = vmatpush.bf16.msra.mxu1 %v1664_v21  ;;  %7588 = vmatmul.msk.bf16.gmra.mxu2 %vm1346_vm5, %v8487_v36 }
 0x2e8   :  { %2745 = vrot.lane.b32.xlu0 %v2612_v14, %s12472_s24  ;;  %2807 = vrot.lane.b32.xlu2 %v2612_v14, %s12476_s25  ;;  %s12516_s25 = smov 124   ;;  %s12514_s24 = smov 116  }
 0x2e9   :  { %1599 = vmatpush.bf16.msra.mxu0 %v1576_v57  ;;  %v8497_v57 = vld [vmem:[%s12376_s6 + $0x90] sm:$0xff] }
 0x2ea   :  { %v1712_v4 = vpop.permute.xlu0 %1711  ;;  %v1974_v38 = vpop.permute.xlu2 %1973 }
 0x2eb   :  { %v1643_v6 = vpop.permute.xlu1 %1642  ;;  %1735 = vmatpush.bf16.msra.mxu2 %v1712_v4 }
 0x2ec   :  { %7557 = vmatmul.msk.bf16.gmra.mxu0 %vm1346_vm5, %v8483_v11 }
 0x2ed   :  { %1858 = vmatpush.bf16.msrb.mxu0 %v1850_v29 }
 0x2f0   :  { %2871 = vrot.lane.b32.xlu0 %v2613_v24, %s12474_s2  ;;  %2869 = vrot.lane.b32.xlu2 %v2612_v14, %s12474_s2  ;;  %v8484_v14 = vld [vmem:[%s12376_s6 + $0x28] sm:$0xff]  ;;  %s12518_s2 = smov 120  }
 0x2f2   :  { %v1776_v58 = vpop.permute.xlu0 %1775  ;;  %v1968_v26 = vpop.permute.xlu2 %1967 }
 0x2f3   :  { %v1788_v44 = vsel %vm1356_vm4, %v1776_v58, 0  ;;  %v1836_v54 = vpop.permute.xlu1 %1835 }
 0x2f4   :  { %7602 = vmatmul.msk.bf16.gmra.mxu3 %vm1346_vm5, %v8489_v3  ;;  %1859 = vmatpush.bf16.msrb.mxu0 %v1836_v54 }
 0x2f5   :  { %1796 = vmatpush.bf16.msra.mxu3 %v1788_v44  ;;  %v8499_v44 = vld [vmem:[%s12376_s6 + $0xa0] sm:$0xff] }
 0x2f6   :  { %7646 = vmatmul.msk.bf16.vlgmr.msra.gmra.mxu2 %vm1346_vm5, %v8497_v57 }
 0x2f9   :  { %1797 = vmatpush.bf16.msra.mxu3 %v10130_v5 }
 0x2fa   :  { %v1645_v24 = vpop.permute.xlu0 %1644  ;;  %v1898_v0 = vpop.permute.xlu2 %1897 }
 0x2fb   :  { %v1970_v17 = vpop.permute.xlu1 %1969  ;;  %v1651_v28 = vsel %vm1650_vm6, %v1643_v6, %v1645_v24  ;;  %v8495_v6 = vld [vmem:[%s12376_s6 + $0x80] sm:$0xff]  ;;  %v8492_v24 = vld [vmem:[%s12376_s6 + $0x68] sm:$0xff] }
 0x2fc   :  { %7558 = vmatmul.msk.bf16.gmra.mxu0 %vm1346_vm5, %v8484_v14  ;;  %1673 = vmatpush.bf16.msra.mxu1 %v1651_v28  ;;  %v1976_v39 = vsel %vm1975_vm7, %v1968_v26, %v1970_v17  ;;  %v8500_v26 = vld [vmem:[%s12376_s6 + $0xa8] sm:$0xff] }
 0x2fd   :  { %v8496_v28 = vld [vmem:[%s12376_s6 + $0x88] sm:$0xff] }
 0x2ff   :  { %7631 = vmatmul.msk.bf16.vlgmr.msra.gmra.mxu1 %vm1346_vm5, %v8494_v18 }
 0x302   :  { %v1972_v5 = vpop.permute.xlu0 %1971  ;;  %v2225_v61 = vpop.permute.xlu2 %2224 }
 0x303   :  { %v1977_v37 = vsel %vm1975_vm7, %v1972_v5, %v1974_v38  ;;  %v2039_v20 = vpop.permute.xlu1 %2038  ;;  %v2237_v21 = vsel %vm1356_vm4, %v2225_v61, 0  ;;  %v8509_v61 = vld [vmem:[%s12376_s6 + $0xf0] sm:$0xff] }
 0x304   :  { %v1989_v36 = vsel %vm1356_vm4, %v1977_v37, 0  ;;  %v2051_v16 = vsel %vm1356_vm4, %v2039_v20, 0  ;;  %7603 = vmatmul.msk.bf16.gmra.mxu3 %vm1346_vm5, %v8490_v19  ;;  %v8501_v19 = vld [vmem:[%s12376_s6 + $0xb0] sm:$0xff] }
 0x305   :  { %2059 = vmatpush.bf16.msrb.mxu3 %v2051_v16  ;;  %1997 = vmatpush.bf16.msrb.mxu2 %v1989_v36  ;;  %v8493_v36 = vld [vmem:[%s12376_s6 + $0x70] sm:$0xff] }
 0x306   :  { %7647 = vmatmul.msk.bf16.gmra.mxu2 %vm1346_vm5, %v8498_v49 }
 0x309   :  { %1998 = vmatpush.bf16.msrb.mxu2 %v1976_v39 }
 0x30a   :  { %v1900_v11 = vpop.permute.xlu0 %1899  ;;  %v2163_v4 = vpop.permute.xlu2 %2162 }
 0x30b   :  { %v1912_v29 = vsel %vm1356_vm4, %v1900_v11, 0  ;;  %v2101_v38 = vpop.permute.xlu1 %2100  ;;  %v2175_v58 = vsel %vm1356_vm4, %v2163_v4, 0  ;;  %v8506_v11 = vld [vmem:[%s12376_s6 + $0xd8] sm:$0xff] }
 0x30c   :  { %v2113_v3 = vsel %vm1356_vm4, %v2101_v38, 0  ;;  %7616 = vmatmul.msk.bf16.vlgmr.msra.gmra.mxu0 %vm1346_vm5, %v8491_v33  ;;  %1920 = vmatpush.bf16.msrb.mxu1 %v1912_v29  ;;  %v8502_v4 = vld [vmem:[%s12376_s6 + $0xb8] sm:$0xff] }
 0x30d   :  { %2245 = vmatpush.bf16.msra.mxu2 %v2237_v21  ;;  %2121 = vmatpush.bf16.msra.mxu0 %v2113_v3 }
 0x30f   :  { %7632 = vmatmul.msk.bf16.gmra.mxu1 %vm1346_vm5, %v8495_v6  ;;  %v8510_v6 = vld [vmem:[%s12376_s6 + $0xf8] sm:$0xff] }
 0x310   :  { %1921 = vmatpush.bf16.msrb.mxu1 %v1898_v0 }
 0x312   :  { %v2037_v57 = vpop.permute.xlu0 %2036  ;;  %v2292_v14 = vpop.permute.xlu2 %2291 }
 0x313   :  { %v2223_v54 = vpop.permute.xlu1 %2222  ;;  %2060 = vmatpush.bf16.msrb.mxu3 %v2037_v57  ;;  %v8503_v57 = vld [vmem:[%s12376_s6 + $0xc0] sm:$0xff] }
 0x314   :  { %2183 = vmatpush.bf16.msra.mxu1 %v2175_v58  ;;  %7661 = vmatmul.msk.bf16.vlgmr.msra.gmra.mxu3 %vm1346_vm5, %v8500_v26 }
 0x315   :  { %2246 = vmatpush.bf16.msra.mxu2 %v2223_v54  ;;  %v8507_v54 = vld [vmem:[%s12376_s6 + $0xe0] sm:$0xff] }
 0x316   :  { %7648 = vmatmul.msk.bf16.gmra.mxu2 %vm1346_vm5, %v8499_v44 }
 0x31a   :  { %v2099_v0 = vpop.permute.xlu0 %2098  ;;  %v2359_v18 = vpop.permute.xlu2 %2358 }
 0x31b   :  { %v2294_v17 = vpop.permute.xlu1 %2293  ;;  %2122 = vmatpush.bf16.msra.mxu0 %v2099_v0 }
 0x31c   :  { %7617 = vmatmul.msk.bf16.gmra.mxu0 %vm1346_vm5, %v8492_v24  ;;  %v8512_v24 = vld [vmem:[%s12376_s6 + $0x108] sm:$0xff] }
 0x31f   :  { %7633 = vmatmul.msk.bf16.gmra.mxu1 %vm1346_vm5, %v8496_v28  ;;  %v1421_v28 = vpop.f32.mrf.mxu1 }
 0x322   :  { %v2296_v5 = vpop.permute.xlu0 %2295  ;;  %v2423_v16 = vpop.permute.xlu2 %2422 }
 0x323   :  { %v2299_v49 = vsel %vm2297_vm8, %v2294_v17, %v2296_v5  ;;  %v2161_v37 = vpop.permute.xlu1 %2160  ;;  %v2435_v29 = vsel %vm1356_vm4, %v2423_v16, 0  ;;  %v8511_v17 = vld [vmem:[%s12376_s6 + $0x100] sm:$0xff]  ;;  %v8513_v16 = vld [vmem:[%s12376_s6 + $0x110] sm:$0xff] }
 0x324   :  { %v2311_v20 = vsel %vm1356_vm4, %v2299_v49, 0  ;;  %7662 = vmatmul.msk.bf16.gmra.mxu3 %vm1346_vm5, %v8501_v19  ;;  %2184 = vmatpush.bf16.msra.mxu1 %v2161_v37  ;;  %v8508_v37 = vld [vmem:[%s12376_s6 + $0xe8] sm:$0xff] }
 0x325   :  { %2319 = vmatpush.bf16.msra.mxu3 %v2311_v20 }
 0x326   :  { %7706 = vmatmul.msk.bf16.vlgmr.msrb.gmra.mxu2 %vm1346_vm5, %v8509_v61  ;;  %v8504_v61 = vld [vmem:[%s12376_s6 + $0xc8] sm:$0xff] }
 0x327   :  { %v1423_v20 = vpop.f32.mrf.mxu1 }
 0x32a   :  { %v2290_v39 = vpop.permute.xlu0 %2289  ;;  %v2421_v3 = vpop.permute.xlu2 %2420 }
 0x32b   :  { %v2483_v33 = vpop.permute.xlu1 %2482  ;;  %v2298_v21 = vsel %vm2297_vm8, %v2290_v39, %v2292_v14 }
 0x32c   :  { %7618 = vmatmul.msk.bf16.gmra.mxu0 %vm1346_vm5, %v8493_v36  ;;  %2320 = vmatpush.bf16.msra.mxu3 %v2298_v21  ;;  %v8521_v21 = vld [vmem:[%s12376_s6 + $0x150] sm:$0xff] }
 0x32f   :  { %7691 = vmatmul.msk.bf16.vlgmr.msrb.gmra.mxu1 %vm1346_vm5, %v8506_v11 }
 0x330   :  { %2443 = vmatpush.bf16.msrb.mxu1 %v2435_v29  ;;  %v1426_v29 = vpop.f32.mrf.mxu1 }
 0x332   :  { %v2361_v38 = vpop.permute.xlu0 %2360 }
 0x333   :  { %v2485_v58 = vpop.permute.xlu1 %2484  ;;  %v2373_v14 = vsel %vm1356_vm4, %v2361_v38, 0  ;;  %v8505_v38 = vld [vmem:[%s12376_s6 + $0xd0] sm:$0xff] }
 0x334   :  { %v2497_v26 = vsel %vm1356_vm4, %v2485_v58, 0  ;;  %7663 = vmatmul.msk.bf16.gmra.mxu3 %vm1346_vm5, %v8502_v4  ;;  %2444 = vmatpush.bf16.msrb.mxu1 %v2421_v3 }
 0x335   :  { %2505 = vmatpush.bf16.msrb.mxu2 %v2497_v26 }
 0x336   :  { %7707 = vmatmul.msk.bf16.gmra.mxu2 %vm1346_vm5, %v8510_v6 }
 0x339   :  { %2506 = vmatpush.bf16.msrb.mxu2 %v2483_v33 }
 0x33a   :  { %v2545_v44 = vpop.permute.xlu0 %2544 }
 0x33b   :  { %v2619_v5 = vpop.permute.xlu1 %2618 }
 0x33c   :  { %7676 = vmatmul.msk.bf16.vlgmr.msrb.gmra.mxu0 %vm1346_vm5, %v8503_v57  ;;  %v8518_v57 = vld [vmem:[%s12376_s6 + $0x138] sm:$0xff] }
 0x33d   :  { %2381 = vmatpush.bf16.msrb.mxu0 %v2373_v14  ;;  %v8514_v14 = vld [vmem:[%s12376_s6 + $0x118] sm:$0xff] }
 0x33f   :  { %7692 = vmatmul.msk.bf16.gmra.mxu1 %vm1346_vm5, %v8507_v54 }
 0x341   :  { %2382 = vmatpush.bf16.msrb.mxu0 %v2359_v18 }
 0x342   :  { %v2547_v0 = vpop.permute.xlu0 %2546 }
 0x343   :  { %v2559_v19 = vsel %vm1356_vm4, %v2547_v0, 0  ;;  %v2617_v36 = vpop.permute.xlu1 %2616 }
 0x344   :  { %7721 = vmatmul.msk.bf16.vlgmr.msrb.gmra.mxu3 %vm1346_vm5, %v8512_v24  ;;  %v1428_v24 = vpop.f32.mrf.mxu1 }
 0x345   :  { %2567 = vmatpush.bf16.msrb.mxu3 %v2559_v19  ;;  %v8522_v19 = vld [vmem:[%s12376_s6 + $0x158] sm:$0xff] }
 0x346   :  { %7708 = vmatmul.msk.bf16.gmra.mxu2 %vm1346_vm5, %v8511_v17 }
 0x349   :  { %2568 = vmatpush.bf16.msrb.mxu3 %v2545_v44  ;;  %v1477_v18 = vpop.f32.mrf.mxu2 }
 0x34a   :  { %v2621_v49 = vpop.permute.xlu0 %2620 }
 0x34b   :  { %v2686_v4 = vpop.permute.xlu1 %2685 }
 0x34c   :  { %7677 = vmatmul.msk.bf16.gmra.mxu0 %vm1346_vm5, %v8504_v61  ;;  %v2698_v54 = vsel %vm1356_vm4, %v2686_v4, 0 }
 0x34f   :  { %7693 = vmatmul.msk.bf16.gmra.mxu1 %vm1346_vm5, %v8508_v37 }
 0x351   :  { %v1479_v39 = vpop.f32.mrf.mxu2 }
 0x352   :  { %v2748_v33 = vpop.permute.xlu0 %2747 }
 0x353   :  { %v2760_v11 = vsel %vm1356_vm4, %v2748_v33, 0  ;;  %v2684_v61 = vpop.permute.xlu1 %2683 }
 0x354   :  { %7722 = vmatmul.msk.bf16.gmra.mxu3 %vm1346_vm5, %v8513_v16 }
 0x356   :  { %7766 = vmatmul.msk.bf16.vlgmr.msra.gmra.mxu2 %vm1346_vm5, %v8521_v21  ;;  %v8515_v21 = vld [vmem:[%s12376_s6 + $0x120] sm:$0xff] }
 0x357   :  { %2768 = vmatpush.bf16.msra.mxu2 %v2760_v11 }
 0x359   :  { %v1369_v6 = vpop.f32.mrf.mxu0  ;;  %v1482_v3 = vpop.f32.mrf.mxu2 }
 0x35a   :  { %v1422_v58 = vadd.f32 %v1421_v28, %v1369_v6  ;;  %v2746_v26 = vpop.permute.xlu0 %2745  ;;  %v1431_v6 = vpop.f32.mrf.mxu1 }
 0x35b   :  { %2769 = vmatpush.bf16.msra.mxu2 %v2746_v26 }
 0x35c   :  { %v1492_v44 = vadd.f32 %v1477_v18, %v1422_v58  ;;  %7678 = vmatmul.msk.bf16.gmra.mxu0 %vm1346_vm5, %v8505_v38  ;;  %v2615_v18 = vpop.permute.xlu2 %2614 }
 0x35f   :  { %7751 = vmatmul.msk.bf16.vlgmr.msra.gmra.mxu1 %vm1346_vm5, %v8518_v57 }
 0x360   :  { %2706 = vmatpush.bf16.msra.mxu1 %v2698_v54 }
 0x361   :  { %v1371_v0 = vpop.f32.mrf.mxu0  ;;  %v1484_v17 = vpop.f32.mrf.mxu2 }
 0x362   :  { %v1424_v28 = vadd.f32 %v1423_v20, %v1371_v0  ;;  %v2624_v20 = vsel %vm12513_vm9, %v2619_v5, %v2621_v49  ;;  %v2623_v5 = vsel %vm12513_vm9, %v2615_v18, %v2617_v36  ;;  %v8524_v49 = vld [vmem:[%s12376_s6 + $0x168] sm:$0xff] }
 0x363   :  { %v2636_v58 = vsel %vm1356_vm4, %v2624_v20, 0 }
 0x364   :  { %v1493_v37 = vadd.f32 %v1479_v39, %v1424_v28  ;;  %7723 = vmatmul.msk.bf16.gmra.mxu3 %vm1346_vm5, %v8514_v14  ;;  %2707 = vmatpush.bf16.msra.mxu1 %v2684_v61  ;;  %v8519_v39 = vld [vmem:[%s12376_s6 + $0x140] sm:$0xff]  ;;  %v2810_v57 = vpop.permute.xlu2 %2809  ;;  %v1433_v61 = vpop.f32.mrf.mxu1 }
 0x365   :  { %v2822_v28 = vsel %vm1356_vm4, %v2810_v57, 0 }
 0x366   :  { %7767 = vmatmul.msk.bf16.gmra.mxu2 %vm1346_vm5, %v8522_v19 }
 0x367   :  { %v1539_v16 = vpop.f32.mrf.mxu3 }
 0x368   :  { %v1554_v33 = vadd.f32 %v1539_v16, %v1492_v44 }
 0x369   :  { %v1374_v11 = vpop.f32.mrf.mxu0  ;;  %v1487_v4 = vpop.f32.mrf.mxu2 }
 0x36a   :  { %v1427_v38 = vadd.f32 %v1426_v29, %v1374_v11 }
 0x36c   :  { %v1494_v26 = vadd.f32 %v1482_v3, %v1427_v38  ;;  %7736 = vmatmul.msk.bf16.vlgmr.msra.gmra.mxu0 %vm1346_vm5, %v8515_v21  ;;  %v8523_v3 = vld [vmem:[%s12376_s6 + $0x160] sm:$0xff]  ;;  %v2808_v18 = vpop.permute.xlu2 %2807 }
 0x36d   :  { %2644 = vmatpush.bf16.msra.mxu0 %v2636_v58 }
 0x36f   :  { %v1541_v44 = vpop.f32.mrf.mxu3  ;;  %7752 = vmatmul.msk.bf16.gmra.mxu1 %vm1346_vm5, %v8519_v39 }
 0x370   :  { %v1555_v54 = vadd.f32 %v1541_v44, %v1493_v37 }
 0x371   :  { %2645 = vmatpush.bf16.msra.mxu0 %v2623_v5  ;;  %v1376_v29 = vpop.f32.mrf.mxu0  ;;  %v1489_v14 = vpop.f32.mrf.mxu2 }
 0x372   :  { %v1429_v0 = vadd.f32 %v1428_v24, %v1376_v29  ;;  %v8516_v24 = vld [vmem:[%s12376_s6 + $0x128] sm:$0xff] }
 0x374   :  { %v1495_v19 = vadd.f32 %v1484_v17, %v1429_v0  ;;  %7781 = vmatmul.msk.bf16.vlgmr.msra.gmra.mxu3 %vm1346_vm5, %v8524_v49  ;;  %v8520_v17 = vld [vmem:[%s12376_s6 + $0x148] sm:$0xff] }
 0x375   :  { %2830 = vmatpush.bf16.msra.mxu3 %v2822_v28 }
 0x376   :  { %7768 = vmatmul.msk.bf16.gmra.mxu2 %vm1346_vm5, %v8523_v3  ;;  %v8517_v3 = vld [vmem:[%s12376_s6 + $0x130] sm:$0xff] }
 0x377   :  { %v1544_v36 = vpop.f32.mrf.mxu3 }
 0x378   :  { %v1556_v37 = vadd.f32 %v1544_v36, %v1494_v26  ;;  %v8525_v26 = vld [vmem:[%s12376_s6 + $0x170] sm:$0xff] }
 0x379   :  { %2831 = vmatpush.bf16.msra.mxu3 %v2808_v18  ;;  %v1379_v16 = vpop.f32.mrf.mxu0  ;;  %v1737_v21 = vpop.f32.mrf.mxu2 }
 0x37a   :  { %v1432_v20 = vadd.f32 %v1431_v6, %v1379_v16  ;;  %v8533_v6 = vld [vmem:[%s12376_s6 + $0x1b0] sm:$0xff] }
 0x37c   :  { %v1496_v11 = vadd.f32 %v1487_v4, %v1432_v20  ;;  %7737 = vmatmul.msk.bf16.gmra.mxu0 %vm1346_vm5, %v8516_v24  ;;  %v1675_v38 = vpop.f32.mrf.mxu1 }
 0x37f   :  { %v1546_v39 = vpop.f32.mrf.mxu3  ;;  %7753 = vmatmul.msk.bf16.gmra.mxu1 %vm1346_vm5, %v8520_v17  ;;  %v8526_v17 = vld [vmem:[%s12376_s6 + $0x178] sm:$0xff] }
 0x380   :  { %v1557_v58 = vadd.f32 %v1546_v39, %v1495_v19 }
 0x381   :  { %v1381_v57 = vpop.f32.mrf.mxu0  ;;  %v1739_v44 = vpop.f32.mrf.mxu2 }
 0x382   :  { %v1434_v5 = vadd.f32 %v1433_v61, %v1381_v57  ;;  %v8530_v61 = vld [vmem:[%s12376_s6 + $0x198] sm:$0xff] }
 0x384   :  { %v1497_v49 = vadd.f32 %v1489_v14, %v1434_v5  ;;  %7782 = vmatmul.msk.bf16.gmra.mxu3 %vm1346_vm5, %v8525_v26  ;;  %v1677_v4 = vpop.f32.mrf.mxu1  ;;  %v8534_v26 = vld [vmem:[%s12376_s6 + $0x1b8] sm:$0xff] }
 0x386   :  { %7826 = vmatmul.msk.bf16.vlgmr.msrb.gmra.mxu2 %vm1346_vm5, %v8533_v6  ;;  %v2872_v6 = vpop.permute.xlu0 %2871 }
 0x387   :  { %v1549_v29 = vpop.f32.mrf.mxu3 }
 0x388   :  { %v1558_v0 = vadd.f32 %v1549_v29, %v1496_v11  ;;  %v8527_v29 = vld [vmem:[%s12376_s6 + $0x180] sm:$0xff] }
 0x389   :  { %v1601_v28 = vpop.f32.mrf.mxu0  ;;  %v1742_v19 = vpop.f32.mrf.mxu2 }
 0x38a   :  { %v1616_v36 = vadd.f32 %v1601_v28, %v1554_v33 }
 0x38c   :  { %v1690_v18 = vadd.f32 %v1675_v38, %v1616_v36  ;;  %7738 = vmatmul.msk.bf16.gmra.mxu0 %vm1346_vm5, %v8517_v3  ;;  %v1680_v14 = vpop.f32.mrf.mxu1  ;;  %v2884_v36 = vsel %vm1356_vm4, %v2872_v6, 0 }
 0x38e   :  { %v1752_v24 = vadd.f32 %v1737_v21, %v1690_v18 }
 0x38f   :  { %v1551_v16 = vpop.f32.mrf.mxu3  ;;  %7811 = vmatmul.msk.bf16.vlgmr.msrb.gmra.mxu1 %vm1346_vm5, %v8530_v61 }
 0x390   :  { %v1559_v20 = vadd.f32 %v1551_v16, %v1497_v49  ;;  %v2870_v16 = vpop.permute.xlu2 %2869 }
 0x391   :  { %v1603_v11 = vpop.f32.mrf.mxu0  ;;  %v1744_v39 = vpop.f32.mrf.mxu2 }
 0x392   :  { %v1617_v33 = vadd.f32 %v1603_v11, %v1555_v54 }
 0x394   :  { %v1691_v38 = vadd.f32 %v1677_v4, %v1617_v33  ;;  %7783 = vmatmul.msk.bf16.gmra.mxu3 %vm1346_vm5, %v8526_v17  ;;  %v1682_v57 = vpop.f32.mrf.mxu1  ;;  %v8531_v4 = vld [vmem:[%s12376_s6 + $0x1a0] sm:$0xff] }
 0x396   :  { %v1753_v21 = vadd.f32 %v1739_v44, %v1691_v38  ;;  %7827 = vmatmul.msk.bf16.gmra.mxu2 %vm1346_vm5, %v8534_v26 }
 0x397   :  { %v1799_v5 = vpop.f32.mrf.mxu3 }
 0x398   :  { %v1814_v49 = vadd.f32 %v1799_v5, %v1752_v24 }
 0x399   :  { %v1606_v3 = vpop.f32.mrf.mxu0  ;;  %v1747_v54 = vpop.f32.mrf.mxu2 }
 0x39a   :  { %v1618_v28 = vadd.f32 %v1606_v3, %v1556_v37  ;;  %v8536_v37 = vld [vmem:[%s12376_s6 + $0x1c8] sm:$0xff] }
 0x39c   :  { %v1692_v61 = vadd.f32 %v1680_v14, %v1618_v28  ;;  %7796 = vmatmul.msk.bf16.vlgmr.msrb.gmra.mxu0 %vm1346_vm5, %v8527_v29  ;;  %v1685_v44 = vpop.f32.mrf.mxu1  ;;  %v8535_v14 = vld [vmem:[%s12376_s6 + $0x1c0] sm:$0xff]  ;;  %v8528_v29 = vld [vmem:[%s12376_s6 + $0x188] sm:$0xff] }
 0x39d   :  { %2892 = vmatpush.bf16.msrb.mxu0 %v2884_v36 }
 0x39e   :  { %v1754_v18 = vadd.f32 %v1742_v19, %v1692_v61 }
 0x39f   :  { %v1801_v24 = vpop.f32.mrf.mxu3  ;;  %7812 = vmatmul.msk.bf16.gmra.mxu1 %vm1346_vm5, %v8531_v4  ;;  %v8532_v4 = vld [vmem:[%s12376_s6 + $0x1a8] sm:$0xff] }
 0x3a0   :  { %v1815_v17 = vadd.f32 %v1801_v24, %v1753_v21  ;;  %v8537_v24 = vld [vmem:[%s12376_s6 + $0x1d0] sm:$0xff] }
 0x3a1   :  { %2893 = vmatpush.bf16.msrb.mxu0 %v2870_v16  ;;  %v1608_v11 = vpop.f32.mrf.mxu0  ;;  %v1749_v33 = vpop.f32.mrf.mxu2 }
 0x3a2   :  { %v1619_v26 = vadd.f32 %v1608_v11, %v1557_v58 }
 0x3a4   :  { %v1693_v38 = vadd.f32 %v1682_v57, %v1619_v26  ;;  %7841 = vmatmul.msk.bf16.vlgmr.msrb.gmra.mxu3 %vm1346_vm5, %v8536_v37  ;;  %v1687_v19 = vpop.f32.mrf.mxu1 }
 0x3a6   :  { %v1755_v5 = vadd.f32 %v1744_v39, %v1693_v38  ;;  %7828 = vmatmul.msk.bf16.gmra.mxu2 %vm1346_vm5, %v8535_v14 }
 0x3a7   :  { %v1804_v21 = vpop.f32.mrf.mxu3 }
 0x3a8   :  { %v1816_v6 = vadd.f32 %v1804_v21, %v1754_v18 }
 0x3a9   :  { %v1611_v3 = vpop.f32.mrf.mxu0  ;;  %v2000_v28 = vpop.f32.mrf.mxu2 }
 0x3aa   :  { %v1620_v58 = vadd.f32 %v1611_v3, %v1558_v0 }
 0x3ac   :  { %v1694_v57 = vadd.f32 %v1685_v44, %v1620_v58  ;;  %7797 = vmatmul.msk.bf16.gmra.mxu0 %vm1346_vm5, %v8528_v29  ;;  %v1923_v36 = vpop.f32.mrf.mxu1  ;;  %v8545_v44 = vld [vmem:[%s12376_s6 + $0x210] sm:$0xff] }
 0x3ae   :  { %v1756_v39 = vadd.f32 %v1747_v54, %v1694_v57 }
 0x3af   :  { %v1806_v61 = vpop.f32.mrf.mxu3  ;;  %7813 = vmatmul.msk.bf16.gmra.mxu1 %vm1346_vm5, %v8532_v4 }
 0x3b0   :  { %v1817_v18 = vadd.f32 %v1806_v61, %v1755_v5  ;;  %v8529_v5 = vld [vmem:[%s12376_s6 + $0x190] sm:$0xff] }
 0x3b1   :  { %v1613_v16 = vpop.f32.mrf.mxu0  ;;  %v10389_v37 = vpop.f32.mrf.mxu2 }
 0x3b2   :  { %v1621_v0 = vadd.f32 %v1613_v16, %v1559_v20 }
 0x3b4   :  { %v1695_v11 = vadd.f32 %v1687_v19, %v1621_v0  ;;  %7842 = vmatmul.msk.bf16.gmra.mxu3 %vm1346_vm5, %v8537_v24  ;;  %v10395_v54 = vpop.f32.mrf.mxu1  ;;  %v8542_v19 = vld [vmem:[%s12376_s6 + $0x1f8] sm:$0xff] }
 0x3b5   :  { %v8546_v24 = vld [vmem:[%s12376_s6 + $0x218] sm:$0xff] }
 0x3b6   :  { %v1757_v26 = vadd.f32 %v1749_v33, %v1695_v11  ;;  %7886 = vmatmul.msk.bf16.vlgmr.msra.gmra.mxu2 %vm1346_vm5, %v8545_v44  ;;  %v8539_v44 = vld [vmem:[%s12376_s6 + $0x1e0] sm:$0xff] }
 0x3b7   :  { %v1809_v14 = vpop.f32.mrf.mxu3 }
 0x3b8   :  { %v1818_v38 = vadd.f32 %v1809_v14, %v1756_v39  ;;  %v8538_v39 = vld [vmem:[%s12376_s6 + $0x1d8] sm:$0xff] }
 0x3b9   :  { %v1861_v21 = vpop.f32.mrf.mxu0  ;;  %v2005_v29 = vpop.f32.mrf.mxu2 }
 0x3ba   :  { %v1876_v20 = vadd.f32 %v1861_v21, %v1814_v49 }
 0x3bc   :  { %v1938_v3 = vadd.f32 %v1923_v36, %v1876_v20  ;;  %7798 = vmatmul.msk.bf16.gmra.mxu0 %vm1346_vm5, %v8529_v5  ;;  %v1928_v58 = vpop.f32.mrf.mxu1 }
 0x3be   :  { %v2015_v33 = vadd.f32 %v2000_v28, %v1938_v3  ;;  %v8548_v3 = vld [vmem:[%s12376_s6 + $0x228] sm:$0xff] }
 0x3bf   :  { %v1811_v4 = vpop.f32.mrf.mxu3  ;;  %7871 = vmatmul.msk.bf16.vlgmr.msra.gmra.mxu1 %vm1346_vm5, %v8542_v19 }
 0x3c0   :  { %v1819_v57 = vadd.f32 %v1811_v4, %v1757_v26  ;;  %v8543_v26 = vld [vmem:[%s12376_s6 + $0x200] sm:$0xff] }
 0x3c1   :  { %v1863_v61 = vpop.f32.mrf.mxu0  ;;  %v10417_v28 = vpop.f32.mrf.mxu2 }
 0x3c2   :  { %v10409_v49 = vadd.f32 %v1863_v61, %v1815_v17  ;;  %v8540_v61 = vld [vmem:[%s12376_s6 + $0x1e8] sm:$0xff] }
 0x3c4   :  { %7843 = vmatmul.msk.bf16.gmra.mxu3 %vm1346_vm5, %v8538_v39  ;;  %v10415_v36 = vpop.f32.mrf.mxu1 }
 0x3c6   :  { %7887 = vmatmul.msk.bf16.gmra.mxu2 %vm1346_vm5, %v8546_v24 }
 0x3c7   :  { %v2062_v16 = vpop.f32.mrf.mxu3 }
 0x3c8   :  { %v2077_v0 = vadd.f32 %v2062_v16, %v2015_v33 }
 0x3c9   :  { %v1866_v17 = vpop.f32.mrf.mxu0  ;;  %v2010_v19 = vpop.f32.mrf.mxu2 }
 0x3ca   :  { %v1878_v11 = vadd.f32 %v1866_v17, %v1816_v6 }
 0x3cc   :  { %v1940_v14 = vadd.f32 %v1928_v58, %v1878_v11  ;;  %7856 = vmatmul.msk.bf16.vlgmr.msra.gmra.mxu0 %vm1346_vm5, %v8539_v44  ;;  %v1933_v5 = vpop.f32.mrf.mxu1  ;;  %v8547_v58 = vld [vmem:[%s12376_s6 + $0x220] sm:$0xff]  ;;  %v8544_v44 = vld [vmem:[%s12376_s6 + $0x208] sm:$0xff] }
 0x3ce   :  { %v2017_v21 = vadd.f32 %v2005_v29, %v1940_v14  ;;  %v8549_v14 = vld [vmem:[%s12376_s6 + $0x230] sm:$0xff] }
 0x3cf   :  { %v10427_v20 = vpop.f32.mrf.mxu3  ;;  %7872 = vmatmul.msk.bf16.gmra.mxu1 %vm1346_vm5, %v8543_v26 }
 0x3d1   :  { %v1868_v33 = vpop.f32.mrf.mxu0  ;;  %v10445_v16 = vpop.f32.mrf.mxu2 }
 0x3d2   :  { %v10433_v6 = vadd.f32 %v1868_v33, %v1817_v18 }
 0x3d4   :  { %7901 = vmatmul.msk.bf16.vlgmr.msra.gmra.mxu3 %vm1346_vm5, %v8548_v3  ;;  %v10440_v4 = vpop.f32.mrf.mxu1 }
 0x3d6   :  { %7888 = vmatmul.msk.bf16.gmra.mxu2 %vm1346_vm5, %v8547_v58 }
 0x3d7   :  { %v2067_v29 = vpop.f32.mrf.mxu3 }
 0x3d8   :  { %v2079_v39 = vadd.f32 %v2067_v29, %v2017_v21 }
 0x3d9   :  { %v1871_v24 = vpop.f32.mrf.mxu0 }
 0x3da   :  { %v1880_v18 = vadd.f32 %v1871_v24, %v1818_v38  ;;  %v2248_v38 = vpop.f32.mrf.mxu2 }
 0x3dc   :  { %v1942_v17 = vadd.f32 %v1933_v5, %v1880_v18  ;;  %7857 = vmatmul.msk.bf16.gmra.mxu0 %vm1346_vm5, %v8540_v61  ;;  %v2186_v3 = vpop.f32.mrf.mxu1 }
 0x3de   :  { %v2019_v11 = vadd.f32 %v2010_v19, %v1942_v17  ;;  %v8541_v19 = vld [vmem:[%s12376_s6 + $0x1f0] sm:$0xff] }
 0x3df   :  { %v10451_v26 = vpop.f32.mrf.mxu3  ;;  %7873 = vmatmul.msk.bf16.gmra.mxu1 %vm1346_vm5, %v8544_v44 }
 0x3e1   :  { %v1873_v21 = vpop.f32.mrf.mxu0 }
 0x3e2   :  { %v10457_v33 = vadd.f32 %v1873_v21, %v1819_v57  ;;  %v10466_v44 = vpop.f32.mrf.mxu2 }
 0x3e4   :  { %7902 = vmatmul.msk.bf16.gmra.mxu3 %vm1346_vm5, %v8549_v14  ;;  %v10463_v24 = vpop.f32.mrf.mxu1 }
 0x3e7   :  { %v2072_v58 = vpop.f32.mrf.mxu3 }
 0x3e8   :  { %v2081_v5 = vadd.f32 %v2072_v58, %v2019_v11  ;;  %v8550_v11 = vld [vmem:[%s12376_s6 + $0x238] sm:$0xff] }
 0x3e9   :  { %v2124_v29 = vpop.f32.mrf.mxu0 }
 0x3ea   :  { %v2139_v61 = vadd.f32 %v2124_v29, %v2077_v0  ;;  %v2253_v58 = vpop.f32.mrf.mxu2 }
 0x3ec   :  { %v2201_v18 = vadd.f32 %v2186_v3, %v2139_v61  ;;  %7858 = vmatmul.msk.bf16.gmra.mxu0 %vm1346_vm5, %v8541_v19  ;;  %v2191_v21 = vpop.f32.mrf.mxu1  ;;  %v8551_v3 = vld [vmem:[%s12376_s6 + $0x240] sm:$0xff] }
 0x3ee   :  { %v2263_v57 = vadd.f32 %v2248_v38, %v2201_v18 }
 0x3ef   :  { %v10468_v17 = vpop.f32.mrf.mxu3 }
 0x3f1   :  { %v10473_v14 = vpop.f32.mrf.mxu0 }
 0x3f4   :  { %7903 = vmatmul.msk.bf16.gmra.mxu3 %vm1346_vm5, %v8550_v11  ;;  %v10482_v42 = vpop.f32.mrf.mxu1  ;;  %v10486_v11 = vpop.f32.mrf.mxu2 }
 0x3f7   :  { %v2322_v0 = vpop.f32.mrf.mxu3 }
 0x3f8   :  { %v2337_v29 = vadd.f32 %v2322_v0, %v2263_v57  ;;  %v8552_v0 = vld [vmem:[%s12376_s6 + $0x248] sm:$0xff] }
 0x3f9   :  { %v2129_v19 = vpop.f32.mrf.mxu0 }
 0x3fa   :  { %v2141_v38 = vadd.f32 %v2129_v19, %v2079_v39 }
 0x3fc   :  { %v2203_v61 = vadd.f32 %v2191_v21, %v2141_v38  ;;  %7916 = vmatmul.msk.bf16.vlgmr.msrb.gmra.mxu0 %vm1346_vm5, %v8551_v3  ;;  %v2196_v39 = vpop.f32.mrf.mxu1  ;;  %v2258_v19 = vpop.f32.mrf.mxu2 }
 0x3fe   :  { %v2265_v18 = vadd.f32 %v2253_v58, %v2203_v61 }
 0x3ff   :  { %v10480_v55 = vpop.f32.mrf.mxu3 }
 0x401   :  { %v10484_v30 = vpop.f32.mrf.mxu0 }
 0x407   :  { %v2327_v22 = vpop.f32.mrf.mxu3 }
 0x408   :  { %v2339_v57 = vadd.f32 %v2327_v22, %v2265_v18  ;;  %v8553_v22 = vld [vmem:[%s12376_s6 + $0x250] sm:$0xff] }
 0x409   :  { %v2134_v63 = vpop.f32.mrf.mxu0 }
 0x40a   :  { %v2143_v21 = vadd.f32 %v2134_v63, %v2081_v5  ;;  %v10500_v63 = vpop.f32.mrf.mxu1 }
 0x40c   :  { %v2205_v3 = vadd.f32 %v2196_v39, %v2143_v21  ;;  %7917 = vmatmul.msk.bf16.gmra.mxu0 %vm1346_vm5, %v8552_v0  ;;  %v10502_v39 = vpop.f32.mrf.mxu2 }
 0x40e   :  { %v2267_v58 = vadd.f32 %v2258_v19, %v2205_v3 }
 0x40f   :  { %v10492_v38 = vpop.f32.mrf.mxu3 }
 0x411   :  { %v10494_v61 = vpop.f32.mrf.mxu0 }
 0x412   :  { %v2446_v21 = vpop.f32.mrf.mxu1 }
 0x414   :  { %v2508_v12 = vpop.f32.mrf.mxu2 }
 0x417   :  { %v2332_v1 = vpop.f32.mrf.mxu3 }
 0x418   :  { %v2341_v2 = vadd.f32 %v2332_v1, %v2267_v58 }
 0x419   :  { %v2384_v18 = vpop.f32.mrf.mxu0 }
 0x41a   :  { %v2399_v41 = vadd.f32 %v2384_v18, %v2337_v29  ;;  %v2448_v15 = vpop.f32.mrf.mxu1 }
 0x41c   :  { %7918 = vmatmul.msk.bf16.gmra.mxu0 %vm1346_vm5, %v8553_v22  ;;  %v2510_v53 = vpop.f32.mrf.mxu2 }
 0x41f   :  { %v10504_v0 = vpop.f32.mrf.mxu3 }
 0x421   :  { %v2386_v5 = vpop.f32.mrf.mxu0 }
 0x422   :  { %v2451_v22 = vpop.f32.mrf.mxu1 }
 0x424   :  { %v2513_v48 = vpop.f32.mrf.mxu2 }
 0x427   :  { %v2570_v1 = vpop.f32.mrf.mxu3 }
 0x429   :  { %v2389_v19 = vpop.f32.mrf.mxu0 }
 0x42a   :  { %v2401_v3 = vadd.f32 %v2389_v19, %v2339_v57  ;;  %v10512_v52 = vpop.f32.mrf.mxu1 }
 0x42c   :  { %v10514_v13 = vpop.f32.mrf.mxu2 }
 0x42f   :  { %v2572_v51 = vpop.f32.mrf.mxu3 }
 0x431   :  { %v10506_v58 = vpop.f32.mrf.mxu0 }
 0x432   :  { %v10518_v19 = vpop.f32.mrf.mxu1 }
 0x434   :  { %v10520_v32 = vpop.f32.mrf.mxu2 }
 0x437   :  { %v2575_v9 = vpop.f32.mrf.mxu3 }
 0x439   :  { %v2394_v29 = vpop.f32.mrf.mxu0 }
 0x43a   :  { %v10508_v18 = vadd.f32 %v2394_v29, %v2341_v2  ;;  %v1939_v2 = vadd.f32 %v10395_v54, %v10409_v49  ;;  %v10527_v62 = vpop.f32.mrf.mxu1  ;;  %v1941_v49 = vadd.f32 %v10415_v36, %v10433_v6 }
 0x43c   :  { %v2016_v8 = vadd.f32 %v10389_v37, %v1939_v2  ;;  %v10531_v47 = vpop.f32.mrf.mxu2  ;;  %v2461_v2 = vadd.f32 %v2446_v21, %v2399_v41 }
 0x43e   :  { %v2078_v45 = vadd.f32 %v10427_v20, %v2016_v8 }
 0x43f   :  { %v10516_v57 = vpop.f32.mrf.mxu3 }
 0x440   :  { %v2140_v40 = vadd.f32 %v10473_v14, %v2078_v45  ;;  %v2018_v45 = vadd.f32 %v10417_v28, %v1941_v49  ;;  %v2523_v14 = vadd.f32 %v2508_v12, %v2461_v2 }
 0x441   :  { %v10510_v35 = vpop.f32.mrf.mxu0 }
 0x442   :  { %v2202_v10 = vadd.f32 %v10463_v24, %v2140_v40  ;;  %v2709_v54 = vpop.f32.mrf.mxu1  ;;  %v2080_v46 = vadd.f32 %v10451_v26, %v2018_v45  ;;  %v2585_v40 = vadd.f32 %v2570_v1, %v2523_v14  ;;  %v2463_v26 = vadd.f32 %v2451_v22, %v2401_v3 }
 0x444   :  { %v2264_v37 = vadd.f32 %v10466_v44, %v2202_v10  ;;  %v2771_v8 = vpop.f32.mrf.mxu2  ;;  %v2142_v24 = vadd.f32 %v10484_v30, %v2080_v46 }
 0x446   :  { %v2338_v7 = vadd.f32 %v10480_v55, %v2264_v37  ;;  %v2204_v55 = vadd.f32 %v10482_v42, %v2142_v24 }
 0x447   :  { %v10524_v29 = vpop.f32.mrf.mxu3 }
 0x448   :  { %v2400_v59 = vadd.f32 %v2386_v5, %v2338_v7  ;;  %v1943_v7 = vadd.f32 %v10440_v4, %v10457_v33  ;;  %v2266_v28 = vadd.f32 %v10486_v11, %v2204_v55 }
 0x449   :  { %v2647_v50 = vpop.f32.mrf.mxu0 }
 0x44a   :  { %v2462_v43 = vadd.f32 %v2448_v15, %v2400_v59  ;;  %v2662_v36 = vadd.f32 %v2647_v50, %v2585_v40  ;;  %v2711_v6 = vpop.f32.mrf.mxu1  ;;  %v2340_v46 = vadd.f32 %v10492_v38, %v2266_v28  ;;  %v2020_v50 = vadd.f32 %v10445_v16, %v1943_v7 }
 0x44c   :  { %v2524_v41 = vadd.f32 %v2510_v53, %v2462_v43  ;;  %v2724_v44 = vadd.f32 %v2709_v54, %v2662_v36  ;;  %v2773_v21 = vpop.f32.mrf.mxu2  ;;  %v2525_v43 = vadd.f32 %v2513_v48, %v2463_v26  ;;  %v2082_v4 = vadd.f32 %v10468_v17, %v2020_v50 }
 0x44e   :  { %v2586_v37 = vadd.f32 %v2572_v51, %v2524_v41  ;;  %v2786_v5 = vadd.f32 %v2771_v8, %v2724_v44  ;;  %v2402_v51 = vadd.f32 %v10506_v58, %v2340_v46  ;;  %v2587_v33 = vadd.f32 %v2575_v9, %v2525_v43 }
 0x44f   :  { %v10533_v27 = vpop.f32.mrf.mxu3 }
 0x450   :  { %v2464_v16 = vadd.f32 %v10512_v52, %v2402_v51 }
 0x451   :  { %v2649_v60 = vpop.f32.mrf.mxu0 }
 0x452   :  { %v2663_v30 = vadd.f32 %v2649_v60, %v2586_v37  ;;  %v2714_v15 = vpop.f32.mrf.mxu1  ;;  %v2526_v49 = vadd.f32 %v10514_v13, %v2464_v16 }
 0x454   :  { %v2725_v53 = vadd.f32 %v2711_v6, %v2663_v30  ;;  %v2776_v11 = vpop.f32.mrf.mxu2  ;;  %v2588_v8 = vadd.f32 %v10516_v57, %v2526_v49 }
 0x456   :  { %v2787_v38 = vadd.f32 %v2773_v21, %v2725_v53 }
 0x457   :  { %v2833_v56 = vpop.f32.mrf.mxu3 }
 0x458   :  { %v2848_v59 = vadd.f32 %v2833_v56, %v2786_v5  ;;  %v2144_v56 = vadd.f32 %v10494_v61, %v2082_v4 }
 0x459   :  { %v2652_v25 = vpop.f32.mrf.mxu0 }
 0x45a   :  { %v2664_v3 = vadd.f32 %v2652_v25, %v2587_v33  ;;  %v2206_v54 = vadd.f32 %v10500_v63, %v2144_v56  ;;  %v2716_v2 = vpop.f32.mrf.mxu1  ;;  %v2465_v25 = vadd.f32 %v10518_v19, %v10508_v18  ;;  %v8992_v33 = vmov 25.0  }
 0x45b   :  { %8770 = vrcp.f32 %v8992_v33 }
 0x45c   :  { %v2726_v17 = vadd.f32 %v2714_v15, %v2664_v3  ;;  %v2268_v52 = vadd.f32 %v10502_v39, %v2206_v54  ;;  %v2778_v14 = vpop.f32.mrf.mxu2  ;;  %v2527_v57 = vadd.f32 %v10520_v32, %v2465_v25 }
 0x45e   :  { %v2788_v45 = vadd.f32 %v2776_v11, %v2726_v17  ;;  %v2342_v13 = vadd.f32 %v10504_v0, %v2268_v52  ;;  %v2589_v39 = vadd.f32 %v10524_v29, %v2527_v57 }
 0x45f   :  { %v2835_v12 = vpop.f32.mrf.mxu3 }
 0x460   :  { %v2849_v22 = vadd.f32 %v2835_v12, %v2787_v38  ;;  %v2404_v6 = vadd.f32 %v10510_v35, %v2342_v13 }
 0x461   :  { %v10535_v23 = vpop.f32.mrf.mxu0 }
 0x462   :  { %v2665_v63 = vadd.f32 %v10535_v23, %v2588_v8  ;;  %v2719_v18 = vpop.f32.mrf.mxu1  ;;  %v2466_v23 = vadd.f32 %v10527_v62, %v2404_v6 }
 0x464   :  { %v2727_v55 = vadd.f32 %v2716_v2, %v2665_v63  ;;  %v2781_v37 = vpop.f32.mrf.mxu2  ;;  %v2528_v32 = vadd.f32 %v10531_v47, %v2466_v23 }
 0x466   :  { %v2789_v19 = vadd.f32 %v2778_v14, %v2727_v55  ;;  %v2590_v26 = vadd.f32 %v10533_v27, %v2528_v32  ;;  %v8993_v32 = vmov 65535  }
 0x467   :  { %v2838_v48 = vpop.f32.mrf.mxu3 }
 0x468   :  { %v2850_v40 = vadd.f32 %v2838_v48, %v2788_v45 }
 0x469   :  { %v10542_v20 = vpop.f32.mrf.mxu0 }
 0x46a   :  { %v2666_v0 = vadd.f32 %v10542_v20, %v2589_v39  ;;  %v2721_v62 = vpop.f32.mrf.mxu1 }
 0x46c   :  { %v2728_v12 = vadd.f32 %v2719_v18, %v2666_v0  ;;  %v2783_v15 = vpop.f32.mrf.mxu2  ;;  %v7925_v0 = vld [vmem:[%s12379_s9 + $0x8] sm:$0xf] }
 0x46e   :  { %v2790_v5 = vadd.f32 %v2781_v37, %v2728_v12  ;;  %v3116_v12 = vsel %vm1356_vm4, 4294967295, %v8993_v32 }
 0x46f   :  { %v2840_v24 = vpop.f32.mrf.mxu3 }
 0x470   :  { %v2851_v21 = vadd.f32 %v2840_v24, %v2789_v19 }
 0x471   :  { %v10547_v10 = vpop.f32.mrf.mxu0 }
 0x472   :  { %v2667_v30 = vadd.f32 %v10547_v10, %v2590_v26  ;;  %v8771_v10 = vpop.eup %8770 }
 0x473   :  { %vm2940_vm11 = vweird.f32 %v8771_v10 }
 0x474   :  { %v2729_v20 = vadd.f32 %v2721_v62, %v2667_v30 }
 0x476   :  { %v2791_v43 = vadd.f32 %v2783_v15, %v2729_v20 }
 0x477   :  { %v2843_v28 = vpop.f32.mrf.mxu3 }
 0x478   :  { %v2852_v46 = vadd.f32 %v2843_v28, %v2790_v5  ;;  %v3117_v28 = vsel %vm3115_vm12, %v3116_v12, 0  ;;  %v8554_v5 = vld [vmem:[%s12379_s9] sm:$0xff] }
 0x479   :  { %v2895_v42 = vpop.f32.mrf.mxu0 }
 0x47a   :  { %v10556_v1 = vadd.f32 %v2895_v42, %v2848_v59 }
 0x47c   :  { %v2917_v60 = vsel %vm12548_vm10, %v10556_v1, 0.0 }
 0x47d   :  { %2918 = vadd.xlane.f32.xlu1 %v2917_v60  ;;  %v2936_v60 = vmul.f32 25.0, %v8771_v10 }
 0x47f   :  { %v2845_v47 = vpop.f32.mrf.mxu3  ;;  %v2937_v11 = vsub.f32 1.0, %v2936_v60  ;;  %v10646_v60 = vld [vmem:[%s12377_s7] ss:$0 sm:$0xff] }
 0x480   :  { %v2853_v51 = vadd.f32 %v2845_v47, %v2791_v43 }
 0x481   :  { %v2897_v58 = vpop.f32.mrf.mxu0  ;;  %v2938_v56 = vmul.f32 %v8771_v10, %v2937_v11 }
 0x482   :  { %v10565_v9 = vadd.f32 %v2897_v58, %v2849_v22 }
 0x483   :  { %v2939_v16 = vadd.f32 %v8771_v10, %v2938_v56 }
 0x484   :  { %v2920_v61 = vsel %vm12548_vm10, %v10565_v9, 0.0 }
 0x485   :  { %2921 = vadd.xlane.f32.xlu0 %v2920_v61  ;;  %v10587_v38 = vsel %vm2940_vm11, %v8771_v10, %v2939_v16 }
 0x489   :  { %v2900_v36 = vpop.f32.mrf.mxu0 }
 0x48a   :  { %v2912_v41 = vadd.f32 %v2900_v36, %v2850_v40 }
 0x48c   :  { %v2923_v44 = vsel %vm12548_vm10, %v2912_v41, 0.0 }
 0x48d   :  { %2924 = vadd.xlane.f32.xlu2 %v2923_v44 }
 0x491   :  { %v2902_v7 = vpop.f32.mrf.mxu0 }
 0x492   :  { %v2913_v35 = vadd.f32 %v2902_v7, %v2851_v21  ;;  %v8555_v21 = vld [vmem:[%s12379_s9 + $0x8] sm:$0x10] }
 0x493   :  { %v7926_v7 = vor.u32 %v8555_v21, %v7925_v0 }
 0x494   :  { %v2926_v29 = vsel %vm12548_vm10, %v2913_v35, 0.0 }
 0x495   :  { %2927 = vadd.xlane.f32.xlu1 %v2926_v29  ;;  %v10635_v26 = vand.u32 %v7926_v7, %v3117_v28 }
 0x497   :  { %3127 = vmatpush.bf16.msrb.mxu1 %v10635_v26 }
 0x499   :  { %v2905_v59 = vpop.f32.mrf.mxu0 }
 0x49a   :  { %v2914_v50 = vadd.f32 %v2905_v59, %v2852_v46 }
 0x49b   :  { %3128 = vmatpush.bf16.msrb.mxu1 %v8554_v5 }
 0x49c   :  { %v2929_v42 = vsel %vm12548_vm10, %v2914_v50, 0.0 }
 0x49d   :  { %2930 = vadd.xlane.f32.xlu0 %v2929_v42 }
 0x4a1   :  { %v2907_v53 = vpop.f32.mrf.mxu0 }
 0x4a2   :  { %v2915_v27 = vadd.f32 %v2907_v53, %v2853_v51 }
 0x4a4   :  { %v2932_v4 = vsel %vm12548_vm10, %v2915_v27, 0.0 }
 0x4a5   :  { %2933 = vadd.xlane.f32.xlu2 %v2932_v4 }
 0x4f0   :  { %v2919_v3 = vpop.xlane.xlu1 %2918 }
 0x4f1   :  { %v2942_v48 = vmul.f32 %v10587_v38, %v2919_v3 }
 0x4f3   :  { %v10591_v22 = vsub.f32 %v10556_v1, %v2942_v48 }
 0x4f5   :  { %v2954_v58 = vmul.f32 %v10591_v22, %v10591_v22 }
 0x4f7   :  { %v2960_v54 = vsel %vm12548_vm10, %v2954_v58, 0.0 }
 0x4f8   :  { %v2922_v49 = vpop.xlane.xlu0 %2921  ;;  %2961 = vadd.xlane.f32.xlu1 %v2960_v54  ;;  %v10653_v54 = vld [vmem:[%s12378_s8] ss:$0 sm:$0xff] }
 0x4f9   :  { %v2943_v17 = vmul.f32 %v10587_v38, %v2922_v49 }
 0x4fb   :  { %v10598_v2 = vsub.f32 %v10565_v9, %v2943_v17 }
 0x4fd   :  { %v2955_v8 = vmul.f32 %v10598_v2, %v10598_v2 }
 0x4ff   :  { %v2963_v61 = vsel %vm12548_vm10, %v2955_v8, 0.0 }
 0x500   :  { %v2925_v52 = vpop.xlane.xlu2 %2924  ;;  %2964 = vadd.xlane.f32.xlu0 %v2963_v61 }
 0x501   :  { %v2944_v1 = vmul.f32 %v10587_v38, %v2925_v52 }
 0x503   :  { %v10604_v25 = vsub.f32 %v2912_v41, %v2944_v1 }
 0x505   :  { %v2956_v45 = vmul.f32 %v10604_v25, %v10604_v25 }
 0x507   :  { %v2966_v63 = vsel %vm12548_vm10, %v2956_v45, 0.0 }
 0x508   :  { %2967 = vadd.xlane.f32.xlu2 %v2966_v63  ;;  %v2928_v14 = vpop.xlane.xlu1 %2927 }
 0x509   :  { %v2945_v9 = vmul.f32 %v10587_v38, %v2928_v14 }
 0x50b   :  { %v10610_v13 = vsub.f32 %v2913_v35, %v2945_v9 }
 0x50d   :  { %v2957_v40 = vmul.f32 %v10610_v13, %v10610_v13 }
 0x50f   :  { %v2969_v24 = vsel %vm12548_vm10, %v2957_v40, 0.0 }
 0x510   :  { %v2931_v36 = vpop.xlane.xlu0 %2930  ;;  %2970 = vadd.xlane.f32.xlu1 %v2969_v24 }
 0x511   :  { %v2946_v57 = vmul.f32 %v10587_v38, %v2931_v36 }
 0x513   :  { %v10616_v6 = vsub.f32 %v2914_v50, %v2946_v57 }
 0x515   :  { %v2958_v55 = vmul.f32 %v10616_v6, %v10616_v6 }
 0x517   :  { %v2972_v41 = vsel %vm12548_vm10, %v2958_v55, 0.0 }
 0x518   :  { %v2934_v39 = vpop.xlane.xlu2 %2933  ;;  %2973 = vadd.xlane.f32.xlu0 %v2972_v41 }
 0x519   :  { %v2947_v44 = vmul.f32 %v10587_v38, %v2934_v39 }
 0x51b   :  { %v10622_v18 = vsub.f32 %v2915_v27, %v2947_v44 }
 0x51d   :  { %v2959_v23 = vmul.f32 %v10622_v18, %v10622_v18 }
 0x51f   :  { %v2975_v19 = vsel %vm12548_vm10, %v2959_v23, 0.0 }
 0x520   :  { %2976 = vadd.xlane.f32.xlu2 %v2975_v19 }
 0x56b   :  { %v2962_v37 = vpop.xlane.xlu1 %2961 }
 0x56c   :  { %v2978_v35 = vmul.f32 %v2962_v37, %v10587_v38 }
 0x56e   :  { %v2984_v29 = vadd.f32 1e-05, %v2978_v35 }
 0x570   :  { %8772 = vrsqrt.f32 %v2984_v29  ;;  %vm2996_vm14 = vweird.f32 %v2984_v29 }
 0x573   :  { %v2965_v30 = vpop.xlane.xlu0 %2964 }
 0x574   :  { %v2979_v62 = vmul.f32 %v2965_v30, %v10587_v38 }
 0x576   :  { %v8773_v46 = vpop.eup %8772  ;;  %v2985_v59 = vadd.f32 1e-05, %v2979_v62 }
 0x577   :  { %v2991_v20 = vmul.f32 %v8773_v46, %v2984_v29  ;;  %vm2997_vm13 = vweird.f32 %v8773_v46 }
 0x578   :  { %8774 = vrsqrt.f32 %v2985_v59  ;;  %vm2998_vm15 = vmor %vm2996_vm14, %vm2997_vm13  ;;  %vm3006_vm3 = vweird.f32 %v2985_v59 }
 0x579   :  { %v2992_v50 = vmul.f32 %v8773_v46, %v2991_v20 }
 0x57b   :  { %v2993_v15 = vmul.f32 0.5, %v2992_v50  ;;  %v2968_v42 = vpop.xlane.xlu2 %2967 }
 0x57c   :  { %v2980_v47 = vmul.f32 %v2968_v42, %v10587_v38 }
 0x57d   :  { %v2994_v43 = vsub.f32 1.5, %v2993_v15 }
 0x57e   :  { %v8775_v51 = vpop.eup %8774  ;;  %v2986_v53 = vadd.f32 1e-05, %v2980_v47 }
 0x57f   :  { %v2995_v27 = vmul.f32 %v8773_v46, %v2994_v43  ;;  %v3001_v4 = vmul.f32 %v8775_v51, %v2985_v59  ;;  %vm3007_vm2 = vweird.f32 %v8775_v51 }
 0x580   :  { %8776 = vrsqrt.f32 %v2986_v53  ;;  %vm3008_vm11 = vmor %vm3006_vm3, %vm3007_vm2  ;;  %vm3016_vm14 = vweird.f32 %v2986_v53 }
 0x581   :  { %v2999_v33 = vsel %vm2998_vm15, %v8773_v46, %v2995_v27  ;;  %v3002_v10 = vmul.f32 %v8775_v51, %v3001_v4 }
 0x582   :  { %v3050_v11 = vmul.f32 %v2999_v33, %v10591_v22 }
 0x583   :  { %v3003_v56 = vmul.f32 0.5, %v3002_v10  ;;  %v2971_v16 = vpop.xlane.xlu1 %2970 }
 0x584   :  { %v2981_v3 = vmul.f32 %v2971_v16, %v10587_v38  ;;  %v3059_v49 = vmul.f32 %v10646_v60, %v3050_v11 }
 0x585   :  { %v3004_v48 = vsub.f32 1.5, %v3003_v56 }
 0x586   :  { %v8777_v58 = vpop.eup %8776  ;;  %v2987_v17 = vadd.f32 1e-05, %v2981_v3  ;;  %v3068_v1 = vadd.f32 %v10653_v54, %v3059_v49 }
 0x587   :  { %v3005_v8 = vmul.f32 %v8775_v51, %v3004_v48  ;;  %v3011_v61 = vmul.f32 %v8777_v58, %v2986_v53  ;;  %vm3017_vm12 = vweird.f32 %v8777_v58 }
 0x588   :  { %8778 = vrsqrt.f32 %v2987_v17  ;;  %v3080_v57 = vmul.f32 0.1, %v3068_v1  ;;  %vm3074_vm13 = vcmp.gt.f32.partialorder %v3068_v1, 0.0  ;;  %vm3018_vm2 = vmor %vm3016_vm14, %vm3017_vm12 }
 0x589   :  { %v3009_v22 = vsel %vm3008_vm11, %v8775_v51, %v3005_v8  ;;  %v3012_v52 = vmul.f32 %v8777_v58, %v3011_v61  ;;  %vm3026_vm11 = vweird.f32 %v2987_v17 }
 0x58a   :  { %v3051_v45 = vmul.f32 %v3009_v22, %v10598_v2  ;;  %v3086_v21 = vsel %vm3074_vm13, %v3068_v1, %v3080_v57 }
 0x58b   :  { %v3013_v63 = vmul.f32 0.5, %v3012_v52  ;;  %v2974_v14 = vpop.xlane.xlu0 %2973 }
 0x58c   :  { %v3060_v9 = vmul.f32 %v10646_v60, %v3051_v45  ;;  %v2982_v40 = vmul.f32 %v2974_v14, %v10587_v38 }
 0x58d   :  { %v3014_v24 = vsub.f32 1.5, %v3013_v63 }
 0x58e   :  { %v8779_v36 = vpop.eup %8778  ;;  %v3069_v55 = vadd.f32 %v10653_v54, %v3060_v9  ;;  %v2988_v41 = vadd.f32 1e-05, %v2982_v40 }
 0x58f   :  { %v3015_v39 = vmul.f32 %v8777_v58, %v3014_v24  ;;  %v3021_v44 = vmul.f32 %v8779_v36, %v2987_v17  ;;  %vm3027_vm3 = vweird.f32 %v8779_v36 }
 0x590   :  { %vm3075_vm15 = vcmp.gt.f32.partialorder %v3069_v55, 0.0  ;;  %v3081_v23 = vmul.f32 0.1, %v3069_v55  ;;  %8780 = vrsqrt.f32 %v2988_v41  ;;  %vm3028_vm12 = vmor %vm3026_vm11, %vm3027_vm3  ;;  %vm3036_vm14 = vweird.f32 %v2988_v41 }
 0x591   :  { %v3019_v2 = vsel %vm3018_vm2, %v8777_v58, %v3015_v39  ;;  %v3022_v19 = vmul.f32 %v8779_v36, %v3021_v44 }
 0x592   :  { %v3052_v0 = vmul.f32 %v3019_v2, %v10604_v25  ;;  %v3087_v37 = vsel %vm3075_vm15, %v3069_v55, %v3081_v23 }
 0x593   :  { %v3023_v7 = vmul.f32 0.5, %v3022_v19  ;;  %v2977_v32 = vpop.xlane.xlu2 %2976  ;;  %v3092_v12 = vpack.c.bf16 %v3087_v37, %v3086_v21 }
 0x594   :  { %v2983_v35 = vmul.f32 %v2977_v32, %v10587_v38  ;;  %v3061_v5 = vmul.f32 %v10646_v60, %v3052_v0 }
 0x595   :  { %v3024_v28 = vsub.f32 1.5, %v3023_v7  ;;  %7927 = vmatmul.msk.bf16.vlgmr.msrb.gmra.mxu1 %vm12548_vm10, %v3092_v12 }
 0x596   :  { %v8781_v29 = vpop.eup %8780  ;;  %v2989_v30 = vadd.f32 1e-05, %v2983_v35  ;;  %v3070_v50 = vadd.f32 %v10653_v54, %v3061_v5 }
 0x597   :  { %v3025_v62 = vmul.f32 %v8779_v36, %v3024_v28  ;;  %v3031_v46 = vmul.f32 %v8781_v29, %v2988_v41  ;;  %vm3037_vm13 = vweird.f32 %v8781_v29 }
 0x598   :  { %8782 = vrsqrt.f32 %v2989_v30  ;;  %v3082_v53 = vmul.f32 0.1, %v3070_v50  ;;  %vm3076_vm15 = vcmp.gt.f32.partialorder %v3070_v50, 0.0  ;;  %vm3038_vm2 = vmor %vm3036_vm14, %vm3037_vm13 }
 0x599   :  { %v3029_v25 = vsel %vm3028_vm12, %v8779_v36, %v3025_v62  ;;  %v3032_v59 = vmul.f32 %v8781_v29, %v3031_v46  ;;  %vm3046_vm12 = vweird.f32 %v2989_v30 }
 0x59a   :  { %v3053_v20 = vmul.f32 %v3029_v25, %v10610_v13  ;;  %v3088_v56 = vsel %vm3076_vm15, %v3070_v50, %v3082_v53  ;;  %v8558_v50 = vld [vmem:[%s12380_s10 + $0x10] sm:$0xff]  ;;  %vm4157_vm15 = vcmask 31744  }
 0x59b   :  { %v3033_v15 = vmul.f32 0.5, %v3032_v59 }
 0x59c   :  { %v3062_v42 = vmul.f32 %v10646_v60, %v3053_v20 }
 0x59d   :  { %v3034_v47 = vsub.f32 1.5, %v3033_v15 }
 0x59e   :  { %v8783_v43 = vpop.eup %8782  ;;  %v3071_v51 = vadd.f32 %v10653_v54, %v3062_v42 }
 0x59f   :  { %v3035_v27 = vmul.f32 %v8781_v29, %v3034_v47  ;;  %v3041_v4 = vmul.f32 %v8783_v43, %v2989_v30  ;;  %vm3047_vm11 = vweird.f32 %v8783_v43  ;;  %v8557_v30 = vld [vmem:[%s12380_s10 + $0x8] sm:$0xff]  ;;  %v8559_v47 = vld [vmem:[%s12380_s10 + $0x18] sm:$0xff] }
 0x5a0   :  { %vm3077_vm3 = vcmp.gt.f32.partialorder %v3071_v51, 0.0  ;;  %v3083_v33 = vmul.f32 0.1, %v3071_v51  ;;  %vm3048_vm9 = vmor %vm3046_vm12, %vm3047_vm11 }
 0x5a1   :  { %v3039_v10 = vsel %vm3038_vm2, %v8781_v29, %v3035_v27  ;;  %v3042_v13 = vmul.f32 %v8783_v43, %v3041_v4  ;;  %v8556_v29 = vld [vmem:[%s12380_s10] sm:$0xff]  ;;  %v8562_v27 = vld [vmem:[%s12380_s10 + $0x30] sm:$0xff]  ;;  %v8565_v4 = vld [vmem:[%s12380_s10 + $0x48] sm:$0xff] }
 0x5a2   :  { %v3054_v11 = vmul.f32 %v3039_v10, %v10616_v6  ;;  %v3089_v16 = vsel %vm3077_vm3, %v3071_v51, %v3083_v33 }
 0x5a3   :  { %v3043_v3 = vmul.f32 0.5, %v3042_v13  ;;  %v3093_v48 = vpack.c.bf16 %v3089_v16, %v3088_v56 }
 0x5a4   :  { %v3063_v49 = vmul.f32 %v10646_v60, %v3054_v11  ;;  %v8560_v11 = vld [vmem:[%s12380_s10 + $0x20] sm:$0xff] }
 0x5a5   :  { %v3044_v58 = vsub.f32 1.5, %v3043_v3  ;;  %7928 = vmatmul.msk.bf16.gmra.mxu1 %vm12548_vm10, %v3093_v48  ;;  %v8563_v48 = vld [vmem:[%s12380_s10 + $0x38] sm:$0xff] }
 0x5a6   :  { %v3072_v22 = vadd.f32 %v10653_v54, %v3063_v49 }
 0x5a7   :  { %v3045_v17 = vmul.f32 %v8783_v43, %v3044_v58  ;;  %v8566_v58 = vld [vmem:[%s12380_s10 + $0x50] sm:$0xff] }
 0x5a8   :  { %v3084_v1 = vmul.f32 0.1, %v3072_v22  ;;  %vm3078_vm13 = vcmp.gt.f32.partialorder %v3072_v22, 0.0 }
 0x5a9   :  { %v3049_v8 = vsel %vm3048_vm9, %v8783_v43, %v3045_v17  ;;  %vm3190_vm9 = vcmask 392192  }
 0x5aa   :  { %v3055_v61 = vmul.f32 %v3049_v8, %v10622_v18  ;;  %v3090_v63 = vsel %vm3078_vm13, %v3072_v22, %v3084_v1  ;;  %v8571_v22 = vld [vmem:[%s12380_s10 + $0x78] sm:$0xff]  ;;  %v8564_v1 = vld [vmem:[%s12380_s10 + $0x40] sm:$0xff] }
 0x5ac   :  { %v3064_v6 = vmul.f32 %v10646_v60, %v3055_v61  ;;  %v8561_v61 = vld [vmem:[%s12380_s10 + $0x28] sm:$0xff] }
 0x5ae   :  { %v3073_v52 = vadd.f32 %v10653_v54, %v3064_v6 }
 0x5b0   :  { %vm3079_vm14 = vcmp.gt.f32.partialorder %v3073_v52, 0.0  ;;  %v3085_v45 = vmul.f32 0.1, %v3073_v52 }
 0x5b2   :  { %v3091_v14 = vsel %vm3079_vm14, %v3073_v52, %v3085_v45  ;;  %v8567_v45 = vld [vmem:[%s12380_s10 + $0x58] sm:$0xff] }
 0x5b3   :  { %v3094_v9 = vpack.c.bf16 %v3091_v14, %v3090_v63 }
 0x5b5   :  { %7929 = vmatmul.msk.bf16.gmra.mxu1 %vm12548_vm10, %v3094_v9 }
 0x612   :  { %v3130_v40 = vpop.f32.mrf.mxu1 }
 0x613   :  { %v3145_v24 = vpack.c.bf16 %v3130_v40, %v3130_v40  ;;  %v8568_v40 = vld [vmem:[%s12380_s10 + $0x60] sm:$0xff] }
 0x615   :  { %v3172_v18 = vunpack.c.l.b16 %v3145_v24  ;;  %v8572_v24 = vld [vmem:[%s12380_s10 + $0x80] sm:$0xff] }
 0x61a   :  { %v3132_v36 = vpop.f32.mrf.mxu1 }
 0x61b   :  { %v3146_v57 = vpack.c.bf16 %v3132_v36, %v3132_v36 }
 0x61d   :  { %v3173_v55 = vunpack.c.l.b16 %v3146_v57 }
 0x61f   :  { %v10677_v41 = vpack.c.b16 %v3173_v55, %v3172_v18  ;;  %v8574_v55 = vld [vmem:[%s12380_s10 + $0x90] sm:$0xff] }
 0x621   :  { %3181 = vrot.lane.b32.xlu2 %v10677_v41, %s12516_s25 }
 0x622   :  { %v3135_v60 = vpop.f32.mrf.mxu1 }
 0x623   :  { %v3147_v54 = vpack.c.bf16 %v3135_v60, %v3135_v60 }
 0x625   :  { %v3174_v23 = vunpack.c.l.b16 %v3147_v54 }
 0x62a   :  { %v3137_v39 = vpop.f32.mrf.mxu1 }
 0x62b   :  { %v3148_v44 = vpack.c.bf16 %v3137_v39, %v3137_v39 }
 0x62d   :  { %v3175_v2 = vunpack.c.l.b16 %v3148_v44  ;;  %v8569_v44 = vld [vmem:[%s12380_s10 + $0x68] sm:$0xff] }
 0x62f   :  { %v10681_v19 = vpack.c.b16 %v3175_v2, %v3174_v23  ;;  %v8573_v23 = vld [vmem:[%s12380_s10 + $0x88] sm:$0xff] }
 0x631   :  { %3292 = vrot.lane.b32.xlu2 %v10681_v19, %s12518_s2  ;;  %3183 = vrot.lane.b32.xlu0 %v10681_v19, %s12516_s25 }
 0x632   :  { %v3140_v0 = vpop.f32.mrf.mxu1 }
 0x633   :  { %v3149_v21 = vpack.c.bf16 %v3140_v0, %v3140_v0 }
 0x635   :  { %v3176_v32 = vunpack.c.l.b16 %v3149_v21  ;;  %v8575_v21 = vld [vmem:[%s12380_s10 + $0x98] sm:$0xff] }
 0x639   :  { %3353 = vrot.lane.b32.xlu2 %v10677_v41, %s12514_s24 }
 0x63a   :  { %v3142_v37 = vpop.f32.mrf.mxu1 }
 0x63b   :  { %v3150_v7 = vpack.c.bf16 %v3142_v37, %v3142_v37  ;;  %v8578_v37 = vld [vmem:[%s12380_s10 + $0xb0] sm:$0xff] }
 0x63d   :  { %v3177_v12 = vunpack.c.l.b16 %v3150_v7 }
 0x63f   :  { %v3180_v35 = vpack.c.b16 %v3177_v12, %v3176_v32  ;;  %v8570_v12 = vld [vmem:[%s12380_s10 + $0x70] sm:$0xff] }
 0x641   :  { %3418 = vrot.lane.b32.xlu2 %v10681_v19, %s12542_s28  ;;  %3294 = vrot.lane.b32.xlu0 %v3180_v35, %s12518_s2 }
 0x642   :  { %3185 = vrot.lane.b32.xlu1 %v3180_v35, %s12516_s25  ;;  %3256 = vmatpush.bf16.msrb.mxu3 %v3180_v35  ;;  %s12526_s25 = smov 92  }
 0x646   :  { %3257 = vmatpush.bf16.msrb.mxu3 %v10681_v19 }
 0x649   :  { %3479 = vrot.lane.b32.xlu2 %v10677_v41, %s12520_s3  ;;  %3355 = vrot.lane.b32.xlu0 %v10681_v19, %s12514_s24 }
 0x64a   :  { %3357 = vrot.lane.b32.xlu1 %v3180_v35, %s12514_s24  ;;  %3258 = vmatpush.bf16.msrb.mxu3 %v10677_v41  ;;  %s12528_s24 = smov 96  }
 0x64d   :  { %7957 = vmatmul.msk.bf16.vlgmr.msrb.gmra.mxu3 %vm3190_vm9, %v8556_v29 }
 0x651   :  { %3544 = vrot.lane.b32.xlu2 %v10681_v19, %s12524_s27  ;;  %3481 = vrot.lane.b32.xlu0 %v10681_v19, %s12520_s3 }
 0x652   :  { %3290 = vrot.lane.b32.xlu1 %v10677_v41, %s12518_s2  ;;  %s12532_s2 = smov 88  }
 0x659   :  { %3605 = vrot.lane.b32.xlu2 %v10677_v41, %s12522_s26  ;;  %3420 = vrot.lane.b32.xlu0 %v3180_v35, %s12542_s28 }
 0x65a   :  { %3416 = vrot.lane.b32.xlu1 %v10677_v41, %s12542_s28  ;;  %s9010_s28 = smov 125  }
 0x65d   :  { %7958 = vmatmul.msk.bf16.gmra.mxu3 %vm3190_vm9, %v8557_v30  ;;  %v8576_v30 = vld [vmem:[%s12380_s10 + $0xa0] sm:$0xff] }
 0x661   :  { %3670 = vrot.lane.b32.xlu2 %v10681_v19, %s12528_s24  ;;  %3546 = vrot.lane.b32.xlu0 %v3180_v35, %s12524_s27 }
 0x662   :  { %3483 = vrot.lane.b32.xlu1 %v3180_v35, %s12520_s3  ;;  %s12540_s3 = smov 80  }
 0x669   :  { %3731 = vrot.lane.b32.xlu2 %v10677_v41, %s12526_s25  ;;  %3607 = vrot.lane.b32.xlu0 %v10681_v19, %s12522_s26 }
 0x66a   :  { %3609 = vrot.lane.b32.xlu1 %v3180_v35, %s12522_s26  ;;  %s12538_s26 = smov 76  }
 0x66d   :  { %7959 = vmatmul.msk.bf16.gmra.mxu3 %vm3190_vm9, %v8558_v50 }
 0x671   :  { %3796 = vrot.lane.b32.xlu2 %v10681_v19, %s12532_s2  ;;  %3733 = vrot.lane.b32.xlu0 %v10681_v19, %s12526_s25 }
 0x672   :  { %3542 = vrot.lane.b32.xlu1 %v10677_v41, %s12524_s27  ;;  %s12536_s27 = smov 72  }
 0x679   :  { %3857 = vrot.lane.b32.xlu2 %v10677_v41, %s12544_s0  ;;  %3672 = vrot.lane.b32.xlu0 %v3180_v35, %s12528_s24 }
 0x67a   :  { %3668 = vrot.lane.b32.xlu1 %v10677_v41, %s12528_s24  ;;  %s12780_s24 = smov 92  }
 0x67b   :  { %v3182_v28 = vpop.permute.xlu2 %3181 }
 0x681   :  { %3922 = vrot.lane.b32.xlu2 %v10681_v19, %s12540_s3  ;;  %3798 = vrot.lane.b32.xlu0 %v3180_v35, %s12532_s2 }
 0x682   :  { %3735 = vrot.lane.b32.xlu1 %v3180_v35, %s12526_s25  ;;  %s12747_s25 = smov 62  }
 0x689   :  { %3983 = vrot.lane.b32.xlu2 %v10677_v41, %s12538_s26  ;;  %3859 = vrot.lane.b32.xlu0 %v10681_v19, %s12544_s0 }
 0x68a   :  { %3861 = vrot.lane.b32.xlu1 %v3180_v35, %s12544_s0  ;;  %s12745_s0 = smov 9  }
 0x68b   :  { %v3293_v5 = vpop.permute.xlu2 %3292 }
 0x691   :  { %4048 = vrot.lane.b32.xlu2 %v10681_v19, %s12536_s27  ;;  %3985 = vrot.lane.b32.xlu0 %v10681_v19, %s12538_s26 }
 0x692   :  { %3794 = vrot.lane.b32.xlu1 %v10677_v41, %s12532_s2  ;;  %s9009_s2 = smov 127  }
 0x693   :  { %v3354_v62 = vpop.permute.xlu2 %3353 }
 0x699   :  { %4109 = vrot.lane.b32.xlu2 %v10677_v41, %s12534_s19  ;;  %3924 = vrot.lane.b32.xlu0 %v3180_v35, %s12540_s3 }
 0x69a   :  { %3920 = vrot.lane.b32.xlu1 %v10677_v41, %s12540_s3  ;;  %s12739_s3 = smov 56  }
 0x69b   :  { %v3419_v59 = vpop.permute.xlu2 %3418 }
 0x6a1   :  { %4050 = vrot.lane.b32.xlu0 %v3180_v35, %s12536_s27 }
 0x6a2   :  { %3987 = vrot.lane.b32.xlu1 %v3180_v35, %s12538_s26  ;;  %s9008_s26 = smov 126  }
 0x6a3   :  { %v3184_v46 = vpop.permute.xlu0 %3183  ;;  %v3480_v43 = vpop.permute.xlu2 %3479 }
 0x6a9   :  { %4111 = vrot.lane.b32.xlu0 %v10681_v19, %s12534_s19 }
 0x6aa   :  { %4113 = vrot.lane.b32.xlu1 %v3180_v35, %s12534_s19  ;;  %v8583_v35 = vld [vmem:[%s12380_s10 + $0xd8] sm:$0xff]  ;;  %s12782_s19 = smov 80  }
 0x6ab   :  { %v3545_v33 = vpop.permute.xlu2 %3544 }
 0x6b2   :  { %4046 = vrot.lane.b32.xlu1 %v10677_v41, %s12536_s27  ;;  %v8577_v41 = vld [vmem:[%s12380_s10 + $0xa8] sm:$0xff]  ;;  %s12751_s27 = smov 37  }
 0x6b3   :  { %v3295_v25 = vpop.permute.xlu0 %3294  ;;  %v3606_v56 = vpop.permute.xlu2 %3605 }
 0x6b4   :  { %v3186_v20 = vpop.permute.xlu1 %3185  ;;  %3313 = vmatpush.bf16.msra.mxu0 %v3295_v25 }
 0x6b5   :  { %3205 = vmatpush.bf16.msrb.mxu2 %v3186_v20  ;;  %v8584_v20 = vld [vmem:[%s12380_s10 + $0xe0] sm:$0xff] }
 0x6b8   :  { %3314 = vmatpush.bf16.msra.mxu0 %v3293_v5 }
 0x6b9   :  { %3206 = vmatpush.bf16.msrb.mxu2 %v3184_v46 }
 0x6bb   :  { %v3356_v15 = vpop.permute.xlu0 %3355  ;;  %v3671_v17 = vpop.permute.xlu2 %3670 }
 0x6bc   :  { %v3358_v42 = vpop.permute.xlu1 %3357 }
 0x6bd   :  { %3207 = vmatpush.bf16.msrb.mxu2 %v3182_v28  ;;  %3376 = vmatpush.bf16.msra.mxu1 %v3358_v42 }
 0x6c0   :  { %7942 = vmatmul.msk.bf16.vlgmr.msrb.gmra.mxu2 %vm3190_vm9, %v8559_v47  ;;  %v8586_v47 = vld [vmem:[%s12380_s10 + $0xf0] sm:$0xff] }
 0x6c1   :  { %3377 = vmatpush.bf16.msra.mxu1 %v3356_v15 }
 0x6c3   :  { %v3482_v51 = vpop.permute.xlu0 %3481  ;;  %v3732_v63 = vpop.permute.xlu2 %3731 }
 0x6c4   :  { %v3291_v53 = vpop.permute.xlu1 %3290 }
 0x6c5   :  { %3315 = vmatpush.bf16.msra.mxu0 %v3291_v53  ;;  %3378 = vmatpush.bf16.msra.mxu1 %v3354_v62  ;;  %v8579_v62 = vld [vmem:[%s12380_s10 + $0xb8] sm:$0xff]  ;;  %v8581_v53 = vld [vmem:[%s12380_s10 + $0xc8] sm:$0xff] }
 0x6c8   :  { %7972 = vmatmul.msk.bf16.vlgmr.msra.gmra.mxu0 %vm3190_vm9, %v8562_v27  ;;  %7987 = vmatmul.msk.bf16.vlgmr.msra.gmra.mxu1 %vm3190_vm9, %v8565_v4  ;;  %v8585_v27 = vld [vmem:[%s12380_s10 + $0xe8] sm:$0xff] }
 0x6cb   :  { %v3421_v10 = vpop.permute.xlu0 %3420  ;;  %v3797_v36 = vpop.permute.xlu2 %3796 }
 0x6cc   :  { %v3417_v13 = vpop.permute.xlu1 %3416  ;;  %3439 = vmatpush.bf16.msra.mxu2 %v3421_v10  ;;  %v8590_v10 = vld [vmem:[%s12380_s10 + $0x110] sm:$0xff] }
 0x6d0   :  { %7943 = vmatmul.msk.bf16.gmra.mxu2 %vm3190_vm9, %v8560_v11  ;;  %v8582_v11 = vld [vmem:[%s12380_s10 + $0xd0] sm:$0xff] }
 0x6d1   :  { %3440 = vmatpush.bf16.msra.mxu2 %v3419_v59  ;;  %v8580_v59 = vld [vmem:[%s12380_s10 + $0xc0] sm:$0xff] }
 0x6d3   :  { %v3547_v16 = vpop.permute.xlu0 %3546  ;;  %v3858_v60 = vpop.permute.xlu2 %3857 }
 0x6d4   :  { %v3484_v3 = vpop.permute.xlu1 %3483  ;;  %3565 = vmatpush.bf16.msrb.mxu0 %v3547_v16 }
 0x6d5   :  { %3441 = vmatpush.bf16.msra.mxu2 %v3417_v13  ;;  %3502 = vmatpush.bf16.msra.mxu3 %v3484_v3 }
 0x6d8   :  { %7973 = vmatmul.msk.bf16.gmra.mxu0 %vm3190_vm9, %v8563_v48  ;;  %7988 = vmatmul.msk.bf16.gmra.mxu1 %vm3190_vm9, %v8566_v58  ;;  %v8588_v48 = vld [vmem:[%s12380_s10 + $0x100] sm:$0xff]  ;;  %v8591_v58 = vld [vmem:[%s12380_s10 + $0x118] sm:$0xff] }
 0x6d9   :  { %3503 = vmatpush.bf16.msra.mxu3 %v3482_v51  ;;  %3566 = vmatpush.bf16.msrb.mxu0 %v3545_v33  ;;  %v3260_v51 = vpop.f32.mrf.mxu3  ;;  %v8587_v33 = vld [vmem:[%s12380_s10 + $0xf8] sm:$0xff] }
 0x6db   :  { %v3608_v49 = vpop.permute.xlu0 %3607  ;;  %v3923_v19 = vpop.permute.xlu2 %3922 }
 0x6dc   :  { %v3610_v8 = vpop.permute.xlu1 %3609 }
 0x6dd   :  { %3504 = vmatpush.bf16.msra.mxu3 %v3480_v43  ;;  %3628 = vmatpush.bf16.msrb.mxu1 %v3610_v8  ;;  %v8589_v43 = vld [vmem:[%s12380_s10 + $0x108] sm:$0xff] }
 0x6e0   :  { %7944 = vmatmul.msk.bf16.gmra.mxu2 %vm3190_vm9, %v8561_v61  ;;  %8017 = vmatmul.msk.bf16.vlgmr.msra.gmra.mxu3 %vm3190_vm9, %v8571_v22 }
 0x6e1   :  { %3629 = vmatpush.bf16.msrb.mxu1 %v3608_v49  ;;  %v10882_v4 = vpop.f32.mrf.mxu3 }
 0x6e3   :  { %v3734_v6 = vpop.permute.xlu0 %3733  ;;  %v3984_v28 = vpop.permute.xlu2 %3983 }
 0x6e4   :  { %v3543_v52 = vpop.permute.xlu1 %3542 }
 0x6e5   :  { %3567 = vmatpush.bf16.msrb.mxu0 %v3543_v52  ;;  %3630 = vmatpush.bf16.msrb.mxu1 %v3606_v56  ;;  %v8595_v56 = vld [vmem:[%s12380_s10 + $0x138] sm:$0xff]  ;;  %v8592_v52 = vld [vmem:[%s12380_s10 + $0x120] sm:$0xff] }
 0x6e8   :  { %7974 = vmatmul.msk.bf16.gmra.mxu0 %vm3190_vm9, %v8564_v1  ;;  %7989 = vmatmul.msk.bf16.gmra.mxu1 %vm3190_vm9, %v8567_v45  ;;  %v8596_v1 = vld [vmem:[%s12380_s10 + $0x140] sm:$0xff] }
 0x6e9   :  { %v3265_v13 = vpop.f32.mrf.mxu3 }
 0x6eb   :  { %v3673_v14 = vpop.permute.xlu0 %3672  ;;  %v4049_v46 = vpop.permute.xlu2 %4048 }
 0x6ec   :  { %v3669_v9 = vpop.permute.xlu1 %3668  ;;  %3691 = vmatpush.bf16.msrb.mxu2 %v3673_v14 }
 0x6f0   :  { %8002 = vmatmul.msk.bf16.vlgmr.msra.gmra.mxu2 %vm3190_vm9, %v8568_v40  ;;  %8018 = vmatmul.msk.bf16.gmra.mxu3 %vm3190_vm9, %v8572_v24  ;;  %v8598_v24 = vld [vmem:[%s12380_s10 + $0x150] sm:$0xff] }
 0x6f1   :  { %3692 = vmatpush.bf16.msrb.mxu2 %v3671_v17  ;;  %v3267_v49 = vpop.f32.mrf.mxu3 }
 0x6f3   :  { %v3799_v57 = vpop.permute.xlu0 %3798  ;;  %v4110_v15 = vpop.permute.xlu2 %4109 }
 0x6f4   :  { %v3736_v18 = vpop.permute.xlu1 %3735  ;;  %3817 = vmatpush.bf16.msra.mxu0 %v3799_v57 }
 0x6f5   :  { %3693 = vmatpush.bf16.msrb.mxu2 %v3669_v9  ;;  %3754 = vmatpush.bf16.msrb.mxu3 %v3736_v18 }
 0x6f8   :  { %8032 = vmatmul.msk.bf16.vlgmr.msrb.gmra.mxu0 %vm3190_vm9, %v8574_v55  ;;  %8047 = vmatmul.msk.bf16.vlgmr.msrb.gmra.mxu1 %vm3190_vm9, %v8577_v41 }
 0x6f9   :  { %3755 = vmatpush.bf16.msrb.mxu3 %v3734_v6  ;;  %3818 = vmatpush.bf16.msra.mxu0 %v3797_v36  ;;  %v3270_v14 = vpop.f32.mrf.mxu3  ;;  %v8601_v36 = vld [vmem:[%s12380_s10 + $0x168] sm:$0xff] }
 0x6fb   :  { %v3860_v54 = vpop.permute.xlu0 %3859 }
 0x6fc   :  { %v3862_v39 = vpop.permute.xlu1 %3861 }
 0x6fd   :  { %3756 = vmatpush.bf16.msrb.mxu3 %v3732_v63  ;;  %3880 = vmatpush.bf16.msra.mxu1 %v3862_v39 }
 0x700   :  { %8003 = vmatmul.msk.bf16.gmra.mxu2 %vm3190_vm9, %v8569_v44  ;;  %8019 = vmatmul.msk.bf16.gmra.mxu3 %vm3190_vm9, %v8573_v23  ;;  %v8593_v44 = vld [vmem:[%s12380_s10 + $0x128] sm:$0xff] }
 0x701   :  { %3881 = vmatpush.bf16.msra.mxu1 %v3860_v54  ;;  %v8597_v23 = vld [vmem:[%s12380_s10 + $0x148] sm:$0xff] }
 0x703   :  { %v3986_v2 = vpop.permute.xlu0 %3985 }
 0x704   :  { %v3795_v0 = vpop.permute.xlu1 %3794 }
 0x705   :  { %3819 = vmatpush.bf16.msra.mxu0 %v3795_v0  ;;  %3882 = vmatpush.bf16.msra.mxu1 %v3858_v60  ;;  %v3272_v60 = vpop.f32.mrf.mxu3 }
 0x708   :  { %8033 = vmatmul.msk.bf16.gmra.mxu0 %vm3190_vm9, %v8575_v21  ;;  %8048 = vmatmul.msk.bf16.gmra.mxu1 %vm3190_vm9, %v8578_v37 }
 0x70b   :  { %v3925_v7 = vpop.permute.xlu0 %3924 }
 0x70c   :  { %v3921_v32 = vpop.permute.xlu1 %3920  ;;  %3943 = vmatpush.bf16.msra.mxu2 %v3925_v7  ;;  %v8599_v7 = vld [vmem:[%s12380_s10 + $0x158] sm:$0xff] }
 0x710   :  { %8004 = vmatmul.msk.bf16.gmra.mxu2 %vm3190_vm9, %v8570_v12  ;;  %8077 = vmatmul.msk.bf16.vlgmr.msrb.gmra.mxu3 %vm3190_vm9, %v8583_v35 }
 0x711   :  { %3944 = vmatpush.bf16.msra.mxu2 %v3923_v19 }
 0x713   :  { %v4051_v29 = vpop.permute.xlu0 %4050 }
 0x714   :  { %v3988_v5 = vpop.permute.xlu1 %3987  ;;  %4069 = vmatpush.bf16.msrb.mxu0 %v4051_v29 }
 0x715   :  { %3945 = vmatpush.bf16.msra.mxu2 %v3921_v32  ;;  %4006 = vmatpush.bf16.msra.mxu3 %v3988_v5  ;;  %v8602_v32 = vld [vmem:[%s12380_s10 + $0x170] sm:$0xff] }
 0x718   :  { %8034 = vmatmul.msk.bf16.gmra.mxu0 %vm3190_vm9, %v8576_v30  ;;  %8049 = vmatmul.msk.bf16.gmra.mxu1 %vm3190_vm9, %v8579_v62 }
 0x719   :  { %4007 = vmatpush.bf16.msra.mxu3 %v3986_v2  ;;  %4070 = vmatpush.bf16.msrb.mxu0 %v4049_v46  ;;  %v8594_v46 = vld [vmem:[%s12380_s10 + $0x130] sm:$0xff] }
 0x71b   :  { %v4112_v50 = vpop.permute.xlu0 %4111 }
 0x71c   :  { %v4114_v25 = vpop.permute.xlu1 %4113 }
 0x71d   :  { %4008 = vmatpush.bf16.msra.mxu3 %v3984_v28  ;;  %4132 = vmatpush.bf16.msrb.mxu1 %v4114_v25 }
 0x720   :  { %8062 = vmatmul.msk.bf16.vlgmr.msrb.gmra.mxu2 %vm3190_vm9, %v8580_v59  ;;  %8078 = vmatmul.msk.bf16.gmra.mxu3 %vm3190_vm9, %v8584_v20 }
 0x721   :  { %4133 = vmatpush.bf16.msrb.mxu1 %v4112_v50 }
 0x724   :  { %v4047_v42 = vpop.permute.xlu1 %4046 }
 0x725   :  { %4071 = vmatpush.bf16.msrb.mxu0 %v4047_v42  ;;  %4134 = vmatpush.bf16.msrb.mxu1 %v4110_v15 }
 0x728   :  { %8092 = vmatmul.msk.bf16.vlgmr.msra.gmra.mxu0 %vm3190_vm9, %v8586_v47  ;;  %8107 = vmatmul.msk.bf16.vlgmr.msra.gmra.mxu1 %vm3190_vm9, %v8589_v43  ;;  %v8600_v47 = vld [vmem:[%s12380_s10 + $0x160] sm:$0xff]  ;;  %v8603_v43 = vld [vmem:[%s12380_s10 + $0x178] sm:$0xff] }
 0x730   :  { %8063 = vmatmul.msk.bf16.gmra.mxu2 %vm3190_vm9, %v8581_v53  ;;  %8079 = vmatmul.msk.bf16.gmra.mxu3 %vm3190_vm9, %v8585_v27 }
 0x738   :  { %8093 = vmatmul.msk.bf16.gmra.mxu0 %vm3190_vm9, %v8587_v33  ;;  %8108 = vmatmul.msk.bf16.gmra.mxu1 %vm3190_vm9, %v8590_v10 }
 0x740   :  { %8064 = vmatmul.msk.bf16.gmra.mxu2 %vm3190_vm9, %v8582_v11  ;;  %8137 = vmatmul.msk.bf16.vlgmr.msra.gmra.mxu3 %vm3190_vm9, %v8595_v56 }
 0x743   :  { %v3209_v16 = vpop.f32.mrf.mxu2 }
 0x744   :  { %v3261_v3 = vadd.f32 %v3260_v51, %v3209_v16 }
 0x745   :  { %v3317_v17 = vpop.f32.mrf.mxu0  ;;  %v3380_v8 = vpop.f32.mrf.mxu1 }
 0x746   :  { %v3332_v61 = vadd.f32 %v3317_v17, %v3261_v3 }
 0x748   :  { %v3395_v22 = vadd.f32 %v3380_v8, %v3332_v61  ;;  %8094 = vmatmul.msk.bf16.gmra.mxu0 %vm3190_vm9, %v8588_v48  ;;  %8109 = vmatmul.msk.bf16.gmra.mxu1 %vm3190_vm9, %v8591_v58 }
 0x74b   :  { %v3211_v6 = vpop.f32.mrf.mxu2 }
 0x74c   :  { %v3263_v20 = vadd.f32 %v10882_v4, %v3211_v6 }
 0x74d   :  { %v3319_v45 = vpop.f32.mrf.mxu0  ;;  %v3382_v63 = vpop.f32.mrf.mxu1 }
 0x74e   :  { %v3333_v27 = vadd.f32 %v3319_v45, %v3263_v20 }
 0x750   :  { %8122 = vmatmul.msk.bf16.vlgmr.msra.gmra.mxu2 %vm3190_vm9, %v8592_v52  ;;  %8138 = vmatmul.msk.bf16.gmra.mxu3 %vm3190_vm9, %v8596_v1  ;;  %v3396_v4 = vadd.f32 %v3382_v63, %v3333_v27 }
 0x753   :  { %v3214_v9 = vpop.f32.mrf.mxu2 }
 0x754   :  { %v3266_v40 = vadd.f32 %v3265_v13, %v3214_v9 }
 0x755   :  { %v3322_v57 = vpop.f32.mrf.mxu0  ;;  %v3385_v18 = vpop.f32.mrf.mxu1 }
 0x756   :  { %v3334_v55 = vadd.f32 %v3322_v57, %v3266_v40 }
 0x758   :  { %v3397_v41 = vadd.f32 %v3385_v18, %v3334_v55  ;;  %8152 = vmatmul.msk.bf16.vlgmr.msrb.gmra.mxu0 %vm3190_vm9, %v8598_v24  ;;  %8167 = vmatmul.msk.bf16.vlgmr.msrb.gmra.mxu1 %vm3190_vm9, %v8601_v36 }
 0x75b   :  { %v3216_v54 = vpop.f32.mrf.mxu2 }
 0x75c   :  { %v3268_v39 = vadd.f32 %v3267_v49, %v3216_v54 }
 0x75d   :  { %v3324_v2 = vpop.f32.mrf.mxu0  ;;  %v3387_v19 = vpop.f32.mrf.mxu1 }
 0x75e   :  { %v3335_v6 = vadd.f32 %v3324_v2, %v3268_v39 }
 0x760   :  { %8123 = vmatmul.msk.bf16.gmra.mxu2 %vm3190_vm9, %v8593_v44  ;;  %8139 = vmatmul.msk.bf16.gmra.mxu3 %vm3190_vm9, %v8597_v23  ;;  %v3398_v45 = vadd.f32 %v3387_v19, %v3335_v6 }
 0x763   :  { %v3219_v0 = vpop.f32.mrf.mxu2  ;;  %v3506_v21 = vpop.f32.mrf.mxu3 }
 0x764   :  { %v3271_v37 = vadd.f32 %v3270_v14, %v3219_v0 }
 0x765   :  { %v3327_v12 = vpop.f32.mrf.mxu0  ;;  %v3390_v35 = vpop.f32.mrf.mxu1 }
 0x766   :  { %v3336_v28 = vadd.f32 %v3327_v12, %v3271_v37 }
 0x768   :  { %v3399_v29 = vadd.f32 %v3390_v35, %v3336_v28  ;;  %8153 = vmatmul.msk.bf16.gmra.mxu0 %vm3190_vm9, %v8599_v7  ;;  %8168 = vmatmul.msk.bf16.gmra.mxu1 %vm3190_vm9, %v8602_v32 }
 0x76b   :  { %v3221_v5 = vpop.f32.mrf.mxu2  ;;  %v3508_v30 = vpop.f32.mrf.mxu3 }
 0x76c   :  { %v3273_v62 = vadd.f32 %v3272_v60, %v3221_v5 }
 0x76d   :  { %v3329_v25 = vpop.f32.mrf.mxu0  ;;  %v3392_v59 = vpop.f32.mrf.mxu1 }
 0x76e   :  { %v3337_v23 = vadd.f32 %v3329_v25, %v3273_v62 }
 0x770   :  { %8124 = vmatmul.msk.bf16.gmra.mxu2 %vm3190_vm9, %v8594_v46 }
 0x773   :  { %v3443_v50 = vpop.f32.mrf.mxu2  ;;  %v3511_v15 = vpop.f32.mrf.mxu3 }
 0x774   :  { %v3458_v42 = vadd.f32 %v3443_v50, %v3395_v22 }
 0x775   :  { %v3569_v51 = vpop.f32.mrf.mxu0  ;;  %v3632_v53 = vpop.f32.mrf.mxu1 }
 0x776   :  { %v3521_v33 = vadd.f32 %v3506_v21, %v3458_v42  ;;  %v3400_v21 = vadd.f32 %v3392_v59, %v3337_v23 }
 0x778   :  { %v3584_v10 = vadd.f32 %v3569_v51, %v3521_v33  ;;  %8154 = vmatmul.msk.bf16.gmra.mxu0 %vm3190_vm9, %v8600_v47  ;;  %8169 = vmatmul.msk.bf16.gmra.mxu1 %vm3190_vm9, %v8603_v43 }
 0x77a   :  { %v3647_v13 = vadd.f32 %v3632_v53, %v3584_v10 }
 0x77b   :  { %v3445_v11 = vpop.f32.mrf.mxu2  ;;  %v3513_v56 = vpop.f32.mrf.mxu3 }
 0x77c   :  { %v3459_v16 = vadd.f32 %v3445_v11, %v3396_v4 }
 0x77d   :  { %v3571_v3 = vpop.f32.mrf.mxu0  ;;  %v3634_v48 = vpop.f32.mrf.mxu1 }
 0x77e   :  { %v3522_v58 = vadd.f32 %v3508_v30, %v3459_v16 }
 0x780   :  { %v3585_v20 = vadd.f32 %v3571_v3, %v3522_v58 }
 0x783   :  { %v3448_v49 = vpop.f32.mrf.mxu2  ;;  %v3516_v17 = vpop.f32.mrf.mxu3 }
 0x784   :  { %v3460_v8 = vadd.f32 %v3448_v49, %v3397_v41 }
 0x785   :  { %v3574_v61 = vpop.f32.mrf.mxu0  ;;  %v3637_v22 = vpop.f32.mrf.mxu1 }
 0x786   :  { %v3523_v52 = vadd.f32 %v3511_v15, %v3460_v8  ;;  %v3648_v15 = vadd.f32 %v3634_v48, %v3585_v20 }
 0x788   :  { %v3586_v1 = vadd.f32 %v3574_v61, %v3523_v52 }
 0x78a   :  { %v3649_v14 = vadd.f32 %v3637_v22, %v3586_v1 }
 0x78b   :  { %v3450_v9 = vpop.f32.mrf.mxu2  ;;  %v3518_v40 = vpop.f32.mrf.mxu3 }
 0x78c   :  { %v3461_v63 = vadd.f32 %v3450_v9, %v3398_v45 }
 0x78d   :  { %v3576_v24 = vpop.f32.mrf.mxu0  ;;  %v3639_v36 = vpop.f32.mrf.mxu1 }
 0x78e   :  { %v3524_v57 = vadd.f32 %v3513_v56, %v3461_v63 }
 0x793   :  { %v3453_v18 = vpop.f32.mrf.mxu2  ;;  %v3758_v55 = vpop.f32.mrf.mxu3 }
 0x794   :  { %v3462_v60 = vadd.f32 %v3453_v18, %v3399_v29 }
 0x795   :  { %v3579_v54 = vpop.f32.mrf.mxu0  ;;  %v3642_v44 = vpop.f32.mrf.mxu1 }
 0x796   :  { %v3525_v41 = vadd.f32 %v3516_v17, %v3462_v60 }
 0x798   :  { %v3588_v0 = vadd.f32 %v3579_v54, %v3525_v41 }
 0x79a   :  { %v3651_v39 = vadd.f32 %v3642_v44, %v3588_v0 }
 0x79b   :  { %v3455_v2 = vpop.f32.mrf.mxu2  ;;  %v3760_v37 = vpop.f32.mrf.mxu3 }
 0x79c   :  { %v3463_v19 = vadd.f32 %v3455_v2, %v3400_v21 }
 0x79d   :  { %v3581_v7 = vpop.f32.mrf.mxu0  ;;  %v3644_v32 = vpop.f32.mrf.mxu1 }
 0x79e   :  { %v3526_v12 = vadd.f32 %v3518_v40, %v3463_v19  ;;  %v3587_v40 = vadd.f32 %v3576_v24, %v3524_v57 }
 0x7a0   :  { %v3650_v18 = vadd.f32 %v3639_v36, %v3587_v40  ;;  %v3589_v19 = vadd.f32 %v3581_v7, %v3526_v12 }
 0x7a2   :  { %v3652_v20 = vadd.f32 %v3644_v32, %v3589_v19 }
 0x7a3   :  { %v3695_v35 = vpop.f32.mrf.mxu2  ;;  %v3763_v28 = vpop.f32.mrf.mxu3 }
 0x7a4   :  { %v3710_v5 = vadd.f32 %v3695_v35, %v3647_v13 }
 0x7a5   :  { %v3821_v30 = vpop.f32.mrf.mxu0  ;;  %v3884_v46 = vpop.f32.mrf.mxu1 }
 0x7a6   :  { %v3773_v29 = vadd.f32 %v3758_v55, %v3710_v5 }
 0x7a8   :  { %v3836_v50 = vadd.f32 %v3821_v30, %v3773_v29 }
 0x7aa   :  { %v3899_v62 = vadd.f32 %v3884_v46, %v3836_v50 }
 0x7ab   :  { %v3697_v25 = vpop.f32.mrf.mxu2  ;;  %v3765_v59 = vpop.f32.mrf.mxu3 }
 0x7ac   :  { %v3711_v42 = vadd.f32 %v3697_v25, %v3648_v15 }
 0x7ad   :  { %v3823_v47 = vpop.f32.mrf.mxu0  ;;  %v3886_v43 = vpop.f32.mrf.mxu1 }
 0x7ae   :  { %v3774_v51 = vadd.f32 %v3760_v37, %v3711_v42 }
 0x7b0   :  { %v3837_v29 = vadd.f32 %v3823_v47, %v3774_v51 }
 0x7b3   :  { %v3700_v53 = vpop.f32.mrf.mxu2  ;;  %v3768_v11 = vpop.f32.mrf.mxu3 }
 0x7b4   :  { %v3712_v27 = vadd.f32 %v3700_v53, %v3649_v14  ;;  %v3900_v53 = vadd.f32 %v3886_v43, %v3837_v29 }
 0x7b5   :  { %v3826_v33 = vpop.f32.mrf.mxu0  ;;  %v3889_v10 = vpop.f32.mrf.mxu1 }
 0x7b6   :  { %v3775_v4 = vadd.f32 %v3763_v28, %v3712_v27 }
 0x7b8   :  { %v3838_v13 = vadd.f32 %v3826_v33, %v3775_v4 }
 0x7ba   :  { %v10953_v56 = vadd.f32 %v3889_v10, %v3838_v13 }
 0x7bb   :  { %v3702_v16 = vpop.f32.mrf.mxu2  ;;  %v3770_v48 = vpop.f32.mrf.mxu3 }
 0x7bc   :  { %v3713_v54 = vadd.f32 %v3702_v16, %v3650_v18 }
 0x7bd   :  { %v3828_v3 = vpop.f32.mrf.mxu0  ;;  %v3891_v58 = vpop.f32.mrf.mxu1 }
 0x7be   :  { %v3776_v23 = vadd.f32 %v3765_v59, %v3713_v54 }
 0x7c0   :  { %v3839_v2 = vadd.f32 %v3828_v3, %v3776_v23 }
 0x7c2   :  { %v3902_v28 = vadd.f32 %v3891_v58, %v3839_v2 }
 0x7c3   :  { %v3705_v49 = vpop.f32.mrf.mxu2  ;;  %v4010_v61 = vpop.f32.mrf.mxu3 }
 0x7c4   :  { %v3714_v37 = vadd.f32 %v3705_v49, %v3651_v39 }
 0x7c5   :  { %v3831_v17 = vpop.f32.mrf.mxu0  ;;  %v3894_v8 = vpop.f32.mrf.mxu1 }
 0x7c6   :  { %v3777_v5 = vadd.f32 %v3768_v11, %v3714_v37 }
 0x7c8   :  { %v3840_v50 = vadd.f32 %v3831_v17, %v3777_v5  ;;  %v8397_v5 = vld [vmem:[%s12558_s29 + $0xd4] sm:$0x30] }
 0x7ca   :  { %v3903_v27 = vadd.f32 %v3894_v8, %v3840_v50  ;;  %v8391_v50 = vld [vmem:[%s12558_s29 + $0xac] sm:$0xf] }
 0x7cb   :  { %v3707_v22 = vpop.f32.mrf.mxu2  ;;  %v4012_v45 = vpop.f32.mrf.mxu3 }
 0x7cc   :  { %v3715_v15 = vadd.f32 %v3707_v22, %v3652_v20 }
 0x7cd   :  { %v3833_v6 = vpop.f32.mrf.mxu0  ;;  %v3896_v52 = vpop.f32.mrf.mxu1 }
 0x7ce   :  { %v3778_v33 = vadd.f32 %v3770_v48, %v3715_v15  ;;  %v8221_v15 = vld [vmem:[%s12558_s29 + $0xb8] sm:$0xf0] }
 0x7d0   :  { %v3841_v51 = vadd.f32 %v3833_v6, %v3778_v33  ;;  %v8224_v33 = vor.u32 %v8391_v50, %v8221_v15 }
 0x7d2   :  { %v3904_v58 = vadd.f32 %v3896_v52, %v3841_v51 }
 0x7d3   :  { %v3947_v1 = vpop.f32.mrf.mxu2  ;;  %v4015_v44 = vpop.f32.mrf.mxu3 }
 0x7d4   :  { %v3962_v30 = vadd.f32 %v3947_v1, %v3899_v62 }
 0x7d5   :  { %v4073_v14 = vpop.f32.mrf.mxu0  ;;  %v4136_v9 = vpop.f32.mrf.mxu1 }
 0x7d6   :  { %v4025_v42 = vadd.f32 %v4010_v61, %v3962_v30  ;;  %v8395_v30 = vld [vmem:[%s12558_s29 + $0xcc] sm:$0xf] }
 0x7d8   :  { %v4088_v7 = vadd.f32 %v4073_v14, %v4025_v42 }
 0x7da   :  { %v10959_v13 = vadd.f32 %v4136_v9, %v4088_v7  ;;  %v8211_v7 = vld [vmem:[%s12558_s29 + $0x88] sm:$0xf] }
 0x7db   :  { %v3949_v63 = vpop.f32.mrf.mxu2  ;;  %v4017_v35 = vpop.f32.mrf.mxu3 }
 0x7dc   :  { %v3963_v62 = vadd.f32 %v3949_v63, %v3900_v53  ;;  %v4158_v17 = vsel %vm4157_vm15, %v10959_v13, 0.0 }
 0x7dd   :  { %v4075_v55 = vpop.f32.mrf.mxu0  ;;  %v4138_v60 = vpop.f32.mrf.mxu1 }
 0x7de   :  { %v4026_v16 = vadd.f32 %v4012_v45, %v3963_v62 }
 0x7e0   :  { %v4089_v8 = vadd.f32 %v4075_v55, %v4026_v16  ;;  %v8203_v16 = vld [vmem:[%s12558_s29 + $0x68] sm:$0xf] }
 0x7e2   :  { %v10968_v9 = vadd.f32 %v4138_v60, %v4089_v8 }
 0x7e3   :  { %v3952_v41 = vpop.f32.mrf.mxu2  ;;  %v4020_v12 = vpop.f32.mrf.mxu3 }
 0x7e4   :  { %v3964_v61 = vadd.f32 %v3952_v41, %v10953_v56  ;;  %v4161_v55 = vsel %vm4157_vm15, %v10968_v9, 0.0 }
 0x7e5   :  { %v4078_v0 = vpop.f32.mrf.mxu0  ;;  %v4141_v21 = vpop.f32.mrf.mxu1 }
 0x7e6   :  { %v4027_v52 = vadd.f32 %v4015_v44, %v3964_v61  ;;  %v9007_v44 = vmov 4.0  }
 0x7e7   :  { %8784 = vrcp.f32 %v9007_v44 }
 0x7e8   :  { %v4090_v54 = vadd.f32 %v4078_v0, %v4027_v52 }
 0x7ea   :  { %v10976_v23 = vadd.f32 %v4141_v21, %v4090_v54  ;;  %v8227_v21 = vld [vmem:[%s12558_s29 + $0xc8] sm:$0xf] }
 0x7eb   :  { %v3954_v46 = vpop.f32.mrf.mxu2  ;;  %v4022_v1 = vpop.f32.mrf.mxu3  ;;  %v8228_v20 = vor.u32 %v8397_v5, %v8227_v21 }
 0x7ec   :  { %v3965_v24 = vadd.f32 %v3954_v46, %v3902_v28  ;;  %v4164_v60 = vsel %vm4157_vm15, %v10976_v23, 0.0 }
 0x7ed   :  { %v4080_v57 = vpop.f32.mrf.mxu0  ;;  %v4143_v36 = vpop.f32.mrf.mxu1  ;;  %v4614_v42 = vsel %vm544_vm0, %v8228_v20, 0  ;;  %v8179_v20 = vld [vmem:[%s12558_s29 + $0x8] sm:$0xf] }
 0x7ee   :  { %v4028_v25 = vadd.f32 %v4017_v35, %v3965_v24  ;;  %v8785_v41 = vpop.eup %8784  ;;  %v8229_v24 = vld [vmem:[%s12558_s29 + $0xd8] sm:$0x30]  ;;  %4620 = vmatpush.bf16.msra.mxu0 %v4614_v42 }
 0x7ef   :  { %v4177_v2 = vmul.f32 4.0, %v8785_v41  ;;  %vm4181_vm2 = vweird.f32 %v8785_v41  ;;  %v8232_v29 = vor.u32 %v8395_v30, %v8229_v24  ;;  %v8181_v24 = vld [vmem:[%s12558_s29 + $0x18] sm:$0xf0] }
 0x7f0   :  { %v4091_v59 = vadd.f32 %v4080_v57, %v4028_v25  ;;  %v8219_v57 = vld [vmem:[%s12558_s29 + $0xa8] sm:$0xf] }
 0x7f1   :  { %v4178_v37 = vsub.f32 1.0, %v4177_v2  ;;  %v8377_v2 = vld [vmem:[%s12558_s29 + $0x34] sm:$0xf0] }
 0x7f2   :  { %v10955_v39 = vadd.f32 %v4143_v36, %v4091_v59  ;;  %v8393_v36 = vld [vmem:[%s12558_s29 + $0xb4] sm:$0xf0]  ;;  %v4617_v59 = vsel %vm544_vm0, %v8232_v29, 0 }
 0x7f3   :  { %v3957_v10 = vpop.f32.mrf.mxu2  ;;  %v4179_v0 = vmul.f32 %v8785_v41, %v4178_v37  ;;  %v8220_v53 = vor.u32 %v8393_v36, %v8219_v57  ;;  %4638 = vmatpush.bf16.msra.mxu1 %v4617_v59  ;;  %v8375_v37 = vld [vmem:[%s12558_s29 + $0x2c] sm:$0xf] }
 0x7f4   :  { %v3966_v32 = vadd.f32 %v3957_v10, %v3903_v27  ;;  %v4167_v4 = vsel %vm4157_vm15, %v10955_v39, 0.0  ;;  %v8213_v10 = vld [vmem:[%s12558_s29 + $0x98] sm:$0xf0] }
 0x7f5   :  { %v4083_v47 = vpop.f32.mrf.mxu0  ;;  %4168 = vadd.xlane.f32.xlu2 %v4167_v4  ;;  %v4146_v43 = vpop.f32.mrf.mxu1  ;;  %v4180_v19 = vadd.f32 %v8785_v41, %v4179_v0  ;;  %4621 = vmatpush.bf16.msra.mxu0 %v8220_v53  ;;  %v8189_v0 = vld [vmem:[%s12558_s29 + $0x38] sm:$0xf0] }
 0x7f6   :  { %v4029_v11 = vadd.f32 %v4020_v12, %v3966_v32  ;;  %v8387_v12 = vld [vmem:[%s12558_s29 + $0x8c] sm:$0xf] }
 0x7f7   :  { %v10980_v35 = vsel %vm4181_vm2, %v8785_v41, %v4180_v19  ;;  %4639 = vmatpush.bf16.msra.mxu1 %v8224_v33  ;;  %v8187_v41 = vld [vmem:[%s12558_s29 + $0x28] sm:$0xf]  ;;  %v8828_v33 = vld [vmem:[%s12559_s30] sm:$0xff]  ;;  %s12744_s30 = smov 34  }
 0x7f8   :  { %v4092_v3 = vadd.f32 %v4083_v47, %v4029_v11  ;;  %v8188_v21 = vor.u32 %v8377_v2, %v8187_v41 }
 0x7fa   :  { %v10961_v48 = vadd.f32 %v4146_v43, %v4092_v3  ;;  %v8216_v43 = vor.u32 %v8387_v12, %v8213_v10  ;;  %v8385_v3 = vld [vmem:[%s12558_s29 + $0x74] sm:$0xf0] }
 0x7fb   :  { %v3959_v49 = vpop.f32.mrf.mxu2  ;;  %v12650_v12 = vld [vmem:[#allocation18_spill] sm:$0xff]  ;;  %v12651_v10 = vld [vmem:[#allocation21_spill] sm:$0xff] }
 0x7fc   :  { %v3967_v22 = vadd.f32 %v3959_v49, %v3904_v58  ;;  %v4170_v6 = vsel %vm4157_vm15, %v10961_v48, 0.0  ;;  %v8383_v58 = vld [vmem:[%s12558_s29 + $0x6c] sm:$0xf]  ;;  %v8205_v49 = vld [vmem:[%s12558_s29 + $0x78] sm:$0xf0]  ;;  %4640 = vmatpush.bf16.msra.mxu1 %v8216_v43  ;;  %v12658_v43 = vld [vmem:[#allocation33_spill] sm:$0xff] }
 0x7fd   :  { %4171 = vadd.xlane.f32.xlu1 %v4170_v6  ;;  %4159 = vadd.xlane.f32.xlu2 %v4158_v17  ;;  %v4085_v45 = vpop.f32.mrf.mxu0  ;;  %v4148_v63 = vpop.f32.mrf.mxu1  ;;  %v8204_v6 = vor.u32 %v8385_v3, %v8203_v16  ;;  %v12659_v16 = vld [vmem:[#allocation34_spill] sm:$0xff]  ;;  %v12660_v3 = vld [vmem:[#allocation37_spill] sm:$0xff] }
 0x7fe   :  { %v4030_v14 = vadd.f32 %v4022_v1, %v3967_v22  ;;  %v8208_v1 = vor.u32 %v8383_v58, %v8205_v49  ;;  %v12661_v58 = vld [vmem:[#allocation38_spill] sm:$0xff]  ;;  %v12662_v49 = vld [vmem:[#allocation41_spill] sm:$0xff] }
 0x800   :  { %v4093_v40 = vadd.f32 %v4085_v45, %v4030_v14  ;;  %v8195_v14 = vld [vmem:[%s12558_s29 + $0x48] sm:$0xf]  ;;  %v8197_v45 = vld [vmem:[%s12558_s29 + $0x58] sm:$0xf0]  ;;  %4641 = vmatpush.bf16.msra.mxu1 %v8208_v1 }
 0x801   :  { %v12666_v1 = vld [vmem:[#allocation51_spill] sm:$0xff] }
 0x802   :  { %v10970_v18 = vadd.f32 %v4148_v63, %v4093_v40 }
 0x804   :  { %v4173_v56 = vsel %vm4157_vm15, %v10970_v18, 0.0 }
 0x805   :  { %4174 = vadd.xlane.f32.xlu0 %v4173_v56  ;;  %4162 = vadd.xlane.f32.xlu1 %v4161_v55 }
 0x80d   :  { %4165 = vadd.xlane.f32.xlu0 %v4164_v60 }
 0x868   :  { %v4169_v28 = vpop.xlane.xlu2 %4168 }
 0x869   :  { %v4186_v46 = vmul.f32 %v10980_v35, %v4169_v28 }
 0x86b   :  { %v11008_v25 = vsub.f32 %v10955_v39, %v4186_v46  ;;  %v8389_v39 = vld [vmem:[%s12558_s29 + $0x94] sm:$0xf0]  ;;  %v8192_v46 = vor.u32 %v8375_v37, %v8189_v0 }
 0x86c   :  { %v8212_v47 = vor.u32 %v8389_v39, %v8211_v7  ;;  %v12646_v7 = vld [vmem:[#allocation10_spill] sm:$0xff]  ;;  %v12647_v39 = vld [vmem:[#allocation13_spill] sm:$0xff] }
 0x86d   :  { %v4198_v27 = vmul.f32 %v11008_v25, %v11008_v25 }
 0x86e   :  { %4622 = vmatpush.bf16.msra.mxu0 %v8212_v47  ;;  %v12655_v47 = vld [vmem:[#allocation26_spill] sm:$0xff] }
 0x86f   :  { %v4210_v62 = vsel %vm4157_vm15, %v4198_v27, 0.0 }
 0x870   :  { %v4172_v32 = vpop.xlane.xlu1 %4171  ;;  %4211 = vadd.xlane.f32.xlu2 %v4210_v62  ;;  %v4160_v4 = vpop.xlane.xlu2 %4159  ;;  %v12652_v62 = vld [vmem:[#allocation22_spill] sm:$0xff] }
 0x871   :  { %v4187_v51 = vmul.f32 %v10980_v35, %v4172_v32  ;;  %v4183_v11 = vmul.f32 %v10980_v35, %v4160_v4  ;;  %v12653_v32 = vld [vmem:[#allocation3_spill] sm:$0xff]  ;;  %v12654_v4 = vld [vmem:[#allocation25_spill] sm:$0xff] }
 0x872   :  { %4623 = vmatpush.bf16.msra.mxu0 %v8204_v6  ;;  %v12665_v6 = vld [vmem:[#allocation47_spill] sm:$0xff] }
 0x873   :  { %v11042_v17 = vsub.f32 %v10961_v48, %v4187_v51  ;;  %v11045_v8 = vsub.f32 %v10959_v13, %v4183_v11  ;;  %v8381_v48 = vld [vmem:[%s12558_s29 + $0x54] sm:$0xf0]  ;;  %v8379_v13 = vld [vmem:[%s12558_s29 + $0x4c] sm:$0xf] }
 0x874   :  { %v8196_v56 = vor.u32 %v8381_v48, %v8195_v14  ;;  %v8200_v44 = vor.u32 %v8379_v13, %v8197_v45  ;;  %v12656_v51 = vld [vmem:[#allocation29_spill] sm:$0xff]  ;;  %v12657_v11 = vld [vmem:[#allocation30_spill] sm:$0xff]  ;;  %v12667_v14 = vld [vmem:[#allocation52_spill] sm:$0xff] }
 0x875   :  { %v4199_v61 = vmul.f32 %v11042_v17, %v11042_v17  ;;  %v4195_v22 = vmul.f32 %v11045_v8, %v11045_v8  ;;  %v12668_v48 = vld [vmem:[#allocation57_spill] sm:$0xff]  ;;  %v12669_v13 = vld [vmem:[#allocation58_spill] sm:$0xff] }
 0x876   :  { %4624 = vmatpush.bf16.msra.mxu0 %v8196_v56  ;;  %4642 = vmatpush.bf16.msra.mxu1 %v8200_v44  ;;  %v12670_v45 = vld [vmem:[#allocation61_spill] sm:$0xff]  ;;  %v12675_v56 = vld [vmem:[#allocation70_spill] sm:$0xff] }
 0x877   :  { %v4213_v52 = vsel %vm4157_vm15, %v4199_v61, 0.0  ;;  %v4201_v40 = vsel %vm4157_vm15, %v4195_v22, 0.0  ;;  %v12663_v61 = vld [vmem:[#allocation42_spill] sm:$0xff] }
 0x878   :  { %v4175_v63 = vpop.xlane.xlu0 %4174  ;;  %4214 = vadd.xlane.f32.xlu1 %v4213_v52  ;;  %v4163_v54 = vpop.xlane.xlu1 %4162  ;;  %4202 = vadd.xlane.f32.xlu2 %v4201_v40  ;;  %v12664_v22 = vld [vmem:[#allocation46_spill] sm:$0xff]  ;;  %v12672_v40 = vld [vmem:[#allocation65_spill] sm:$0xff] }
 0x879   :  { %v4188_v55 = vmul.f32 %v10980_v35, %v4175_v63  ;;  %v4184_v60 = vmul.f32 %v10980_v35, %v4163_v54  ;;  %v12671_v52 = vld [vmem:[#allocation62_spill] sm:$0xff]  ;;  %v12674_v54 = vld [vmem:[#allocation69_spill] sm:$0xff] }
 0x87a   :  { %4625 = vmatpush.bf16.msra.mxu0 %v8188_v21  ;;  %4643 = vmatpush.bf16.msra.mxu1 %v8192_v46  ;;  %v12673_v63 = vld [vmem:[#allocation66_spill] sm:$0xff] }
 0x87b   :  { %v11080_v19 = vsub.f32 %v10970_v18, %v4188_v55  ;;  %v11083_v28 = vsub.f32 %v10968_v9, %v4184_v60  ;;  %v8373_v18 = vld [vmem:[%s12558_s29 + $0x14] sm:$0xf0]  ;;  %v8371_v9 = vld [vmem:[%s12558_s29 + $0xc] sm:$0xf]  ;;  %s12741_s29 = smov 109  }
 0x87c   :  { %v8180_v15 = vor.u32 %v8373_v18, %v8179_v20  ;;  %v8184_v42 = vor.u32 %v8371_v9, %v8181_v24 }
 0x87d   :  { %v4200_v5 = vmul.f32 %v11080_v19, %v11080_v19  ;;  %v4196_v30 = vmul.f32 %v11083_v28, %v11083_v28 }
 0x87e   :  { %4626 = vmatpush.bf16.msra.mxu0 %v8180_v15  ;;  %4644 = vmatpush.bf16.msra.mxu1 %v8184_v42 }
 0x87f   :  { %v4216_v57 = vsel %vm4157_vm15, %v4200_v5, 0.0  ;;  %v4204_v36 = vsel %vm4157_vm15, %v4196_v30, 0.0 }
 0x880   :  { %4217 = vadd.xlane.f32.xlu0 %v4216_v57  ;;  %v4166_v29 = vpop.xlane.xlu0 %4165  ;;  %4205 = vadd.xlane.f32.xlu1 %v4204_v36 }
 0x881   :  { %v4185_v50 = vmul.f32 %v10980_v35, %v4166_v29  ;;  %8233 = vmatmul.msk.bf16.vlgmr.msra.gmra.mxu0 %vm537_vm1, %v8828_v33  ;;  %8235 = vmatmul.msk.bf16.vlgmr.msra.gmra.mxu1 %vm537_vm1, %v8828_v33 }
 0x882   :  { %4800 = vmatpush.bf16.msrb.mxu0 %v9257_v31  ;;  %4818 = vmatpush.bf16.msrb.mxu1 %v9266_v34  ;;  %v12648_v31 = vld [vmem:[#allocation14_spill] sm:$0xff]  ;;  %v12649_v34 = vld [vmem:[#allocation17_spill] sm:$0xff] }
 0x883   :  { %v11105_v59 = vsub.f32 %v10976_v23, %v4185_v50  ;;  %v12645_v23 = vld [vmem:[#allocation9_spill] sm:$0xff] }
 0x885   :  { %v4197_v53 = vmul.f32 %v11105_v59, %v11105_v59 }
 0x886   :  { %4801 = vmatpush.bf16.msrb.mxu0 %v12645_v23  ;;  %4819 = vmatpush.bf16.msrb.mxu1 %v12646_v7 }
 0x887   :  { %v4207_v27 = vsel %vm4157_vm15, %v4197_v53, 0.0 }
 0x888   :  { %4208 = vadd.xlane.f32.xlu0 %v4207_v27 }
 0x88a   :  { %4802 = vmatpush.bf16.msrb.mxu0 %v12647_v39  ;;  %4820 = vmatpush.bf16.msrb.mxu1 %v12648_v31 }
 0x88e   :  { %4803 = vmatpush.bf16.msrb.mxu0 %v12649_v34  ;;  %4821 = vmatpush.bf16.msrb.mxu1 %v12650_v12 }
 0x891   :  { %8234 = vmatmul.msk.bf16.gmra.mxu0 %vm537_vm1, %v12653_v32  ;;  %8236 = vmatmul.msk.bf16.gmra.mxu1 %vm537_vm1, %v12653_v32 }
 0x892   :  { %4804 = vmatpush.bf16.msrb.mxu0 %v12651_v10  ;;  %4822 = vmatpush.bf16.msrb.mxu1 %v12652_v62 }
 0x896   :  { %4805 = vmatpush.bf16.msrb.mxu0 %v12654_v4  ;;  %4823 = vmatpush.bf16.msrb.mxu1 %v12655_v47 }
 0x89a   :  { %4806 = vmatpush.bf16.msrb.mxu0 %v12656_v51  ;;  %4824 = vmatpush.bf16.msrb.mxu1 %v12657_v11 }
 0x89e   :  { %4807 = vmatpush.bf16.msrb.mxu0 %v12658_v43  ;;  %4825 = vmatpush.bf16.msrb.mxu1 %v12659_v16 }
 0x8a2   :  { %4872 = vmatpush.bf16.msra.mxu0 %v12660_v3  ;;  %4890 = vmatpush.bf16.msra.mxu1 %v12661_v58 }
 0x8a6   :  { %4873 = vmatpush.bf16.msra.mxu0 %v12662_v49  ;;  %4891 = vmatpush.bf16.msra.mxu1 %v12663_v61 }
 0x8aa   :  { %4874 = vmatpush.bf16.msra.mxu0 %v12664_v22  ;;  %4892 = vmatpush.bf16.msra.mxu1 %v12665_v6 }
 0x8ae   :  { %4875 = vmatpush.bf16.msra.mxu0 %v12666_v1  ;;  %4893 = vmatpush.bf16.msra.mxu1 %v12667_v14  ;;  %v8760_v1 = vld [vmem:[%s12381_s11] ss:$0 sm:$0xff] }
 0x8b2   :  { %4876 = vmatpush.bf16.msra.mxu0 %v12668_v48  ;;  %4894 = vmatpush.bf16.msra.mxu1 %v12669_v13 }
 0x8b6   :  { %4877 = vmatpush.bf16.msra.mxu0 %v12670_v45  ;;  %4895 = vmatpush.bf16.msra.mxu1 %v12671_v52 }
 0x8ba   :  { %4878 = vmatpush.bf16.msra.mxu0 %v12672_v40  ;;  %4896 = vmatpush.bf16.msra.mxu1 %v12673_v63 }
 0x8be   :  { %4879 = vmatpush.bf16.msra.mxu0 %v12674_v54  ;;  %4897 = vmatpush.bf16.msra.mxu1 %v12675_v56 }
 0x8e3   :  { %v4212_v55 = vpop.xlane.xlu2 %4211 }
 0x8e4   :  { %v4222_v60 = vmul.f32 %v4212_v55, %v10980_v35 }
 0x8e6   :  { %v4228_v44 = vadd.f32 1e-05, %v4222_v60 }
 0x8e8   :  { %8786 = vrsqrt.f32 %v4228_v44  ;;  %vm4267_vm12 = vweird.f32 %v4228_v44 }
 0x8eb   :  { %v4215_v41 = vpop.xlane.xlu1 %4214  ;;  %v4203_v2 = vpop.xlane.xlu2 %4202 }
 0x8ec   :  { %v4223_v37 = vmul.f32 %v4215_v41, %v10980_v35  ;;  %v4219_v0 = vmul.f32 %v4203_v2, %v10980_v35 }
 0x8ee   :  { %v8787_v21 = vpop.eup %8786  ;;  %v4229_v5 = vadd.f32 1e-05, %v4223_v37  ;;  %v4225_v30 = vadd.f32 1e-05, %v4219_v0 }
 0x8ef   :  { %v4262_v46 = vmul.f32 %v8787_v21, %v4228_v44  ;;  %vm4268_vm1 = vweird.f32 %v8787_v21 }
 0x8f0   :  { %8788 = vrsqrt.f32 %v4229_v5  ;;  %vm4277_vm3 = vweird.f32 %v4229_v5  ;;  %vm4269_vm13 = vmor %vm4267_vm12, %vm4268_vm1  ;;  %vm4237_vm2 = vweird.f32 %v4225_v30 }
 0x8f1   :  { %8790 = vrsqrt.f32 %v4225_v30  ;;  %v4263_v20 = vmul.f32 %v8787_v21, %v4262_v46 }
 0x8f3   :  { %v4218_v18 = vpop.xlane.xlu0 %4217  ;;  %v4206_v9 = vpop.xlane.xlu1 %4205  ;;  %v4264_v42 = vmul.f32 0.5, %v4263_v20 }
 0x8f4   :  { %v4224_v24 = vmul.f32 %v4218_v18, %v10980_v35  ;;  %v4220_v57 = vmul.f32 %v4206_v9, %v10980_v35 }
 0x8f5   :  { %v4265_v7 = vsub.f32 1.5, %v4264_v42 }
 0x8f6   :  { %v8789_v36 = vpop.eup %8788  ;;  %v4230_v29 = vadd.f32 1e-05, %v4224_v24  ;;  %v4226_v50 = vadd.f32 1e-05, %v4220_v57 }
 0x8f7   :  { %v11156_v15 = vpop.eup %8790  ;;  %v4272_v53 = vmul.f32 %v8789_v36, %v4229_v5  ;;  %vm4278_vm0 = vweird.f32 %v8789_v36  ;;  %v4266_v47 = vmul.f32 %v8787_v21, %v4265_v7 }
 0x8f8   :  { %v4232_v27 = vmul.f32 %v11156_v15, %v4225_v30  ;;  %8792 = vrsqrt.f32 %v4230_v29  ;;  %vm4279_vm11 = vmor %vm4277_vm3, %vm4278_vm0  ;;  %vm4238_vm14 = vweird.f32 %v11156_v15 }
 0x8f9   :  { %v4273_v33 = vmul.f32 %v8789_v36, %v4272_v53  ;;  %8794 = vrsqrt.f32 %v4226_v50  ;;  %v4270_v22 = vsel %vm4269_vm13, %v8787_v21, %v4266_v47  ;;  %vm11168_vm3 = vmor %vm4237_vm2, %vm4238_vm14  ;;  %vm4247_vm13 = vweird.f32 %v4226_v50 }
 0x8fa   :  { %v4233_v23 = vmul.f32 %v11156_v15, %v4232_v27  ;;  %v4294_v52 = vmul.f32 %v4270_v22, %v11008_v25  ;;  %v8761_v25 = vld [vmem:[%s12382_s12] ss:$0 sm:$0xff] }
 0x8fb   :  { %v4274_v39 = vmul.f32 0.5, %v4273_v33  ;;  %v4209_v31 = vpop.xlane.xlu0 %4208 }
 0x8fc   :  { %v4234_v34 = vmul.f32 0.5, %v4233_v23  ;;  %v4221_v12 = vmul.f32 %v4209_v31, %v10980_v35  ;;  %v4303_v21 = vmul.f32 %v8760_v1, %v4294_v52  ;;  %v11216_v52 = vld [vmem:[%s12384_s1 + $0x28] sm:$0xff] }
 0x8fd   :  { %v4275_v10 = vsub.f32 1.5, %v4274_v39  ;;  %12678 = vst [vmem:[#allocation9_spill] sm:$0xff] %v11216_v52 }
 0x8fe   :  { %v8793_v62 = vpop.eup %8792  ;;  %v4227_v32 = vadd.f32 1e-05, %v4221_v12  ;;  %v4235_v43 = vsub.f32 1.5, %v4234_v34 }
 0x8ff   :  { %v8795_v4 = vpop.eup %8794  ;;  %v4276_v51 = vmul.f32 %v8789_v36, %v4275_v10  ;;  %v4282_v11 = vmul.f32 %v8793_v62, %v4230_v29  ;;  %vm4288_vm0 = vweird.f32 %v8793_v62 }
 0x900   :  { %v4242_v16 = vmul.f32 %v8795_v4, %v4226_v50  ;;  %8796 = vrsqrt.f32 %v4227_v32  ;;  %v4236_v14 = vmul.f32 %v11156_v15, %v4235_v43  ;;  %vm4248_vm1 = vweird.f32 %v8795_v4 }
 0x901   :  { %v4280_v3 = vsel %vm4279_vm11, %v8789_v36, %v4276_v51  ;;  %v4283_v58 = vmul.f32 %v8793_v62, %v4282_v11  ;;  %vm4287_vm11 = vweird.f32 %v4230_v29  ;;  %vm4249_vm10 = vmor %vm4247_vm13, %vm4248_vm1  ;;  %v4312_v36 = vadd.f32 %v8761_v25, %v4303_v21  ;;  %v11186_v51 = vpop.f32.mrf.mxu0  ;;  %v11188_v11 = vpop.f32.mrf.mxu1 }
 0x902   :  { %v4295_v49 = vmul.f32 %v4280_v3, %v11042_v17  ;;  %v4243_v61 = vmul.f32 %v8795_v4, %v4242_v16  ;;  %v4240_v55 = vsel %vm11168_vm3, %v11156_v15, %v4236_v14  ;;  %vm4289_vm12 = vmor %vm4287_vm11, %vm4288_vm0  ;;  %vm4257_vm2 = vweird.f32 %v4227_v32  ;;  %v453_v14 = vld [vmem:[%s12383_s13] sm:$0xf] }
 0x903   :  { %v4284_v6 = vmul.f32 0.5, %v4283_v58  ;;  %v4291_v5 = vmul.f32 %v4240_v55, %v11045_v8  ;;  %v4324_v27 = vmul.f32 0.1, %v4312_v36  ;;  %vm4318_vm3 = vcmp.gt.f32.partialorder %v4312_v36, 0.0 }
 0x904   :  { %v4244_v48 = vmul.f32 0.5, %v4243_v61  ;;  %v4304_v40 = vmul.f32 %v8760_v1, %v4295_v49  ;;  %v4655_v22 = vadd.f32 %v11188_v11, %v11186_v51 }
 0x905   :  { %v4285_v13 = vsub.f32 1.5, %v4284_v6  ;;  %v4300_v29 = vmul.f32 %v8760_v1, %v4291_v5  ;;  %v4330_v31 = vsel %vm4318_vm3, %v4312_v36, %v4324_v27  ;;  %v457_v27 = vld [vmem:[%s12385_s14] sm:$0xf] }
 0x906   :  { %v8797_v45 = vpop.eup %8796  ;;  %v4245_v17 = vsub.f32 1.5, %v4244_v48  ;;  %v4313_v0 = vadd.f32 %v8761_v25, %v4304_v40  ;;  %v11221_v40 = vld [vmem:[%s12384_s1 + $0x20] sm:$0xff] }
 0x907   :  { %v4286_v54 = vmul.f32 %v8793_v62, %v4285_v13  ;;  %v4252_v56 = vmul.f32 %v8797_v45, %v4227_v32  ;;  %vm4258_vm14 = vweird.f32 %v8797_v45  ;;  %v4309_v23 = vadd.f32 %v8761_v25, %v4300_v29  ;;  %12679 = vst [vmem:[#allocation10_spill] sm:$0xff] %v11221_v40 }
 0x908   :  { %v4246_v60 = vmul.f32 %v8795_v4, %v4245_v17  ;;  %v4325_v57 = vmul.f32 0.1, %v4313_v0  ;;  %vm4319_vm0 = vcmp.gt.f32.partialorder %v4313_v0, 0.0  ;;  %vm4259_vm1 = vmor %vm4257_vm2, %vm4258_vm14  ;;  %vm4489_vm14 = vcmask 523264  }
 0x909   :  { %v4290_v44 = vsel %vm4289_vm12, %v8793_v62, %v4286_v54  ;;  %v4253_v41 = vmul.f32 %v8797_v45, %v4252_v56  ;;  %v4321_v12 = vmul.f32 0.1, %v4309_v23  ;;  %vm4315_vm13 = vcmp.gt.f32.partialorder %v4309_v23, 0.0  ;;  %v11193_v43 = vpop.f32.mrf.mxu0  ;;  %v11195_v16 = vpop.f32.mrf.mxu1  ;;  %v11228_v54 = vld [vmem:[%s12384_s1 + $0x18] sm:$0xff]  ;;  %v11233_v56 = vld [vmem:[%s12384_s1 + $0x10] sm:$0xff] }
 0x90a   :  { %v4296_v2 = vmul.f32 %v4290_v44, %v11080_v19  ;;  %v4250_v37 = vsel %vm4249_vm10, %v8795_v4, %v4246_v60  ;;  %v4331_v53 = vsel %vm4319_vm0, %v4313_v0, %v4325_v57  ;;  %v4658_v6 = vadd.f32 %v11195_v16, %v11193_v43  ;;  %12680 = vst [vmem:[#allocation13_spill] sm:$0xff] %v11228_v54  ;;  %v11240_v44 = vld [vmem:[%s12384_s1 + $0x8] sm:$0xff] }
 0x90b   :  { %v4292_v30 = vmul.f32 %v4250_v37, %v11083_v28  ;;  %v4254_v46 = vmul.f32 0.5, %v4253_v41  ;;  %v4327_v4 = vsel %vm4315_vm13, %v4309_v23, %v4321_v12  ;;  %12681 = vst [vmem:[#allocation14_spill] sm:$0xff] %v11233_v56  ;;  %v11245_v41 = vld [vmem:[%s12384_s1] sm:$0xff]  ;;  %v456_v12 = vld [vmem:[%s12383_s13 + $0xc] sm:$0xf] }
 0x90c   :  { %v4305_v20 = vmul.f32 %v8760_v1, %v4296_v2  ;;  %12682 = vst [vmem:[#allocation17_spill] sm:$0xff] %v11240_v44 }
 0x90d   :  { %v4255_v18 = vsub.f32 1.5, %v4254_v46  ;;  %v4301_v9 = vmul.f32 %v8760_v1, %v4292_v30  ;;  %12683 = vst [vmem:[#allocation18_spill] sm:$0xff] %v11245_v41  ;;  %v97_v30 = vld [vmem:[%s12384_s1 + $0x38] sm:$0xff] }
 0x90e   :  { %v4314_v24 = vadd.f32 %v8761_v25, %v4305_v20  ;;  %v455_v20 = vld [vmem:[%s12383_s13 + $0x8] sm:$0xf] }
 0x90f   :  { %v4256_v50 = vmul.f32 %v8797_v45, %v4255_v18  ;;  %v4310_v42 = vadd.f32 %v8761_v25, %v4301_v9  ;;  %v96_v9 = vld [vmem:[%s12384_s1 + $0x30] sm:$0xff] }
 0x910   :  { %vm4320_vm10 = vcmp.gt.f32.partialorder %v4314_v24, 0.0  ;;  %v4326_v19 = vmul.f32 0.1, %v4314_v24 }
 0x911   :  { %v4260_v15 = vsel %vm4259_vm1, %v8797_v45, %v4256_v50  ;;  %v4322_v39 = vmul.f32 0.1, %v4310_v42  ;;  %vm4316_vm11 = vcmp.gt.f32.partialorder %v4310_v42, 0.0  ;;  %v11198_v3 = vpop.f32.mrf.mxu0  ;;  %v11200_v58 = vpop.f32.mrf.mxu1 }
 0x912   :  { %v4293_v8 = vmul.f32 %v4260_v15, %v11105_v59  ;;  %v4332_v28 = vsel %vm4320_vm10, %v4314_v24, %v4326_v19 }
 0x913   :  { %4346 = vmatpush.msrb.mxu2 %v4332_v28  ;;  %v8663_v33 = vpack.i.bf16 %v4331_v53, %v4332_v28  ;;  %v4328_v10 = vsel %vm4316_vm11, %v4310_v42, %v4322_v39  ;;  %v12684_v39 = vld [vmem:[#allocation6_spill] sm:$0xff] }
 0x914   :  { %v4302_v7 = vmul.f32 %v8760_v1, %v4293_v8  ;;  %v8668_v47 = vpack.i.bf16 %v4327_v4, %v4328_v10  ;;  %v4661_v1 = vadd.f32 %v11200_v58, %v11198_v3  ;;  %v454_v8 = vld [vmem:[%s12383_s13 + $0x4] sm:$0xf] }
 0x915   :  { %8664 = vrot.lane.b32.xlu1 %v8663_v33, %s9008_s26  ;;  %4347 = vmatpush.msrb.mxu2 %v4331_v53 }
 0x916   :  { %v4311_v34 = vadd.f32 %v8761_v25, %v4302_v7 }
 0x917   :  { %4348 = vmatpush.msrb.mxu2 %v4330_v31 }
 0x918   :  { %vm4317_vm12 = vcmp.gt.f32.partialorder %v4311_v34, 0.0  ;;  %v4323_v59 = vmul.f32 0.1, %v4311_v34 }
 0x919   :  { %v4635_v49 = vpop.f32.mrf.mxu0  ;;  %v4653_v61 = vpop.f32.mrf.mxu1 }
 0x91a   :  { %v4329_v62 = vsel %vm4317_vm12, %v4311_v34, %v4323_v59  ;;  %v12685_v59 = vld [vmem:[#allocation8_spill] sm:$0xff] }
 0x91b   :  { %4349 = vmatpush.msrb.mxu2 %v4329_v62  ;;  %v8653_v32 = vpack.i.bf16 %v4329_v62, %v4330_v31  ;;  %v12687_v62 = vld [vmem:[#allocation16_spill] sm:$0xff] }
 0x91c   :  { %v12690_v49 = vld [vmem:[#allocation28_spill] sm:$0xff] }
 0x91d   :  { %8654 = vrot.lane.b32.xlu0 %v8653_v32, %s9008_s26  ;;  %8649 = vrot.lane.b32.xlu2 %v8653_v32, %s9009_s2  ;;  %v12691_v61 = vld [vmem:[#allocation4_spill] sm:$0xff] }
 0x91e   :  { %4350 = vmatpush.msrb.mxu2 %v4328_v10  ;;  %8669 = vrot.lane.b32.xlu1 %v8668_v47, %s9009_s2  ;;  %v12686_v10 = vld [vmem:[#allocation12_spill] sm:$0xff] }
 0x920   :  { %4351 = vmatpush.msrb.mxu2 %v4327_v4  ;;  %v12689_v4 = vld [vmem:[#allocation24_spill] sm:$0xff] }
 0x921   :  { %8170 = vmatmul.msk.f32.vlgmr.msrb.gmra.mxu2 %vm3190_vm9, %v453_v14 }
 0x925   :  { %8659 = vrot.lane.b32.xlu0 %v8663_v33, %s9009_s2  ;;  %8674 = vrot.lane.b32.xlu2 %v8668_v47, %s9008_s26 }
 0x926   :  { %8679 = vrot.lane.b32.xlu1 %v8653_v32, %s9010_s28  ;;  %v12688_v32 = vld [vmem:[#allocation20_spill] sm:$0xff] }
 0x92d   :  { %8684 = vrot.lane.b32.xlu0 %v8663_v33, %s9010_s28 }
 0x935   :  { %8689 = vrot.lane.b32.xlu0 %v8668_v47, %s9010_s28 }
 0x94e   :  { %4656 = vadd.xlane.f32.xlu2 %v4655_v22 }
 0x950   :  { %4659 = vadd.xlane.f32.xlu1 %v4658_v6 }
 0x95f   :  { %4662 = vadd.xlane.f32.xlu0 %v4661_v1 }
 0x977   :  { %v8650_v48 = vpop.permute.xlu2 %8649 }
 0x978   :  { %v8651_v36 = vunpack.i.l.bf16 %v8650_v48  ;;  %v8652_v29 = vunpack.i.h.bf16 %v8650_v48 }
 0x97f   :  { %v8675_v2 = vpop.permute.xlu2 %8674 }
 0x980   :  { %v8676_v21 = vunpack.i.l.bf16 %v8675_v2  ;;  %v8677_v5 = vunpack.i.h.bf16 %v8675_v2 }
 0x987   :  { %v8665_v13 = vpop.permute.xlu1 %8664 }
 0x988   :  { %v8666_v45 = vunpack.i.l.bf16 %v8665_v13  ;;  %v8667_v17 = vunpack.i.h.bf16 %v8665_v13  ;;  %v12692_v13 = vld [vmem:[#allocation32_spill] sm:$0xff] }
 0x98a   :  { %4436 = vmatpush.msra.mxu2 %v8666_v45 }
 0x98c   :  { %4437 = vmatpush.msra.mxu2 %v8667_v17 }
 0x98f   :  { %v8655_v60 = vpop.permute.xlu0 %8654 }
 0x990   :  { %v8656_v25 = vunpack.i.l.bf16 %v8655_v60  ;;  %v8657_v0 = vunpack.i.h.bf16 %v8655_v60  ;;  %v8670_v24 = vpop.permute.xlu1 %8669 }
 0x991   :  { %v8671_v19 = vunpack.i.l.bf16 %v8670_v24  ;;  %v8672_v15 = vunpack.i.h.bf16 %v8670_v24 }
 0x992   :  { %4438 = vmatpush.msra.mxu2 %v8656_v25  ;;  %v12693_v25 = vld [vmem:[#allocation36_spill] sm:$0xff] }
 0x994   :  { %4439 = vmatpush.msra.mxu2 %v8657_v0 }
 0x996   :  { %4440 = vmatpush.msra.mxu2 %v8676_v21  ;;  %v12694_v21 = vld [vmem:[#allocation40_spill] sm:$0xff] }
 0x997   :  { %v8660_v46 = vpop.permute.xlu0 %8659 }
 0x998   :  { %v8661_v18 = vunpack.i.l.bf16 %v8660_v46  ;;  %4441 = vmatpush.msra.mxu2 %v8677_v5  ;;  %v8662_v57 = vunpack.i.h.bf16 %v8660_v46  ;;  %v8680_v28 = vpop.permute.xlu1 %8679 }
 0x999   :  { %8172 = vmatmul.msk.f32.vlgmr.msra.gmra.mxu2 %vm3190_vm9, %v455_v20  ;;  %v8681_v33 = vunpack.i.l.bf16 %v8680_v28  ;;  %v8682_v7 = vunpack.i.h.bf16 %v8680_v28 }
 0x99a   :  { %4501 = vmatpush.msrb.mxu2 %v97_v30  ;;  %4394 = vmatpush.msrb.mxu3 %v8661_v18  ;;  %v12696_v30 = vld [vmem:[#allocation50_spill] sm:$0xff] }
 0x99c   :  { %4502 = vmatpush.msrb.mxu2 %v96_v9  ;;  %4395 = vmatpush.msrb.mxu3 %v8662_v57  ;;  %v12697_v9 = vld [vmem:[#allocation56_spill] sm:$0xff] }
 0x99e   :  { %4503 = vmatpush.msrb.mxu2 %v11216_v52  ;;  %4396 = vmatpush.msrb.mxu3 %v8651_v36 }
 0x99f   :  { %v8685_v50 = vpop.permute.xlu0 %8684 }
 0x9a0   :  { %4504 = vmatpush.msrb.mxu2 %v11221_v40  ;;  %4397 = vmatpush.msrb.mxu3 %v8652_v29  ;;  %v8686_v42 = vunpack.i.l.bf16 %v8685_v50  ;;  %v8687_v53 = vunpack.i.h.bf16 %v8685_v50  ;;  %v12698_v29 = vld [vmem:[#allocation60_spill] sm:$0xff] }
 0x9a1   :  { %v12699_v50 = vld [vmem:[#allocation64_spill] sm:$0xff] }
 0x9a2   :  { %4505 = vmatpush.msrb.mxu2 %v11228_v54  ;;  %4398 = vmatpush.msrb.mxu3 %v8671_v19  ;;  %v12700_v19 = vld [vmem:[#allocation68_spill] sm:$0xff] }
 0x9a4   :  { %4506 = vmatpush.msrb.mxu2 %v11233_v56  ;;  %4399 = vmatpush.msrb.mxu3 %v8672_v15 }
 0x9a5   :  { %8171 = vmatmul.msk.f32.vlgmr.msrb.gmra.mxu3 %vm3190_vm9, %v454_v8 }
 0x9a6   :  { %4478 = vmatpush.msra.mxu3 %v8686_v42  ;;  %4507 = vmatpush.msrb.mxu2 %v11240_v44 }
 0x9a7   :  { %v8690_v23 = vpop.permute.xlu0 %8689 }
 0x9a8   :  { %4479 = vmatpush.msra.mxu3 %v8687_v53  ;;  %4508 = vmatpush.msrb.mxu2 %v11245_v41  ;;  %v8691_v31 = vunpack.i.l.bf16 %v8690_v23  ;;  %v8692_v34 = vunpack.i.h.bf16 %v8690_v23 }
 0x9a9   :  { %8174 = vmatmul.msk.f32.vlgmr.msrb.gmra.mxu2 %vm4489_vm14, %v457_v27 }
 0x9aa   :  { %4480 = vmatpush.msra.mxu3 %v8681_v33  ;;  %4782 = vmatpush.bf16.msra.mxu2 %v12684_v39 }
 0x9ac   :  { %4481 = vmatpush.msra.mxu3 %v8682_v7 }
 0x9ae   :  { %4482 = vmatpush.msra.mxu3 %v8691_v31  ;;  %4783 = vmatpush.bf16.msra.mxu2 %v12685_v59 }
 0x9b0   :  { %4483 = vmatpush.msra.mxu3 %v8692_v34  ;;  %v459_v34 = vld [vmem:[%s12387_s16] sm:$0x1] }
 0x9b1   :  { %8173 = vmatmul.msk.f32.vlgmr.msra.gmra.mxu3 %vm3190_vm9, %v456_v12  ;;  %v12701_v12 = vld [vmem:[#allocation5_spill] sm:$0xff] }
 0x9b2   :  { %4784 = vmatpush.bf16.msra.mxu2 %v12686_v10 }
 0x9b6   :  { %4785 = vmatpush.bf16.msra.mxu2 %v12687_v62 }
 0x9ba   :  { %4786 = vmatpush.bf16.msra.mxu2 %v12688_v32 }
 0x9be   :  { %4787 = vmatpush.bf16.msra.mxu2 %v12689_v4 }
 0x9c1   :  { %v4657_v47 = vpop.xlane.xlu2 %4656 }
 0x9c2   :  { %4788 = vmatpush.bf16.msra.mxu2 %v12690_v49  ;;  %v4664_v22 = vmul.f32 %v4657_v47, %v12691_v61  ;;  %v12702_v47 = vld [vmem:[#allocation7_spill] sm:$0xff] }
 0x9c3   :  { %v4660_v6 = vpop.xlane.xlu1 %4659 }
 0x9c4   :  { %v11286_v1 = vsub.f32 %v11186_v51, %v4664_v22  ;;  %v11289_v14 = vsub.f32 %v11188_v11, %v4664_v22  ;;  %v4665_v48 = vmul.f32 %v4660_v6, %v12691_v61  ;;  %v12703_v22 = vld [vmem:[#allocation11_spill] sm:$0xff] }
 0x9c6   :  { %4789 = vmatpush.bf16.msra.mxu2 %v12692_v13  ;;  %v11294_v45 = vsub.f32 %v11193_v43, %v4665_v48  ;;  %v11297_v17 = vsub.f32 %v11195_v16, %v4665_v48  ;;  %v4673_v60 = vmul.f32 %v11286_v1, %v11286_v1  ;;  %v4674_v51 = vmul.f32 %v11289_v14, %v11289_v14  ;;  %v12695_v16 = vld [vmem:[#allocation45_spill] sm:$0xff]  ;;  %v12704_v48 = vld [vmem:[#allocation15_spill] sm:$0xff] }
 0x9c8   :  { %v4679_v11 = vadd.f32 %v4674_v51, %v4673_v60  ;;  %v4675_v2 = vmul.f32 %v11294_v45, %v11294_v45  ;;  %v4676_v0 = vmul.f32 %v11297_v17, %v11297_v17 }
 0x9ca   :  { %4854 = vmatpush.bf16.msrb.mxu2 %v12693_v25  ;;  %4680 = vadd.xlane.f32.xlu2 %v4679_v11  ;;  %v4682_v43 = vadd.f32 %v4676_v0, %v4675_v2  ;;  %v12705_v11 = vld [vmem:[#allocation19_spill] sm:$0xff] }
 0x9cc   :  { %4683 = vadd.xlane.f32.xlu1 %v4682_v43 }
 0x9ce   :  { %4855 = vmatpush.bf16.msrb.mxu2 %v12694_v21 }
 0x9d2   :  { %4856 = vmatpush.bf16.msrb.mxu2 %v12695_v16  ;;  %v4663_v5 = vpop.xlane.xlu0 %4662 }
 0x9d3   :  { %v4666_v46 = vmul.f32 %v4663_v5, %v12691_v61 }
 0x9d5   :  { %v11313_v20 = vsub.f32 %v11198_v3, %v4666_v46  ;;  %v11316_v18 = vsub.f32 %v11200_v58, %v4666_v46  ;;  %v4353_v3 = vpop.f32.mrf.mxu2  ;;  %v458_v58 = vld [vmem:[%s12386_s15] sm:$0xf] }
 0x9d6   :  { %4857 = vmatpush.bf16.msrb.mxu2 %v12696_v30  ;;  %v4356_v8 = vadd.f32 %v4353_v3, %v458_v58  ;;  %v12706_v30 = vld [vmem:[#allocation23_spill] sm:$0xff] }
 0x9d7   :  { %v4677_v24 = vmul.f32 %v11313_v20, %v11313_v20  ;;  %v4678_v57 = vmul.f32 %v11316_v18, %v11316_v18  ;;  %v12708_v3 = vld [vmem:[#allocation43_spill] sm:$0xff] }
 0x9d9   :  { %v4685_v36 = vadd.f32 %v4678_v57, %v4677_v24 }
 0x9da   :  { %4858 = vmatpush.bf16.msrb.mxu2 %v12697_v9 }
 0x9db   :  { %4686 = vadd.xlane.f32.xlu0 %v4685_v36 }
 0x9de   :  { %4859 = vmatpush.bf16.msrb.mxu2 %v12698_v29 }
 0x9e2   :  { %4860 = vmatpush.bf16.msrb.mxu2 %v12699_v50 }
 0x9e6   :  { %4861 = vmatpush.bf16.msrb.mxu2 %v12700_v19  ;;  %v12707_v19 = vld [vmem:[#allocation27_spill] sm:$0xff] }
 0xa1c   :  { %v4443_v42 = vpop.f32.mrf.mxu2 }
 0xa28   :  { %v4401_v15 = vpop.f32.mrf.mxu3 }
 0xa29   :  { %v4404_v28 = vadd.f32 %v4401_v15, %v4356_v8  ;;  %v12709_v15 = vld [vmem:[#allocation49_spill] sm:$0xff] }
 0xa2b   :  { %v4446_v53 = vadd.f32 %v4443_v42, %v4404_v28 }
 0xa2c   :  { %v4510_v33 = vpop.f32.mrf.mxu2 }
 0xa34   :  { %v4485_v27 = vpop.f32.mrf.mxu3 }
 0xa35   :  { %v4488_v23 = vadd.f32 %v4485_v27, %v4446_v53  ;;  %v12710_v53 = vld [vmem:[#allocation53_spill] sm:$0xff] }
 0xa37   :  { %v4513_v7 = vadd.f32 %v4510_v33, %v4488_v23  ;;  %v12711_v33 = vld [vmem:[#allocation54_spill] sm:$0xff] }
 0xa39   :  { %vm4514_vm2 = vcmp.gt.f32.partialorder %v4513_v7, 0.0  ;;  %v4515_v39 = vmul.f32 0.2, %v4513_v7 }
 0xa3b   :  { %v4516_v31 = vsel %vm4514_vm2, %v4513_v7, %v4515_v39  ;;  %v12712_v7 = vld [vmem:[#allocation31_spill] sm:$0xff] }
 0xa3c   :  { %8175 = vmatpush.msk.msrb.mxu3 %vm1356_vm4, %v4516_v31  ;;  %v12713_v31 = vld [vmem:[#allocation35_spill] sm:$0xff] }
 0xa3d   :  { %v4681_v59 = vpop.xlane.xlu2 %4680  ;;  %8176 = vmatmul.msk.f32.vlgmr.msrb.gmra.mxu3 %vm4157_vm15, %v459_v34 }
 0xa3e   :  { %4764 = vmatpush.bf16.msra.mxu3 %v12701_v12  ;;  %v4688_v10 = vmul.f32 %v4681_v59, %v12691_v61 }
 0xa3f   :  { %v4684_v62 = vpop.xlane.xlu1 %4683 }
 0xa40   :  { %v4691_v32 = vadd.f32 1e-05, %v4688_v10  ;;  %v4689_v4 = vmul.f32 %v4684_v62, %v12691_v61 }
 0xa42   :  { %4765 = vmatpush.bf16.msra.mxu3 %v12702_v47  ;;  %8798 = vrsqrt.f32 %v4691_v32  ;;  %v4692_v49 = vadd.f32 1e-05, %v4689_v4  ;;  %vm4700_vm1 = vweird.f32 %v4691_v32 }
 0xa44   :  { %8800 = vrsqrt.f32 %v4692_v49  ;;  %vm4710_vm11 = vweird.f32 %v4692_v49 }
 0xa46   :  { %4766 = vmatpush.bf16.msra.mxu3 %v12703_v22 }
 0xa48   :  { %v8799_v6 = vpop.eup %8798 }
 0xa49   :  { %v4695_v13 = vmul.f32 %v8799_v6, %v4691_v32  ;;  %vm4701_vm0 = vweird.f32 %v8799_v6 }
 0xa4a   :  { %4767 = vmatpush.bf16.msra.mxu3 %v12704_v48  ;;  %v8801_v60 = vpop.eup %8800  ;;  %vm4702_vm3 = vmor %vm4700_vm1, %vm4701_vm0 }
 0xa4b   :  { %v4696_v51 = vmul.f32 %v8799_v6, %v4695_v13  ;;  %v4705_v25 = vmul.f32 %v8801_v60, %v4692_v49  ;;  %vm4711_vm10 = vweird.f32 %v8801_v60  ;;  %v12714_v49 = vld [vmem:[#allocation39_spill] sm:$0xff] }
 0xa4c   :  { %vm4712_vm12 = vmor %vm4710_vm11, %vm4711_vm10 }
 0xa4d   :  { %v4697_v2 = vmul.f32 0.5, %v4696_v51  ;;  %v4706_v0 = vmul.f32 %v8801_v60, %v4705_v25 }
 0xa4e   :  { %4768 = vmatpush.bf16.msra.mxu3 %v12705_v11  ;;  %v4687_v43 = vpop.xlane.xlu0 %4686  ;;  %v12715_v11 = vld [vmem:[#allocation44_spill] sm:$0xff] }
 0xa4f   :  { %v4698_v21 = vsub.f32 1.5, %v4697_v2  ;;  %v4707_v16 = vmul.f32 0.5, %v4706_v0  ;;  %v4690_v5 = vmul.f32 %v4687_v43, %v12691_v61  ;;  %v12716_v2 = vld [vmem:[#allocation72_spill] sm:$0xff] }
 0xa51   :  { %v4699_v46 = vmul.f32 %v8799_v6, %v4698_v21  ;;  %v4708_v9 = vsub.f32 1.5, %v4707_v16  ;;  %v4693_v24 = vadd.f32 1e-05, %v4690_v5 }
 0xa52   :  { %4769 = vmatpush.bf16.msra.mxu3 %v12706_v30  ;;  %v12717_v30 = vld [vmem:[#allocation48_spill] sm:$0xff] }
 0xa53   :  { %v4703_v57 = vsel %vm4702_vm3, %v8799_v6, %v4699_v46  ;;  %v4709_v36 = vmul.f32 %v8801_v60, %v4708_v9  ;;  %8802 = vrsqrt.f32 %v4693_v24  ;;  %vm4720_vm3 = vweird.f32 %v4693_v24  ;;  %v12718_v46 = vld [vmem:[#allocation74_spill] sm:$0xff] }
 0xa54   :  { %v4724_v29 = vmul.f32 %v4703_v57, %v11286_v1  ;;  %v4725_v50 = vmul.f32 %v4703_v57, %v11289_v14 }
 0xa55   :  { %v4713_v61 = vsel %vm4712_vm12, %v8801_v60, %v4709_v36 }
 0xa56   :  { %4770 = vmatpush.bf16.msra.mxu3 %v12707_v19  ;;  %v4730_v58 = vmul.f32 %v4724_v29, %v12708_v3  ;;  %v4731_v42 = vmul.f32 %v4725_v50, %v12709_v15  ;;  %v4726_v8 = vmul.f32 %v4713_v61, %v11294_v45  ;;  %v4727_v28 = vmul.f32 %v4713_v61, %v11297_v17  ;;  %v12719_v29 = vld [vmem:[#allocation55_spill] sm:$0xff] }
 0xa58   :  { %v4736_v27 = vadd.f32 %v4730_v58, %v12710_v53  ;;  %v4737_v23 = vadd.f32 %v4731_v42, %v12711_v33  ;;  %v4732_v1 = vmul.f32 %v4726_v8, %v12708_v3  ;;  %v4733_v14 = vmul.f32 %v4727_v28, %v12709_v15  ;;  %v12722_v58 = vld [vmem:[#allocation78_spill] sm:$0xff]  ;;  %v12724_v42 = vld [vmem:[#allocation80_spill] sm:$0xff]  ;;  %v12725_v8 = vld [vmem:[#allocation67_spill] sm:$0xff] }
 0xa59   :  { %v8803_v39 = vpop.eup %8802  ;;  %v12726_v28 = vld [vmem:[#allocation82_spill] sm:$0xff] }
 0xa5a   :  { %4771 = vmatpush.bf16.msra.mxu3 %v12712_v7  ;;  %v4738_v34 = vadd.f32 %v4732_v1, %v12710_v53  ;;  %v4739_v12 = vadd.f32 %v4733_v14, %v12711_v33  ;;  %v4715_v45 = vmul.f32 %v8803_v39, %v4693_v24  ;;  %vm4742_vm13 = vcmp.gt.f32.partialorder %v4736_v27, 0.0  ;;  %v12731_v1 = vld [vmem:[#allocation75_spill] sm:$0xff]  ;;  %v12732_v14 = vld [vmem:[#allocation77_spill] sm:$0xff] }
 0xa5b   :  { %v4748_v17 = vmul.f32 0.1, %v4736_v27  ;;  %vm4743_vm2 = vcmp.gt.f32.partialorder %v4737_v23, 0.0  ;;  %v4749_v59 = vmul.f32 0.1, %v4737_v23  ;;  %vm4721_vm10 = vweird.f32 %v8803_v39  ;;  %v12733_v7 = vld [vmem:[#allocation79_spill] sm:$0xff] }
 0xa5c   :  { %v4716_v10 = vmul.f32 %v8803_v39, %v4715_v45  ;;  %vm4744_vm0 = vcmp.gt.f32.partialorder %v4738_v34, 0.0  ;;  %v4750_v62 = vmul.f32 0.1, %v4738_v34  ;;  %vm4745_vm1 = vcmp.gt.f32.partialorder %v4739_v12, 0.0  ;;  %vm4722_vm11 = vmor %vm4720_vm3, %vm4721_vm10 }
 0xa5d   :  { %v4754_v32 = vsel %vm4742_vm13, %v4736_v27, %v4748_v17  ;;  %v4751_v4 = vmul.f32 0.1, %v4739_v12  ;;  %v4755_v47 = vsel %vm4743_vm2, %v4737_v23, %v4749_v59  ;;  %v12728_v27 = vld [vmem:[#allocation84_spill] sm:$0xff]  ;;  %v12730_v23 = vld [vmem:[#allocation86_spill] sm:$0xff]  ;;  %vm4543_vm2 = vcmask 0  }
 0xa5e   :  { %4836 = vmatpush.bf16.msrb.mxu3 %v12713_v31  ;;  %v4717_v22 = vmul.f32 0.5, %v4716_v10  ;;  %v4756_v6 = vsel %vm4744_vm0, %v4738_v34, %v4750_v62  ;;  %v12735_v31 = vld [vmem:[#allocation83_spill] sm:$0xff]  ;;  %v12736_v34 = vld [vmem:[#allocation85_spill] sm:$0xff] }
 0xa5f   :  { %v4760_v48 = vpack.c.bf16 %v4756_v6, %v4754_v32  ;;  %v4757_v13 = vsel %vm4745_vm1, %v4739_v12, %v4751_v4  ;;  %v23_v12 = vstv %s12388_s17  ;;  %s12746_s17 = smov 59  }
 0xa60   :  { %v4718_v60 = vsub.f32 1.5, %v4717_v22  ;;  %v4761_v51 = vpack.c.bf16 %v4757_v13, %v4755_v47  ;;  %24 = vst [vmem:[#allocation2] sm:$0x1] %v23_v12 }
 0xa61   :  { %4772 = vmatmul.bf16.vlgmr.msra.gmra.mxu3 %v4760_v48  ;;  %4808 = vmatmul.bf16.vlgmr.msrb.gmra.mxu0 %v4760_v48 }
 0xa62   :  { %4837 = vmatpush.bf16.msrb.mxu3 %v12714_v49  ;;  %v4719_v25 = vmul.f32 %v8803_v39, %v4718_v60  ;;  %4790 = vmatmul.bf16.vlgmr.msra.gmra.mxu2 %v4761_v51 }
 0xa63   :  { %4826 = vmatmul.bf16.vlgmr.msrb.gmra.mxu1 %v4761_v51  ;;  %4926 = vmatpush.bf16.msra.mxu2 %v12716_v2 }
 0xa64   :  { %v4723_v0 = vsel %vm4722_vm11, %v8803_v39, %v4719_v25  ;;  %v12734_v39 = vld [vmem:[#allocation81_spill] sm:$0xff] }
 0xa65   :  { %v4728_v43 = vmul.f32 %v4723_v0, %v11313_v20  ;;  %v4729_v21 = vmul.f32 %v4723_v0, %v11316_v18  ;;  %v12720_v20 = vld [vmem:[#allocation76_spill] sm:$0xff] }
 0xa66   :  { %4838 = vmatpush.bf16.msrb.mxu3 %v12715_v11 }
 0xa67   :  { %v4734_v16 = vmul.f32 %v4728_v43, %v12708_v3  ;;  %v4735_v5 = vmul.f32 %v4729_v21, %v12709_v15  ;;  %4927 = vmatpush.bf16.msra.mxu2 %v12718_v46  ;;  %v12721_v3 = vld [vmem:[#allocation59_spill] sm:$0xff]  ;;  %v460_v17 = vld [vmem:[#allocation2] sm:$0x1] }
 0xa68   :  { %v12723_v15 = vld [vmem:[#allocation63_spill] sm:$0xff] }
 0xa69   :  { %v4740_v9 = vadd.f32 %v4734_v16, %v12710_v53  ;;  %v4741_v24 = vadd.f32 %v4735_v5, %v12711_v33  ;;  %v12727_v53 = vld [vmem:[#allocation71_spill] sm:$0xff]  ;;  %v12729_v33 = vld [vmem:[#allocation73_spill] sm:$0xff] }
 0xa6a   :  { %4839 = vmatpush.bf16.msrb.mxu3 %v12717_v30 }
 0xa6b   :  { %vm4746_vm12 = vcmp.gt.f32.partialorder %v4740_v9, 0.0  ;;  %v4752_v57 = vmul.f32 0.1, %v4740_v9  ;;  %vm4747_vm13 = vcmp.gt.f32.partialorder %v4741_v24, 0.0  ;;  %v4753_v36 = vmul.f32 0.1, %v4741_v24  ;;  %4928 = vmatpush.bf16.msra.mxu2 %v12720_v20 }
 0xa6d   :  { %v4758_v18 = vsel %vm4746_vm12, %v4740_v9, %v4752_v57  ;;  %v4759_v50 = vsel %vm4747_vm13, %v4741_v24, %v4753_v36 }
 0xa6e   :  { %4840 = vmatpush.bf16.msrb.mxu3 %v12719_v29  ;;  %v4762_v19 = vpack.c.bf16 %v4758_v18, %v4758_v18  ;;  %v4763_v61 = vpack.c.bf16 %v4759_v50, %v4759_v50 }
 0xa6f   :  { %4929 = vmatpush.bf16.msra.mxu2 %v12722_v58 }
 0xa71   :  { %4777 = vmatmul.bf16.gmra.mxu3 %v4762_v19  ;;  %4813 = vmatmul.bf16.gmra.mxu0 %v4762_v19 }
 0xa72   :  { %4841 = vmatpush.bf16.msrb.mxu3 %v12721_v3  ;;  %4795 = vmatmul.bf16.gmra.mxu2 %v4763_v61 }
 0xa73   :  { %4831 = vmatmul.bf16.gmra.mxu1 %v4763_v61  ;;  %4930 = vmatpush.bf16.msra.mxu2 %v12724_v42 }
 0xa76   :  { %4842 = vmatpush.bf16.msrb.mxu3 %v12723_v15 }
 0xa77   :  { %4931 = vmatpush.bf16.msra.mxu2 %v12726_v28 }
 0xa7a   :  { %4843 = vmatpush.bf16.msrb.mxu3 %v12725_v8 }
 0xa7b   :  { %4932 = vmatpush.bf16.msra.mxu2 %v12728_v27  ;;  %v8829_v27 = vld [vmem:[%s12376_s6] sm:$0xff] }
 0xa7e   :  { %4908 = vmatpush.bf16.msra.mxu3 %v12727_v53 }
 0xa7f   :  { %4933 = vmatpush.bf16.msra.mxu2 %v12730_v23 }
 0xa81   :  { %4844 = vmatmul.bf16.vlgmr.msrb.gmra.mxu3 %v4760_v48  ;;  %4880 = vmatmul.bf16.vlgmr.msra.gmra.mxu0 %v4760_v48 }
 0xa82   :  { %4909 = vmatpush.bf16.msra.mxu3 %v12729_v33  ;;  %4862 = vmatmul.bf16.vlgmr.msrb.gmra.mxu2 %v4761_v51 }
 0xa83   :  { %4898 = vmatmul.bf16.vlgmr.msra.gmra.mxu1 %v4761_v51 }
 0xa86   :  { %4910 = vmatpush.bf16.msra.mxu3 %v12731_v1 }
 0xa8a   :  { %4911 = vmatpush.bf16.msra.mxu3 %v12732_v14 }
 0xa8e   :  { %4912 = vmatpush.bf16.msra.mxu3 %v12733_v7 }
 0xa91   :  { %4849 = vmatmul.bf16.gmra.mxu3 %v4762_v19  ;;  %4885 = vmatmul.bf16.gmra.mxu0 %v4762_v19 }
 0xa92   :  { %4913 = vmatpush.bf16.msra.mxu3 %v12734_v39  ;;  %4867 = vmatmul.bf16.gmra.mxu2 %v4763_v61 }
 0xa93   :  { %4903 = vmatmul.bf16.gmra.mxu1 %v4763_v61 }
 0xa96   :  { %4914 = vmatpush.bf16.msra.mxu3 %v12735_v31 }
 0xa9a   :  { %4915 = vmatpush.bf16.msra.mxu3 %v12736_v34 }
 0xaa1   :  { %4916 = vmatmul.bf16.vlgmr.msra.gmra.mxu3 %v4760_v48 }
 0xaa2   :  { %4934 = vmatmul.bf16.vlgmr.msra.gmra.mxu2 %v4761_v51 }
 0xab1   :  { %4921 = vmatmul.bf16.gmra.mxu3 %v4762_v19 }
 0xab2   :  { %4939 = vmatmul.bf16.gmra.mxu2 %v4763_v61 }
 0xac0   :  { %v4540_v45 = vpop.f32.mrf.mxu3 }
 0xac1   :  { %v4541_v59 = vadd.f32 %v4540_v45, %v460_v17 }
 0xac3   :  { %4544 = vst.msk [vmem:[%s12389_s18] sm:$0x1] %vm4543_vm2, %v4541_v59  ;;  %v8830_v59 = vld [vmem:[%s12376_s6 + $0x8] sm:$0xff] }
 0xade   :  { %v4809_v10 = vpop.f32.mrf.mxu0 }
 0xae0   :  { %v4827_v62 = vpop.f32.mrf.mxu1 }
 0xae1   :  { %v4828_v6 = vadd.f32 %v4827_v62, %v4809_v10 }
 0xae4   :  { %v4773_v32 = vpop.f32.mrf.mxu3 }
 0xae5   :  { %v4791_v4 = vpop.f32.mrf.mxu2 }
 0xae6   :  { %v4811_v47 = vpop.f32.mrf.mxu0  ;;  %v4792_v22 = vadd.f32 %v4791_v4, %v4773_v32 }
 0xae8   :  { %v4829_v49 = vpop.f32.mrf.mxu1  ;;  %v4944_v60 = vpack.c.bf16 %v4828_v6, %v4792_v22 }
 0xae9   :  { %v4830_v51 = vadd.f32 %v4829_v49, %v4811_v47 }
 0xaea   :  { %v4956_v43 = vunpack.c.l.b16 %v4944_v60  ;;  %v5135_v39 = vunpack.c.h.b16 %v4944_v60 }
 0xaec   :  { %v4775_v48 = vpop.f32.mrf.mxu3 }
 0xaed   :  { %v4793_v13 = vpop.f32.mrf.mxu2 }
 0xaee   :  { %v4794_v25 = vadd.f32 %v4793_v13, %v4775_v48  ;;  %v4814_v11 = vpop.f32.mrf.mxu0 }
 0xaf0   :  { %v4832_v2 = vpop.f32.mrf.mxu1  ;;  %v4947_v0 = vpack.c.bf16 %v4830_v51, %v4794_v25 }
 0xaf1   :  { %v4833_v46 = vadd.f32 %v4832_v2, %v4814_v11 }
 0xaf2   :  { %v4957_v21 = vunpack.c.l.b16 %v4947_v0  ;;  %v5136_v7 = vunpack.c.h.b16 %v4947_v0 }
 0xaf4   :  { %v4959_v16 = vpack.c.b16 %v4957_v21, %v4956_v43  ;;  %v4778_v5 = vpop.f32.mrf.mxu3  ;;  %v5138_v31 = vpack.c.b16 %v5136_v7, %v5135_v39  ;;  %v8831_v21 = vld [vmem:[%s12376_s6 + $0x10] sm:$0xff] }
 0xaf5   :  { %v4796_v30 = vpop.f32.mrf.mxu2 }
 0xaf6   :  { %v4797_v9 = vadd.f32 %v4796_v30, %v4778_v5  ;;  %4961 = vrot.lane.b32.xlu1 %v4959_v16, %s8968_s21  ;;  %v4816_v24 = vpop.f32.mrf.mxu0 }
 0xaf8   :  { %v4834_v57 = vpop.f32.mrf.mxu1  ;;  %v4950_v36 = vpack.c.bf16 %v4833_v46, %v4797_v9 }
 0xafa   :  { %v4958_v29 = vunpack.c.l.b16 %v4950_v36  ;;  %v5137_v58 = vunpack.c.h.b16 %v4950_v36 }
 0xafc   :  { %v4960_v20 = vpack.c.b16 %v4958_v29, %v4958_v29  ;;  %v4780_v18 = vpop.f32.mrf.mxu3  ;;  %v11399_v15 = vpack.c.b16 %v5137_v58, %v5137_v58 }
 0xafd   :  { %v4798_v50 = vpop.f32.mrf.mxu2 }
 0xafe   :  { %5059 = vrot.lane.b32.xlu1 %v4959_v16, %s8970_s20  ;;  %5023 = vrot.lane.b32.xlu0 %v4960_v20, %s8969_s4  ;;  %v4881_v19 = vpop.f32.mrf.mxu0  ;;  %v4995_v61 = vsel %vm1356_vm4, %v4960_v20, 0 }
 0xaff   :  { %4963 = vrot.lane.b32.xlu2 %v4960_v20, %s8968_s21  ;;  %5003 = vmatpush.bf16.msrb.mxu1 %v4995_v61  ;;  %s12737_s21 = smov 28  }
 0xb00   :  { %v4899_v3 = vpop.f32.mrf.mxu1 }
 0xb01   :  { %v4900_v4 = vadd.f32 %v4899_v3, %v4881_v19 }
 0xb03   :  { %5004 = vmatpush.bf16.msrb.mxu1 %v4959_v16 }
 0xb04   :  { %v4845_v42 = vpop.f32.mrf.mxu3 }
 0xb05   :  { %v4863_v8 = vpop.f32.mrf.mxu2 }
 0xb06   :  { %5186 = vrot.lane.b32.xlu1 %v11399_v15, %s8971_s22  ;;  %5021 = vrot.lane.b32.xlu0 %v4959_v16, %s8969_s4  ;;  %v4883_v28 = vpop.f32.mrf.mxu0  ;;  %s12738_s4 = smov 81   ;;  %v4864_v62 = vadd.f32 %v4863_v8, %v4845_v42 }
 0xb07   :  { %5061 = vrot.lane.b32.xlu2 %v4960_v20, %s8970_s20  ;;  %8240 = vmatmul.msk.bf16.vlgmr.msrb.gmra.mxu1 %vm1346_vm5, %v8829_v27  ;;  %s12750_s20 = smov 87  }
 0xb08   :  { %v4901_v53 = vpop.f32.mrf.mxu1  ;;  %v4945_v6 = vpack.c.bf16 %v4900_v4, %v4864_v62  ;;  %v8833_v62 = vld [vmem:[%s12376_s6 + $0x48] sm:$0xff] }
 0xb09   :  { %v4902_v32 = vadd.f32 %v4901_v53, %v4883_v28 }
 0xb0a   :  { %v5339_v60 = vunpack.c.l.b16 %v4945_v6  ;;  %v5540_v50 = vunpack.c.h.b16 %v4945_v6  ;;  %v8834_v6 = vld [vmem:[%s12376_s6 + $0x20] sm:$0xff] }
 0xb0c   :  { %v4847_v33 = vpop.f32.mrf.mxu3 }
 0xb0d   :  { %v4865_v23 = vpop.f32.mrf.mxu2 }
 0xb0e   :  { %5146 = vrot.lane.b32.xlu1 %v11399_v15, %s8973_s23  ;;  %5097 = vrot.lane.b32.xlu0 %v4959_v16, %s12737_s21  ;;  %v4886_v1 = vpop.f32.mrf.mxu0  ;;  %v4866_v10 = vadd.f32 %v4865_v23, %v4847_v33 }
 0xb0f   :  { %5099 = vrot.lane.b32.xlu2 %v4960_v20, %s12737_s21  ;;  %s12748_s21 = smov 112  }
 0xb10   :  { %v4904_v14 = vpop.f32.mrf.mxu1  ;;  %v4948_v47 = vpack.c.bf16 %v4902_v32, %v4866_v10 }
 0xb11   :  { %v4905_v51 = vadd.f32 %v4904_v14, %v4886_v1 }
 0xb12   :  { %v5340_v48 = vunpack.c.l.b16 %v4948_v47  ;;  %v5541_v18 = vunpack.c.h.b16 %v4948_v47 }
 0xb14   :  { %v4850_v34 = vpop.f32.mrf.mxu3  ;;  %v5342_v25 = vpack.c.b16 %v5340_v48, %v5339_v60  ;;  %v5543_v19 = vpack.c.b16 %v5541_v18, %v5540_v50  ;;  %v8835_v48 = vld [vmem:[%s12376_s6 + $0x30] sm:$0xff] }
 0xb15   :  { %v4868_v12 = vpop.f32.mrf.mxu2 }
 0xb16   :  { %5140 = vrot.lane.b32.xlu1 %v4959_v16, %s8973_s23  ;;  %5222 = vrot.lane.b32.xlu0 %v5138_v31, %s12738_s4  ;;  %v4888_v45 = vpop.f32.mrf.mxu0  ;;  %v4869_v13 = vadd.f32 %v4868_v12, %v4850_v34 }
 0xb17   :  { %5184 = vrot.lane.b32.xlu2 %v5138_v31, %s8971_s22  ;;  %8241 = vmatmul.msk.bf16.gmra.mxu1 %vm1346_vm5, %v8830_v59  ;;  %s12740_s22 = smov 6  }
 0xb18   :  { %v4906_v17 = vpop.f32.mrf.mxu1  ;;  %v4951_v11 = vpack.c.bf16 %v4905_v51, %v4869_v13 }
 0xb1a   :  { %v5341_v16 = vunpack.c.l.b16 %v4951_v11  ;;  %v5542_v29 = vunpack.c.h.b16 %v4951_v11 }
 0xb1c   :  { %v4852_v49 = vpop.f32.mrf.mxu3  ;;  %v5343_v5 = vpack.c.b16 %v5341_v16, %v5341_v16 }
 0xb1d   :  { %v4870_v22 = vpop.f32.mrf.mxu2 }
 0xb1e   :  { %5260 = vrot.lane.b32.xlu1 %v5138_v31, %s12739_s3  ;;  %5144 = vrot.lane.b32.xlu0 %v4960_v20, %s8973_s23  ;;  %v5544_v20 = vpack.c.b16 %v5542_v29, %v5542_v29 }
 0xb1f   :  { %5224 = vrot.lane.b32.xlu2 %v11399_v15, %s12738_s4  ;;  %s12749_s4 = smov 12  }
 0xb24   :  { %v4917_v2 = vpop.f32.mrf.mxu3 }
 0xb25   :  { %v4935_v0 = vpop.f32.mrf.mxu2 }
 0xb26   :  { %v4936_v43 = vadd.f32 %v4935_v0, %v4917_v2  ;;  %5262 = vrot.lane.b32.xlu0 %v11399_v15, %s12739_s3  ;;  %5346 = vrot.lane.b32.xlu1 %v5342_v25, %s12740_s22 }
 0xb27   :  { %5142 = vrot.lane.b32.xlu2 %v5138_v31, %s8973_s23  ;;  %8242 = vmatmul.msk.bf16.gmra.mxu1 %vm1346_vm5, %v8831_v21  ;;  %s12742_s23 = smov 84   ;;  %v8838_v21 = vld [vmem:[%s12376_s6 + $0x38] sm:$0xff] }
 0xb28   :  { %v4946_v28 = vpack.c.bf16 %v4936_v43, %v4936_v43  ;;  %v8837_v43 = vld [vmem:[%s12376_s6 + $0x28] sm:$0xff] }
 0xb2a   :  { %v5744_v1 = vunpack.c.l.b16 %v4946_v28 }
 0xb2c   :  { %v4919_v30 = vpop.f32.mrf.mxu3 }
 0xb2d   :  { %v4937_v46 = vpop.f32.mrf.mxu2 }
 0xb2e   :  { %5390 = vrot.lane.b32.xlu1 %v5343_v5, %s12741_s29  ;;  %5350 = vrot.lane.b32.xlu0 %v5343_v5, %s12740_s22  ;;  %v4938_v58 = vadd.f32 %v4937_v46, %v4919_v30 }
 0xb2f   :  { %5348 = vrot.lane.b32.xlu2 %v11399_v15, %s12740_s22 }
 0xb30   :  { %v4949_v8 = vpack.c.bf16 %v4938_v58, %v4938_v58 }
 0xb32   :  { %v5745_v53 = vunpack.c.l.b16 %v4949_v8 }
 0xb34   :  { %v4922_v9 = vpop.f32.mrf.mxu3  ;;  %v5747_v7 = vpack.c.b16 %v5745_v53, %v5744_v1 }
 0xb35   :  { %v4940_v24 = vpop.f32.mrf.mxu2 }
 0xb36   :  { %5428 = vrot.lane.b32.xlu1 %v5343_v5, %s12742_s23  ;;  %5344 = vrot.lane.b32.xlu0 %v5138_v31, %s12740_s22  ;;  %v4941_v27 = vadd.f32 %v4940_v24, %v4922_v9  ;;  %v8839_v24 = vld [vmem:[%s12376_s6 + $0x58] sm:$0xff]  ;;  %s12779_s22 = smov 96  }
 0xb37   :  { %5300 = vrot.lane.b32.xlu2 %v11399_v15, %s12743_s5 }
 0xb38   :  { %v4952_v39 = vpack.c.bf16 %v4941_v27, %v4941_v27  ;;  %v8843_v27 = vld [vmem:[%s12376_s6 + $0xa8] sm:$0xff] }
 0xb3a   :  { %v5746_v34 = vunpack.c.l.b16 %v4952_v39  ;;  %v8844_v39 = vld [vmem:[%s12376_s6 + $0x80] sm:$0xff] }
 0xb3c   :  { %v4924_v57 = vpop.f32.mrf.mxu3  ;;  %v5748_v10 = vpack.c.b16 %v5746_v34, %v5746_v34  ;;  %v8846_v34 = vld [vmem:[%s12376_s6 + $0x90] sm:$0xff] }
 0xb3d   :  { %v4942_v36 = vpop.f32.mrf.mxu2 }
 0xb3e   :  { %5502 = vrot.lane.b32.xlu1 %v5342_v25, %s12744_s30  ;;  %5298 = vrot.lane.b32.xlu0 %v5138_v31, %s12743_s5  ;;  %v8832_v31 = vld [vmem:[%s12376_s6 + $0x18] sm:$0xff]  ;;  %s12784_s5 = smov 68  }
 0xb3f   :  { %5388 = vrot.lane.b32.xlu2 %v5342_v25, %s12741_s29  ;;  %s12752_s29 = smov 115  }
 0xb46   :  { %5549 = vrot.lane.b32.xlu1 %v5343_v5, %s12745_s0  ;;  %5504 = vrot.lane.b32.xlu0 %v5343_v5, %s12744_s30  ;;  %s12775_s30 = smov 120  }
 0xb47   :  { %5426 = vrot.lane.b32.xlu2 %v5342_v25, %s12742_s23 }
 0xb4e   :  { %5464 = vrot.lane.b32.xlu1 %v5342_v25, %s12746_s17  ;;  %5466 = vrot.lane.b32.xlu0 %v5343_v5, %s12746_s17 }
 0xb4f   :  { %5551 = vrot.lane.b32.xlu2 %v5544_v20, %s12745_s0 }
 0xb56   :  { %5665 = vrot.lane.b32.xlu1 %v5543_v19, %s12747_s25  ;;  %5547 = vrot.lane.b32.xlu0 %v5543_v19, %s12745_s0 }
 0xb57   :  { %5545 = vrot.lane.b32.xlu2 %v5342_v25, %s12745_s0  ;;  %v8836_v25 = vld [vmem:[%s12376_s6 + $0x50] sm:$0xff] }
 0xb59   :  { %v4964_v61 = vpop.permute.xlu2 %4963 }
 0xb5a   :  { %v4967_v3 = vsel %vm1356_vm4, %v4964_v61, 0  ;;  %v8841_v61 = vld [vmem:[%s12376_s6 + $0x40] sm:$0xff] }
 0xb5b   :  { %4975 = vmatpush.bf16.msrb.mxu0 %v4967_v3  ;;  %v8842_v3 = vld [vmem:[%s12376_s6 + $0x60] sm:$0xff] }
 0xb5e   :  { %5667 = vrot.lane.b32.xlu1 %v5544_v20, %s12747_s25  ;;  %5589 = vrot.lane.b32.xlu0 %v5543_v19, %s12748_s21  ;;  %s12753_s25 = smov 65  }
 0xb5f   :  { %5591 = vrot.lane.b32.xlu2 %v5544_v20, %s12748_s21 }
 0xb61   :  { %v5062_v15 = vpop.permute.xlu2 %5061 }
 0xb62   :  { %v5065_v42 = vsel %vm1356_vm4, %v5062_v15, 0 }
 0xb63   :  { %5073 = vmatpush.bf16.msrb.mxu2 %v5065_v42 }
 0xb66   :  { %5753 = vrot.lane.b32.xlu1 %v5544_v20, %s12749_s4  ;;  %5629 = vrot.lane.b32.xlu0 %v5544_v20, %s12750_s20 }
 0xb67   :  { %5703 = vrot.lane.b32.xlu2 %v5543_v19, %s12751_s27 }
 0xb68   :  { %v4962_v33 = vpop.permute.xlu1 %4961 }
 0xb69   :  { %v5100_v23 = vpop.permute.xlu2 %5099  ;;  %4976 = vmatpush.bf16.msrb.mxu0 %v4962_v33 }
 0xb6a   :  { %v5103_v14 = vsel %vm1356_vm4, %v5100_v23, 0 }
 0xb6c   :  { %8237 = vmatmul.msk.bf16.vlgmr.msrb.gmra.mxu0 %vm1346_vm5, %v8832_v31  ;;  %v8845_v31 = vld [vmem:[%s12376_s6 + $0x68] sm:$0xff] }
 0xb6d   :  { %5111 = vmatpush.bf16.msra.mxu0 %v5103_v14 }
 0xb6e   :  { %5627 = vrot.lane.b32.xlu0 %v5543_v19, %s12750_s20  ;;  %5751 = vrot.lane.b32.xlu1 %v5747_v7, %s12749_s4  ;;  %s12777_s20 = smov 100  }
 0xb6f   :  { %5705 = vrot.lane.b32.xlu2 %v5544_v20, %s12751_s27  ;;  %s12778_s27 = smov 104  }
 0xb70   :  { %v5060_v12 = vpop.permute.xlu1 %5059  ;;  %v5024_v45 = vpop.permute.xlu0 %5023 }
 0xb71   :  { %v5027_v17 = vsel %vm1356_vm4, %v5024_v45, 0  ;;  %v5185_v59 = vpop.permute.xlu2 %5184  ;;  %5074 = vmatpush.bf16.msrb.mxu2 %v5060_v12 }
 0xb72   :  { %5035 = vmatpush.bf16.msrb.mxu3 %v5027_v17 }
 0xb74   :  { %8246 = vmatmul.msk.bf16.vlgmr.msrb.gmra.mxu2 %vm1346_vm5, %v8833_v62 }
 0xb76   :  { %5749 = vrot.lane.b32.xlu0 %v5543_v19, %s12749_s4  ;;  %5795 = vrot.lane.b32.xlu1 %v5748_v10, %s12752_s29  ;;  %v8840_v19 = vld [vmem:[%s12376_s6 + $0x78] sm:$0xff] }
 0xb77   :  { %5755 = vrot.lane.b32.xlu2 %v5748_v10, %s12749_s4  ;;  %s12754_s4 = smov 90  }
 0xb78   :  { %v5187_v32 = vpop.permute.xlu1 %5186  ;;  %v5022_v4 = vpop.permute.xlu0 %5021 }
 0xb79   :  { %v5190_v47 = vsel %vm1356_vm4, %v5187_v32, 0  ;;  %v5225_v49 = vpop.permute.xlu2 %5224  ;;  %5036 = vmatpush.bf16.msrb.mxu3 %v5022_v4 }
 0xb7a   :  { %v5228_v22 = vsel %vm1356_vm4, %v5225_v49, 0  ;;  %v8848_v49 = vld [vmem:[%s12376_s6 + $0x88] sm:$0xff] }
 0xb7b   :  { %5236 = vmatpush.bf16.msra.mxu2 %v5228_v22  ;;  %v8849_v22 = vld [vmem:[%s12376_s6 + $0x70] sm:$0xff] }
 0xb7c   :  { %8238 = vmatmul.msk.bf16.gmra.mxu0 %vm1346_vm5, %v8834_v6  ;;  %8243 = vmatmul.msk.bf16.vlgmr.msrb.gmra.mxu3 %vm1346_vm5, %v8835_v48  ;;  %v8850_v6 = vld [vmem:[%s12376_s6 + $0x98] sm:$0xff] }
 0xb7d   :  { %5198 = vmatpush.bf16.msra.mxu3 %v5190_v47 }
 0xb7e   :  { %5793 = vrot.lane.b32.xlu1 %v5747_v7, %s12752_s29  ;;  %5871 = vrot.lane.b32.xlu0 %v5748_v10, %s12753_s25  ;;  %s12755_s29 = smov 40  }
 0xb7f   :  { %5833 = vrot.lane.b32.xlu2 %v5748_v10, %s12754_s4 }
 0xb80   :  { %v5147_v13 = vpop.permute.xlu1 %5146  ;;  %v5098_v60 = vpop.permute.xlu0 %5097 }
 0xb81   :  { %5199 = vmatpush.bf16.msra.mxu3 %v5185_v59  ;;  %v5143_v51 = vpop.permute.xlu2 %5142  ;;  %5112 = vmatpush.bf16.msra.mxu0 %v5098_v60  ;;  %v8847_v59 = vld [vmem:[%s12376_s6 + $0xb0] sm:$0xff] }
 0xb84   :  { %8247 = vmatmul.msk.bf16.gmra.mxu2 %vm1346_vm5, %v8836_v25  ;;  %v8851_v25 = vld [vmem:[%s12376_s6 + $0xb8] sm:$0xff] }
 0xb86   :  { %5869 = vrot.lane.b32.xlu0 %v5747_v7, %s12753_s25  ;;  %s12776_s25 = smov 108  }
 0xb87   :  { %5831 = vrot.lane.b32.xlu2 %v5747_v7, %s12754_s4 }
 0xb88   :  { %v5141_v11 = vpop.permute.xlu1 %5140  ;;  %v5223_v2 = vpop.permute.xlu0 %5222 }
 0xb89   :  { %v5349_v0 = vpop.permute.xlu2 %5348  ;;  %5237 = vmatpush.bf16.msra.mxu2 %v5223_v2  ;;  %v5148_v57 = vsel %vm1650_vm6, %v5141_v11, %v5143_v51 }
 0xb8c   :  { %8239 = vmatmul.msk.bf16.gmra.mxu0 %vm1346_vm5, %v8837_v43  ;;  %8244 = vmatmul.msk.bf16.gmra.mxu3 %vm1346_vm5, %v8838_v21  ;;  %v8852_v43 = vld [vmem:[%s12376_s6 + $0xd8] sm:$0xff] }
 0xb8e   :  { %5907 = vrot.lane.b32.xlu0 %v5747_v7, %s12755_s29 }
 0xb8f   :  { %5909 = vrot.lane.b32.xlu2 %v5748_v10, %s12755_s29  ;;  %s12783_s29 = smov 76  }
 0xb90   :  { %v5261_v16 = vpop.permute.xlu1 %5260  ;;  %v5145_v5 = vpop.permute.xlu0 %5144 }
 0xb91   :  { %v5149_v30 = vsel %vm1650_vm6, %v5145_v5, %v5147_v13  ;;  %v5301_v46 = vpop.permute.xlu2 %5300  ;;  %v8853_v5 = vld [vmem:[%s12376_s6 + $0xa0] sm:$0xff]  ;;  %vm12756_vm6 = vcmask 97280  }
 0xb92   :  { %v5152_v9 = vsel %vm1356_vm4, %v5149_v30, 0  ;;  %v5304_v36 = vsel %vm1356_vm4, %v5301_v46, 0  ;;  %v8854_v30 = vld [vmem:[%s12376_s6 + $0xc0] sm:$0xff] }
 0xb93   :  { %5160 = vmatpush.bf16.msra.mxu1 %v5152_v9 }
 0xb94   :  { %8248 = vmatmul.msk.bf16.gmra.mxu2 %vm1346_vm5, %v8839_v24 }
 0xb97   :  { %5161 = vmatpush.bf16.msra.mxu1 %v5148_v57  ;;  %v8855_v57 = vld [vmem:[%s12376_s6 + $0x108] sm:$0xff] }
 0xb98   :  { %v5263_v29 = vpop.permute.xlu0 %5262  ;;  %v5347_v20 = vpop.permute.xlu1 %5346 }
 0xb99   :  { %v5266_v18 = vsel %vm1356_vm4, %v5263_v29, 0  ;;  %v5389_v50 = vpop.permute.xlu2 %5388 }
 0xb9a   :  { %8252 = vmatmul.msk.bf16.vlgmr.msra.gmra.mxu1 %vm1346_vm5, %v8840_v19  ;;  %5274 = vmatpush.bf16.msrb.mxu0 %v5266_v18  ;;  %v8856_v18 = vld [vmem:[%s12376_s6 + $0xe0] sm:$0xff]  ;;  %v8857_v19 = vld [vmem:[%s12376_s6 + $0xc8] sm:$0xff] }
 0xb9b   :  { %5312 = vmatpush.bf16.msrb.mxu1 %v5304_v36 }
 0xb9c   :  { %8245 = vmatmul.msk.bf16.gmra.mxu3 %vm1346_vm5, %v8841_v61  ;;  %8249 = vmatmul.msk.bf16.vlgmr.msra.gmra.mxu0 %vm1346_vm5, %v8842_v3  ;;  %v8858_v61 = vld [vmem:[%s12376_s6 + $0xf0] sm:$0xff]  ;;  %v5006_v3 = vpop.f32.mrf.mxu1 }
 0xb9e   :  { %5275 = vmatpush.bf16.msrb.mxu0 %v5261_v16 }
 0xba0   :  { %v5391_v58 = vpop.permute.xlu1 %5390  ;;  %v5351_v15 = vpop.permute.xlu0 %5350 }
 0xba1   :  { %v5427_v42 = vpop.permute.xlu2 %5426  ;;  %v5394_v8 = vsel %vm1356_vm4, %v5391_v58, 0  ;;  %v5353_v28 = vsel %vm1975_vm7, %v5349_v0, %v5351_v15 }
 0xba2   :  { %v5356_v53 = vsel %vm1356_vm4, %v5353_v28, 0  ;;  %5402 = vmatpush.bf16.msrb.mxu2 %v5394_v8 }
 0xba3   :  { %5364 = vmatpush.bf16.msrb.mxu3 %v5356_v53 }
 0xba4   :  { %8258 = vmatmul.msk.bf16.vlgmr.msra.gmra.mxu2 %vm1346_vm5, %v8843_v27  ;;  %v5008_v8 = vpop.f32.mrf.mxu1 }
 0xba6   :  { %5403 = vmatpush.bf16.msrb.mxu2 %v5389_v50 }
 0xba8   :  { %v5429_v33 = vpop.permute.xlu1 %5428  ;;  %v5345_v23 = vpop.permute.xlu0 %5344 }
 0xba9   :  { %v5552_v1 = vpop.permute.xlu2 %5551  ;;  %v5432_v14 = vsel %vm1356_vm4, %v5429_v33, 0  ;;  %v5352_v7 = vsel %vm1975_vm7, %v5345_v23, %v5347_v20  ;;  %v8860_v33 = vld [vmem:[%s12376_s6 + $0xe8] sm:$0xff]  ;;  %v8861_v23 = vld [vmem:[%s12376_s6 + $0xd0] sm:$0xff]  ;;  %vm12757_vm7 = vmmov %vm12756_vm6 }
 0xbaa   :  { %8253 = vmatmul.msk.bf16.gmra.mxu1 %vm1346_vm5, %v8844_v39  ;;  %5365 = vmatpush.bf16.msrb.mxu3 %v5352_v7 }
 0xbab   :  { %5440 = vmatpush.bf16.msra.mxu0 %v5432_v14 }
 0xbac   :  { %8250 = vmatmul.msk.bf16.gmra.mxu0 %vm1346_vm5, %v8845_v31  ;;  %8255 = vmatmul.msk.bf16.vlgmr.msra.gmra.mxu3 %vm1346_vm5, %v8846_v34  ;;  %v5011_v14 = vpop.f32.mrf.mxu1  ;;  %v8863_v34 = vld [vmem:[%s12376_s6 + $0x118] sm:$0xff] }
 0xbaf   :  { %5441 = vmatpush.bf16.msra.mxu0 %v5427_v42  ;;  %v8859_v42 = vld [vmem:[%s12376_s6 + $0x110] sm:$0xff] }
 0xbb0   :  { %v5503_v12 = vpop.permute.xlu1 %5502  ;;  %v5299_v45 = vpop.permute.xlu0 %5298 }
 0xbb1   :  { %5313 = vmatpush.bf16.msrb.mxu1 %v5299_v45  ;;  %v5546_v17 = vpop.permute.xlu2 %5545 }
 0xbb4   :  { %8259 = vmatmul.msk.bf16.gmra.mxu2 %vm1346_vm5, %v8847_v59 }
 0xbb8   :  { %v5550_v10 = vpop.permute.xlu1 %5549  ;;  %v5505_v62 = vpop.permute.xlu0 %5504 }
 0xbb9   :  { %v5554_v32 = vsel %vm2297_vm8, %v5550_v10, %v5552_v1  ;;  %v5508_v4 = vsel %vm1356_vm4, %v5505_v62, 0  ;;  %v5592_v48 = vpop.permute.xlu2 %5591  ;;  %v8862_v1 = vld [vmem:[%s12376_s6 + $0xf8] sm:$0xff] }
 0xbba   :  { %v5557_v47 = vsel %vm1356_vm4, %v5554_v32, 0  ;;  %8254 = vmatmul.msk.bf16.gmra.mxu1 %vm1346_vm5, %v8848_v49  ;;  %5516 = vmatpush.bf16.msra.mxu3 %v5508_v4  ;;  %v5595_v21 = vsel %vm1356_vm4, %v5592_v48, 0  ;;  %v8864_v32 = vld [vmem:[%s12376_s6 + $0x138] sm:$0xff]  ;;  %v5013_v4 = vpop.f32.mrf.mxu1  ;;  %v8865_v49 = vld [vmem:[%s12376_s6 + $0x100] sm:$0xff] }
 0xbbb   :  { %5565 = vmatpush.bf16.msra.mxu2 %v5557_v47 }
 0xbbc   :  { %8251 = vmatmul.msk.bf16.gmra.mxu0 %vm1346_vm5, %v8849_v22  ;;  %8256 = vmatmul.msk.bf16.gmra.mxu3 %vm1346_vm5, %v8850_v6  ;;  %v8866_v22 = vld [vmem:[%s12376_s6 + $0x120] sm:$0xff] }
 0xbbe   :  { %5517 = vmatpush.bf16.msra.mxu3 %v5503_v12 }
 0xbc0   :  { %v5467_v13 = vpop.permute.xlu0 %5466  ;;  %v5465_v51 = vpop.permute.xlu1 %5464 }
 0xbc1   :  { %v5470_v60 = vsel %vm1356_vm4, %v5467_v13, 0  ;;  %v5704_v11 = vpop.permute.xlu2 %5703 }
 0xbc2   :  { %5478 = vmatpush.bf16.msra.mxu1 %v5470_v60 }
 0xbc4   :  { %8260 = vmatmul.msk.bf16.gmra.mxu2 %vm1346_vm5, %v8851_v25 }
 0xbc6   :  { %5479 = vmatpush.bf16.msra.mxu1 %v5465_v51 }
 0xbc8   :  { %v5548_v2 = vpop.permute.xlu0 %5547  ;;  %v5666_v16 = vpop.permute.xlu1 %5665 }
 0xbc9   :  { %v5553_v0 = vsel %vm2297_vm8, %v5546_v17, %v5548_v2  ;;  %v5706_v9 = vpop.permute.xlu2 %5705 }
 0xbca   :  { %8264 = vmatmul.msk.bf16.vlgmr.msrb.gmra.mxu1 %vm1346_vm5, %v8852_v43  ;;  %5566 = vmatpush.bf16.msra.mxu2 %v5553_v0  ;;  %v5709_v24 = vsel %vm1356_vm4, %v5706_v9, 0  ;;  %v8867_v43 = vld [vmem:[%s12376_s6 + $0x168] sm:$0xff] }
 0xbcc   :  { %8257 = vmatmul.msk.bf16.gmra.mxu3 %vm1346_vm5, %v8853_v5  ;;  %8261 = vmatmul.msk.bf16.vlgmr.msrb.gmra.mxu0 %vm1346_vm5, %v8854_v30 }
 0xbcd   :  { %5603 = vmatpush.bf16.msrb.mxu0 %v5595_v21  ;;  %v5016_v21 = vpop.f32.mrf.mxu1 }
 0xbd0   :  { %v5590_v46 = vpop.permute.xlu0 %5589  ;;  %v5668_v36 = vpop.permute.xlu1 %5667 }
 0xbd1   :  { %5604 = vmatpush.bf16.msrb.mxu0 %v5590_v46  ;;  %v5671_v50 = vsel %vm1356_vm4, %v5668_v36, 0  ;;  %v5756_v45 = vpop.permute.xlu2 %5755 }
 0xbd4   :  { %8270 = vmatmul.msk.bf16.vlgmr.msrb.gmra.mxu2 %vm1346_vm5, %v8855_v57 }
 0xbd5   :  { %5717 = vmatpush.bf16.msrb.mxu2 %v5709_v24 }
 0xbd8   :  { %v5630_v29 = vpop.permute.xlu0 %5629  ;;  %v5754_v58 = vpop.permute.xlu1 %5753 }
 0xbd9   :  { %5718 = vmatpush.bf16.msrb.mxu2 %v5704_v11  ;;  %v5633_v20 = vsel %vm1356_vm4, %v5630_v29, 0  ;;  %v5758_v17 = vsel %vm12756_vm6, %v5754_v58, %v5756_v45 }
 0xbda   :  { %8265 = vmatmul.msk.bf16.gmra.mxu1 %vm1346_vm5, %v8856_v18  ;;  %v5761_v47 = vsel %vm1356_vm4, %v5758_v17, 0  ;;  %v8873_v17 = vld [vmem:[%s12376_s6 + $0x130] sm:$0xff] }
 0xbdb   :  { %5641 = vmatpush.bf16.msrb.mxu1 %v5633_v20  ;;  %v8868_v20 = vld [vmem:[%s12376_s6 + $0x140] sm:$0xff] }
 0xbdc   :  { %8262 = vmatmul.msk.bf16.gmra.mxu0 %vm1346_vm5, %v8857_v19  ;;  %8267 = vmatmul.msk.bf16.vlgmr.msrb.gmra.mxu3 %vm1346_vm5, %v8858_v61  ;;  %v8870_v19 = vld [vmem:[%s12376_s6 + $0x150] sm:$0xff]  ;;  %v5018_v61 = vpop.f32.mrf.mxu1 }
 0xbdd   :  { %5679 = vmatpush.bf16.msrb.mxu3 %v5671_v50  ;;  %v8869_v50 = vld [vmem:[%s12376_s6 + $0x128] sm:$0xff] }
 0xbe0   :  { %v5628_v15 = vpop.permute.xlu0 %5627  ;;  %v5752_v53 = vpop.permute.xlu1 %5751 }
 0xbe1   :  { %5680 = vmatpush.bf16.msrb.mxu3 %v5666_v16  ;;  %5642 = vmatpush.bf16.msrb.mxu1 %v5628_v15  ;;  %v5834_v16 = vpop.permute.xlu2 %5833 }
 0xbe2   :  { %v5837_v18 = vsel %vm1356_vm4, %v5834_v16, 0 }
 0xbe4   :  { %8271 = vmatmul.msk.bf16.gmra.mxu2 %vm1346_vm5, %v8859_v42 }
 0xbe8   :  { %v5750_v39 = vpop.permute.xlu0 %5749  ;;  %v5796_v31 = vpop.permute.xlu1 %5795 }
 0xbe9   :  { %v4978_v28 = vpop.f32.mrf.mxu0  ;;  %v5799_v10 = vsel %vm1356_vm4, %v5796_v31, 0  ;;  %v5757_v25 = vsel %vm12757_vm7, %v5750_v39, %v5752_v53  ;;  %v5832_v15 = vpop.permute.xlu2 %5831 }
 0xbea   :  { %v5007_v27 = vadd.f32 %v5006_v3, %v4978_v28  ;;  %8266 = vmatmul.msk.bf16.gmra.mxu1 %vm1346_vm5, %v8860_v33 }
 0xbec   :  { %8263 = vmatmul.msk.bf16.gmra.mxu0 %vm1346_vm5, %v8861_v23  ;;  %8268 = vmatmul.msk.bf16.gmra.mxu3 %vm1346_vm5, %v8862_v1 }
 0xbf0   :  { %v5794_v6 = vpop.permute.xlu1 %5793  ;;  %v5872_v48 = vpop.permute.xlu0 %5871 }
 0xbf1   :  { %v4980_v7 = vpop.f32.mrf.mxu0  ;;  %v5875_v0 = vsel %vm1356_vm4, %v5872_v48, 0  ;;  %v8875_v48 = vld [vmem:[%s12376_s6 + $0x178] sm:$0xff] }
 0xbf2   :  { %v5009_v5 = vadd.f32 %v5008_v8, %v4980_v7 }
 0xbf4   :  { %8272 = vmatmul.msk.bf16.gmra.mxu2 %vm1346_vm5, %v8863_v34 }
 0xbf7   :  { %v5076_v12 = vpop.f32.mrf.mxu2 }
 0xbf8   :  { %v5870_v9 = vpop.permute.xlu0 %5869 }
 0xbf9   :  { %v4983_v59 = vpop.f32.mrf.mxu0 }
 0xbfa   :  { %v5012_v62 = vadd.f32 %v5011_v14, %v4983_v59  ;;  %8276 = vmatmul.msk.bf16.vlgmr.msra.gmra.mxu1 %vm1346_vm5, %v8864_v32  ;;  %v8874_v59 = vld [vmem:[%s12376_s6 + $0x158] sm:$0xff] }
 0xbfb   :  { %5807 = vmatpush.bf16.msra.mxu1 %v5799_v10 }
 0xbfc   :  { %8269 = vmatmul.msk.bf16.gmra.mxu3 %vm1346_vm5, %v8865_v49  ;;  %8273 = vmatmul.msk.bf16.vlgmr.msra.gmra.mxu0 %vm1346_vm5, %v8866_v22 }
 0xbfd   :  { %5769 = vmatpush.bf16.msra.mxu0 %v5761_v47 }
 0xbff   :  { %5808 = vmatpush.bf16.msra.mxu1 %v5794_v6  ;;  %v5038_v13 = vpop.f32.mrf.mxu3  ;;  %v5078_v60 = vpop.f32.mrf.mxu2 }
 0xc00   :  { %v5053_v51 = vadd.f32 %v5038_v13, %v5007_v27  ;;  %v8871_v27 = vld [vmem:[%s12376_s6 + $0x170] sm:$0xff] }
 0xc01   :  { %5770 = vmatpush.bf16.msra.mxu0 %v5757_v25  ;;  %v4985_v11 = vpop.f32.mrf.mxu0 }
 0xc02   :  { %v5091_v2 = vadd.f32 %v5076_v12, %v5053_v51  ;;  %v5014_v33 = vadd.f32 %v5013_v4, %v4985_v11  ;;  %v8872_v12 = vld [vmem:[%s12376_s6 + $0x148] sm:$0xff]  ;;  %v5910_v11 = vpop.permute.xlu2 %5909 }
 0xc03   :  { %v5913_v16 = vsel %vm1356_vm4, %v5910_v11, 0 }
 0xc04   :  { %8282 = vmatmul.msk.bf16.vlgmr.msra.gmra.mxu2 %vm1346_vm5, %v8867_v43 }
 0xc05   :  { %5883 = vmatpush.bf16.msra.mxu2 %v5875_v0 }
 0xc07   :  { %v5040_v30 = vpop.f32.mrf.mxu3  ;;  %v5081_v46 = vpop.f32.mrf.mxu2 }
 0xc08   :  { %v5054_v24 = vadd.f32 %v5040_v30, %v5009_v5  ;;  %v8877_v30 = vld [vmem:[%s12376_s6 + $0x160] sm:$0xff] }
 0xc09   :  { %5884 = vmatpush.bf16.msra.mxu2 %v5870_v9  ;;  %v4988_v57 = vpop.f32.mrf.mxu0 }
 0xc0a   :  { %v5017_v36 = vadd.f32 %v5016_v21, %v4988_v57  ;;  %v5092_v29 = vadd.f32 %v5078_v60, %v5054_v24  ;;  %8277 = vmatmul.msk.bf16.gmra.mxu1 %vm1346_vm5, %v8868_v20  ;;  %v8876_v21 = vld [vmem:[%s12376_s6 + $0x198] sm:$0xff]  ;;  %v5908_v57 = vpop.permute.xlu0 %5907 }
 0xc0c   :  { %8274 = vmatmul.msk.bf16.gmra.mxu0 %vm1346_vm5, %v8869_v50  ;;  %8279 = vmatmul.msk.bf16.vlgmr.msra.gmra.mxu3 %vm1346_vm5, %v8870_v19 }
 0xc0d   :  { %5845 = vmatpush.bf16.msra.mxu3 %v5837_v18 }
 0xc0f   :  { %v5043_v3 = vpop.f32.mrf.mxu3  ;;  %v5083_v58 = vpop.f32.mrf.mxu2 }
 0xc10   :  { %v5055_v42 = vadd.f32 %v5043_v3, %v5012_v62 }
 0xc11   :  { %5846 = vmatpush.bf16.msra.mxu3 %v5832_v15  ;;  %v4990_v8 = vpop.f32.mrf.mxu0 }
 0xc12   :  { %v5019_v28 = vadd.f32 %v5018_v61, %v4990_v8  ;;  %v5093_v53 = vadd.f32 %v5081_v46, %v5055_v42  ;;  %v8878_v46 = vld [vmem:[%s12376_s6 + $0x180] sm:$0xff]  ;;  %v8880_v61 = vld [vmem:[%s12376_s6 + $0x1c8] sm:$0xff] }
 0xc14   :  { %8283 = vmatmul.msk.bf16.gmra.mxu2 %vm1346_vm5, %v8871_v27  ;;  %v8881_v27 = vld [vmem:[%s12376_s6 + $0x1a0] sm:$0xff] }
 0xc17   :  { %v5045_v23 = vpop.f32.mrf.mxu3  ;;  %v5163_v1 = vpop.f32.mrf.mxu1 }
 0xc18   :  { %v5056_v14 = vadd.f32 %v5045_v23, %v5014_v33  ;;  %v5086_v7 = vpop.f32.mrf.mxu2  ;;  %v8882_v23 = vld [vmem:[%s12376_s6 + $0x188] sm:$0xff] }
 0xc19   :  { %v5114_v39 = vpop.f32.mrf.mxu0 }
 0xc1a   :  { %v5094_v31 = vadd.f32 %v5083_v58, %v5056_v14  ;;  %v5129_v34 = vadd.f32 %v5114_v39, %v5091_v2  ;;  %8278 = vmatmul.msk.bf16.gmra.mxu1 %vm1346_vm5, %v8872_v12 }
 0xc1c   :  { %v5178_v45 = vadd.f32 %v5163_v1, %v5129_v34  ;;  %8275 = vmatmul.msk.bf16.gmra.mxu0 %vm1346_vm5, %v8873_v17  ;;  %8280 = vmatmul.msk.bf16.gmra.mxu3 %vm1346_vm5, %v8874_v59  ;;  %v8883_v1 = vld [vmem:[%s12376_s6 + $0x1b0] sm:$0xff] }
 0xc1d   :  { %v8884_v59 = vld [vmem:[%s12376_s6 + $0x1d0] sm:$0xff] }
 0xc1f   :  { %v5048_v10 = vpop.f32.mrf.mxu3  ;;  %v5165_v62 = vpop.f32.mrf.mxu1 }
 0xc20   :  { %v5057_v32 = vadd.f32 %v5048_v10, %v5017_v36  ;;  %v5088_v4 = vpop.f32.mrf.mxu2 }
 0xc21   :  { %v5116_v47 = vpop.f32.mrf.mxu0 }
 0xc22   :  { %v5095_v49 = vadd.f32 %v5086_v7, %v5057_v32  ;;  %v5130_v22 = vadd.f32 %v5116_v47, %v5092_v29 }
 0xc24   :  { %v5179_v6 = vadd.f32 %v5165_v62, %v5130_v22  ;;  %8284 = vmatmul.msk.bf16.gmra.mxu2 %vm1346_vm5, %v8875_v48 }
 0xc27   :  { %v5050_v13 = vpop.f32.mrf.mxu3  ;;  %v5168_v60 = vpop.f32.mrf.mxu1 }
 0xc28   :  { %v5058_v51 = vadd.f32 %v5050_v13, %v5019_v28  ;;  %v5239_v25 = vpop.f32.mrf.mxu2  ;;  %v8886_v13 = vld [vmem:[%s12376_s6 + $0x190] sm:$0xff] }
 0xc29   :  { %v5119_v2 = vpop.f32.mrf.mxu0 }
 0xc2a   :  { %v5096_v0 = vadd.f32 %v5088_v4, %v5058_v51  ;;  %v5131_v43 = vadd.f32 %v5119_v2, %v5093_v53  ;;  %8288 = vmatmul.msk.bf16.vlgmr.msrb.gmra.mxu1 %vm1346_vm5, %v8876_v21 }
 0xc2b   :  { %6125 = vmatpush.bf16.msrb.mxu1 %v10635_v26  ;;  %v8879_v26 = vld [vmem:[%s12379_s9] sm:$0xff] }
 0xc2c   :  { %v5180_v5 = vadd.f32 %v5168_v60, %v5131_v43  ;;  %8281 = vmatmul.msk.bf16.gmra.mxu3 %vm1346_vm5, %v8877_v30  ;;  %8285 = vmatmul.msk.bf16.vlgmr.msrb.gmra.mxu0 %vm1346_vm5, %v8878_v46  ;;  %v8887_v60 = vld [vmem:[%s12376_s6 + $0x1b8] sm:$0xff] }
 0xc2d   :  { %5921 = vmatpush.bf16.msrb.mxu0 %v5913_v16  ;;  %v8888_v16 = vld [vmem:[%s12376_s6 + $0x1d8] sm:$0xff] }
 0xc2f   :  { %v5201_v9 = vpop.f32.mrf.mxu3  ;;  %v5170_v24 = vpop.f32.mrf.mxu1  ;;  %6126 = vmatpush.bf16.msrb.mxu1 %v8879_v26 }
 0xc30   :  { %v5216_v36 = vadd.f32 %v5201_v9, %v5178_v45  ;;  %v5241_v29 = vpop.f32.mrf.mxu2 }
 0xc31   :  { %5922 = vmatpush.bf16.msrb.mxu0 %v5908_v57  ;;  %v5121_v20 = vpop.f32.mrf.mxu0 }
 0xc32   :  { %v5132_v18 = vadd.f32 %v5121_v20, %v5094_v31  ;;  %v5254_v50 = vadd.f32 %v5239_v25, %v5216_v36  ;;  %v8889_v36 = vld [vmem:[%s12376_s6 + $0x1f8] sm:$0xff]  ;;  %v8890_v20 = vld [vmem:[%s12376_s6 + $0x1c0] sm:$0xff] }
 0xc34   :  { %v5181_v19 = vadd.f32 %v5170_v24, %v5132_v18  ;;  %8294 = vmatmul.msk.bf16.vlgmr.msrb.gmra.mxu2 %vm1346_vm5, %v8880_v61  ;;  %v8891_v18 = vld [vmem:[%s12376_s6 + $0x1e0] sm:$0xff] }
 0xc37   :  { %v5203_v3 = vpop.f32.mrf.mxu3  ;;  %v5173_v58 = vpop.f32.mrf.mxu1 }
 0xc38   :  { %v5217_v15 = vadd.f32 %v5203_v3, %v5179_v6  ;;  %v5244_v42 = vpop.f32.mrf.mxu2  ;;  %v8885_v6 = vld [vmem:[%s12376_s6 + $0x1a8] sm:$0xff] }
 0xc39   :  { %v5124_v8 = vpop.f32.mrf.mxu0 }
 0xc3a   :  { %v5133_v28 = vadd.f32 %v5124_v8, %v5095_v49  ;;  %v5255_v53 = vadd.f32 %v5241_v29, %v5217_v15  ;;  %8289 = vmatmul.msk.bf16.gmra.mxu1 %vm1346_vm5, %v8881_v27  ;;  %v8892_v8 = vld [vmem:[%s12376_s6 + $0x228] sm:$0xff] }
 0xc3c   :  { %v5182_v33 = vadd.f32 %v5173_v58, %v5133_v28  ;;  %8286 = vmatmul.msk.bf16.gmra.mxu0 %vm1346_vm5, %v8882_v23  ;;  %8291 = vmatmul.msk.bf16.vlgmr.msrb.gmra.mxu3 %vm1346_vm5, %v8883_v1  ;;  %v8893_v1 = vld [vmem:[%s12376_s6 + $0x200] sm:$0xff] }
 0xc3f   :  { %v5206_v14 = vpop.f32.mrf.mxu3  ;;  %v5175_v7 = vpop.f32.mrf.mxu1 }
 0xc40   :  { %v5218_v39 = vadd.f32 %v5206_v14, %v5180_v5  ;;  %v5246_v31 = vpop.f32.mrf.mxu2 }
 0xc41   :  { %v5126_v34 = vpop.f32.mrf.mxu0 }
 0xc42   :  { %v5134_v12 = vadd.f32 %v5126_v34, %v5096_v0  ;;  %v5256_v45 = vadd.f32 %v5244_v42, %v5218_v39  ;;  %v8895_v39 = vld [vmem:[%s12376_s6 + $0x210] sm:$0xff] }
 0xc44   :  { %v5183_v17 = vadd.f32 %v5175_v7, %v5134_v12  ;;  %8295 = vmatmul.msk.bf16.gmra.mxu2 %vm1346_vm5, %v8884_v59  ;;  %v8894_v7 = vld [vmem:[%s12376_s6 + $0x1e8] sm:$0xff] }
 0xc47   :  { %v5208_v10 = vpop.f32.mrf.mxu3  ;;  %v5315_v62 = vpop.f32.mrf.mxu1 }
 0xc48   :  { %v5219_v32 = vadd.f32 %v5208_v10, %v5181_v19  ;;  %v5249_v4 = vpop.f32.mrf.mxu2 }
 0xc49   :  { %v5277_v47 = vpop.f32.mrf.mxu0 }
 0xc4a   :  { %v5257_v49 = vadd.f32 %v5246_v31, %v5219_v32  ;;  %v5292_v22 = vadd.f32 %v5277_v47, %v5254_v50  ;;  %8290 = vmatmul.msk.bf16.gmra.mxu1 %vm1346_vm5, %v8885_v6  ;;  %v8897_v6 = vld [vmem:[%s12376_s6 + $0x208] sm:$0xff] }
 0xc4c   :  { %v5330_v48 = vadd.f32 %v5315_v62, %v5292_v22  ;;  %8287 = vmatmul.msk.bf16.gmra.mxu0 %vm1346_vm5, %v8886_v13  ;;  %8292 = vmatmul.msk.bf16.gmra.mxu3 %vm1346_vm5, %v8887_v60  ;;  %v8896_v62 = vld [vmem:[%s12376_s6 + $0x230] sm:$0xff]  ;;  %v8899_v60 = vld [vmem:[%s12376_s6 + $0x218] sm:$0xff] }
 0xc4d   :  { %v8898_v13 = vld [vmem:[%s12376_s6 + $0x1f0] sm:$0xff] }
 0xc4f   :  { %v5211_v51 = vpop.f32.mrf.mxu3  ;;  %v11727_v25 = vpop.f32.mrf.mxu1 }
 0xc50   :  { %v5220_v11 = vadd.f32 %v5211_v51, %v5182_v33  ;;  %v5251_v2 = vpop.f32.mrf.mxu2 }
 0xc51   :  { %v5279_v0 = vpop.f32.mrf.mxu0 }
 0xc52   :  { %v5258_v43 = vadd.f32 %v5249_v4, %v5220_v11  ;;  %v11729_v21 = vadd.f32 %v5279_v0, %v5255_v53 }
 0xc54   :  { %8296 = vmatmul.msk.bf16.gmra.mxu2 %vm1346_vm5, %v8888_v16 }
 0xc57   :  { %v5213_v5 = vpop.f32.mrf.mxu3  ;;  %v5320_v30 = vpop.f32.mrf.mxu1 }
 0xc58   :  { %v5221_v46 = vadd.f32 %v5213_v5, %v5183_v17  ;;  %v5405_v9 = vpop.f32.mrf.mxu2  ;;  %v8900_v5 = vld [vmem:[%s12376_s6 + $0x238] sm:$0xff] }
 0xc59   :  { %v5282_v24 = vpop.f32.mrf.mxu0 }
 0xc5a   :  { %v5259_v26 = vadd.f32 %v5251_v2, %v5221_v46  ;;  %v5294_v57 = vadd.f32 %v5282_v24, %v5256_v45  ;;  %8300 = vmatmul.msk.bf16.vlgmr.msra.gmra.mxu1 %vm1346_vm5, %v8889_v36  ;;  %v8901_v36 = vld [vmem:[%s12376_s6 + $0x220] sm:$0xff] }
 0xc5c   :  { %v5332_v29 = vadd.f32 %v5320_v30, %v5294_v57  ;;  %8293 = vmatmul.msk.bf16.gmra.mxu3 %vm1346_vm5, %v8890_v20  ;;  %8297 = vmatmul.msk.bf16.vlgmr.msra.gmra.mxu0 %vm1346_vm5, %v8891_v18 }
 0xc5f   :  { %v5367_v50 = vpop.f32.mrf.mxu3  ;;  %v11747_v19 = vpop.f32.mrf.mxu1 }
 0xc60   :  { %v5382_v61 = vadd.f32 %v5367_v50, %v5330_v48  ;;  %v11749_v3 = vpop.f32.mrf.mxu2 }
 0xc61   :  { %v5284_v58 = vpop.f32.mrf.mxu0 }
 0xc62   :  { %v11751_v15 = vadd.f32 %v5284_v58, %v5257_v49  ;;  %v5420_v42 = vadd.f32 %v5405_v9, %v5382_v61 }
 0xc64   :  { %8306 = vmatmul.msk.bf16.vlgmr.msra.gmra.mxu2 %vm1346_vm5, %v8892_v8 }
 0xc67   :  { %v11757_v28 = vpop.f32.mrf.mxu3  ;;  %v5325_v53 = vpop.f32.mrf.mxu1 }
 0xc68   :  { %v5410_v27 = vpop.f32.mrf.mxu2 }
 0xc69   :  { %v5287_v33 = vpop.f32.mrf.mxu0 }
 0xc6a   :  { %v5296_v23 = vadd.f32 %v5287_v33, %v5258_v43  ;;  %8301 = vmatmul.msk.bf16.gmra.mxu1 %vm1346_vm5, %v8893_v1 }
 0xc6c   :  { %v5334_v14 = vadd.f32 %v5325_v53, %v5296_v23  ;;  %8298 = vmatmul.msk.bf16.gmra.mxu0 %vm1346_vm5, %v8894_v7  ;;  %8303 = vmatmul.msk.bf16.vlgmr.msra.gmra.mxu3 %vm1346_vm5, %v8895_v39 }
 0xc6f   :  { %v5372_v31 = vpop.f32.mrf.mxu3  ;;  %v11771_v34 = vpop.f32.mrf.mxu1 }
 0xc70   :  { %v5384_v12 = vadd.f32 %v5372_v31, %v5332_v29  ;;  %v11773_v45 = vpop.f32.mrf.mxu2  ;;  %v8902_v29 = vld [vmem:[%s12376_s6 + $0x240] sm:$0xff] }
 0xc71   :  { %v5289_v17 = vpop.f32.mrf.mxu0 }
 0xc72   :  { %v11775_v59 = vadd.f32 %v5289_v17, %v5259_v26  ;;  %v5422_v10 = vadd.f32 %v5410_v27, %v5384_v12 }
 0xc74   :  { %8307 = vmatmul.msk.bf16.gmra.mxu2 %vm1346_vm5, %v8896_v62 }
 0xc77   :  { %v11781_v32 = vpop.f32.mrf.mxu3  ;;  %v5481_v4 = vpop.f32.mrf.mxu1 }
 0xc78   :  { %v5415_v47 = vpop.f32.mrf.mxu2 }
 0xc79   :  { %v5443_v49 = vpop.f32.mrf.mxu0 }
 0xc7a   :  { %v5458_v22 = vadd.f32 %v5443_v49, %v5420_v42  ;;  %8302 = vmatmul.msk.bf16.gmra.mxu1 %vm1346_vm5, %v8897_v6  ;;  %v8904_v49 = vld [vmem:[%s12376_s6 + $0x250] sm:$0xff] }
 0xc7c   :  { %v5496_v48 = vadd.f32 %v5481_v4, %v5458_v22  ;;  %8299 = vmatmul.msk.bf16.gmra.mxu0 %vm1346_vm5, %v8898_v13  ;;  %8304 = vmatmul.msk.bf16.gmra.mxu3 %vm1346_vm5, %v8899_v60 }
 0xc7f   :  { %v5377_v51 = vpop.f32.mrf.mxu3  ;;  %v11795_v11 = vpop.f32.mrf.mxu1 }
 0xc80   :  { %v5386_v2 = vadd.f32 %v5377_v51, %v5334_v14  ;;  %v11797_v0 = vpop.f32.mrf.mxu2  ;;  %v8903_v14 = vld [vmem:[%s12376_s6 + $0x248] sm:$0xff]  ;;  %s12781_s6 = smov 88  }
 0xc81   :  { %v11799_v43 = vpop.f32.mrf.mxu0 }
 0xc82   :  { %v5424_v16 = vadd.f32 %v5415_v47, %v5386_v2 }
 0xc84   :  { %8308 = vmatmul.msk.bf16.gmra.mxu2 %vm1346_vm5, %v8900_v5 }
 0xc87   :  { %v11805_v30 = vpop.f32.mrf.mxu3  ;;  %v5486_v46 = vpop.f32.mrf.mxu1 }
 0xc88   :  { %v5568_v9 = vpop.f32.mrf.mxu2 }
 0xc89   :  { %v5448_v24 = vpop.f32.mrf.mxu0 }
 0xc8a   :  { %v5460_v26 = vadd.f32 %v5448_v24, %v5422_v10 }
 0xc8c   :  { %v5498_v57 = vadd.f32 %v5486_v46, %v5460_v26  ;;  %8305 = vmatmul.msk.bf16.gmra.mxu3 %vm1346_vm5, %v8901_v36  ;;  %8309 = vmatmul.msk.bf16.vlgmr.msrb.gmra.mxu0 %vm1346_vm5, %v8902_v29 }
 0xc8f   :  { %v5519_v20 = vpop.f32.mrf.mxu3  ;;  %v11815_v18 = vpop.f32.mrf.mxu1 }
 0xc90   :  { %v5534_v50 = vadd.f32 %v5519_v20, %v5496_v48  ;;  %v11817_v61 = vpop.f32.mrf.mxu2 }
 0xc91   :  { %v11819_v58 = vpop.f32.mrf.mxu0 }
 0xc92   :  { %v5583_v42 = vadd.f32 %v5568_v9, %v5534_v50 }
 0xc97   :  { %v5521_v8 = vpop.f32.mrf.mxu3  ;;  %v5491_v33 = vpop.f32.mrf.mxu1 }
 0xc98   :  { %v5573_v53 = vpop.f32.mrf.mxu2 }
 0xc99   :  { %v5453_v27 = vpop.f32.mrf.mxu0 }
 0xc9a   :  { %v5462_v23 = vadd.f32 %v5453_v27, %v5424_v16 }
 0xc9c   :  { %v5500_v1 = vadd.f32 %v5491_v33, %v5462_v23  ;;  %8310 = vmatmul.msk.bf16.gmra.mxu0 %vm1346_vm5, %v8903_v14 }
 0xc9f   :  { %v5524_v7 = vpop.f32.mrf.mxu3  ;;  %v11835_v22 = vpop.f32.mrf.mxu1 }
 0xca0   :  { %v5536_v39 = vadd.f32 %v5524_v7, %v5498_v57  ;;  %v11827_v12 = vpop.f32.mrf.mxu2 }
 0xca1   :  { %v11825_v31 = vpop.f32.mrf.mxu0 }
 0xca2   :  { %v5585_v17 = vadd.f32 %v5573_v53, %v5536_v39 }
 0xca7   :  { %v11829_v10 = vpop.f32.mrf.mxu3  ;;  %v5644_v16 = vpop.f32.mrf.mxu1 }
 0xca8   :  { %v5578_v47 = vpop.f32.mrf.mxu2 }
 0xca9   :  { %v5606_v62 = vpop.f32.mrf.mxu0 }
 0xcaa   :  { %v5621_v4 = vadd.f32 %v5606_v62, %v5583_v42 }
 0xcac   :  { %8311 = vmatmul.msk.bf16.gmra.mxu0 %vm1346_vm5, %v8904_v49  ;;  %vm12758_vm5 = vcmask 203776  }
 0xcad   :  { %vm12759_vm8 = vmmov %vm12758_vm5 }
 0xcae   :  { %vm12760_vm0 = vmmov %vm12758_vm5 }
 0xcaf   :  { %v5529_v6 = vpop.f32.mrf.mxu3  ;;  %v5646_v57 = vpop.f32.mrf.mxu1  ;;  %vm12761_vm1 = vmmov %vm12760_vm0 }
 0xcb0   :  { %v5538_v48 = vadd.f32 %v5529_v6, %v5500_v1  ;;  %v11837_v51 = vpop.f32.mrf.mxu2  ;;  %vm12762_vm10 = vmmov %vm12760_vm0 }
 0xcb1   :  { %v5608_v13 = vpop.f32.mrf.mxu0  ;;  %vm12763_vm3 = vmmov %vm12760_vm0 }
 0xcb2   :  { %v5587_v60 = vadd.f32 %v5578_v47, %v5538_v48  ;;  %v5331_v47 = vadd.f32 %v11727_v25, %v11729_v21  ;;  %vm12764_vm11 = vmmov %vm12760_vm0 }
 0xcb3   :  { %vm12765_vm12 = vmmov %vm12760_vm0 }
 0xcb4   :  { %v5383_v6 = vadd.f32 %v11757_v28, %v5331_v47  ;;  %v5333_v28 = vadd.f32 %v11747_v19, %v11751_v15  ;;  %v5659_v47 = vadd.f32 %v5644_v16, %v5621_v4  ;;  %vm12766_vm13 = vmmov %vm12760_vm0 }
 0xcb5   :  { %vm12767_vm6 = vmmov %vm12760_vm0 }
 0xcb6   :  { %v5385_v44 = vadd.f32 %v11781_v32, %v5333_v28  ;;  %vm12768_vm7 = vmmov %vm12760_vm0 }
 0xcb7   :  { %v11839_v2 = vpop.f32.mrf.mxu3  ;;  %v5649_v42 = vpop.f32.mrf.mxu1 }
 0xcb8   :  { %v5720_v24 = vpop.f32.mrf.mxu2  ;;  %v5423_v52 = vadd.f32 %v11773_v45, %v5385_v44  ;;  %v5335_v44 = vadd.f32 %v11771_v34, %v11775_v59 }
 0xcb9   :  { %v5611_v5 = vpop.f32.mrf.mxu0 }
 0xcba   :  { %v5623_v46 = vadd.f32 %v5611_v5, %v5585_v17  ;;  %v5421_v5 = vadd.f32 %v11749_v3, %v5383_v6 }
 0xcbc   :  { %v5459_v55 = vadd.f32 %v11799_v43, %v5421_v5  ;;  %v5661_v45 = vadd.f32 %v5649_v42, %v5623_v46 }
 0xcbe   :  { %v5497_v54 = vadd.f32 %v11795_v11, %v5459_v55 }
 0xcbf   :  { %v5682_v9 = vpop.f32.mrf.mxu3  ;;  %v11847_v23 = vpop.f32.mrf.mxu1 }
 0xcc0   :  { %v5722_v20 = vpop.f32.mrf.mxu2  ;;  %v5535_v25 = vadd.f32 %v5521_v8, %v5497_v54  ;;  %v5697_v6 = vadd.f32 %v5682_v9, %v5659_v47  ;;  %v5461_v54 = vadd.f32 %v11819_v58, %v5423_v52 }
 0xcc1   :  { %v11841_v26 = vpop.f32.mrf.mxu0 }
 0xcc2   :  { %v5584_v3 = vadd.f32 %v11817_v61, %v5535_v25  ;;  %v5735_v40 = vadd.f32 %v5720_v24, %v5697_v6  ;;  %v5499_v32 = vadd.f32 %v11815_v18, %v5461_v54 }
 0xcc4   :  { %v5622_v43 = vadd.f32 %v5608_v13, %v5584_v3  ;;  %v5537_v16 = vadd.f32 %v11829_v10, %v5499_v32 }
 0xcc6   :  { %v5660_v55 = vadd.f32 %v5646_v57, %v5622_v43  ;;  %v5586_v58 = vadd.f32 %v11827_v12, %v5537_v16 }
 0xcc7   :  { %v5684_v36 = vpop.f32.mrf.mxu3  ;;  %v11853_v39 = vpop.f32.mrf.mxu1 }
 0xcc8   :  { %v5725_v33 = vpop.f32.mrf.mxu2  ;;  %v5698_v19 = vadd.f32 %v5684_v36, %v5660_v55  ;;  %v5624_v18 = vadd.f32 %v11841_v26, %v5586_v58 }
 0xcc9   :  { %v5616_v29 = vpop.f32.mrf.mxu0 }
 0xcca   :  { %v11843_v50 = vadd.f32 %v5616_v29, %v5587_v60  ;;  %v5736_v9 = vadd.f32 %v5722_v20, %v5698_v19  ;;  %v5662_v12 = vadd.f32 %v11847_v23, %v5624_v18 }
 0xccc   :  { %v5663_v23 = vadd.f32 %v11853_v39, %v11843_v50 }
 0xccf   :  { %v5687_v53 = vpop.f32.mrf.mxu3  ;;  %v11862_v60 = vpop.f32.mrf.mxu1 }
 0xcd0   :  { %v11851_v7 = vpop.f32.mrf.mxu2  ;;  %v5699_v24 = vadd.f32 %v5687_v53, %v5661_v45 }
 0xcd1   :  { %v11845_v27 = vpop.f32.mrf.mxu0 }
 0xcd2   :  { %v5737_v28 = vadd.f32 %v5725_v33, %v5699_v24 }
 0xcd7   :  { %v11849_v1 = vpop.f32.mrf.mxu3  ;;  %v5810_v21 = vpop.f32.mrf.mxu1 }
 0xcd8   :  { %v11859_v49 = vpop.f32.mrf.mxu2  ;;  %v5700_v26 = vadd.f32 %v11849_v1, %v5662_v12 }
 0xcd9   :  { %v5772_v14 = vpop.f32.mrf.mxu0 }
 0xcda   :  { %v5787_v11 = vadd.f32 %v5772_v14, %v5735_v40  ;;  %v5387_v40 = vadd.f32 %v11805_v30, %v5335_v44  ;;  %v5738_v43 = vadd.f32 %v11851_v7, %v5700_v26 }
 0xcdc   :  { %v5825_v61 = vadd.f32 %v5810_v21, %v5787_v11  ;;  %v5425_v20 = vadd.f32 %v11797_v0, %v5387_v40 }
 0xcde   :  { %v5463_v30 = vadd.f32 %v11825_v31, %v5425_v20 }
 0xcdf   :  { %v11855_v62 = vpop.f32.mrf.mxu3  ;;  %v5812_v8 = vpop.f32.mrf.mxu1 }
 0xce0   :  { %v11868_v37 = vpop.f32.mrf.mxu2  ;;  %v5501_v47 = vadd.f32 %v11835_v22, %v5463_v30  ;;  %v5701_v22 = vadd.f32 %v11855_v62, %v5663_v23 }
 0xce1   :  { %v5774_v17 = vpop.f32.mrf.mxu0 }
 0xce2   :  { %v5788_v52 = vadd.f32 %v5774_v17, %v5736_v9  ;;  %v5539_v6 = vadd.f32 %v11839_v2, %v5501_v47 }
 0xce4   :  { %v5826_v21 = vadd.f32 %v5812_v8, %v5788_v52 }
 0xce7   :  { %v11865_v29 = vpop.f32.mrf.mxu3  ;;  %v5815_v36 = vpop.f32.mrf.mxu1 }
 0xce8   :  { %v5886_v5 = vpop.f32.mrf.mxu2 }
 0xce9   :  { %v5777_v48 = vpop.f32.mrf.mxu0 }
 0xcea   :  { %v5789_v46 = vadd.f32 %v5777_v48, %v5737_v28  ;;  %v5588_v48 = vadd.f32 %v11837_v51, %v5539_v6 }
 0xcec   :  { %v5827_v3 = vadd.f32 %v5815_v36, %v5789_v46  ;;  %v5626_v2 = vadd.f32 %v11845_v27, %v5588_v48 }
 0xcef   :  { %v5848_v56 = vpop.f32.mrf.mxu3  ;;  %v5817_v33 = vpop.f32.mrf.mxu1 }
 0xcf0   :  { %v5863_v13 = vadd.f32 %v5848_v56, %v5825_v61  ;;  %v5888_v25 = vpop.f32.mrf.mxu2 }
 0xcf1   :  { %v11870_v63 = vpop.f32.mrf.mxu0 }
 0xcf2   :  { %v5901_v57 = vadd.f32 %v5886_v5, %v5863_v13  ;;  %v5790_v1 = vadd.f32 %v11870_v63, %v5738_v43  ;;  %v5664_v63 = vadd.f32 %v11862_v60, %v5626_v2 }
 0xcf4   :  { %v5828_v7 = vadd.f32 %v5817_v33, %v5790_v1  ;;  %v5702_v39 = vadd.f32 %v11865_v29, %v5664_v63 }
 0xcf6   :  { %v5740_v44 = vadd.f32 %v11868_v37, %v5702_v39 }
 0xcf7   :  { %v5850_v15 = vpop.f32.mrf.mxu3  ;;  %v5820_v16 = vpop.f32.mrf.mxu1 }
 0xcf8   :  { %v5864_v34 = vadd.f32 %v5850_v15, %v5826_v21  ;;  %v5891_v42 = vpop.f32.mrf.mxu2  ;;  %v5739_v15 = vadd.f32 %v11859_v49, %v5701_v22 }
 0xcf9   :  { %v11877_v41 = vpop.f32.mrf.mxu0 }
 0xcfa   :  { %v5902_v53 = vadd.f32 %v5888_v25, %v5864_v34  ;;  %v5791_v51 = vadd.f32 %v11877_v41, %v5739_v15 }
 0xcfc   :  { %v5829_v13 = vadd.f32 %v5820_v16, %v5791_v51 }
 0xcff   :  { %v5853_v56 = vpop.f32.mrf.mxu3  ;;  %v5822_v40 = vpop.f32.mrf.mxu1 }
 0xd00   :  { %v5865_v5 = vadd.f32 %v5853_v56, %v5827_v3  ;;  %v5893_v11 = vpop.f32.mrf.mxu2 }
 0xd01   :  { %v11881_v4 = vpop.f32.mrf.mxu0 }
 0xd02   :  { %v5903_v55 = vadd.f32 %v5891_v42, %v5865_v5  ;;  %v5792_v52 = vadd.f32 %v11881_v4, %v5740_v44 }
 0xd04   :  { %v5830_v24 = vadd.f32 %v5822_v40, %v5792_v52 }
 0xd07   :  { %v5855_v54 = vpop.f32.mrf.mxu3 }
 0xd08   :  { %v5866_v32 = vadd.f32 %v5855_v54, %v5828_v7  ;;  %v5896_v25 = vpop.f32.mrf.mxu2 }
 0xd09   :  { %v5924_v14 = vpop.f32.mrf.mxu0 }
 0xd0a   :  { %v11890_v10 = vadd.f32 %v5924_v14, %v5901_v57  ;;  %v5904_v62 = vadd.f32 %v5893_v11, %v5866_v32 }
 0xd0c   :  { %v5945_v59 = vsel %vm12758_vm5, %v11890_v10, 0.0  ;;  %vm12769_vm5 = vmmov %vm12760_vm0 }
 0xd0d   :  { %5946 = vadd.xlane.f32.xlu1 %v5945_v59 }
 0xd0f   :  { %v5858_v50 = vpop.f32.mrf.mxu3 }
 0xd10   :  { %v5867_v49 = vadd.f32 %v5858_v50, %v5829_v13  ;;  %v5898_v14 = vpop.f32.mrf.mxu2 }
 0xd11   :  { %v5926_v17 = vpop.f32.mrf.mxu0 }
 0xd12   :  { %v5940_v0 = vadd.f32 %v5926_v17, %v5902_v53  ;;  %v5905_v60 = vadd.f32 %v5896_v25, %v5867_v49 }
 0xd14   :  { %v5948_v31 = vsel %vm12759_vm8, %v5940_v0, 0.0 }
 0xd15   :  { %5949 = vadd.xlane.f32.xlu2 %v5948_v31 }
 0xd17   :  { %v5860_v58 = vpop.f32.mrf.mxu3 }
 0xd18   :  { %v5868_v29 = vadd.f32 %v5860_v58, %v5830_v24 }
 0xd19   :  { %v5929_v8 = vpop.f32.mrf.mxu0 }
 0xd1a   :  { %v5941_v19 = vadd.f32 %v5929_v8, %v5903_v55  ;;  %v5906_v18 = vadd.f32 %v5898_v14, %v5868_v29  ;;  %v11958_v29 = vld [vmem:[%s12377_s7] ss:$0 sm:$0xff]  ;;  %s12773_s7 = smov 124  }
 0xd1c   :  { %v5951_v61 = vsel %vm12760_vm0, %v5941_v19, 0.0 }
 0xd1d   :  { %5952 = vadd.xlane.f32.xlu0 %v5951_v61 }
 0xd21   :  { %v5931_v9 = vpop.f32.mrf.mxu0 }
 0xd22   :  { %v5942_v27 = vadd.f32 %v5931_v9, %v5904_v62 }
 0xd24   :  { %v5954_v45 = vsel %vm12761_vm1, %v5942_v27, 0.0 }
 0xd25   :  { %5955 = vadd.xlane.f32.xlu1 %v5954_v45 }
 0xd29   :  { %v5934_v41 = vpop.f32.mrf.mxu0 }
 0xd2a   :  { %v5943_v57 = vadd.f32 %v5934_v41, %v5905_v60 }
 0xd2c   :  { %v5957_v36 = vsel %vm12762_vm10, %v5943_v57, 0.0 }
 0xd2d   :  { %5958 = vadd.xlane.f32.xlu2 %v5957_v36 }
 0xd31   :  { %v5936_v21 = vpop.f32.mrf.mxu0 }
 0xd32   :  { %v5944_v37 = vadd.f32 %v5936_v21, %v5906_v18 }
 0xd34   :  { %v5960_v56 = vsel %vm12763_vm3, %v5944_v37, 0.0 }
 0xd35   :  { %5961 = vadd.xlane.f32.xlu0 %v5960_v56 }
 0xd80   :  { %v5947_v20 = vpop.xlane.xlu1 %5946 }
 0xd81   :  { %v5963_v4 = vmul.f32 %v5947_v20, %v10587_v38  ;;  %v11964_v20 = vld [vmem:[%s12378_s8] ss:$0 sm:$0xff]  ;;  %s12774_s8 = smov 116  }
 0xd83   :  { %v5969_v28 = vsub.f32 %v11890_v10, %v5963_v4 }
 0xd85   :  { %v5975_v34 = vmul.f32 %v5969_v28, %v5969_v28 }
 0xd87   :  { %v5981_v59 = vsel %vm12764_vm11, %v5975_v34, 0.0 }
 0xd88   :  { %v5950_v30 = vpop.xlane.xlu2 %5949  ;;  %5982 = vadd.xlane.f32.xlu1 %v5981_v59 }
 0xd89   :  { %v5964_v12 = vmul.f32 %v5950_v30, %v10587_v38 }
 0xd8b   :  { %v11922_v46 = vsub.f32 %v5940_v0, %v5964_v12 }
 0xd8d   :  { %v5976_v42 = vmul.f32 %v11922_v46, %v11922_v46 }
 0xd8f   :  { %v5984_v26 = vsel %vm12765_vm12, %v5976_v42, 0.0 }
 0xd90   :  { %v5953_v53 = vpop.xlane.xlu0 %5952  ;;  %5985 = vadd.xlane.f32.xlu2 %v5984_v26 }
 0xd91   :  { %v5965_v17 = vmul.f32 %v5953_v53, %v10587_v38 }
 0xd93   :  { %v11928_v47 = vsub.f32 %v5941_v19, %v5965_v17 }
 0xd95   :  { %v5977_v10 = vmul.f32 %v11928_v47, %v11928_v47 }
 0xd97   :  { %v5987_v3 = vsel %vm12766_vm13, %v5977_v10, 0.0 }
 0xd98   :  { %v5956_v33 = vpop.xlane.xlu1 %5955  ;;  %5988 = vadd.xlane.f32.xlu0 %v5987_v3 }
 0xd99   :  { %v5966_v0 = vmul.f32 %v5956_v33, %v10587_v38 }
 0xd9b   :  { %v11934_v6 = vsub.f32 %v5942_v27, %v5966_v0 }
 0xd9d   :  { %v5978_v43 = vmul.f32 %v11934_v6, %v11934_v6 }
 0xd9f   :  { %v5990_v5 = vsel %vm12767_vm6, %v5978_v43, 0.0 }
 0xda0   :  { %5991 = vadd.xlane.f32.xlu1 %v5990_v5  ;;  %v5959_v31 = vpop.xlane.xlu2 %5958 }
 0xda1   :  { %v5967_v54 = vmul.f32 %v5959_v31, %v10587_v38 }
 0xda3   :  { %v11940_v23 = vsub.f32 %v5943_v57, %v5967_v54 }
 0xda5   :  { %v5979_v1 = vmul.f32 %v11940_v23, %v11940_v23 }
 0xda7   :  { %v5993_v48 = vsel %vm12768_vm7, %v5979_v1, 0.0 }
 0xda8   :  { %5994 = vadd.xlane.f32.xlu2 %v5993_v48  ;;  %v5962_v22 = vpop.xlane.xlu0 %5961 }
 0xda9   :  { %v5968_v55 = vmul.f32 %v5962_v22, %v10587_v38 }
 0xdab   :  { %v11946_v11 = vsub.f32 %v5944_v37, %v5968_v55 }
 0xdad   :  { %v5980_v8 = vmul.f32 %v11946_v11, %v11946_v11 }
 0xdaf   :  { %v5996_v2 = vsel %vm12769_vm5, %v5980_v8, 0.0 }
 0xdb0   :  { %5997 = vadd.xlane.f32.xlu0 %v5996_v2 }
 0xdfb   :  { %v5983_v7 = vpop.xlane.xlu1 %5982 }
 0xdfc   :  { %v5999_v19 = vmul.f32 %v5983_v7, %v10587_v38 }
 0xdfe   :  { %v6005_v15 = vadd.f32 1e-05, %v5999_v19 }
 0xe00   :  { %8804 = vrsqrt.f32 %v6005_v15  ;;  %vm6017_vm0 = vweird.f32 %v6005_v15 }
 0xe03   :  { %v5986_v32 = vpop.xlane.xlu2 %5985 }
 0xe04   :  { %v6000_v61 = vmul.f32 %v5986_v32, %v10587_v38 }
 0xe06   :  { %v8805_v16 = vpop.eup %8804  ;;  %v6006_v63 = vadd.f32 1e-05, %v6000_v61 }
 0xe07   :  { %v6012_v51 = vmul.f32 %v8805_v16, %v6005_v15  ;;  %vm6018_vm8 = vweird.f32 %v8805_v16 }
 0xe08   :  { %8806 = vrsqrt.f32 %v6006_v63  ;;  %vm6019_vm1 = vmor %vm6017_vm0, %vm6018_vm8  ;;  %vm6027_vm3 = vweird.f32 %v6006_v63  ;;  %vm12770_vm0 = vcmask 203776  }
 0xe09   :  { %v6013_v50 = vmul.f32 %v8805_v16, %v6012_v51 }
 0xe0b   :  { %v6014_v39 = vmul.f32 0.5, %v6013_v50  ;;  %v5989_v62 = vpop.xlane.xlu0 %5988 }
 0xe0c   :  { %v6001_v9 = vmul.f32 %v5989_v62, %v10587_v38 }
 0xe0d   :  { %v6015_v13 = vsub.f32 1.5, %v6014_v39 }
 0xe0e   :  { %v8807_v27 = vpop.eup %8806  ;;  %v6007_v25 = vadd.f32 1e-05, %v6001_v9 }
 0xe0f   :  { %v6016_v44 = vmul.f32 %v8805_v16, %v6015_v13  ;;  %v6022_v49 = vmul.f32 %v8807_v27, %v6006_v63  ;;  %vm6028_vm10 = vweird.f32 %v8807_v27 }
 0xe10   :  { %8808 = vrsqrt.f32 %v6007_v25  ;;  %vm6029_vm11 = vmor %vm6027_vm3, %vm6028_vm10  ;;  %vm6037_vm6 = vweird.f32 %v6007_v25 }
 0xe11   :  { %v6020_v45 = vsel %vm6019_vm1, %v8805_v16, %v6016_v44  ;;  %v6023_v52 = vmul.f32 %v8807_v27, %v6022_v49 }
 0xe12   :  { %v6071_v40 = vmul.f32 %v6020_v45, %v5969_v28 }
 0xe13   :  { %v6024_v60 = vmul.f32 0.5, %v6023_v52  ;;  %v5992_v58 = vpop.xlane.xlu1 %5991 }
 0xe14   :  { %v6002_v41 = vmul.f32 %v5992_v58, %v10587_v38  ;;  %v6077_v36 = vmul.f32 %v11958_v29, %v6071_v40 }
 0xe15   :  { %v6025_v24 = vsub.f32 1.5, %v6024_v60 }
 0xe16   :  { %v8809_v57 = vpop.eup %8808  ;;  %v6008_v14 = vadd.f32 1e-05, %v6002_v41  ;;  %v6083_v4 = vadd.f32 %v11964_v20, %v6077_v36 }
 0xe17   :  { %v6026_v18 = vmul.f32 %v8807_v27, %v6025_v24  ;;  %v6032_v21 = vmul.f32 %v8809_v57, %v6007_v25  ;;  %vm6038_vm12 = vweird.f32 %v8809_v57 }
 0xe18   :  { %8810 = vrsqrt.f32 %v6008_v14  ;;  %v6095_v53 = vmul.f32 0.1, %v6083_v4  ;;  %vm6089_vm13 = vcmp.gt.f32.partialorder %v6083_v4, 0.0  ;;  %vm6039_vm5 = vmor %vm6037_vm6, %vm6038_vm12  ;;  %vm6047_vm1 = vweird.f32 %v6008_v14 }
 0xe19   :  { %v6030_v37 = vsel %vm6029_vm11, %v8807_v27, %v6026_v18  ;;  %v6033_v56 = vmul.f32 %v8809_v57, %v6032_v21 }
 0xe1a   :  { %v6072_v28 = vmul.f32 %v6030_v37, %v11922_v46  ;;  %v6101_v5 = vsel %vm6089_vm13, %v6083_v4, %v6095_v53 }
 0xe1b   :  { %v6034_v34 = vmul.f32 0.5, %v6033_v56  ;;  %v5995_v59 = vpop.xlane.xlu2 %5994 }
 0xe1c   :  { %v6078_v30 = vmul.f32 %v11958_v29, %v6072_v28  ;;  %v6003_v12 = vmul.f32 %v5995_v59, %v10587_v38 }
 0xe1d   :  { %v6035_v42 = vsub.f32 1.5, %v6034_v34 }
 0xe1e   :  { %v8811_v26 = vpop.eup %8810  ;;  %v6084_v17 = vadd.f32 %v11964_v20, %v6078_v30  ;;  %v6009_v10 = vadd.f32 1e-05, %v6003_v12 }
 0xe1f   :  { %v6036_v3 = vmul.f32 %v8809_v57, %v6035_v42  ;;  %v6042_v33 = vmul.f32 %v8811_v26, %v6008_v14  ;;  %vm6048_vm8 = vweird.f32 %v8811_v26 }
 0xe20   :  { %vm6090_vm7 = vcmp.gt.f32.partialorder %v6084_v17, 0.0  ;;  %v6096_v0 = vmul.f32 0.1, %v6084_v17  ;;  %8812 = vrsqrt.f32 %v6009_v10  ;;  %vm6049_vm10 = vmor %vm6047_vm1, %vm6048_vm8  ;;  %vm6057_vm11 = vweird.f32 %v6009_v10 }
 0xe21   :  { %v6040_v46 = vsel %vm6039_vm5, %v8809_v57, %v6036_v3  ;;  %v6043_v43 = vmul.f32 %v8811_v26, %v6042_v33  ;;  %vm12771_vm5 = vmmov %vm12770_vm0 }
 0xe22   :  { %v6102_v31 = vsel %vm6090_vm7, %v6084_v17, %v6096_v0  ;;  %v6073_v54 = vmul.f32 %v6040_v46, %v11928_v47 }
 0xe23   :  { %v6044_v1 = vmul.f32 0.5, %v6043_v43  ;;  %v5998_v48 = vpop.xlane.xlu0 %5997  ;;  %v6107_v22 = vpack.c.bf16 %v6102_v31, %v6101_v5 }
 0xe24   :  { %v6004_v55 = vmul.f32 %v5998_v48, %v10587_v38  ;;  %v6079_v7 = vmul.f32 %v11958_v29, %v6073_v54  ;;  %v8907_v48 = vld [vmem:[%s12380_s10] sm:$0xff] }
 0xe25   :  { %v6045_v8 = vsub.f32 1.5, %v6044_v1  ;;  %8312 = vmatmul.msk.bf16.vlgmr.msrb.gmra.mxu1 %vm12770_vm0, %v6107_v22  ;;  %v8908_v22 = vld [vmem:[%s12380_s10 + $0x8] sm:$0xff] }
 0xe26   :  { %v8813_v2 = vpop.eup %8812  ;;  %v6010_v19 = vadd.f32 1e-05, %v6004_v55  ;;  %v6085_v63 = vadd.f32 %v11964_v20, %v6079_v7  ;;  %v8909_v55 = vld [vmem:[%s12380_s10 + $0x10] sm:$0xff] }
 0xe27   :  { %v6046_v15 = vmul.f32 %v8811_v26, %v6045_v8  ;;  %v6052_v32 = vmul.f32 %v8813_v2, %v6009_v10  ;;  %vm6058_vm3 = vweird.f32 %v8813_v2 }
 0xe28   :  { %8814 = vrsqrt.f32 %v6010_v19  ;;  %v6097_v9 = vmul.f32 0.1, %v6085_v63  ;;  %vm6091_vm12 = vcmp.gt.f32.partialorder %v6085_v63, 0.0  ;;  %vm6059_vm13 = vmor %vm6057_vm11, %vm6058_vm3  ;;  %vm6067_vm8 = vweird.f32 %v6010_v19 }
 0xe29   :  { %v6050_v61 = vsel %vm6049_vm10, %v8811_v26, %v6046_v15  ;;  %v6053_v47 = vmul.f32 %v8813_v2, %v6052_v32  ;;  %vm12772_vm3 = vmmov %vm12771_vm5 }
 0xe2a   :  { %v6074_v16 = vmul.f32 %v6050_v61, %v11934_v6  ;;  %v6103_v45 = vsel %vm6091_vm12, %v6085_v63, %v6097_v9  ;;  %v8911_v9 = vld [vmem:[%s12380_s10 + $0x30] sm:$0xff] }
 0xe2b   :  { %v6054_v38 = vmul.f32 0.5, %v6053_v47 }
 0xe2c   :  { %v6080_v51 = vmul.f32 %v11958_v29, %v6074_v16 }
 0xe2d   :  { %v6055_v50 = vsub.f32 1.5, %v6054_v38 }
 0xe2e   :  { %v8815_v39 = vpop.eup %8814  ;;  %v6086_v62 = vadd.f32 %v11964_v20, %v6080_v51  ;;  %v8910_v51 = vld [vmem:[%s12380_s10 + $0x18] sm:$0xff] }
 0xe2f   :  { %v6056_v13 = vmul.f32 %v8813_v2, %v6055_v50  ;;  %v6062_v27 = vmul.f32 %v8815_v39, %v6010_v19  ;;  %vm6068_vm7 = vweird.f32 %v8815_v39 }
 0xe30   :  { %vm6092_vm6 = vcmp.gt.f32.partialorder %v6086_v62, 0.0  ;;  %v6098_v25 = vmul.f32 0.1, %v6086_v62  ;;  %vm6069_vm0 = vmor %vm6067_vm8, %vm6068_vm7 }
 0xe31   :  { %v6060_v44 = vsel %vm6059_vm13, %v8813_v2, %v6056_v13  ;;  %v6063_v6 = vmul.f32 %v8815_v39, %v6062_v27  ;;  %v8912_v13 = vld [vmem:[%s12380_s10 + $0x48] sm:$0xff] }
 0xe32   :  { %v6075_v49 = vmul.f32 %v6060_v44, %v11940_v23  ;;  %v6104_v52 = vsel %vm6092_vm6, %v6086_v62, %v6098_v25 }
 0xe33   :  { %v6064_v40 = vmul.f32 0.5, %v6063_v6  ;;  %v6108_v60 = vpack.c.bf16 %v6104_v52, %v6103_v45  ;;  %v8913_v6 = vld [vmem:[%s12380_s10 + $0x20] sm:$0xff] }
 0xe34   :  { %v6081_v41 = vmul.f32 %v11958_v29, %v6075_v49 }
 0xe35   :  { %v6065_v58 = vsub.f32 1.5, %v6064_v40  ;;  %8313 = vmatmul.msk.bf16.gmra.mxu1 %vm12771_vm5, %v6108_v60  ;;  %v8914_v40 = vld [vmem:[%s12380_s10 + $0x38] sm:$0xff]  ;;  %v8915_v60 = vld [vmem:[%s12380_s10 + $0x50] sm:$0xff] }
 0xe36   :  { %v6087_v14 = vadd.f32 %v11964_v20, %v6081_v41 }
 0xe37   :  { %v6066_v24 = vmul.f32 %v8815_v39, %v6065_v58  ;;  %v8916_v58 = vld [vmem:[%s12380_s10 + $0x78] sm:$0xff] }
 0xe38   :  { %v6099_v21 = vmul.f32 0.1, %v6087_v14  ;;  %vm6093_vm1 = vcmp.gt.f32.partialorder %v6087_v14, 0.0 }
 0xe39   :  { %v6070_v57 = vsel %vm6069_vm0, %v8815_v39, %v6066_v24 }
 0xe3a   :  { %v6076_v36 = vmul.f32 %v6070_v57, %v11946_v11  ;;  %v6105_v56 = vsel %vm6093_vm1, %v6087_v14, %v6099_v21  ;;  %v8918_v21 = vld [vmem:[%s12380_s10 + $0x40] sm:$0xff] }
 0xe3c   :  { %v6082_v23 = vmul.f32 %v11958_v29, %v6076_v36  ;;  %v8917_v36 = vld [vmem:[%s12380_s10 + $0x28] sm:$0xff] }
 0xe3e   :  { %v6088_v18 = vadd.f32 %v11964_v20, %v6082_v23 }
 0xe40   :  { %vm6094_vm10 = vcmp.gt.f32.partialorder %v6088_v18, 0.0  ;;  %v6100_v37 = vmul.f32 0.1, %v6088_v18 }
 0xe42   :  { %v6106_v4 = vsel %vm6094_vm10, %v6088_v18, %v6100_v37  ;;  %v8919_v37 = vld [vmem:[%s12380_s10 + $0x58] sm:$0xff] }
 0xe43   :  { %v6109_v28 = vpack.c.bf16 %v6106_v4, %v6105_v56  ;;  %v8920_v56 = vld [vmem:[%s12380_s10 + $0x80] sm:$0xff] }
 0xe45   :  { %8314 = vmatmul.msk.bf16.gmra.mxu1 %vm12772_vm3, %v6109_v28 }
 0xea2   :  { %v6128_v34 = vpop.f32.mrf.mxu1 }
 0xea3   :  { %v6143_v59 = vpack.c.bf16 %v6128_v34, %v6128_v34 }
 0xea5   :  { %v6155_v11 = vunpack.c.l.b16 %v6143_v59  ;;  %v8921_v59 = vld [vmem:[%s12380_s10 + $0x60] sm:$0xff] }
 0xeaa   :  { %v6130_v30 = vpop.f32.mrf.mxu1 }
 0xeab   :  { %v6144_v12 = vpack.c.bf16 %v6130_v30, %v6130_v30 }
 0xead   :  { %v6156_v42 = vunpack.c.l.b16 %v6144_v12 }
 0xeaf   :  { %v11987_v26 = vpack.c.b16 %v6156_v42, %v6155_v11  ;;  %v8922_v42 = vld [vmem:[%s12380_s10 + $0x90] sm:$0xff] }
 0xeb1   :  { %6164 = vrot.lane.b32.xlu0 %v11987_v26, %s12773_s7 }
 0xeb2   :  { %v6133_v29 = vpop.f32.mrf.mxu1 }
 0xeb3   :  { %v6145_v20 = vpack.c.bf16 %v6133_v29, %v6133_v29  ;;  %v8924_v29 = vld [vmem:[%s12380_s10 + $0x88] sm:$0xff] }
 0xeb5   :  { %v6157_v10 = vunpack.c.l.b16 %v6145_v20 }
 0xeba   :  { %v6135_v53 = vpop.f32.mrf.mxu1 }
 0xebb   :  { %v6146_v17 = vpack.c.bf16 %v6135_v53, %v6135_v53 }
 0xebd   :  { %v6158_v3 = vunpack.c.l.b16 %v6146_v17  ;;  %v8925_v17 = vld [vmem:[%s12380_s10 + $0x68] sm:$0xff] }
 0xebf   :  { %v6162_v33 = vpack.c.b16 %v6158_v3, %v6157_v10 }
 0xec1   :  { %6166 = vrot.lane.b32.xlu2 %v6162_v33, %s12773_s7 }
 0xec2   :  { %v6138_v0 = vpop.f32.mrf.mxu1 }
 0xec3   :  { %v6147_v46 = vpack.c.bf16 %v6138_v0, %v6138_v0  ;;  %v8926_v0 = vld [vmem:[%s12380_s10 + $0x98] sm:$0xff] }
 0xec5   :  { %v6159_v31 = vunpack.c.l.b16 %v6147_v46  ;;  %v8927_v46 = vld [vmem:[%s12380_s10 + $0xb0] sm:$0xff] }
 0xeca   :  { %v6140_v43 = vpop.f32.mrf.mxu1 }
 0xecb   :  { %v6148_v5 = vpack.c.bf16 %v6140_v43, %v6140_v43  ;;  %v8928_v43 = vld [vmem:[%s12380_s10 + $0xd8] sm:$0xff] }
 0xecd   :  { %v6160_v54 = vunpack.c.l.b16 %v6148_v5 }
 0xecf   :  { %v6163_v1 = vpack.c.b16 %v6160_v54, %v6159_v31  ;;  %v8929_v54 = vld [vmem:[%s12380_s10 + $0x70] sm:$0xff] }
 0xed1   :  { %6267 = vrot.lane.b32.xlu2 %v6163_v1, %s12774_s8  ;;  %6228 = vrot.lane.b32.xlu0 %v6163_v1, %s12775_s30 }
 0xed2   :  { %6168 = vrot.lane.b32.xlu1 %v6163_v1, %s12773_s7  ;;  %6205 = vmatpush.bf16.msrb.mxu2 %v6163_v1  ;;  %s12785_s7 = smov 72  }
 0xed6   :  { %6206 = vmatpush.bf16.msrb.mxu2 %v6162_v33 }
 0xed9   :  { %6224 = vrot.lane.b32.xlu2 %v11987_v26, %s12775_s30  ;;  %6265 = vrot.lane.b32.xlu0 %v6162_v33, %s12774_s8 }
 0xeda   :  { %6226 = vrot.lane.b32.xlu1 %v6162_v33, %s12775_s30  ;;  %6207 = vmatpush.bf16.msrb.mxu2 %v11987_v26 }
 0xedd   :  { %8318 = vmatmul.msk.bf16.vlgmr.msrb.gmra.mxu2 %vm3190_vm9, %v8907_v48 }
 0xee1   :  { %6302 = vrot.lane.b32.xlu2 %v11987_v26, %s12748_s21  ;;  %6343 = vrot.lane.b32.xlu0 %v6162_v33, %s12776_s25 }
 0xee2   :  { %6263 = vrot.lane.b32.xlu1 %v11987_v26, %s12774_s8 }
 0xee9   :  { %6345 = vrot.lane.b32.xlu2 %v6163_v1, %s12776_s25  ;;  %6306 = vrot.lane.b32.xlu0 %v6163_v1, %s12748_s21 }
 0xeea   :  { %6304 = vrot.lane.b32.xlu1 %v6162_v33, %s12748_s21 }
 0xeed   :  { %8319 = vmatmul.msk.bf16.gmra.mxu2 %vm3190_vm9, %v8908_v22  ;;  %v8930_v22 = vld [vmem:[%s12380_s10 + $0xa0] sm:$0xff] }
 0xef1   :  { %6423 = vrot.lane.b32.xlu2 %v6163_v1, %s12777_s20  ;;  %6384 = vrot.lane.b32.xlu0 %v6163_v1, %s12778_s27 }
 0xef2   :  { %6341 = vrot.lane.b32.xlu1 %v11987_v26, %s12776_s25 }
 0xef9   :  { %6380 = vrot.lane.b32.xlu2 %v11987_v26, %s12778_s27  ;;  %6421 = vrot.lane.b32.xlu0 %v6162_v33, %s12777_s20 }
 0xefa   :  { %6382 = vrot.lane.b32.xlu1 %v6162_v33, %s12778_s27 }
 0xefd   :  { %8320 = vmatmul.msk.bf16.gmra.mxu2 %vm3190_vm9, %v8909_v55  ;;  %v8931_v55 = vld [vmem:[%s12380_s10 + $0xb8] sm:$0xff] }
 0xf01   :  { %6458 = vrot.lane.b32.xlu2 %v11987_v26, %s12779_s22  ;;  %6499 = vrot.lane.b32.xlu0 %v6162_v33, %s12780_s24 }
 0xf02   :  { %6419 = vrot.lane.b32.xlu1 %v11987_v26, %s12777_s20 }
 0xf09   :  { %6501 = vrot.lane.b32.xlu2 %v6163_v1, %s12780_s24  ;;  %6462 = vrot.lane.b32.xlu0 %v6163_v1, %s12779_s22 }
 0xf0a   :  { %6460 = vrot.lane.b32.xlu1 %v6162_v33, %s12779_s22 }
 0xf11   :  { %6579 = vrot.lane.b32.xlu2 %v6163_v1, %s12742_s23  ;;  %6540 = vrot.lane.b32.xlu0 %v6163_v1, %s12781_s6 }
 0xf12   :  { %6497 = vrot.lane.b32.xlu1 %v11987_v26, %s12780_s24 }
 0xf19   :  { %6536 = vrot.lane.b32.xlu2 %v11987_v26, %s12781_s6  ;;  %6577 = vrot.lane.b32.xlu0 %v6162_v33, %s12742_s23 }
 0xf1a   :  { %6538 = vrot.lane.b32.xlu1 %v6162_v33, %s12781_s6 }
 0xf1b   :  { %v6167_v8 = vpop.permute.xlu2 %6166 }
 0xf21   :  { %6614 = vrot.lane.b32.xlu2 %v11987_v26, %s12782_s19  ;;  %6655 = vrot.lane.b32.xlu0 %v6162_v33, %s12783_s29 }
 0xf22   :  { %6575 = vrot.lane.b32.xlu1 %v11987_v26, %s12742_s23 }
 0xf23   :  { %v6165_v19 = vpop.permute.xlu0 %6164 }
 0xf29   :  { %6657 = vrot.lane.b32.xlu2 %v6163_v1, %s12783_s29  ;;  %6618 = vrot.lane.b32.xlu0 %v6163_v1, %s12782_s19 }
 0xf2a   :  { %6616 = vrot.lane.b32.xlu1 %v6162_v33, %s12782_s19 }
 0xf2b   :  { %v6268_v2 = vpop.permute.xlu2 %6267 }
 0xf2c   :  { %6277 = vmatpush.bf16.msra.mxu1 %v6268_v2 }
 0xf31   :  { %6735 = vrot.lane.b32.xlu2 %v6163_v1, %s12784_s5  ;;  %6696 = vrot.lane.b32.xlu0 %v6163_v1, %s12785_s7 }
 0xf32   :  { %6653 = vrot.lane.b32.xlu1 %v11987_v26, %s12783_s29 }
 0xf33   :  { %v6225_v7 = vpop.permute.xlu2 %6224 }
 0xf39   :  { %6692 = vrot.lane.b32.xlu2 %v11987_v26, %s12785_s7  ;;  %6733 = vrot.lane.b32.xlu0 %v6162_v33, %s12784_s5 }
 0xf3a   :  { %6694 = vrot.lane.b32.xlu1 %v6162_v33, %s12785_s7 }
 0xf3b   :  { %v6303_v15 = vpop.permute.xlu2 %6302 }
 0xf42   :  { %6731 = vrot.lane.b32.xlu1 %v11987_v26, %s12784_s5  ;;  %v8923_v26 = vld [vmem:[%s12380_s10 + $0xa8] sm:$0xff] }
 0xf43   :  { %v6346_v32 = vpop.permute.xlu2 %6345  ;;  %v6229_v61 = vpop.permute.xlu0 %6228 }
 0xf44   :  { %v6169_v47 = vpop.permute.xlu1 %6168  ;;  %6238 = vmatpush.bf16.msra.mxu0 %v6229_v61  ;;  %6355 = vmatpush.bf16.msra.mxu2 %v6346_v32 }
 0xf45   :  { %6178 = vmatpush.bf16.msrb.mxu3 %v6169_v47  ;;  %v8934_v47 = vld [vmem:[%s12380_s10 + $0xf0] sm:$0xff] }
 0xf49   :  { %6179 = vmatpush.bf16.msrb.mxu3 %v6167_v8  ;;  %v8932_v8 = vld [vmem:[%s12380_s10 + $0xe0] sm:$0xff] }
 0xf4b   :  { %v6424_v16 = vpop.permute.xlu2 %6423  ;;  %v6266_v63 = vpop.permute.xlu0 %6265 }
 0xf4c   :  { %v6227_v38 = vpop.permute.xlu1 %6226  ;;  %6278 = vmatpush.bf16.msra.mxu1 %v6266_v63  ;;  %v8936_v63 = vld [vmem:[%s12380_s10 + $0xe8] sm:$0xff] }
 0xf4d   :  { %6180 = vmatpush.bf16.msrb.mxu3 %v6165_v19  ;;  %6239 = vmatpush.bf16.msra.mxu0 %v6227_v38 }
 0xf50   :  { %8315 = vmatmul.msk.bf16.vlgmr.msrb.gmra.mxu3 %vm3190_vm9, %v8910_v51  ;;  %v8937_v51 = vld [vmem:[%s12380_s10 + $0xc8] sm:$0xff] }
 0xf51   :  { %6240 = vmatpush.bf16.msra.mxu0 %v6225_v7 }
 0xf53   :  { %v6381_v50 = vpop.permute.xlu2 %6380  ;;  %v6344_v39 = vpop.permute.xlu0 %6343 }
 0xf54   :  { %v6264_v62 = vpop.permute.xlu1 %6263  ;;  %6356 = vmatpush.bf16.msra.mxu2 %v6344_v39  ;;  %8321 = vmatmul.msk.bf16.vlgmr.msra.gmra.mxu0 %vm3190_vm9, %v8911_v9  ;;  %v8938_v39 = vld [vmem:[%s12380_s10 + $0xf8] sm:$0xff] }
 0xf55   :  { %6279 = vmatpush.bf16.msra.mxu1 %v6264_v62  ;;  %v8939_v62 = vld [vmem:[%s12380_s10 + $0x110] sm:$0xff]  ;;  %v8940_v9 = vld [vmem:[%s12380_s10 + $0x138] sm:$0xff] }
 0xf58   :  { %8324 = vmatmul.msk.bf16.vlgmr.msra.gmra.mxu1 %vm3190_vm9, %v8912_v13 }
 0xf59   :  { %6433 = vmatpush.bf16.msrb.mxu1 %v6424_v16  ;;  %v8935_v16 = vld [vmem:[%s12380_s10 + $0x108] sm:$0xff] }
 0xf5b   :  { %v6459_v27 = vpop.permute.xlu2 %6458  ;;  %v6307_v25 = vpop.permute.xlu0 %6306 }
 0xf5c   :  { %v6305_v44 = vpop.permute.xlu1 %6304  ;;  %6316 = vmatpush.bf16.msra.mxu3 %v6307_v25 }
 0xf60   :  { %8316 = vmatmul.msk.bf16.gmra.mxu3 %vm3190_vm9, %v8913_v6  ;;  %v6209_v32 = vpop.f32.mrf.mxu2 }
 0xf61   :  { %6317 = vmatpush.bf16.msra.mxu3 %v6305_v44 }
 0xf63   :  { %v6502_v49 = vpop.permute.xlu2 %6501  ;;  %v6385_v45 = vpop.permute.xlu0 %6384 }
 0xf64   :  { %v6342_v52 = vpop.permute.xlu1 %6341  ;;  %6394 = vmatpush.bf16.msrb.mxu0 %v6385_v45 }
 0xf65   :  { %6318 = vmatpush.bf16.msra.mxu3 %v6303_v15  ;;  %6357 = vmatpush.bf16.msra.mxu2 %v6342_v52  ;;  %v8933_v15 = vld [vmem:[%s12380_s10 + $0xc0] sm:$0xff] }
 0xf66   :  { %8322 = vmatmul.msk.bf16.gmra.mxu0 %vm3190_vm9, %v8914_v40  ;;  %v8942_v52 = vld [vmem:[%s12380_s10 + $0x100] sm:$0xff] }
 0xf68   :  { %8325 = vmatmul.msk.bf16.gmra.mxu1 %vm3190_vm9, %v8915_v60  ;;  %8330 = vmatmul.msk.bf16.vlgmr.msra.gmra.mxu2 %vm3190_vm9, %v8916_v58  ;;  %v6211_v38 = vpop.f32.mrf.mxu2  ;;  %v8943_v60 = vld [vmem:[%s12380_s10 + $0x118] sm:$0xff]  ;;  %v8944_v58 = vld [vmem:[%s12380_s10 + $0x140] sm:$0xff] }
 0xf69   :  { %6511 = vmatpush.bf16.msrb.mxu2 %v6502_v49 }
 0xf6b   :  { %v6580_v41 = vpop.permute.xlu2 %6579  ;;  %v6422_v24 = vpop.permute.xlu0 %6421 }
 0xf6c   :  { %v6383_v57 = vpop.permute.xlu1 %6382  ;;  %6434 = vmatpush.bf16.msrb.mxu1 %v6422_v24 }
 0xf6d   :  { %6395 = vmatpush.bf16.msrb.mxu0 %v6383_v57 }
 0xf70   :  { %8317 = vmatmul.msk.bf16.gmra.mxu3 %vm3190_vm9, %v8917_v36 }
 0xf71   :  { %6396 = vmatpush.bf16.msrb.mxu0 %v6381_v50  ;;  %v6214_v50 = vpop.f32.mrf.mxu2 }
 0xf73   :  { %v6537_v14 = vpop.permute.xlu2 %6536  ;;  %v6500_v23 = vpop.permute.xlu0 %6499 }
 0xf74   :  { %v6420_v18 = vpop.permute.xlu1 %6419  ;;  %6512 = vmatpush.bf16.msrb.mxu2 %v6500_v23 }
 0xf75   :  { %6435 = vmatpush.bf16.msrb.mxu1 %v6420_v18  ;;  %v8945_v18 = vld [vmem:[%s12380_s10 + $0x120] sm:$0xff] }
 0xf76   :  { %8323 = vmatmul.msk.bf16.gmra.mxu0 %vm3190_vm9, %v8918_v21 }
 0xf78   :  { %8326 = vmatmul.msk.bf16.gmra.mxu1 %vm3190_vm9, %v8919_v37  ;;  %8331 = vmatmul.msk.bf16.gmra.mxu2 %vm3190_vm9, %v8920_v56 }
 0xf79   :  { %6589 = vmatpush.bf16.msra.mxu1 %v6580_v41  ;;  %v6216_v13 = vpop.f32.mrf.mxu2 }
 0xf7b   :  { %v6615_v4 = vpop.permute.xlu2 %6614  ;;  %v6463_v28 = vpop.permute.xlu0 %6462 }
 0xf7c   :  { %v6461_v34 = vpop.permute.xlu1 %6460  ;;  %6472 = vmatpush.bf16.msrb.mxu3 %v6463_v28 }
 0xf80   :  { %8327 = vmatmul.msk.bf16.vlgmr.msra.gmra.mxu3 %vm3190_vm9, %v8921_v59 }
 0xf81   :  { %6473 = vmatpush.bf16.msrb.mxu3 %v6461_v34  ;;  %v6219_v41 = vpop.f32.mrf.mxu2 }
 0xf83   :  { %v6658_v30 = vpop.permute.xlu2 %6657  ;;  %v6541_v12 = vpop.permute.xlu0 %6540 }
 0xf84   :  { %v6498_v11 = vpop.permute.xlu1 %6497  ;;  %6550 = vmatpush.bf16.msra.mxu0 %v6541_v12 }
 0xf85   :  { %6474 = vmatpush.bf16.msrb.mxu3 %v6459_v27  ;;  %6513 = vmatpush.bf16.msrb.mxu2 %v6498_v11  ;;  %v8941_v27 = vld [vmem:[%s12380_s10 + $0xd0] sm:$0xff]  ;;  %v8947_v11 = vld [vmem:[%s12380_s10 + $0x168] sm:$0xff] }
 0xf86   :  { %8333 = vmatmul.msk.bf16.vlgmr.msrb.gmra.mxu0 %vm3190_vm9, %v8922_v42  ;;  %v8948_v42 = vld [vmem:[%s12380_s10 + $0x148] sm:$0xff] }
 0xf88   :  { %8336 = vmatmul.msk.bf16.vlgmr.msrb.gmra.mxu1 %vm3190_vm9, %v8923_v26  ;;  %8332 = vmatmul.msk.bf16.gmra.mxu2 %vm3190_vm9, %v8924_v29 }
 0xf89   :  { %6667 = vmatpush.bf16.msra.mxu2 %v6658_v30  ;;  %v6221_v37 = vpop.f32.mrf.mxu2  ;;  %v8946_v30 = vld [vmem:[%s12380_s10 + $0x150] sm:$0xff] }
 0xf8b   :  { %v6578_v20 = vpop.permute.xlu0 %6577  ;;  %v6736_v33 = vpop.permute.xlu2 %6735 }
 0xf8c   :  { %v6539_v53 = vpop.permute.xlu1 %6538  ;;  %6590 = vmatpush.bf16.msra.mxu1 %v6578_v20 }
 0xf8d   :  { %6551 = vmatpush.bf16.msra.mxu0 %v6539_v53 }
 0xf90   :  { %8328 = vmatmul.msk.bf16.gmra.mxu3 %vm3190_vm9, %v8925_v17 }
 0xf91   :  { %6552 = vmatpush.bf16.msra.mxu0 %v6537_v14 }
 0xf93   :  { %v6656_v10 = vpop.permute.xlu0 %6655  ;;  %v6693_v19 = vpop.permute.xlu2 %6692 }
 0xf94   :  { %v6576_v3 = vpop.permute.xlu1 %6575  ;;  %6668 = vmatpush.bf16.msra.mxu2 %v6656_v10 }
 0xf95   :  { %6591 = vmatpush.bf16.msra.mxu1 %v6576_v3  ;;  %v8949_v3 = vld [vmem:[%s12380_s10 + $0x128] sm:$0xff] }
 0xf96   :  { %8334 = vmatmul.msk.bf16.gmra.mxu0 %vm3190_vm9, %v8926_v0 }
 0xf98   :  { %8337 = vmatmul.msk.bf16.gmra.mxu1 %vm3190_vm9, %v8927_v46  ;;  %8342 = vmatmul.msk.bf16.vlgmr.msrb.gmra.mxu2 %vm3190_vm9, %v8928_v43 }
 0xf99   :  { %6745 = vmatpush.bf16.msrb.mxu1 %v6736_v33 }
 0xf9b   :  { %v6619_v5 = vpop.permute.xlu0 %6618 }
 0xf9c   :  { %v6617_v31 = vpop.permute.xlu1 %6616  ;;  %6628 = vmatpush.bf16.msra.mxu3 %v6619_v5 }
 0xfa0   :  { %8329 = vmatmul.msk.bf16.gmra.mxu3 %vm3190_vm9, %v8929_v54 }
 0xfa1   :  { %6629 = vmatpush.bf16.msra.mxu3 %v6617_v31 }
 0xfa3   :  { %v6697_v1 = vpop.permute.xlu0 %6696 }
 0xfa4   :  { %v6654_v48 = vpop.permute.xlu1 %6653  ;;  %6706 = vmatpush.bf16.msrb.mxu0 %v6697_v1  ;;  %v8950_v1 = vld [vmem:[%s12380_s10 + $0x158] sm:$0xff] }
 0xfa5   :  { %6630 = vmatpush.bf16.msra.mxu3 %v6615_v4  ;;  %6669 = vmatpush.bf16.msra.mxu2 %v6654_v48 }
 0xfa6   :  { %8335 = vmatmul.msk.bf16.gmra.mxu0 %vm3190_vm9, %v8930_v22  ;;  %v8951_v22 = vld [vmem:[%s12380_s10 + $0x170] sm:$0xff] }
 0xfa8   :  { %8338 = vmatmul.msk.bf16.gmra.mxu1 %vm3190_vm9, %v8931_v55  ;;  %8343 = vmatmul.msk.bf16.gmra.mxu2 %vm3190_vm9, %v8932_v8 }
 0xfab   :  { %v6734_v2 = vpop.permute.xlu0 %6733 }
 0xfac   :  { %v6695_v7 = vpop.permute.xlu1 %6694  ;;  %6746 = vmatpush.bf16.msrb.mxu1 %v6734_v2 }
 0xfad   :  { %6707 = vmatpush.bf16.msrb.mxu0 %v6695_v7 }
 0xfb0   :  { %8339 = vmatmul.msk.bf16.vlgmr.msrb.gmra.mxu3 %vm3190_vm9, %v8933_v15 }
 0xfb1   :  { %6708 = vmatpush.bf16.msrb.mxu0 %v6693_v19 }
 0xfb4   :  { %v6732_v61 = vpop.permute.xlu1 %6731 }
 0xfb5   :  { %6747 = vmatpush.bf16.msrb.mxu1 %v6732_v61 }
 0xfb6   :  { %8345 = vmatmul.msk.bf16.vlgmr.msra.gmra.mxu0 %vm3190_vm9, %v8934_v47 }
 0xfb8   :  { %8348 = vmatmul.msk.bf16.vlgmr.msra.gmra.mxu1 %vm3190_vm9, %v8935_v16  ;;  %8344 = vmatmul.msk.bf16.gmra.mxu2 %vm3190_vm9, %v8936_v63 }
 0xfc0   :  { %8340 = vmatmul.msk.bf16.gmra.mxu3 %vm3190_vm9, %v8937_v51 }
 0xfc6   :  { %8346 = vmatmul.msk.bf16.gmra.mxu0 %vm3190_vm9, %v8938_v39  ;;  %v8953_v39 = vld [vmem:[%s12380_s10 + $0x160] sm:$0xff] }
 0xfc8   :  { %8349 = vmatmul.msk.bf16.gmra.mxu1 %vm3190_vm9, %v8939_v62  ;;  %8354 = vmatmul.msk.bf16.vlgmr.msra.gmra.mxu2 %vm3190_vm9, %v8940_v9  ;;  %v8954_v9 = vld [vmem:[%s12380_s10 + $0x178] sm:$0xff] }
 0xfd0   :  { %8341 = vmatmul.msk.bf16.gmra.mxu3 %vm3190_vm9, %v8941_v27 }
 0xfd1   :  { %v6242_v25 = vpop.f32.mrf.mxu0 }
 0xfd3   :  { %v6182_v44 = vpop.f32.mrf.mxu3 }
 0xfd4   :  { %v6210_v6 = vadd.f32 %v6209_v32, %v6182_v44  ;;  %v8952_v32 = vld [vmem:[%s12380_s10 + $0x130] sm:$0xff] }
 0xfd5   :  { %v6281_v49 = vpop.f32.mrf.mxu1 }
 0xfd6   :  { %v6257_v45 = vadd.f32 %v6242_v25, %v6210_v6  ;;  %8347 = vmatmul.msk.bf16.gmra.mxu0 %vm3190_vm9, %v8942_v52 }
 0xfd8   :  { %v6296_v40 = vadd.f32 %v6281_v49, %v6257_v45  ;;  %8350 = vmatmul.msk.bf16.gmra.mxu1 %vm3190_vm9, %v8943_v60  ;;  %8355 = vmatmul.msk.bf16.gmra.mxu2 %vm3190_vm9, %v8944_v58 }
 0xfd9   :  { %v6244_v24 = vpop.f32.mrf.mxu0 }
 0xfdb   :  { %v6184_v57 = vpop.f32.mrf.mxu3 }
 0xfdc   :  { %v6212_v36 = vadd.f32 %v6211_v38, %v6184_v57 }
 0xfdd   :  { %v6283_v14 = vpop.f32.mrf.mxu1 }
 0xfde   :  { %v6258_v23 = vadd.f32 %v6244_v24, %v6212_v36 }
 0xfe0   :  { %8351 = vmatmul.msk.bf16.vlgmr.msra.gmra.mxu3 %vm3190_vm9, %v8945_v18  ;;  %v6297_v21 = vadd.f32 %v6283_v14, %v6258_v23 }
 0xfe3   :  { %v6187_v56 = vpop.f32.mrf.mxu3  ;;  %v6247_v4 = vpop.f32.mrf.mxu0 }
 0xfe4   :  { %v6215_v28 = vadd.f32 %v6214_v50, %v6187_v56 }
 0xfe5   :  { %v6286_v34 = vpop.f32.mrf.mxu1 }
 0xfe6   :  { %v6259_v59 = vadd.f32 %v6247_v4, %v6215_v28  ;;  %8357 = vmatmul.msk.bf16.vlgmr.msrb.gmra.mxu0 %vm3190_vm9, %v8946_v30 }
 0xfe8   :  { %v6298_v12 = vadd.f32 %v6286_v34, %v6259_v59  ;;  %8360 = vmatmul.msk.bf16.vlgmr.msrb.gmra.mxu1 %vm3190_vm9, %v8947_v11  ;;  %8356 = vmatmul.msk.bf16.gmra.mxu2 %vm3190_vm9, %v8948_v42 }
 0xfeb   :  { %v6189_v26 = vpop.f32.mrf.mxu3  ;;  %v6249_v29 = vpop.f32.mrf.mxu0 }
 0xfec   :  { %v6217_v20 = vadd.f32 %v6216_v13, %v6189_v26  ;;  %v6359_v53 = vpop.f32.mrf.mxu2 }
 0xfed   :  { %v6288_v17 = vpop.f32.mrf.mxu1 }
 0xfee   :  { %v6260_v10 = vadd.f32 %v6249_v29, %v6217_v20 }
 0xff0   :  { %8352 = vmatmul.msk.bf16.gmra.mxu3 %vm3190_vm9, %v8949_v3  ;;  %v6299_v33 = vadd.f32 %v6288_v17, %v6260_v10 }
 0xff3   :  { %v6192_v0 = vpop.f32.mrf.mxu3  ;;  %v6252_v46 = vpop.f32.mrf.mxu0 }
 0xff4   :  { %v6220_v43 = vadd.f32 %v6219_v41, %v6192_v0  ;;  %v6361_v5 = vpop.f32.mrf.mxu2 }
 0xff5   :  { %v6291_v31 = vpop.f32.mrf.mxu1 }
 0xff6   :  { %v6261_v54 = vadd.f32 %v6252_v46, %v6220_v43  ;;  %8358 = vmatmul.msk.bf16.gmra.mxu0 %vm3190_vm9, %v8950_v1 }
 0xff8   :  { %v6300_v48 = vadd.f32 %v6291_v31, %v6261_v54  ;;  %8361 = vmatmul.msk.bf16.gmra.mxu1 %vm3190_vm9, %v8951_v22 }
 0xffb   :  { %v6194_v55 = vpop.f32.mrf.mxu3  ;;  %v6254_v8 = vpop.f32.mrf.mxu0 }
 0xffc   :  { %v6222_v2 = vadd.f32 %v6221_v37, %v6194_v55  ;;  %v6364_v7 = vpop.f32.mrf.mxu2 }
 0xffd   :  { %v6293_v19 = vpop.f32.mrf.mxu1 }
 0xffe   :  { %v6262_v15 = vadd.f32 %v6254_v8, %v6222_v2 }
0x1000   :  { %8353 = vmatmul.msk.bf16.gmra.mxu3 %vm3190_vm9, %v8952_v32  ;;  %v6301_v61 = vadd.f32 %v6293_v19, %v6262_v15 }
0x1003   :  { %v6320_v47 = vpop.f32.mrf.mxu3  ;;  %v6398_v16 = vpop.f32.mrf.mxu0 }
0x1004   :  { %v6335_v63 = vadd.f32 %v6320_v47, %v6296_v40  ;;  %v6366_v38 = vpop.f32.mrf.mxu2 }
0x1005   :  { %v6437_v51 = vpop.f32.mrf.mxu1 }
0x1006   :  { %v6374_v50 = vadd.f32 %v6359_v53, %v6335_v63  ;;  %8359 = vmatmul.msk.bf16.gmra.mxu0 %vm3190_vm9, %v8953_v39 }
0x1008   :  { %v6413_v62 = vadd.f32 %v6398_v16, %v6374_v50  ;;  %8362 = vmatmul.msk.bf16.gmra.mxu1 %vm3190_vm9, %v8954_v9 }
0x100a   :  { %v6452_v13 = vadd.f32 %v6437_v51, %v6413_v62 }
0x100b   :  { %v6322_v27 = vpop.f32.mrf.mxu3  ;;  %v6400_v25 = vpop.f32.mrf.mxu0 }
0x100c   :  { %v6336_v44 = vadd.f32 %v6322_v27, %v6297_v21  ;;  %v6369_v6 = vpop.f32.mrf.mxu2 }
0x100d   :  { %v6439_v49 = vpop.f32.mrf.mxu1 }
0x100e   :  { %v6375_v45 = vadd.f32 %v6361_v5, %v6336_v44 }
0x1010   :  { %v6414_v52 = vadd.f32 %v6400_v25, %v6375_v45 }
0x1012   :  { %v6453_v40 = vadd.f32 %v6439_v49, %v6414_v52 }
0x1013   :  { %v6325_v60 = vpop.f32.mrf.mxu3  ;;  %v6403_v58 = vpop.f32.mrf.mxu0 }
0x1014   :  { %v6337_v41 = vadd.f32 %v6325_v60, %v6298_v12  ;;  %v6371_v24 = vpop.f32.mrf.mxu2 }
0x1015   :  { %v6442_v57 = vpop.f32.mrf.mxu1 }
0x1016   :  { %v6376_v36 = vadd.f32 %v6364_v7, %v6337_v41 }
0x1018   :  { %v6415_v14 = vadd.f32 %v6403_v58, %v6376_v36 }
0x101a   :  { %v6454_v23 = vadd.f32 %v6442_v57, %v6415_v14 }
0x101b   :  { %v6327_v18 = vpop.f32.mrf.mxu3  ;;  %v6405_v37 = vpop.f32.mrf.mxu0 }
0x101c   :  { %v6338_v56 = vadd.f32 %v6327_v18, %v6299_v33  ;;  %v6515_v34 = vpop.f32.mrf.mxu2 }
0x101d   :  { %v6444_v4 = vpop.f32.mrf.mxu1 }
0x101e   :  { %v6377_v28 = vadd.f32 %v6366_v38, %v6338_v56 }
0x1020   :  { %v6416_v21 = vadd.f32 %v6405_v37, %v6377_v28 }
0x1022   :  { %v6455_v59 = vadd.f32 %v6444_v4, %v6416_v21 }
0x1023   :  { %v6330_v30 = vpop.f32.mrf.mxu3  ;;  %v6408_v11 = vpop.f32.mrf.mxu0 }
0x1024   :  { %v6339_v42 = vadd.f32 %v6330_v30, %v6300_v48  ;;  %v6517_v12 = vpop.f32.mrf.mxu2 }
0x1025   :  { %v6447_v26 = vpop.f32.mrf.mxu1 }
0x1026   :  { %v6378_v29 = vadd.f32 %v6369_v6, %v6339_v42 }
0x1028   :  { %v6417_v20 = vadd.f32 %v6408_v11, %v6378_v29 }
0x102a   :  { %v6456_v53 = vadd.f32 %v6447_v26, %v6417_v20 }
0x102b   :  { %v6332_v17 = vpop.f32.mrf.mxu3  ;;  %v6410_v10 = vpop.f32.mrf.mxu0 }
0x102c   :  { %v6340_v3 = vadd.f32 %v6332_v17, %v6301_v61  ;;  %v6520_v5 = vpop.f32.mrf.mxu2 }
0x102d   :  { %v6449_v0 = vpop.f32.mrf.mxu1 }
0x102e   :  { %v6379_v46 = vadd.f32 %v6371_v24, %v6340_v3 }
0x1030   :  { %v6418_v43 = vadd.f32 %v6410_v10, %v6379_v46 }
0x1032   :  { %v6457_v33 = vadd.f32 %v6449_v0, %v6418_v43 }
0x1033   :  { %v6476_v31 = vpop.f32.mrf.mxu3  ;;  %v6554_v54 = vpop.f32.mrf.mxu0 }
0x1034   :  { %v6491_v1 = vadd.f32 %v6476_v31, %v6452_v13  ;;  %v6522_v15 = vpop.f32.mrf.mxu2 }
0x1035   :  { %v6593_v22 = vpop.f32.mrf.mxu1 }
0x1036   :  { %v6530_v55 = vadd.f32 %v6515_v34, %v6491_v1 }
0x1038   :  { %v6569_v8 = vadd.f32 %v6554_v54, %v6530_v55 }
0x103a   :  { %v6608_v48 = vadd.f32 %v6593_v22, %v6569_v8 }
0x103b   :  { %v6478_v2 = vpop.f32.mrf.mxu3  ;;  %v6556_v7 = vpop.f32.mrf.mxu0 }
0x103c   :  { %v6492_v19 = vadd.f32 %v6478_v2, %v6453_v40  ;;  %v6525_v62 = vpop.f32.mrf.mxu2 }
0x103d   :  { %v6595_v32 = vpop.f32.mrf.mxu1 }
0x103e   :  { %v6531_v47 = vadd.f32 %v6517_v12, %v6492_v19 }
0x1040   :  { %v6570_v16 = vadd.f32 %v6556_v7, %v6531_v47 }
0x1042   :  { %v12242_v61 = vadd.f32 %v6595_v32, %v6570_v16 }
0x1043   :  { %v6481_v63 = vpop.f32.mrf.mxu3  ;;  %v6559_v38 = vpop.f32.mrf.mxu0 }
0x1044   :  { %v6493_v51 = vadd.f32 %v6481_v63, %v6454_v23  ;;  %v6527_v6 = vpop.f32.mrf.mxu2 }
0x1045   :  { %v6598_v50 = vpop.f32.mrf.mxu1 }
0x1046   :  { %v6532_v39 = vadd.f32 %v6520_v5, %v6493_v51 }
0x1048   :  { %v6571_v9 = vadd.f32 %v6559_v38, %v6532_v39 }
0x104a   :  { %v6610_v13 = vadd.f32 %v6598_v50, %v6571_v9 }
0x104b   :  { %v6483_v27 = vpop.f32.mrf.mxu3  ;;  %v6561_v25 = vpop.f32.mrf.mxu0 }
0x104c   :  { %v6671_v40 = vpop.f32.mrf.mxu2  ;;  %v6494_v56 = vadd.f32 %v6483_v27, %v6455_v59 }
0x104d   :  { %v6600_v44 = vpop.f32.mrf.mxu1 }
0x104e   :  { %v6533_v28 = vadd.f32 %v6522_v15, %v6494_v56 }
0x1050   :  { %v6572_v11 = vadd.f32 %v6561_v25, %v6533_v28 }
0x1052   :  { %v6611_v29 = vadd.f32 %v6600_v44, %v6572_v11 }
0x1053   :  { %v6486_v49 = vpop.f32.mrf.mxu3  ;;  %v6564_v45 = vpop.f32.mrf.mxu0 }
0x1054   :  { %v6673_v14 = vpop.f32.mrf.mxu2  ;;  %v6495_v42 = vadd.f32 %v6486_v49, %v6456_v53 }
0x1055   :  { %v6603_v52 = vpop.f32.mrf.mxu1 }
0x1056   :  { %v6534_v20 = vadd.f32 %v6525_v62, %v6495_v42 }
0x1058   :  { %v6573_v46 = vadd.f32 %v6564_v45, %v6534_v20 }
0x105a   :  { %v6612_v54 = vadd.f32 %v6603_v52, %v6573_v46 }
0x105b   :  { %v6488_v60 = vpop.f32.mrf.mxu3  ;;  %v6566_v58 = vpop.f32.mrf.mxu0 }
0x105c   :  { %v6676_v4 = vpop.f32.mrf.mxu2  ;;  %v6496_v43 = vadd.f32 %v6488_v60, %v6457_v33 }
0x105d   :  { %v6605_v41 = vpop.f32.mrf.mxu1 }
0x105e   :  { %v6535_v1 = vadd.f32 %v6527_v6, %v6496_v43 }
0x1063   :  { %v6632_v24 = vpop.f32.mrf.mxu3  ;;  %v6710_v57 = vpop.f32.mrf.mxu0 }
0x1064   :  { %v6678_v26 = vpop.f32.mrf.mxu2  ;;  %v6647_v10 = vadd.f32 %v6632_v24, %v6608_v48  ;;  %v6574_v48 = vadd.f32 %v6566_v58, %v6535_v1 }
0x1065   :  { %v6749_v36 = vpop.f32.mrf.mxu1 }
0x1066   :  { %v6686_v31 = vadd.f32 %v6671_v40, %v6647_v10  ;;  %v6613_v38 = vadd.f32 %v6605_v41, %v6574_v48 }
0x1068   :  { %v6725_v2 = vadd.f32 %v6710_v57, %v6686_v31 }
0x106a   :  { %v6764_v16 = vadd.f32 %v6749_v36, %v6725_v2 }
0x106b   :  { %v6634_v23 = vpop.f32.mrf.mxu3  ;;  %v6712_v18 = vpop.f32.mrf.mxu0 }
0x106c   :  { %v6681_v8 = vpop.f32.mrf.mxu2  ;;  %v6648_v50 = vadd.f32 %v6634_v23, %v12242_v61 }
0x106d   :  { %v6751_v37 = vpop.f32.mrf.mxu1 }
0x106e   :  { %v6687_v49 = vadd.f32 %v6673_v14, %v6648_v50 }
0x1070   :  { %v6726_v58 = vadd.f32 %v6712_v18, %v6687_v49 }
0x1072   :  { %v6765_v24 = vadd.f32 %v6751_v37, %v6726_v58 }
0x1073   :  { %v6637_v34 = vpop.f32.mrf.mxu3  ;;  %v6715_v21 = vpop.f32.mrf.mxu0 }
0x1074   :  { %v6649_v53 = vadd.f32 %v6637_v34, %v6610_v13  ;;  %v6770_v13 = vsel %vm4157_vm15, %v6764_v16, 0.0  ;;  %v6683_v25 = vpop.f32.mrf.mxu2  ;;  %v6773_v57 = vsel %vm4157_vm15, %v6765_v24, 0.0 }
0x1075   :  { %v6754_v30 = vpop.f32.mrf.mxu1 }
0x1076   :  { %v6688_v33 = vadd.f32 %v6676_v4, %v6649_v53 }
0x1078   :  { %v6727_v62 = vadd.f32 %v6715_v21, %v6688_v33 }
0x107a   :  { %v6766_v45 = vadd.f32 %v6754_v30, %v6727_v62 }
0x107b   :  { %v6639_v12 = vpop.f32.mrf.mxu3  ;;  %v6717_v17 = vpop.f32.mrf.mxu0 }
0x107c   :  { %v6650_v3 = vadd.f32 %v6639_v12, %v6611_v29  ;;  %v6776_v61 = vsel %vm4157_vm15, %v6766_v45, 0.0 }
0x107d   :  { %v6756_v0 = vpop.f32.mrf.mxu1 }
0x107e   :  { %v6689_v5 = vadd.f32 %v6678_v26, %v6650_v3 }
0x1080   :  { %v6728_v59 = vadd.f32 %v6717_v17, %v6689_v5 }
0x1082   :  { %v6767_v22 = vadd.f32 %v6756_v0, %v6728_v59 }
0x1083   :  { %v6642_v55 = vpop.f32.mrf.mxu3  ;;  %v6720_v15 = vpop.f32.mrf.mxu0 }
0x1084   :  { %v6651_v7 = vadd.f32 %v6642_v55, %v6612_v54  ;;  %v6779_v19 = vsel %vm4157_vm15, %v6767_v22, 0.0 }
0x1085   :  { %6780 = vadd.xlane.f32.xlu1 %v6779_v19  ;;  %v6759_v47 = vpop.f32.mrf.mxu1 }
0x1086   :  { %v6690_v32 = vadd.f32 %v6681_v8, %v6651_v7 }
0x1088   :  { %v6729_v63 = vadd.f32 %v6720_v15, %v6690_v32 }
0x108a   :  { %v6768_v51 = vadd.f32 %v6759_v47, %v6729_v63 }
0x108b   :  { %v6644_v39 = vpop.f32.mrf.mxu3  ;;  %v6722_v6 = vpop.f32.mrf.mxu0 }
0x108c   :  { %v6652_v9 = vadd.f32 %v6644_v39, %v6613_v38  ;;  %v6782_v27 = vsel %vm4157_vm15, %v6768_v51, 0.0 }
0x108d   :  { %6771 = vadd.xlane.f32.xlu1 %v6770_v13  ;;  %6783 = vadd.xlane.f32.xlu2 %v6782_v27  ;;  %v6761_v40 = vpop.f32.mrf.mxu1 }
0x108e   :  { %v6691_v44 = vadd.f32 %v6683_v25, %v6652_v9 }
0x1090   :  { %v6730_v52 = vadd.f32 %v6722_v6, %v6691_v44 }
0x1092   :  { %v6769_v60 = vadd.f32 %v6761_v40, %v6730_v52 }
0x1094   :  { %v6785_v41 = vsel %vm4157_vm15, %v6769_v60, 0.0 }
0x1095   :  { %6777 = vadd.xlane.f32.xlu2 %v6776_v61  ;;  %6786 = vadd.xlane.f32.xlu0 %v6785_v41 }
0x109d   :  { %6774 = vadd.xlane.f32.xlu0 %v6773_v57 }
0x10f8   :  { %v6781_v36 = vpop.xlane.xlu1 %6780 }
0x10f9   :  { %v6791_v23 = vmul.f32 %v6781_v36, %v10980_v35 }
0x10fb   :  { %v12252_v56 = vsub.f32 %v6767_v22, %v6791_v23 }
0x10fd   :  { %v6803_v14 = vmul.f32 %v12252_v56, %v12252_v56 }
0x10ff   :  { %v6815_v18 = vsel %vm4157_vm15, %v6803_v14, 0.0 }
0x1100   :  { %6816 = vadd.xlane.f32.xlu1 %v6815_v18  ;;  %v6772_v4 = vpop.xlane.xlu1 %6771  ;;  %v6784_v28 = vpop.xlane.xlu2 %6783 }
0x1101   :  { %v6788_v34 = vmul.f32 %v6772_v4, %v10980_v35  ;;  %v6792_v37 = vmul.f32 %v6784_v28, %v10980_v35 }
0x1103   :  { %v12259_v21 = vsub.f32 %v6764_v16, %v6788_v34  ;;  %v12261_v30 = vsub.f32 %v6768_v51, %v6792_v37 }
0x1105   :  { %v6800_v11 = vmul.f32 %v12259_v21, %v12259_v21  ;;  %v6804_v42 = vmul.f32 %v12261_v30, %v12261_v30 }
0x1107   :  { %v6806_v26 = vsel %vm4157_vm15, %v6800_v11, 0.0  ;;  %v6818_v29 = vsel %vm4157_vm15, %v6804_v42, 0.0 }
0x1108   :  { %6807 = vadd.xlane.f32.xlu1 %v6806_v26  ;;  %v6778_v20 = vpop.xlane.xlu2 %6777  ;;  %6819 = vadd.xlane.f32.xlu0 %v6818_v29  ;;  %v6787_v12 = vpop.xlane.xlu0 %6786  ;;  %v8955_v26 = vld [vmem:[%s12381_s11] ss:$0 sm:$0xff] }
0x1109   :  { %v6793_v17 = vmul.f32 %v6787_v12, %v10980_v35  ;;  %v6790_v10 = vmul.f32 %v6778_v20, %v10980_v35 }
0x110b   :  { %v12271_v3 = vsub.f32 %v6769_v60, %v6793_v17  ;;  %v12275_v46 = vsub.f32 %v6766_v45, %v6790_v10 }
0x110d   :  { %v6805_v0 = vmul.f32 %v12271_v3, %v12271_v3  ;;  %v6802_v54 = vmul.f32 %v12275_v46, %v12275_v46 }
0x110f   :  { %v6821_v43 = vsel %vm4157_vm15, %v6805_v0, 0.0  ;;  %v6812_v22 = vsel %vm4157_vm15, %v6802_v54, 0.0  ;;  %v8956_v0 = vld [vmem:[%s12382_s12] ss:$0 sm:$0xff] }
0x1110   :  { %6822 = vadd.xlane.f32.xlu2 %v6821_v43  ;;  %v6775_v5 = vpop.xlane.xlu0 %6774 }
0x1111   :  { %v6789_v31 = vmul.f32 %v6775_v5, %v10980_v35 }
0x1113   :  { %v12279_v59 = vsub.f32 %v6765_v24, %v6789_v31 }
0x1115   :  { %v6801_v1 = vmul.f32 %v12279_v59, %v12279_v59 }
0x1117   :  { %v6809_v55 = vsel %vm4157_vm15, %v6801_v1, 0.0 }
0x1118   :  { %6813 = vadd.xlane.f32.xlu2 %v6812_v22  ;;  %6810 = vadd.xlane.f32.xlu0 %v6809_v55 }
0x1173   :  { %v6817_v8 = vpop.xlane.xlu1 %6816 }
0x1174   :  { %v6827_v2 = vmul.f32 %v6817_v8, %v10980_v35 }
0x1176   :  { %v6833_v53 = vadd.f32 1e-05, %v6827_v2 }
0x1178   :  { %8816 = vrsqrt.f32 %v6833_v53  ;;  %vm6872_vm8 = vweird.f32 %v6833_v53 }
0x117b   :  { %v6808_v7 = vpop.xlane.xlu1 %6807  ;;  %v6820_v19 = vpop.xlane.xlu0 %6819 }
0x117c   :  { %v6824_v15 = vmul.f32 %v6808_v7, %v10980_v35  ;;  %v6828_v48 = vmul.f32 %v6820_v19, %v10980_v35  ;;  %v8957_v19 = vld [vmem:[%s12384_s1 + $0x30] sm:$0xff] }
0x117e   :  { %v8817_v32 = vpop.eup %8816  ;;  %v6830_v47 = vadd.f32 1e-05, %v6824_v15  ;;  %v6834_v16 = vadd.f32 1e-05, %v6828_v48 }
0x117f   :  { %v6867_v33 = vmul.f32 %v8817_v32, %v6833_v53  ;;  %vm6873_vm11 = vweird.f32 %v8817_v32 }
0x1180   :  { %8818 = vrsqrt.f32 %v6830_v47  ;;  %vm6842_vm6 = vweird.f32 %v6830_v47  ;;  %vm6882_vm5 = vweird.f32 %v6834_v16  ;;  %vm6874_vm1 = vmor %vm6872_vm8, %vm6873_vm11 }
0x1181   :  { %8820 = vrsqrt.f32 %v6834_v16  ;;  %v6868_v63 = vmul.f32 %v8817_v32, %v6867_v33 }
0x1183   :  { %v6823_v38 = vpop.xlane.xlu2 %6822  ;;  %v6869_v9 = vmul.f32 0.5, %v6868_v63 }
0x1184   :  { %v6829_v51 = vmul.f32 %v6823_v38, %v10980_v35 }
0x1185   :  { %v6870_v6 = vsub.f32 1.5, %v6869_v9 }
0x1186   :  { %v8819_v50 = vpop.eup %8818  ;;  %v6835_v39 = vadd.f32 1e-05, %v6829_v51 }
0x1187   :  { %v8821_v62 = vpop.eup %8820  ;;  %v6837_v13 = vmul.f32 %v8819_v50, %v6830_v47  ;;  %vm6843_vm12 = vweird.f32 %v8819_v50  ;;  %v6871_v23 = vmul.f32 %v8817_v32, %v6870_v6 }
0x1188   :  { %v6877_v27 = vmul.f32 %v8821_v62, %v6834_v16  ;;  %8822 = vrsqrt.f32 %v6835_v39  ;;  %vm6883_vm13 = vweird.f32 %v8821_v62  ;;  %vm6844_vm7 = vmor %vm6842_vm6, %vm6843_vm12  ;;  %vm6892_vm3 = vweird.f32 %v6835_v39 }
0x1189   :  { %v6838_v25 = vmul.f32 %v8819_v50, %v6837_v13  ;;  %vm6884_vm0 = vmor %vm6882_vm5, %vm6883_vm13  ;;  %v6875_v11 = vsel %vm6874_vm1, %v8817_v32, %v6871_v23 }
0x118a   :  { %v6878_v44 = vmul.f32 %v8821_v62, %v6877_v27  ;;  %v6899_v10 = vmul.f32 %v6875_v11, %v12252_v56  ;;  %v12792_v11 = vld [vmem:[#allocation14_spill] sm:$0xff] }
0x118b   :  { %v6839_v49 = vmul.f32 0.5, %v6838_v25  ;;  %v6814_v45 = vpop.xlane.xlu2 %6813  ;;  %v6811_v52 = vpop.xlane.xlu0 %6810 }
0x118c   :  { %v6879_v40 = vmul.f32 0.5, %v6878_v44  ;;  %v6826_v60 = vmul.f32 %v6814_v45, %v10980_v35  ;;  %v6825_v58 = vmul.f32 %v6811_v52, %v10980_v35  ;;  %v6905_v53 = vmul.f32 %v8955_v26, %v6899_v10 }
0x118d   :  { %v6840_v61 = vsub.f32 1.5, %v6839_v49 }
0x118e   :  { %v8823_v41 = vpop.eup %8822  ;;  %v6880_v24 = vsub.f32 1.5, %v6879_v40  ;;  %v6832_v57 = vadd.f32 1e-05, %v6826_v60  ;;  %v12293_v36 = vadd.f32 1e-05, %v6825_v58 }
0x118f   :  { %v6841_v14 = vmul.f32 %v8819_v50, %v6840_v61  ;;  %v6887_v18 = vmul.f32 %v8823_v41, %v6835_v39  ;;  %vm6893_vm10 = vweird.f32 %v8823_v41 }
0x1190   :  { %v6881_v4 = vmul.f32 %v8821_v62, %v6880_v24  ;;  %8824 = vrsqrt.f32 %v6832_v57  ;;  %vm6894_vm11 = vmor %vm6892_vm3, %vm6893_vm10  ;;  %vm6852_vm5 = vweird.f32 %v12293_v36 }
0x1191   :  { %v6845_v28 = vsel %vm6844_vm7, %v8819_v50, %v6841_v14  ;;  %v6888_v35 = vmul.f32 %v8823_v41, %v6887_v18  ;;  %8826 = vrsqrt.f32 %v12293_v36  ;;  %vm6862_vm7 = vweird.f32 %v6832_v57  ;;  %v12786_v14 = vld [vmem:[#allocation10_spill] sm:$0xff]  ;;  %v12787_v18 = vld [vmem:[#allocation9_spill] sm:$0xff] }
0x1192   :  { %v6896_v34 = vmul.f32 %v6845_v28, %v12259_v21  ;;  %v6885_v37 = vsel %vm6884_vm0, %v8821_v62, %v6881_v4  ;;  %v12788_v4 = vpack.i.bf16 %v12786_v14, %v12787_v18 }
0x1193   :  { %v6889_v42 = vmul.f32 0.5, %v6888_v35  ;;  %v6900_v20 = vmul.f32 %v6885_v37, %v12261_v30  ;;  %v12789_v35 = vld [vmem:[#allocation18_spill] sm:$0xff] }
0x1194   :  { %v6902_v29 = vmul.f32 %v8955_v26, %v6896_v34  ;;  %v12790_v34 = vld [vmem:[#allocation17_spill] sm:$0xff] }
0x1195   :  { %v6890_v12 = vsub.f32 1.5, %v6889_v42  ;;  %v6906_v30 = vmul.f32 %v8955_v26, %v6900_v20  ;;  %v12791_v37 = vpack.i.bf16 %v12789_v35, %v12790_v34  ;;  %v12793_v42 = vld [vmem:[#allocation13_spill] sm:$0xff]  ;;  %v8966_v35 = vld [vmem:[#allocation2] sm:$0x1] }
0x1196   :  { %v8825_v17 = vpop.eup %8824  ;;  %v6908_v21 = vadd.f32 %v8956_v0, %v6902_v29 }
0x1197   :  { %v8827_v43 = vpop.eup %8826  ;;  %v6891_v5 = vmul.f32 %v8823_v41, %v6890_v12  ;;  %v6857_v31 = vmul.f32 %v8825_v17, %v6832_v57  ;;  %v6912_v47 = vadd.f32 %v8956_v0, %v6906_v30  ;;  %vm6863_vm13 = vweird.f32 %v8825_v17 }
0x1198   :  { %v6847_v54 = vmul.f32 %v8827_v43, %v12293_v36  ;;  %vm6914_vm12 = vcmp.gt.f32.partialorder %v6908_v21, 0.0  ;;  %v6920_v1 = vmul.f32 0.1, %v6908_v21  ;;  %vm6853_vm6 = vweird.f32 %v8827_v43  ;;  %vm6864_vm8 = vmor %vm6862_vm7, %vm6863_vm13  ;;  %v8959_v36 = vld [vmem:[%s12383_s13] sm:$0xf] }
0x1199   :  { %v6895_v22 = vsel %vm6894_vm11, %v8823_v41, %v6891_v5  ;;  %v6858_v55 = vmul.f32 %v8825_v17, %v6857_v31  ;;  %v6924_v39 = vmul.f32 0.1, %v6912_v47  ;;  %vm6854_vm1 = vmor %vm6852_vm5, %vm6853_vm6  ;;  %vm6918_vm10 = vcmp.gt.f32.partialorder %v6912_v47, 0.0 }
0x119a   :  { %v6901_v8 = vmul.f32 %v6895_v22, %v12271_v3  ;;  %v6848_v56 = vmul.f32 %v8827_v43, %v6847_v54  ;;  %v6926_v2 = vsel %vm6914_vm12, %v6908_v21, %v6920_v1  ;;  %v6911_v3 = vadd.f32 %v8956_v0, %v6905_v53 }
0x119b   :  { %v6859_v7 = vmul.f32 0.5, %v6858_v55  ;;  %v8693_v15 = vpack.i.bf16 %v6926_v2, %v8957_v19  ;;  %v6930_v6 = vsel %vm6918_vm10, %v6912_v47, %v6924_v39  ;;  %v8960_v55 = vld [vmem:[%s12383_s13 + $0x4] sm:$0xf] }
0x119c   :  { %v6849_v48 = vmul.f32 0.5, %v6848_v56  ;;  %v6907_v32 = vmul.f32 %v8955_v26, %v6901_v8  ;;  %v6923_v25 = vmul.f32 0.1, %v6911_v3  ;;  %vm6917_vm3 = vcmp.gt.f32.partialorder %v6911_v3, 0.0 }
0x119d   :  { %v6860_v16 = vsub.f32 1.5, %v6859_v7  ;;  %8694 = vrot.lane.b32.xlu0 %v8693_v15, %s9009_s2 }
0x119e   :  { %v6850_v33 = vsub.f32 1.5, %v6849_v48  ;;  %v6913_v63 = vadd.f32 %v8956_v0, %v6907_v32  ;;  %v6929_v52 = vsel %vm6917_vm3, %v6911_v3, %v6923_v25 }
0x119f   :  { %v6861_v38 = vmul.f32 %v8825_v17, %v6860_v16 }
0x11a0   :  { %v6851_v51 = vmul.f32 %v8827_v43, %v6850_v33  ;;  %vm6919_vm0 = vcmp.gt.f32.partialorder %v6913_v63, 0.0  ;;  %v6925_v50 = vmul.f32 0.1, %v6913_v63 }
0x11a1   :  { %v6865_v62 = vsel %vm6864_vm8, %v8825_v17, %v6861_v38 }
0x11a2   :  { %v6898_v9 = vmul.f32 %v6865_v62, %v12275_v46  ;;  %v6855_v13 = vsel %vm6854_vm1, %v8827_v43, %v6851_v51  ;;  %v6931_v27 = vsel %vm6919_vm0, %v6913_v63, %v6925_v50  ;;  %v8961_v51 = vld [vmem:[%s12383_s13 + $0x8] sm:$0xf] }
0x11a3   :  { %v6897_v44 = vmul.f32 %v6855_v13, %v12279_v59  ;;  %6942 = vmatpush.msrb.mxu3 %v6931_v27  ;;  %v8958_v59 = vld [vmem:[%s12384_s1 + $0x38] sm:$0xff]  ;;  %v8728_v23 = vpack.i.bf16 %v6930_v6, %v6931_v27 }
0x11a4   :  { %v6904_v49 = vmul.f32 %v8955_v26, %v6898_v9 }
0x11a5   :  { %v6903_v45 = vmul.f32 %v8955_v26, %v6897_v44  ;;  %6943 = vmatpush.msrb.mxu3 %v6930_v6  ;;  %v12794_v26 = vpack.i.bf16 %v12792_v11, %v12793_v42 }
0x11a6   :  { %v6910_v40 = vadd.f32 %v8956_v0, %v6904_v49  ;;  %v8962_v49 = vld [vmem:[%s12383_s13 + $0xc] sm:$0xf] }
0x11a7   :  { %v6909_v60 = vadd.f32 %v8956_v0, %v6903_v45  ;;  %6944 = vmatpush.msrb.mxu3 %v6929_v52 }
0x11a8   :  { %vm6916_vm11 = vcmp.gt.f32.partialorder %v6910_v40, 0.0  ;;  %v6922_v58 = vmul.f32 0.1, %v6910_v40 }
0x11a9   :  { %vm6915_vm12 = vcmp.gt.f32.partialorder %v6909_v60, 0.0  ;;  %v6921_v61 = vmul.f32 0.1, %v6909_v60 }
0x11aa   :  { %v6928_v46 = vsel %vm6916_vm11, %v6910_v40, %v6922_v58  ;;  %v8964_v58 = vld [vmem:[%s12386_s15] sm:$0xf] }
0x11ab   :  { %6945 = vmatpush.msrb.mxu3 %v6928_v46  ;;  %v8703_v41 = vpack.i.bf16 %v6928_v46, %v6929_v52  ;;  %v6927_v24 = vsel %vm6915_vm12, %v6909_v60, %v6921_v61  ;;  %v8963_v52 = vld [vmem:[%s12385_s14] sm:$0xf] }
0x11ac   :  { %v8698_v57 = vpack.i.bf16 %v6927_v24, %v8958_v59  ;;  %v8718_v28 = vpack.i.bf16 %v6926_v2, %v6927_v24 }
0x11ad   :  { %8704 = vrot.lane.b32.xlu1 %v8703_v41, %s9009_s2  ;;  %8709 = vrot.lane.b32.xlu0 %v8703_v41, %s9008_s26 }
0x11ae   :  { %8699 = vrot.lane.b32.xlu2 %v8698_v57, %s9009_s2  ;;  %6946 = vmatpush.msrb.mxu3 %v6927_v24 }
0x11b0   :  { %6947 = vmatpush.msrb.mxu3 %v6926_v2 }
0x11b1   :  { %8363 = vmatmul.msk.f32.vlgmr.msrb.gmra.mxu3 %vm3190_vm9, %v8959_v36 }
0x11b5   :  { %8724 = vrot.lane.b32.xlu1 %v12788_v4, %s9009_s2  ;;  %8729 = vrot.lane.b32.xlu0 %v8728_v23, %s9008_s26  ;;  %v8965_v4 = vld [vmem:[%s12387_s16] sm:$0x1] }
0x11b6   :  { %8714 = vrot.lane.b32.xlu2 %v8728_v23, %s9009_s2 }
0x11bd   :  { %8739 = vrot.lane.b32.xlu1 %v8728_v23, %s9010_s28  ;;  %8734 = vrot.lane.b32.xlu0 %v8703_v41, %s9010_s28 }
0x11be   :  { %8719 = vrot.lane.b32.xlu2 %v8718_v28, %s9008_s26 }
0x11c5   :  { %8749 = vrot.lane.b32.xlu1 %v8718_v28, %s9010_s28  ;;  %8754 = vrot.lane.b32.xlu0 %v12791_v37, %s9009_s2 }
0x11c6   :  { %8744 = vrot.lane.b32.xlu2 %v12794_v26, %s9009_s2 }
0x1208   :  { %v8700_v29 = vpop.permute.xlu2 %8699 }
0x1209   :  { %v8702_v31 = vunpack.i.h.bf16 %v8700_v29  ;;  %v8701_v16 = vunpack.i.l.bf16 %v8700_v29 }
0x120f   :  { %v8695_v10 = vpop.permute.xlu0 %8694 }
0x1210   :  { %v8715_v20 = vpop.permute.xlu2 %8714  ;;  %v8697_v54 = vunpack.i.h.bf16 %v8695_v10  ;;  %v8696_v63 = vunpack.i.l.bf16 %v8695_v10 }
0x1211   :  { %v8716_v12 = vunpack.i.l.bf16 %v8715_v20  ;;  %v8717_v17 = vunpack.i.h.bf16 %v8715_v20 }
0x1213   :  { %6987 = vmatpush.msrb.mxu2 %v8716_v12 }
0x1215   :  { %6988 = vmatpush.msrb.mxu2 %v8717_v17 }
0x1218   :  { %v8720_v2 = vpop.permute.xlu2 %8719 }
0x1219   :  { %v8721_v19 = vunpack.i.l.bf16 %v8720_v2  ;;  %v8722_v32 = vunpack.i.h.bf16 %v8720_v2 }
0x121f   :  { %v8705_v0 = vpop.permute.xlu1 %8704  ;;  %v8710_v21 = vpop.permute.xlu0 %8709 }
0x1220   :  { %v8706_v43 = vunpack.i.l.bf16 %v8705_v0  ;;  %v8707_v5 = vunpack.i.h.bf16 %v8705_v0  ;;  %v8711_v56 = vunpack.i.l.bf16 %v8710_v21  ;;  %v8712_v53 = vunpack.i.h.bf16 %v8710_v21  ;;  %v8745_v38 = vpop.permute.xlu2 %8744 }
0x1221   :  { %v8746_v13 = vunpack.i.l.bf16 %v8745_v38  ;;  %v8747_v44 = vunpack.i.h.bf16 %v8745_v38 }
0x1222   :  { %6989 = vmatpush.msrb.mxu2 %v8706_v43 }
0x1224   :  { %6990 = vmatpush.msrb.mxu2 %v8707_v5 }
0x1226   :  { %6991 = vmatpush.msrb.mxu2 %v8702_v31 }
0x1227   :  { %v8725_v1 = vpop.permute.xlu1 %8724  ;;  %v8730_v30 = vpop.permute.xlu0 %8729 }
0x1228   :  { %v8731_v22 = vunpack.i.l.bf16 %v8730_v30  ;;  %6992 = vmatpush.msrb.mxu2 %v8697_v54  ;;  %v8732_v8 = vunpack.i.h.bf16 %v8730_v30  ;;  %v8726_v50 = vunpack.i.l.bf16 %v8725_v1  ;;  %v8727_v9 = vunpack.i.h.bf16 %v8725_v1 }
0x1229   :  { %8364 = vmatmul.msk.f32.vlgmr.msrb.gmra.mxu2 %vm3190_vm9, %v8960_v55 }
0x122a   :  { %7026 = vmatpush.msra.mxu3 %v8731_v22 }
0x122c   :  { %7027 = vmatpush.msra.mxu3 %v8732_v8 }
0x122e   :  { %7028 = vmatpush.msra.mxu3 %v8711_v56 }
0x122f   :  { %v8740_v7 = vpop.permute.xlu1 %8739  ;;  %v8735_v48 = vpop.permute.xlu0 %8734 }
0x1230   :  { %v8741_v15 = vunpack.i.l.bf16 %v8740_v7  ;;  %7029 = vmatpush.msra.mxu3 %v8712_v53  ;;  %v8742_v47 = vunpack.i.h.bf16 %v8740_v7  ;;  %v8736_v33 = vunpack.i.l.bf16 %v8735_v48  ;;  %v8737_v3 = vunpack.i.h.bf16 %v8735_v48 }
0x1232   :  { %7030 = vmatpush.msra.mxu3 %v8721_v19  ;;  %7065 = vmatpush.msra.mxu2 %v8741_v15 }
0x1234   :  { %7031 = vmatpush.msra.mxu3 %v8722_v32  ;;  %7066 = vmatpush.msra.mxu2 %v8742_v47  ;;  %v6949_v40 = vpop.f32.mrf.mxu3 }
0x1235   :  { %8365 = vmatmul.msk.f32.vlgmr.msra.gmra.mxu3 %vm3190_vm9, %v8961_v51  ;;  %v6952_v61 = vadd.f32 %v8964_v58, %v6949_v40 }
0x1236   :  { %7116 = vmatpush.msrb.mxu3 %v8701_v16  ;;  %7067 = vmatpush.msra.mxu2 %v8736_v33 }
0x1237   :  { %v8750_v39 = vpop.permute.xlu1 %8749  ;;  %v8755_v25 = vpop.permute.xlu0 %8754 }
0x1238   :  { %7117 = vmatpush.msrb.mxu3 %v8696_v63  ;;  %v8751_v62 = vunpack.i.l.bf16 %v8750_v39  ;;  %7068 = vmatpush.msra.mxu2 %v8737_v3  ;;  %v8752_v27 = vunpack.i.h.bf16 %v8750_v39  ;;  %v8756_v6 = vunpack.i.l.bf16 %v8755_v25  ;;  %v8757_v45 = vunpack.i.h.bf16 %v8755_v25 }
0x123a   :  { %7118 = vmatpush.msrb.mxu3 %v8726_v50  ;;  %7069 = vmatpush.msra.mxu2 %v8751_v62 }
0x123c   :  { %7119 = vmatpush.msrb.mxu3 %v8727_v9  ;;  %7070 = vmatpush.msra.mxu2 %v8752_v27 }
0x123d   :  { %8366 = vmatmul.msk.f32.vlgmr.msra.gmra.mxu2 %vm3190_vm9, %v8962_v49 }
0x123e   :  { %7120 = vmatpush.msrb.mxu3 %v8746_v13 }
0x1240   :  { %7121 = vmatpush.msrb.mxu3 %v8747_v44 }
0x1242   :  { %7122 = vmatpush.msrb.mxu3 %v8756_v6 }
0x1244   :  { %7123 = vmatpush.msrb.mxu3 %v8757_v45 }
0x1245   :  { %8367 = vmatmul.msk.f32.vlgmr.msrb.gmra.mxu3 %vm4489_vm14, %v8963_v52 }
0x12ac   :  { %v6994_v60 = vpop.f32.mrf.mxu2 }
0x12ad   :  { %v6997_v41 = vadd.f32 %v6994_v60, %v6952_v61 }
0x12b8   :  { %v7033_v46 = vpop.f32.mrf.mxu3 }
0x12b9   :  { %v7036_v59 = vadd.f32 %v7033_v46, %v6997_v41 }
0x12c0   :  { %v7072_v24 = vpop.f32.mrf.mxu2 }
0x12c1   :  { %v7075_v57 = vadd.f32 %v7072_v24, %v7036_v59 }
0x12c8   :  { %v7125_v36 = vpop.f32.mrf.mxu3 }
0x12c9   :  { %v7128_v23 = vadd.f32 %v7125_v36, %v7075_v57 }
0x12cb   :  { %vm7129_vm9 = vcmp.gt.f32.partialorder %v7128_v23, 0.0  ;;  %v7130_v14 = vmul.f32 0.2, %v7128_v23 }
0x12cd   :  { %v7131_v18 = vsel %vm7129_vm9, %v7128_v23, %v7130_v14 }
0x12ce   :  { %8368 = vmatpush.msk.msrb.mxu2 %vm1356_vm4, %v7131_v18 }
0x12cf   :  { %8369 = vmatmul.msk.f32.vlgmr.msrb.gmra.mxu2 %vm4157_vm15, %v8965_v4 }
0x1352   :  { %v7152_v28 = vpop.f32.mrf.mxu2 }
0x1353   :  { %v7153_v34 = vadd.f32 %v8966_v35, %v7152_v28 }
0x1355   :  { %7155 = vst.msk [vmem:[%s12389_s18 + $0x1] sm:$0x1] %vm4543_vm2, %v7153_v34 }

</bundles_post_ra>
